<compile_context>
chip_gen: v7x
topology: tpu7x:2x2x1
jax: 0.10.0
libtpu: 0.0.40
codegen_flags: <defaults>
</compile_context>

<pallas_src>
import functools
import math

import jax
import jax.numpy as jnp
from jax.experimental import pallas as pl
from jax.experimental.pallas import tpu as pltpu

jax.config.update("jax_default_matmul_precision", "highest")


# ----------------------------------------------------------------------------- utils
def _round_up(x, m):
    return ((x + m - 1) // m) * m


def _pick_tile(n, target):
    """Largest 128-multiple tile <= target that divides n, else the full dim."""
    if n <= target:
        return n
    t = (target // 128) * 128
    while t >= 128:
        if n % t == 0:
            return t
        t -= 128
    return n


def _llama_hidden_dim(hidden_dim, multiple_of, ffn_dim_multiplier):
    hidden_dim = int(2 * hidden_dim / 3)
    if ffn_dim_multiplier is not None:
        hidden_dim = int(ffn_dim_multiplier * hidden_dim)
    return multiple_of * ((hidden_dim + multiple_of - 1) // multiple_of)


# ----------------------------------------------------------------------------- RMSNorm
def _rmsnorm_kernel(x_ref, w_ref, o_ref, *, eps):
    x = x_ref[...]
    xf = x.astype(jnp.float32)
    inv = jax.lax.rsqrt(jnp.mean(xf * xf, axis=-1, keepdims=True) + eps)
    normed = (xf * inv).astype(x.dtype)          # matches .type_as(x) in the reference
    o_ref[...] = (normed * w_ref[...]).astype(o_ref.dtype)


def rmsnorm(x, w, eps):
    orig_shape = x.shape
    D = x.shape[-1]
    x2d = x.reshape(-1, D)
    tokens = x2d.shape[0]
    tm = min(256, _round_up(tokens, 8))
    padded = _round_up(tokens, tm)
    if padded != tokens:
        x2d = jnp.pad(x2d, ((0, padded - tokens), (0, 0)))

    out = pl.pallas_call(
        functools.partial(_rmsnorm_kernel, eps=eps),
        out_shape=jax.ShapeDtypeStruct((padded, D), x.dtype),
        grid_spec=pltpu.PrefetchScalarGridSpec(
            num_scalar_prefetch=0,
            grid=(padded // tm,),
            in_specs=[
                pl.BlockSpec((tm, D), lambda i: (i, 0)),
                pl.BlockSpec((1, D), lambda i: (0, 0)),
            ],
            out_specs=pl.BlockSpec((tm, D), lambda i: (i, 0)),
        ),
        compiler_params=pltpu.CompilerParams(dimension_semantics=("parallel",)),
    )(x2d, w.reshape(1, D))
    return out[:tokens].reshape(orig_shape)


# ----------------------------------------------------------------------------- matmul
def _matmul_kernel(a_ref, b_ref, o_ref, acc_ref):
    @pl.when(pl.program_id(2) == 0)
    def _():
        acc_ref[...] = jnp.zeros_like(acc_ref)

    acc_ref[...] += jnp.dot(a_ref[...], b_ref[...],
                            preferred_element_type=jnp.float32)

    @pl.when(pl.program_id(2) == pl.num_programs(2) - 1)
    def _():
        o_ref[...] = acc_ref[...].astype(o_ref.dtype)


def pallas_matmul(a, b, *, tm_target=256, tn_target=512, tk_target=512):
    """a: (M, K), b: (K, N) -> (M, N). M is padded to the token tile."""
    M, K = a.shape
    _, N = b.shape
    tm = min(tm_target, _round_up(M, 8))
    Mp = _round_up(M, tm)
    if Mp != M:
        a = jnp.pad(a, ((0, Mp - M), (0, 0)))
    tn = _pick_tile(N, tn_target)
    tk = _pick_tile(K, tk_target)

    cost = pl.CostEstimate(
        flops=2 * M * N * K,
        transcendentals=0,
        bytes_accessed=(M * K + K * N + M * N) * a.dtype.itemsize,
    )

    out = pl.pallas_call(
        _matmul_kernel,
        out_shape=jax.ShapeDtypeStruct((Mp, N), a.dtype),
        grid_spec=pltpu.PrefetchScalarGridSpec(
            num_scalar_prefetch=0,
            grid=(Mp // tm, N // tn, K // tk),
            in_specs=[
                pl.BlockSpec((tm, tk), lambda i, j, k: (i, k)),
                pl.BlockSpec((tk, tn), lambda i, j, k: (k, j)),
            ],
            out_specs=pl.BlockSpec((tm, tn), lambda i, j, k: (i, j)),
            scratch_shapes=[pltpu.VMEM((tm, tn), jnp.float32)],
        ),
        compiler_params=pltpu.CompilerParams(
            dimension_semantics=("parallel", "parallel", "arbitrary"),
            vmem_limit_bytes=64 * 1024 * 1024),
        cost_estimate=cost,
    )(a, b)
    return out[:M]


# ----------------------------------------------------------------------------- attention core
def _attn_core_kernel(q_ref, k_ref, v_ref, mask_ref, o_ref, *, scale):
    q = q_ref[0].astype(jnp.float32)          # (S, Dh)
    k = k_ref[0].astype(jnp.float32)          # (S_kv, Dh)
    v = v_ref[0]                              # (S_kv, Dh)
    s = jax.lax.dot_general(q, k, (((1,), (1,)), ((), ())),
                            preferred_element_type=jnp.float32) * scale
    s = s + mask_ref[...]
    m = jnp.max(s, axis=-1, keepdims=True)
    p = jnp.exp(s - m)
    p = p / jnp.sum(p, axis=-1, keepdims=True)
    o = jnp.dot(p.astype(v.dtype), v, preferred_element_type=jnp.float32)
    o_ref[0] = o.astype(o_ref.dtype)


def attention_core(q, k, v, mask):
    """q: (B*H, S, Dh), k/v: (B*H, S_kv, Dh), mask: (S, S_kv) -> (B*H, S, Dh)."""
    # TODO(synk): whole (S, S_kv) score tile is kept resident per head; switch to a
    # flash-attention style KV-tiled kernel for long sequences.
    BH, S, Dh = q.shape
    S_kv = k.shape[1]
    scale = 1.0 / math.sqrt(Dh)
    return pl.pallas_call(
        functools.partial(_attn_core_kernel, scale=scale),
        out_shape=jax.ShapeDtypeStruct((BH, S, Dh), q.dtype),
        grid_spec=pltpu.PrefetchScalarGridSpec(
            num_scalar_prefetch=0,
            grid=(BH,),
            in_specs=[
                pl.BlockSpec((1, S, Dh), lambda b: (b, 0, 0)),
                pl.BlockSpec((1, S_kv, Dh), lambda b: (b, 0, 0)),
                pl.BlockSpec((1, S_kv, Dh), lambda b: (b, 0, 0)),
                pl.BlockSpec((S, S_kv), lambda b: (0, 0)),
            ],
            out_specs=pl.BlockSpec((1, S, Dh), lambda b: (b, 0, 0)),
        ),
        compiler_params=pltpu.CompilerParams(dimension_semantics=("parallel",)),
    )(q, k, v, mask)


# ----------------------------------------------------------------------------- SwiGLU FFN
def _ffn_kernel(x_ref, w13_ref, w2_ref, o_ref, acc_ref):
    k = pl.program_id(1)

    @pl.when(k == 0)
    def _():
        acc_ref[...] = jnp.zeros_like(acc_ref)

    th = w13_ref.shape[1] // 2
    h = jnp.dot(x_ref[...], w13_ref[...], preferred_element_type=jnp.float32)
    h1 = h[:, :th]
    h3 = h[:, th:]
    gated = (h1 * jax.nn.sigmoid(h1)) * h3          # SiLU gate in f32
    acc_ref[...] += jnp.dot(gated.astype(w2_ref.dtype), w2_ref[...],
                            preferred_element_type=jnp.float32)

    @pl.when(k == pl.num_programs(1) - 1)
    def _():
        o_ref[...] = acc_ref[...].astype(o_ref.dtype)


def feed_forward(x, w1, w3, w2, *, tm_target=256, th_target=512):
    """x: (B, S, D); w1/w3: (D, H); w2: (H, D) -> (B, S, D)."""
    B, S, D = x.shape
    H = w1.shape[1]
    tokens = B * S
    x2d = x.reshape(tokens, D)

    tm = min(tm_target, _round_up(tokens, 8))
    Tp = _round_up(tokens, tm)
    if Tp != tokens:
        x2d = jnp.pad(x2d, ((0, Tp - tokens), (0, 0)))

    th = _pick_tile(H, th_target)
    nk = H // th
    # Fuse w1/w3 so hidden chunk k occupies adjacent columns [w1_chunk_k | w3_chunk_k].
    w13 = jnp.concatenate(
        [w1.reshape(D, nk, th), w3.reshape(D, nk, th)], axis=2).reshape(D, 2 * H)

    itemsize = x.dtype.itemsize
    cost = pl.CostEstimate(
        flops=6 * tokens * D * H,                                   # 2*T*D*2H + 2*T*H*D
        transcendentals=tokens * H,                                 # sigmoid
        bytes_accessed=(2 * tokens * D + 3 * D * H) * itemsize,
    )

    out = pl.pallas_call(
        _ffn_kernel,
        out_shape=jax.ShapeDtypeStruct((Tp, D), x.dtype),
        grid_spec=pltpu.PrefetchScalarGridSpec(
            num_scalar_prefetch=0,
            grid=(Tp // tm, nk),
            in_specs=[
                pl.BlockSpec((tm, D), lambda i, k: (i, 0)),       # token block
                pl.BlockSpec((D, 2 * th), lambda i, k: (0, k)),   # fused w1|w3 chunk
                pl.BlockSpec((th, D), lambda i, k: (k, 0)),       # w2 chunk
            ],
            out_specs=pl.BlockSpec((tm, D), lambda i, k: (i, 0)),
            scratch_shapes=[pltpu.VMEM((tm, D), jnp.float32)],
        ),
        compiler_params=pltpu.CompilerParams(
            dimension_semantics=("parallel", "arbitrary"),
            vmem_limit_bytes=64 * 1024 * 1024),
        cost_estimate=cost,
    )(x2d, w13, w2)
    return out[:tokens].reshape(B, S, D)


# ----------------------------------------------------------------------------- RoPE / cache (wrapper-level plumbing)
def precompute_freqs_cis(head_dim, end, theta=500000.0):
    inv = 1.0 / (theta ** (jnp.arange(0, head_dim, 2, dtype=jnp.float32) / head_dim))
    t = jnp.arange(end, dtype=jnp.float32)
    freqs = jnp.outer(t, inv)
    return jnp.cos(freqs), jnp.sin(freqs)


def apply_rotary_emb(xq, xk, cos, sin):
    """Interleaved-pair (complex) RoPE, matching torch.view_as_complex semantics."""
    def rot(x):
        xf = x.astype(jnp.float32)
        x0 = xf[..., 0::2]
        x1 = xf[..., 1::2]
        c = cos[None, :, None, :]
        s = sin[None, :, None, :]
        o0 = x0 * c - x1 * s
        o1 = x0 * s + x1 * c
        return jnp.stack([o0, o1], axis=-1).reshape(x.shape).astype(x.dtype)
    return rot(xq), rot(xk)


def repeat_kv(x, n_rep):
    if n_rep == 1:
        return x
    B, S, nkv, Dh = x.shape
    return jnp.broadcast_to(
        x[:, :, :, None, :], (B, S, nkv, n_rep, Dh)).reshape(B, S, nkv * n_rep, Dh)


# ----------------------------------------------------------------------------- attention module
def attention(x_norm, wq, wk, wv, wo, cache_k, cache_v, start_pos, cos, sin, mask,
              n_heads, n_kv_heads):
    B, S, D = x_norm.shape
    head_dim = D // n_heads
    q_dim = n_heads * head_dim
    kv_dim = n_kv_heads * head_dim

    # Fused QKV projection: one MXU pass over x.
    wqkv = jnp.concatenate([wq, wk, wv], axis=1)
    qkv = pallas_matmul(x_norm.reshape(B * S, D), wqkv)
    xq = qkv[:, :q_dim].reshape(B, S, n_heads, head_dim)
    xk = qkv[:, q_dim:q_dim + kv_dim].reshape(B, S, n_kv_heads, head_dim)
    xv = qkv[:, q_dim + kv_dim:].reshape(B, S, n_kv_heads, head_dim)

    xq, xk = apply_rotary_emb(xq, xk, cos, sin)

    # Functional KV-cache update (torch does it in place).
    cache_k = jax.lax.dynamic_update_slice(cache_k, xk.astype(cache_k.dtype),
                                           (0, start_pos, 0, 0))
    cache_v = jax.lax.dynamic_update_slice(cache_v, xv.astype(cache_v.dtype),
                                           (0, start_pos, 0, 0))
    S_kv = start_pos + S
    keys = repeat_kv(cache_k[:B, :S_kv], n_heads // n_kv_heads)
    values = repeat_kv(cache_v[:B, :S_kv], n_heads // n_kv_heads)

    q_ = xq.transpose(0, 2, 1, 3).reshape(B * n_heads, S, head_dim)
    k_ = keys.transpose(0, 2, 1, 3).reshape(B * n_heads, S_kv, head_dim)
    v_ = values.transpose(0, 2, 1, 3).reshape(B * n_heads, S_kv, head_dim)

    if mask is None:
        mask = jnp.zeros((S, S_kv), dtype=jnp.float32)
    attn = attention_core(q_, k_, v_, mask.astype(jnp.float32))

    attn = attn.reshape(B, n_heads, S, head_dim).transpose(0, 2, 1, 3)
    attn = attn.reshape(B * S, n_heads * head_dim)
    out = pallas_matmul(attn, wo)
    return out.reshape(B, S, D), cache_k, cache_v


# ----------------------------------------------------------------------------- TransformerBlock
@functools.partial(jax.jit,
                   static_argnames=("n_heads", "n_kv_heads", "start_pos", "eps"))
def transformer_block(x, cos, sin, mask, params, cache_k, cache_v, *,
                      n_heads, n_kv_heads, start_pos, eps=1e-6):
    x_norm = rmsnorm(x, params["attention_norm"], eps)
    attn_out, cache_k, cache_v = attention(
        x_norm, params["wq"], params["wk"], params["wv"], params["wo"],
        cache_k, cache_v, start_pos, cos, sin, mask, n_heads, n_kv_heads)
    h = x + attn_out
    h_norm = rmsnorm(h, params["ffn_norm"], eps)
    out = h + feed_forward(h_norm, params["w1"], params["w3"], params["w2"])
    return out, cache_k, cache_v


# ----------------------------------------------------------------------------- pure-JAX reference
def transformer_block_ref(x, cos, sin, mask, params, cache_k, cache_v, *,
                          n_heads, n_kv_heads, start_pos, eps=1e-6):
    def rms_ref(x, w):
        xf = x.astype(jnp.float32)
        out = xf * jax.lax.rsqrt(jnp.mean(xf * xf, axis=-1, keepdims=True) + eps)
        return out.astype(x.dtype) * w

    B, S, D = x.shape
    Dh = D // n_heads
    xn = rms_ref(x, params["attention_norm"])
    x2 = xn.reshape(B * S, D)
    xq = (x2 @ params["wq"]).reshape(B, S, n_heads, Dh)
    xk = (x2 @ params["wk"]).reshape(B, S, n_kv_heads, Dh)
    xv = (x2 @ params["wv"]).reshape(B, S, n_kv_heads, Dh)
    xq, xk = apply_rotary_emb(xq, xk, cos, sin)
    ck = jax.lax.dynamic_update_slice(cache_k, xk, (0, start_pos, 0, 0))
    cv = jax.lax.dynamic_update_slice(cache_v, xv, (0, start_pos, 0, 0))
    keys = repeat_kv(ck[:B, :start_pos + S], n_heads // n_kv_heads)
    values = repeat_kv(cv[:B, :start_pos + S], n_heads // n_kv_heads)
    q = xq.transpose(0, 2, 1, 3)
    k = keys.transpose(0, 2, 1, 3)
    v = values.transpose(0, 2, 1, 3)
    scores = jnp.einsum("bhqd,bhkd->bhqk", q, k) / math.sqrt(Dh)
    if mask is not None:
        scores = scores + mask
    probs = jax.nn.softmax(scores.astype(jnp.float32), axis=-1).astype(q.dtype)
    o = jnp.einsum("bhqk,bhkd->bhqd", probs, v)
    attn_out = o.transpose(0, 2, 1, 3).reshape(B * S, D) @ params["wo"]
    h = x + attn_out.reshape(B, S, D)
    hn = rms_ref(h, params["ffn_norm"])
    h1 = hn @ params["w1"]
    h3 = hn @ params["w3"]
    return h + (h1 * jax.nn.sigmoid(h1) * h3) @ params["w2"]


# ----------------------------------------------------------------------------- test
if __name__ == "__main__":
    dim = 128
    n_heads = 4
    n_kv_heads = 2               # exercises GQA repeat_kv
    head_dim = dim // n_heads
    hidden = _llama_hidden_dim(4 * dim, multiple_of=128, ffn_dim_multiplier=None)  # 384
    max_batch, max_seq = 2, 16
    batch, seq, start_pos = 2, 9, 2   # 18 tokens -> exercises token-tile padding
    eps = 1e-6

    key = jax.random.PRNGKey(0)
    ks = jax.random.split(key, 12)

    def w(k, i, o, s):
        return jax.random.normal(k, (i, o), dtype=jnp.float32) * s

    params = {
        "attention_norm": 1.0 + 0.1 * jax.random.normal(ks[0], (dim,), jnp.float32),
        "ffn_norm": 1.0 + 0.1 * jax.random.normal(ks[1], (dim,), jnp.float32),
        "wq": w(ks[2], dim, n_heads * head_dim, 1.0 / math.sqrt(dim)),
        "wk": w(ks[3], dim, n_kv_heads * head_dim, 1.0 / math.sqrt(dim)),
        "wv": w(ks[4], dim, n_kv_heads * head_dim, 1.0 / math.sqrt(dim)),
        "wo": w(ks[5], n_heads * head_dim, dim, 1.0 / math.sqrt(dim)),
        "w1": w(ks[6], dim, hidden, 1.0 / math.sqrt(dim)),
        "w3": w(ks[7], dim, hidden, 1.0 / math.sqrt(dim)),
        "w2": w(ks[8], hidden, dim, 1.0 / math.sqrt(hidden)),
    }

    x = jax.random.normal(ks[9], (batch, seq, dim), dtype=jnp.float32)
    cache_k = jnp.zeros((max_batch, max_seq, n_kv_heads, head_dim), jnp.float32)
    cache_v = jnp.zeros((max_batch, max_seq, n_kv_heads, head_dim), jnp.float32)

    cos_full, sin_full = precompute_freqs_cis(head_dim, max_seq)
    cos = cos_full[start_pos:start_pos + seq]
    sin = sin_full[start_pos:start_pos + seq]

    causal = jnp.triu(jnp.full((seq, seq), float("-inf"), jnp.float32), k=1)
    mask = jnp.concatenate([jnp.zeros((seq, start_pos), jnp.float32), causal], axis=1)

    out, _, _ = transformer_block(
        x, cos, sin, mask, params, cache_k, cache_v,
        n_heads=n_heads, n_kv_heads=n_kv_heads, start_pos=start_pos, eps=eps)
    out = jax.block_until_ready(out)

    ref = transformer_block_ref(
        x, cos, sin, mask, params, cache_k, cache_v,
        n_heads=n_heads, n_kv_heads=n_kv_heads, start_pos=start_pos, eps=eps)

    assert out.shape == (batch, seq, dim)
    err = float(jnp.max(jnp.abs(out - ref)))
    assert jnp.allclose(out, ref, atol=2e-3, rtol=2e-3), f"block mismatch, max err {err:.3e}"

    # Extra check: exercise the FFN hidden-dim reduction axis (384 -> 3 chunks of 128)
    # plus the token-padding path, against a pure-JAX SwiGLU reference.
    xf = jax.random.normal(ks[10], (batch, seq, dim), dtype=jnp.float32)
    ffn_out = jax.block_until_ready(
        feed_forward(xf, params["w1"], params["w3"], params["w2"], th_target=128))
    h1 = xf @ params["w1"]
    h3 = xf @ params["w3"]
    ffn_ref = (h1 * jax.nn.sigmoid(h1) * h3) @ params["w2"]
    ferr = float(jnp.max(jnp.abs(ffn_out - ffn_ref)))
    assert jnp.allclose(ffn_out, ffn_ref, atol=2e-3, rtol=2e-3), f"ffn mismatch {ferr:.3e}"

    print("KERNEL_OK")
</pallas_src>

<mosaic_0001>
module attributes {stable_mosaic.version = 11 : i64} {
  func.func @_rmsnorm_kernel(%arg0: i32, %arg1: memref<24x128xf32, #tpu.memory_space<vmem>>, %arg2: memref<1x128xf32, #tpu.memory_space<vmem>>, %arg3: memref<24x128xf32, #tpu.memory_space<vmem>>) attributes {dimension_semantics = [#tpu.dimension_semantics<parallel>], iteration_bounds = array<i64: 1>, scalar_prefetch = 0 : i64, scratch_operands = 0 : i64, tpu.core_type = #tpu.core_type<tc>, window_params = [{transform_indices = @transform_0, window_bounds = array<i64: 24, 128>}, {pipeline_mode = #tpu.pipeline_mode<synchronous>, transform_indices = @transform_1, window_bounds = array<i64: 1, 128>}, {transform_indices = @transform_2, window_bounds = array<i64: 24, 128>}]} {
    %c0 = arith.constant 0 : index
    %c0_0 = arith.constant 0 : index
    %0 = vector.load %arg1[%c0, %c0_0] : memref<24x128xf32, #tpu.memory_space<vmem>>, vector<24x128xf32>
    %1 = arith.mulf %0, %0 : vector<24x128xf32>
    %cst = arith.constant dense<0.000000e+00> : vector<24xf32>
    %2 = vector.multi_reduction <add>, %1, %cst [1] : vector<24x128xf32> to vector<24xf32>
    %3 = vector.shape_cast %2 : vector<24xf32> to vector<24x1xf32>
    %cst_1 = arith.constant 1.280000e+02 : f32
    %4 = vector.broadcast %cst_1 : f32 to vector<24x1xf32>
    %5 = arith.divf %3, %4 : vector<24x1xf32>
    %cst_2 = arith.constant 9.99999997E-7 : f32
    %6 = vector.broadcast %cst_2 : f32 to vector<24x1xf32>
    %7 = arith.addf %5, %6 : vector<24x1xf32>
    %8 = math.rsqrt %7 : vector<24x1xf32>
    %9 = vector.broadcast %8 : vector<24x1xf32> to vector<24x128xf32>
    %10 = arith.mulf %0, %9 : vector<24x128xf32>
    %c0_3 = arith.constant 0 : index
    %c0_4 = arith.constant 0 : index
    %11 = vector.load %arg2[%c0_3, %c0_4] : memref<1x128xf32, #tpu.memory_space<vmem>>, vector<1x128xf32>
    %12 = vector.broadcast %11 : vector<1x128xf32> to vector<24x128xf32>
    %13 = arith.mulf %10, %12 : vector<24x128xf32>
    %c0_5 = arith.constant 0 : index
    %c0_6 = arith.constant 0 : index
    %14 = vector.load %arg3[%c0_5, %c0_6] : memref<24x128xf32, #tpu.memory_space<vmem>>, vector<24x128xf32>
    tpu.vector_store %arg3[%c0_5, %c0_6], %13 {strides = array<i32>} : memref<24x128xf32, #tpu.memory_space<vmem>>, vector<24x128xf32>,
    return
  }
  func.func @transform_0(%arg0: i32) -> (i32, i32) {
    %c0_i32 = arith.constant 0 : i32
    %c0_i32_0 = arith.constant 0 : i32
    return %arg0, %c0_i32 : i32, i32
  }
  func.func @transform_1(%arg0: i32) -> (i32, i32) {
    %c0_i32 = arith.constant 0 : i32
    %c0_i32_0 = arith.constant 0 : i32
    %c0_i32_1 = arith.constant 0 : i32
    return %c0_i32, %c0_i32_0 : i32, i32
  }
  func.func @transform_2(%arg0: i32) -> (i32, i32) {
    %c0_i32 = arith.constant 0 : i32
    %c0_i32_0 = arith.constant 0 : i32
    return %arg0, %c0_i32 : i32, i32
  }
}

module attributes {stable_mosaic.version = 11 : i64} {
  func.func @_matmul_kernel(%arg0: i32, %arg1: i32, %arg2: i32, %arg3: memref<24x128xf32, #tpu.memory_space<vmem>>, %arg4: memref<128x256xf32, #tpu.memory_space<vmem>>, %arg5: memref<24x256xf32, #tpu.memory_space<vmem>>, %arg6: memref<24x256xf32, #tpu.memory_space<vmem>>) attributes {dimension_semantics = [#tpu.dimension_semantics<parallel>, #tpu.dimension_semantics<parallel>, #tpu.dimension_semantics<arbitrary>], iteration_bounds = array<i64: 1, 1, 1>, scalar_prefetch = 0 : i64, scratch_operands = 1 : i64, tpu.core_type = #tpu.core_type<tc>, window_params = [{transform_indices = @transform_0, window_bounds = array<i64: 24, 128>}, {transform_indices = @transform_1, window_bounds = array<i64: 128, 256>}, {transform_indices = @transform_2, window_bounds = array<i64: 24, 256>}]} {
    %c0_i32 = arith.constant 0 : i32
    %0 = arith.cmpi eq, %arg2, %c0_i32 : i32
    %1 = arith.extui %0 : i1 to i32
    %c0_i32_0 = arith.constant 0 : i32
    %2 = arith.cmpi ne, %1, %c0_i32_0 : i32
    scf.if %2 {
      %cst_10 = arith.constant 0.000000e+00 : f32
      %12 = vector.broadcast %cst_10 : f32 to vector<24x256xf32>
      %c0_11 = arith.constant 0 : index
      %c0_12 = arith.constant 0 : index
      %13 = vector.load %arg6[%c0_11, %c0_12] : memref<24x256xf32, #tpu.memory_space<vmem>>, vector<24x256xf32>
      tpu.vector_store %arg6[%c0_11, %c0_12], %12 {strides = array<i32>} : memref<24x256xf32, #tpu.memory_space<vmem>>, vector<24x256xf32>,
    } else {
    }
    %c0 = arith.constant 0 : index
    %c0_1 = arith.constant 0 : index
    %3 = vector.load %arg6[%c0, %c0_1] : memref<24x256xf32, #tpu.memory_space<vmem>>, vector<24x256xf32>
    %c0_2 = arith.constant 0 : index
    %c0_3 = arith.constant 0 : index
    %4 = vector.load %arg3[%c0_2, %c0_3] : memref<24x128xf32, #tpu.memory_space<vmem>>, vector<24x128xf32>
    %c0_4 = arith.constant 0 : index
    %c0_5 = arith.constant 0 : index
    %5 = vector.load %arg4[%c0_4, %c0_5] : memref<128x256xf32, #tpu.memory_space<vmem>>, vector<128x256xf32>
    %cst = arith.constant dense<0.000000e+00> : vector<24x256xf32>
    %6 = tpu.matmul %4, %5, %cst {dimension_numbers = #tpu.dot_dimension_numbers<[1], [0], [0], [1], [0, 0, 1, 1], [], []>, precision = #tpu.contract_precision<fp32>} : vector<24x128xf32>, vector<128x256xf32>, vector<24x256xf32> -> vector<24x256xf32>
    %7 = arith.addf %3, %6 : vector<24x256xf32>
    %c0_6 = arith.constant 0 : index
    %c0_7 = arith.constant 0 : index
    %8 = vector.load %arg6[%c0_6, %c0_7] : memref<24x256xf32, #tpu.memory_space<vmem>>, vector<24x256xf32>
    tpu.vector_store %arg6[%c0_6, %c0_7], %7 {strides = array<i32>} : memref<24x256xf32, #tpu.memory_space<vmem>>, vector<24x256xf32>,
    %c0_i32_8 = arith.constant 0 : i32
    %9 = arith.cmpi eq, %arg2, %c0_i32_8 : i32
    %10 = arith.extui %9 : i1 to i32
    %c0_i32_9 = arith.constant 0 : i32
    %11 = arith.cmpi ne, %10, %c0_i32_9 : i32
    scf.if %11 {
      %c0_10 = arith.constant 0 : index
      %c0_11 = arith.constant 0 : index
      %12 = vector.load %arg6[%c0_10, %c0_11] : memref<24x256xf32, #tpu.memory_space<vmem>>, vector<24x256xf32>
      %c0_12 = arith.constant 0 : index
      %c0_13 = arith.constant 0 : index
      %13 = vector.load %arg5[%c0_12, %c0_13] : memref<24x256xf32, #tpu.memory_space<vmem>>, vector<24x256xf32>
      tpu.vector_store %arg5[%c0_12, %c0_13], %12 {strides = array<i32>} : memref<24x256xf32, #tpu.memory_space<vmem>>, vector<24x256xf32>,
    } else {
    }
    return
  }
  func.func @transform_0(%arg0: i32, %arg1: i32, %arg2: i32) -> (i32, i32) {
    %c0_i32 = arith.constant 0 : i32
    return %arg0, %arg2 : i32, i32
  }
  func.func @transform_1(%arg0: i32, %arg1: i32, %arg2: i32) -> (i32, i32) {
    %c0_i32 = arith.constant 0 : i32
    return %arg2, %arg1 : i32, i32
  }
  func.func @transform_2(%arg0: i32, %arg1: i32, %arg2: i32) -> (i32, i32) {
    %c0_i32 = arith.constant 0 : i32
    return %arg0, %arg1 : i32, i32
  }
}

module attributes {stable_mosaic.version = 11 : i64} {
  func.func @_attn_core_kernel(%arg0: i32, %arg1: memref<1x9x32xf32, #tpu.memory_space<vmem>>, %arg2: memref<1x11x32xf32, #tpu.memory_space<vmem>>, %arg3: memref<1x11x32xf32, #tpu.memory_space<vmem>>, %arg4: memref<9x11xf32, #tpu.memory_space<vmem>>, %arg5: memref<1x9x32xf32, #tpu.memory_space<vmem>>) attributes {dimension_semantics = [#tpu.dimension_semantics<parallel>], iteration_bounds = array<i64: 8>, scalar_prefetch = 0 : i64, scratch_operands = 0 : i64, tpu.core_type = #tpu.core_type<tc>, window_params = [{transform_indices = @transform_0, window_bounds = array<i64: 1, 9, 32>}, {transform_indices = @transform_1, window_bounds = array<i64: 1, 11, 32>}, {transform_indices = @transform_2, window_bounds = array<i64: 1, 11, 32>}, {pipeline_mode = #tpu.pipeline_mode<synchronous>, transform_indices = @transform_3, window_bounds = array<i64: 9, 11>}, {transform_indices = @transform_4, window_bounds = array<i64: 1, 9, 32>}]} {
    %c0 = arith.constant 0 : index
    %c0_0 = arith.constant 0 : index
    %c0_1 = arith.constant 0 : index
    %0 = vector.load %arg1[%c0, %c0_0, %c0_1] : memref<1x9x32xf32, #tpu.memory_space<vmem>>, vector<1x9x32xf32>
    %1 = vector.shape_cast %0 : vector<1x9x32xf32> to vector<9x32xf32>
    %c0_2 = arith.constant 0 : index
    %c0_3 = arith.constant 0 : index
    %c0_4 = arith.constant 0 : index
    %2 = vector.load %arg2[%c0_2, %c0_3, %c0_4] : memref<1x11x32xf32, #tpu.memory_space<vmem>>, vector<1x11x32xf32>
    %3 = vector.shape_cast %2 : vector<1x11x32xf32> to vector<11x32xf32>
    %c0_5 = arith.constant 0 : index
    %c0_6 = arith.constant 0 : index
    %c0_7 = arith.constant 0 : index
    %4 = vector.load %arg3[%c0_5, %c0_6, %c0_7] : memref<1x11x32xf32, #tpu.memory_space<vmem>>, vector<1x11x32xf32>
    %5 = vector.shape_cast %4 : vector<1x11x32xf32> to vector<11x32xf32>
    %cst = arith.constant dense<0.000000e+00> : vector<9x11xf32>
    %6 = tpu.matmul %1, %3, %cst {dimension_numbers = #tpu.dot_dimension_numbers<[1], [1], [0], [0], [0, 0, 1, 0], [], []>, precision = #tpu.contract_precision<fp32>} : vector<9x32xf32>, vector<11x32xf32>, vector<9x11xf32> -> vector<9x11xf32>
    %cst_8 = arith.constant 0.176776692 : f32
    %7 = vector.broadcast %cst_8 : f32 to vector<9x11xf32>
    %8 = arith.mulf %6, %7 : vector<9x11xf32>
    %c0_9 = arith.constant 0 : index
    %c0_10 = arith.constant 0 : index
    %9 = vector.load %arg4[%c0_9, %c0_10] : memref<9x11xf32, #tpu.memory_space<vmem>>, vector<9x11xf32>
    %10 = arith.addf %8, %9 : vector<9x11xf32>
    %cst_11 = arith.constant dense<0xFF800000> : vector<9xf32>
    %11 = vector.multi_reduction <maximumf>, %10, %cst_11 [1] : vector<9x11xf32> to vector<9xf32>
    %12 = vector.shape_cast %11 : vector<9xf32> to vector<9x1xf32>
    %13 = vector.broadcast %12 : vector<9x1xf32> to vector<9x11xf32>
    %14 = arith.subf %10, %13 : vector<9x11xf32>
    %15 = math.exp %14 : vector<9x11xf32>
    %cst_12 = arith.constant dense<0.000000e+00> : vector<9xf32>
    %16 = vector.multi_reduction <add>, %15, %cst_12 [1] : vector<9x11xf32> to vector<9xf32>
    %17 = vector.shape_cast %16 : vector<9xf32> to vector<9x1xf32>
    %18 = vector.broadcast %17 : vector<9x1xf32> to vector<9x11xf32>
    %19 = arith.divf %15, %18 : vector<9x11xf32>
    %cst_13 = arith.constant dense<0.000000e+00> : vector<9x32xf32>
    %20 = tpu.matmul %19, %5, %cst_13 {dimension_numbers = #tpu.dot_dimension_numbers<[1], [0], [0], [1], [0, 0, 1, 1], [], []>, precision = #tpu.contract_precision<fp32>} : vector<9x11xf32>, vector<11x32xf32>, vector<9x32xf32> -> vector<9x32xf32>
    %c0_14 = arith.constant 0 : index
    %c0_15 = arith.constant 0 : index
    %c0_16 = arith.constant 0 : index
    %21 = vector.load %arg5[%c0_14, %c0_15, %c0_16] : memref<1x9x32xf32, #tpu.memory_space<vmem>>, vector<1x9x32xf32>
    %22 = vector.shape_cast %21 : vector<1x9x32xf32> to vector<9x32xf32>
    %23 = vector.shape_cast %20 : vector<9x32xf32> to vector<1x9x32xf32>
    tpu.vector_store %arg5[%c0_14, %c0_15, %c0_16], %23 {strides = array<i32>} : memref<1x9x32xf32, #tpu.memory_space<vmem>>, vector<1x9x32xf32>,
    return
  }
  func.func @transform_0(%arg0: i32) -> (i32, i32, i32) {
    %c0_i32 = arith.constant 0 : i32
    %c0_i32_0 = arith.constant 0 : i32
    %c0_i32_1 = arith.constant 0 : i32
    return %arg0, %c0_i32, %c0_i32_0 : i32, i32, i32
  }
  func.func @transform_1(%arg0: i32) -> (i32, i32, i32) {
    %c0_i32 = arith.constant 0 : i32
    %c0_i32_0 = arith.constant 0 : i32
    %c0_i32_1 = arith.constant 0 : i32
    return %arg0, %c0_i32, %c0_i32_0 : i32, i32, i32
  }
  func.func @transform_2(%arg0: i32) -> (i32, i32, i32) {
    %c0_i32 = arith.constant 0 : i32
    %c0_i32_0 = arith.constant 0 : i32
    %c0_i32_1 = arith.constant 0 : i32
    return %arg0, %c0_i32, %c0_i32_0 : i32, i32, i32
  }
  func.func @transform_3(%arg0: i32) -> (i32, i32) {
    %c0_i32 = arith.constant 0 : i32
    %c0_i32_0 = arith.constant 0 : i32
    %c0_i32_1 = arith.constant 0 : i32
    return %c0_i32, %c0_i32_0 : i32, i32
  }
  func.func @transform_4(%arg0: i32) -> (i32, i32, i32) {
    %c0_i32 = arith.constant 0 : i32
    %c0_i32_0 = arith.constant 0 : i32
    %c0_i32_1 = arith.constant 0 : i32
    return %arg0, %c0_i32, %c0_i32_0 : i32, i32, i32
  }
}

module attributes {stable_mosaic.version = 11 : i64} {
  func.func @_matmul_kernel(%arg0: i32, %arg1: i32, %arg2: i32, %arg3: memref<24x128xf32, #tpu.memory_space<vmem>>, %arg4: memref<128x128xf32, #tpu.memory_space<vmem>>, %arg5: memref<24x128xf32, #tpu.memory_space<vmem>>, %arg6: memref<24x128xf32, #tpu.memory_space<vmem>>) attributes {dimension_semantics = [#tpu.dimension_semantics<parallel>, #tpu.dimension_semantics<parallel>, #tpu.dimension_semantics<arbitrary>], iteration_bounds = array<i64: 1, 1, 1>, scalar_prefetch = 0 : i64, scratch_operands = 1 : i64, tpu.core_type = #tpu.core_type<tc>, window_params = [{transform_indices = @transform_0, window_bounds = array<i64: 24, 128>}, {transform_indices = @transform_1, window_bounds = array<i64: 128, 128>}, {transform_indices = @transform_2, window_bounds = array<i64: 24, 128>}]} {
    %c0_i32 = arith.constant 0 : i32
    %0 = arith.cmpi eq, %arg2, %c0_i32 : i32
    %1 = arith.extui %0 : i1 to i32
    %c0_i32_0 = arith.constant 0 : i32
    %2 = arith.cmpi ne, %1, %c0_i32_0 : i32
    scf.if %2 {
      %cst_10 = arith.constant 0.000000e+00 : f32
      %12 = vector.broadcast %cst_10 : f32 to vector<24x128xf32>
      %c0_11 = arith.constant 0 : index
      %c0_12 = arith.constant 0 : index
      %13 = vector.load %arg6[%c0_11, %c0_12] : memref<24x128xf32, #tpu.memory_space<vmem>>, vector<24x128xf32>
      tpu.vector_store %arg6[%c0_11, %c0_12], %12 {strides = array<i32>} : memref<24x128xf32, #tpu.memory_space<vmem>>, vector<24x128xf32>,
    } else {
    }
    %c0 = arith.constant 0 : index
    %c0_1 = arith.constant 0 : index
    %3 = vector.load %arg6[%c0, %c0_1] : memref<24x128xf32, #tpu.memory_space<vmem>>, vector<24x128xf32>
    %c0_2 = arith.constant 0 : index
    %c0_3 = arith.constant 0 : index
    %4 = vector.load %arg3[%c0_2, %c0_3] : memref<24x128xf32, #tpu.memory_space<vmem>>, vector<24x128xf32>
    %c0_4 = arith.constant 0 : index
    %c0_5 = arith.constant 0 : index
    %5 = vector.load %arg4[%c0_4, %c0_5] : memref<128x128xf32, #tpu.memory_space<vmem>>, vector<128x128xf32>
    %cst = arith.constant dense<0.000000e+00> : vector<24x128xf32>
    %6 = tpu.matmul %4, %5, %cst {dimension_numbers = #tpu.dot_dimension_numbers<[1], [0], [0], [1], [0, 0, 1, 1], [], []>, precision = #tpu.contract_precision<fp32>} : vector<24x128xf32>, vector<128x128xf32>, vector<24x128xf32> -> vector<24x128xf32>
    %7 = arith.addf %3, %6 : vector<24x128xf32>
    %c0_6 = arith.constant 0 : index
    %c0_7 = arith.constant 0 : index
    %8 = vector.load %arg6[%c0_6, %c0_7] : memref<24x128xf32, #tpu.memory_space<vmem>>, vector<24x128xf32>
    tpu.vector_store %arg6[%c0_6, %c0_7], %7 {strides = array<i32>} : memref<24x128xf32, #tpu.memory_space<vmem>>, vector<24x128xf32>,
    %c0_i32_8 = arith.constant 0 : i32
    %9 = arith.cmpi eq, %arg2, %c0_i32_8 : i32
    %10 = arith.extui %9 : i1 to i32
    %c0_i32_9 = arith.constant 0 : i32
    %11 = arith.cmpi ne, %10, %c0_i32_9 : i32
    scf.if %11 {
      %c0_10 = arith.constant 0 : index
      %c0_11 = arith.constant 0 : index
      %12 = vector.load %arg6[%c0_10, %c0_11] : memref<24x128xf32, #tpu.memory_space<vmem>>, vector<24x128xf32>
      %c0_12 = arith.constant 0 : index
      %c0_13 = arith.constant 0 : index
      %13 = vector.load %arg5[%c0_12, %c0_13] : memref<24x128xf32, #tpu.memory_space<vmem>>, vector<24x128xf32>
      tpu.vector_store %arg5[%c0_12, %c0_13], %12 {strides = array<i32>} : memref<24x128xf32, #tpu.memory_space<vmem>>, vector<24x128xf32>,
    } else {
    }
    return
  }
  func.func @transform_0(%arg0: i32, %arg1: i32, %arg2: i32) -> (i32, i32) {
    %c0_i32 = arith.constant 0 : i32
    return %arg0, %arg2 : i32, i32
  }
  func.func @transform_1(%arg0: i32, %arg1: i32, %arg2: i32) -> (i32, i32) {
    %c0_i32 = arith.constant 0 : i32
    return %arg2, %arg1 : i32, i32
  }
  func.func @transform_2(%arg0: i32, %arg1: i32, %arg2: i32) -> (i32, i32) {
    %c0_i32 = arith.constant 0 : i32
    return %arg0, %arg1 : i32, i32
  }
}

module attributes {stable_mosaic.version = 11 : i64} {
  func.func @_ffn_kernel(%arg0: i32, %arg1: i32, %arg2: memref<24x128xf32, #tpu.memory_space<vmem>>, %arg3: memref<128x768xf32, #tpu.memory_space<vmem>>, %arg4: memref<384x128xf32, #tpu.memory_space<vmem>>, %arg5: memref<24x128xf32, #tpu.memory_space<vmem>>, %arg6: memref<24x128xf32, #tpu.memory_space<vmem>>) attributes {dimension_semantics = [#tpu.dimension_semantics<parallel>, #tpu.dimension_semantics<arbitrary>], iteration_bounds = array<i64: 1, 1>, scalar_prefetch = 0 : i64, scratch_operands = 1 : i64, tpu.core_type = #tpu.core_type<tc>, window_params = [{transform_indices = @transform_0, window_bounds = array<i64: 24, 128>}, {transform_indices = @transform_1, window_bounds = array<i64: 128, 768>}, {transform_indices = @transform_2, window_bounds = array<i64: 384, 128>}, {transform_indices = @transform_3, window_bounds = array<i64: 24, 128>}]} {
    %c0_i32 = arith.constant 0 : i32
    %0 = arith.cmpi eq, %arg1, %c0_i32 : i32
    %1 = arith.extui %0 : i1 to i32
    %c0_i32_0 = arith.constant 0 : i32
    %2 = arith.cmpi ne, %1, %c0_i32_0 : i32
    scf.if %2 {
      %cst_14 = arith.constant 0.000000e+00 : f32
      %23 = vector.broadcast %cst_14 : f32 to vector<24x128xf32>
      %c0_15 = arith.constant 0 : index
      %c0_16 = arith.constant 0 : index
      %24 = vector.load %arg6[%c0_15, %c0_16] : memref<24x128xf32, #tpu.memory_space<vmem>>, vector<24x128xf32>
      tpu.vector_store %arg6[%c0_15, %c0_16], %23 {strides = array<i32>} : memref<24x128xf32, #tpu.memory_space<vmem>>, vector<24x128xf32>,
    } else {
    }
    %c0 = arith.constant 0 : index
    %c0_1 = arith.constant 0 : index
    %3 = vector.load %arg2[%c0, %c0_1] : memref<24x128xf32, #tpu.memory_space<vmem>>, vector<24x128xf32>
    %c0_2 = arith.constant 0 : index
    %c0_3 = arith.constant 0 : index
    %4 = vector.load %arg3[%c0_2, %c0_3] : memref<128x768xf32, #tpu.memory_space<vmem>>, vector<128x768xf32>
    %cst = arith.constant dense<0.000000e+00> : vector<24x768xf32>
    %5 = tpu.matmul %3, %4, %cst {dimension_numbers = #tpu.dot_dimension_numbers<[1], [0], [0], [1], [0, 0, 1, 1], [], []>, precision = #tpu.contract_precision<fp32>} : vector<24x128xf32>, vector<128x768xf32>, vector<24x768xf32> -> vector<24x768xf32>
    %6 = vector.extract_strided_slice %5 {offsets = [0, 0], sizes = [24, 384], strides = [1, 1]} : vector<24x768xf32> to vector<24x384xf32>
    %7 = vector.extract_strided_slice %5 {offsets = [0, 384], sizes = [24, 384], strides = [1, 1]} : vector<24x768xf32> to vector<24x384xf32>
    %8 = arith.negf %6 : vector<24x384xf32>
    %9 = math.exp %8 : vector<24x384xf32>
    %cst_4 = arith.constant 1.000000e+00 : f32
    %10 = vector.broadcast %cst_4 : f32 to vector<24x384xf32>
    %11 = arith.addf %10, %9 : vector<24x384xf32>
    %12 = arith.divf %10, %11 : vector<24x384xf32>
    %13 = arith.mulf %6, %12 : vector<24x384xf32>
    %14 = arith.mulf %13, %7 : vector<24x384xf32>
    %c0_5 = arith.constant 0 : index
    %c0_6 = arith.constant 0 : index
    %15 = vector.load %arg6[%c0_5, %c0_6] : memref<24x128xf32, #tpu.memory_space<vmem>>, vector<24x128xf32>
    %c0_7 = arith.constant 0 : index
    %c0_8 = arith.constant 0 : index
    %16 = vector.load %arg4[%c0_7, %c0_8] : memref<384x128xf32, #tpu.memory_space<vmem>>, vector<384x128xf32>
    %cst_9 = arith.constant dense<0.000000e+00> : vector<24x128xf32>
    %17 = tpu.matmul %14, %16, %cst_9 {dimension_numbers = #tpu.dot_dimension_numbers<[1], [0], [0], [1], [0, 0, 1, 1], [], []>, precision = #tpu.contract_precision<fp32>} : vector<24x384xf32>, vector<384x128xf32>, vector<24x128xf32> -> vector<24x128xf32>
    %18 = arith.addf %15, %17 : vector<24x128xf32>
    %c0_10 = arith.constant 0 : index
    %c0_11 = arith.constant 0 : index
    %19 = vector.load %arg6[%c0_10, %c0_11] : memref<24x128xf32, #tpu.memory_space<vmem>>, vector<24x128xf32>
    tpu.vector_store %arg6[%c0_10, %c0_11], %18 {strides = array<i32>} : memref<24x128xf32, #tpu.memory_space<vmem>>, vector<24x128xf32>,
    %c0_i32_12 = arith.constant 0 : i32
    %20 = arith.cmpi eq, %arg1, %c0_i32_12 : i32
    %21 = arith.extui %20 : i1 to i32
    %c0_i32_13 = arith.constant 0 : i32
    %22 = arith.cmpi ne, %21, %c0_i32_13 : i32
    scf.if %22 {
      %c0_14 = arith.constant 0 : index
      %c0_15 = arith.constant 0 : index
      %23 = vector.load %arg6[%c0_14, %c0_15] : memref<24x128xf32, #tpu.memory_space<vmem>>, vector<24x128xf32>
      %c0_16 = arith.constant 0 : index
      %c0_17 = arith.constant 0 : index
      %24 = vector.load %arg5[%c0_16, %c0_17] : memref<24x128xf32, #tpu.memory_space<vmem>>, vector<24x128xf32>
      tpu.vector_store %arg5[%c0_16, %c0_17], %23 {strides = array<i32>} : memref<24x128xf32, #tpu.memory_space<vmem>>, vector<24x128xf32>,
    } else {
    }
    return
  }
  func.func @transform_0(%arg0: i32, %arg1: i32) -> (i32, i32) {
    %c0_i32 = arith.constant 0 : i32
    %c0_i32_0 = arith.constant 0 : i32
    return %arg0, %c0_i32 : i32, i32
  }
  func.func @transform_1(%arg0: i32, %arg1: i32) -> (i32, i32) {
    %c0_i32 = arith.constant 0 : i32
    %c0_i32_0 = arith.constant 0 : i32
    return %c0_i32, %arg1 : i32, i32
  }
  func.func @transform_2(%arg0: i32, %arg1: i32) -> (i32, i32) {
    %c0_i32 = arith.constant 0 : i32
    %c0_i32_0 = arith.constant 0 : i32
    return %arg1, %c0_i32 : i32, i32
  }
  func.func @transform_3(%arg0: i32, %arg1: i32) -> (i32, i32) {
    %c0_i32 = arith.constant 0 : i32
    %c0_i32_0 = arith.constant 0 : i32
    return %arg0, %c0_i32 : i32, i32
  }
}

</mosaic_0001>

<bundles_post_ra>
// kernel: transformer_block.6
= control target key start
LH: loop header
LB: loop body
LE: loop exit
PB: predicated region body
PF: predicated region fallthrough
CT: control target
= control target key end

     0   :  { %s96_s0 = inlined_call_operand.vmem [shape: f32[24,128], index: 0, kind: input, shape index: {}]   ;;  %s97_s1 = inlined_call_operand.vmem [shape: f32[1,128], index: 1, kind: input, shape index: {}]   ;;  %s98_s2 = inlined_call_operand.vmem [shape: f32[24,128], index: 2, kind: output, shape index: {}]  }
   0x1   :  { %v11_v0 = vld [vmem:[%s96_s0] sm:$0xff]  ;;  %v13_v1 = vld [vmem:[%s96_s0 + $0x10] sm:$0xff]  ;;  %v12_v2 = vld [vmem:[%s96_s0 + $0x8] sm:$0xff] }
   0x2   :  { %v14_v3 = vmul.f32 %v11_v0, %v11_v0  ;;  %v16_v4 = vmul.f32 %v13_v1, %v13_v1  ;;  %v15_v5 = vmul.f32 %v12_v2, %v12_v2  ;;  %v53_v16 = vld [vmem:[%s97_s1] ss:$0 sm:$0xff] }
   0x4   :  { %17 = vadd.xlane.f32.xlu0 %v14_v3  ;;  %21 = vadd.xlane.f32.xlu1 %v16_v4 }
   0x8   :  { %19 = vadd.xlane.f32.xlu0 %v15_v5 }
  0x91   :  { %v18_v6 = vpop.xlane.xlu0 %17  ;;  %v22_v7 = vpop.xlane.xlu1 %21 }
  0x92   :  { %v24_v8 = vmul.f32 0.0078125, %v18_v6  ;;  %v26_v9 = vmul.f32 0.0078125, %v22_v7 }
  0x94   :  { %v27_v10 = vadd.f32 1e-06, %v24_v8  ;;  %v29_v11 = vadd.f32 1e-06, %v26_v9 }
  0x95   :  { %v20_v12 = vpop.xlane.xlu0 %19 }
  0x96   :  { %54 = vrsqrt.f32 %v27_v10  ;;  %v25_v13 = vmul.f32 0.0078125, %v20_v12 }
  0x97   :  { %56 = vrsqrt.f32 %v29_v11 }
  0x98   :  { %v28_v14 = vadd.f32 1e-06, %v25_v13 }
  0x9a   :  { %58 = vrsqrt.f32 %v28_v14 }
  0xa0   :  { %v55_v15 = vpop.eup %54 }
  0xa1   :  { %v57_v17 = vpop.eup %56  ;;  %v33_v18 = vmul.f32 %v55_v15, %v11_v0 }
  0xa2   :  { %v35_v19 = vmul.f32 %v57_v17, %v13_v1 }
  0xa3   :  { %v43_v20 = vmul.f32 %v53_v16, %v33_v18 }
  0xa4   :  { %v59_v21 = vpop.eup %58  ;;  %v45_v22 = vmul.f32 %v53_v16, %v35_v19 }
  0xa5   :  { %46 = vst [vmem:[%s98_s2] sm:$0xff] %v43_v20  ;;  %v34_v23 = vmul.f32 %v59_v21, %v12_v2 }
  0xa6   :  { %48 = vst [vmem:[%s98_s2 + $0x10] sm:$0xff] %v45_v22 }
  0xa7   :  { %v44_v24 = vmul.f32 %v53_v16, %v34_v23 }
  0xa9   :  { %47 = vst [vmem:[%s98_s2 + $0x8] sm:$0xff] %v44_v24 }

// kernel: transformer_block.7
= control target key start
LH: loop header
LB: loop body
LE: loop exit
PB: predicated region body
PF: predicated region fallthrough
CT: control target
= control target key end

     0   :  { %7 = vsyncpa [#allocation4], 0  ;;  %s1747_s0 = inlined_call_operand.hbm [shape: f32[24,128], index: 0, kind: input, shape index: {}]   ;;  %s1748_s1 = inlined_call_operand.hbm [shape: f32[128,256], index: 1, kind: input, shape index: {}]   ;;  %s1749_s2 = inlined_call_operand.hbm [shape: f32[24,256], index: 2, kind: output, shape index: {}]  }
   0x1   :  { %8 = vsyncpa [#allocation7], 0 }
   0x2   :  { %9 = vsyncpa [#allocation5], 0  ;;  %s1391_s9 = smov [#allocation3]   ;;  %s1319_s13 = scalar_lea.hbm %s1747_s0, 384 }
   0x3   :  { %s15_s10 = sshll.u32 %s1391_s9, 4  ;;  %p1320_p0 = scmp.ne.s32.totalorder %s1747_s0, %s1319_s13  ;;  %s16_s10 = int_to_ptr.vmem [resolvable:$true] %s15_s10 }
   0x4   :  { %p1323_p1 = scmp.lt.u32.totalorder %s1319_s13, %s1747_s0 }
   0x6   :  { %p1325_p2 = pnand %p1323_p1, %p1320_p0 }
   0x8   :  { %1328 = shalt.err (!%p1325_p2)
}
   0x9   :  { %s1329_s18 = scalar_lea.vmem %s16_s10, 384  ;;  %p1334_p4 = scmp.lt.s32.totalorder %s16_s10, %s16_s10 }
   0xa   :  { %p1330_p3 = scmp.ne.s32.totalorder %s16_s10, %s1329_s18  ;;  %p1335_p5 = scmp.lt.s32.totalorder %s1329_s18, %s1329_s18 }
   0xc   :  { %p1336_p6 = por %p1335_p5, %p1334_p4 }
   0xe   :  { %p1337_p7 = pnand %p1336_p6, %p1330_p3 }
  0x10   :  { %1340 = shalt.err (!%p1337_p7)
}
  0x11   :  { %s1392_s19 = smov 128   ;;  %s1393_s20 = smov 8  }
  0x12   :  { %21 = dma.hbm_to_vmem [thread:$0]  %s1747_s0, 384, %s16_s10, [#allocation4], %s1392_s19, %s1392_s19, %s1393_s20  }
  0x13   :  { %s1394_s23 = smov [#allocation6]   ;;  %s1341_s27 = scalar_lea.hbm %s1748_s1, 4096 }
  0x14   :  { %s27_s24 = sshll.u32 %s1394_s23, 4  ;;  %p1342_p8 = scmp.ne.s32.totalorder %s1748_s1, %s1341_s27  ;;  %s28_s24 = int_to_ptr.vmem [resolvable:$true] %s27_s24 }
  0x15   :  { %p1345_p9 = scmp.lt.u32.totalorder %s1341_s27, %s1748_s1 }
  0x17   :  { %p1347_p10 = pnand %p1345_p9, %p1342_p8 }
  0x19   :  { %1350 = shalt.err (!%p1347_p10)
}
  0x1a   :  { %s1351_s4 = scalar_lea.vmem %s28_s24, 4096  ;;  %p1356_p12 = scmp.lt.s32.totalorder %s28_s24, %s28_s24 }
  0x1b   :  { %p1352_p11 = scmp.ne.s32.totalorder %s28_s24, %s1351_s4  ;;  %p1357_p13 = scmp.lt.s32.totalorder %s1351_s4, %s1351_s4 }
  0x1d   :  { %p1358_p0 = por %p1357_p13, %p1356_p12 }
  0x1f   :  { %p1359_p1 = pnand %p1358_p0, %p1352_p11 }
  0x21   :  { %1362 = shalt.err (!%p1359_p1)
}
  0x22   :  { %s1395_s0 = smov 256   ;;  %s1396_s5 = smov 16  }
  0x23   :  { %33 = dma.hbm_to_vmem [thread:$0]  %s1748_s1, 4096, %s28_s24, [#allocation7], %s1395_s0, %s1395_s0, %s1396_s5  }
  0x24   :  { %1385 = dma.done.wait [#allocation4], 384  }
  0x25   :  { %1386 = vsyncadd [#allocation4], 4294966912 }
  0x26   :  { %1387 = dma.done.wait [#allocation7], 4096  }
  0x27   :  { %1388 = vsyncadd [#allocation7], 4294963200  ;;  %v1750_v0 = vmov 0.0   ;;  %v60_v1 = vld [vmem:[#allocation6 + $0x8] sm:$0xff]  ;;  %v62_v2 = vld [vmem:[#allocation6 + $0x18] sm:$0xff]  ;;  %s1398_s1 = smov [#allocation8]  }
  0x28   :  { %187 = vmatprep.mubr.f32.mxu1 %v1750_v0  ;;  %716 = vmatprep.mubr.f32.mxu0 %v1750_v0  ;;  %v59_v3 = vld [vmem:[#allocation6] sm:$0xff]  ;;  %v91_v4 = vand.u32 4294901760, %v60_v1  ;;  %v95_v5 = vand.u32 4294901760, %v62_v2  ;;  %v61_v6 = vld [vmem:[#allocation6 + $0x10] sm:$0xff]  ;;  %v64_v8 = vld [vmem:[#allocation6 + $0x28] sm:$0xff]  ;;  %s1076_s8 = sshll.u32 %s1398_s1, 4  ;;  %s1077_s8 = int_to_ptr.vmem [resolvable:$true] %s1076_s8 }
  0x29   :  { %v93_v7 = vand.u32 4294901760, %v59_v3  ;;  %v66_v9 = vld [vmem:[#allocation6 + $0x38] sm:$0xff]  ;;  %v97_v10 = vand.u32 4294901760, %v61_v6  ;;  %v99_v11 = vand.u32 4294901760, %v64_v8  ;;  %v63_v13 = vld [vmem:[#allocation6 + $0x20] sm:$0xff]  ;;  %v65_v14 = vld [vmem:[#allocation6 + $0x30] sm:$0xff]  ;;  %p1368_p3 = scmp.lt.s32.totalorder %s1077_s8, %s1077_s8 }
  0x2a   :  { %v103_v12 = vand.u32 4294901760, %v66_v9  ;;  %v68_v15 = vld [vmem:[#allocation6 + $0x48] sm:$0xff]  ;;  %v1443_v16 = vpack.c.bf16 %v95_v5, %v91_v4  ;;  %v70_v17 = vld [vmem:[#allocation6 + $0x58] sm:$0xff]  ;;  %v67_v18 = vld [vmem:[#allocation6 + $0x40] sm:$0xff]  ;;  %v1445_v20 = vsub.f32 %v60_v1, %v91_v4  ;;  %v1447_v21 = vsub.f32 %v62_v2, %v95_v5  ;;  %s1363_s9 = scalar_lea.vmem %s1077_s8, 768 }
  0x2b   :  { %v69_v19 = vld [vmem:[#allocation6 + $0x50] sm:$0xff]  ;;  %v1449_v22 = vpack.c.bf16 %v97_v10, %v93_v7  ;;  %v72_v24 = vld [vmem:[#allocation6 + $0x68] sm:$0xff]  ;;  %v74_v25 = vld [vmem:[#allocation6 + $0x78] sm:$0xff]  ;;  %v1455_v26 = vsub.f32 %v59_v3, %v93_v7  ;;  %v101_v27 = vand.u32 4294901760, %v63_v13  ;;  %v105_v28 = vand.u32 4294901760, %v65_v14  ;;  %p1364_p2 = scmp.ne.s32.totalorder %s1077_s8, %s1363_s9  ;;  %p1369_p4 = scmp.lt.s32.totalorder %s1363_s9, %s1363_s9 }
  0x2c   :  { %v1451_v23 = vpack.c.bf16 %v103_v12, %v99_v11  ;;  %1090 = vmatprep.subr.bf16.mxu1 %v1443_v16  ;;  %1186 = vmatprep.subr.bf16.mxu0 %v1443_v16  ;;  %v107_v29 = vand.u32 4294901760, %v68_v15  ;;  %v1458_v30 = vsub.f32 %v61_v6, %v97_v10  ;;  %v111_v31 = vand.u32 4294901760, %v70_v17  ;;  %v71_v38 = vld [vmem:[#allocation6 + $0x60] sm:$0xff]  ;;  %v73_v39 = vld [vmem:[#allocation6 + $0x70] sm:$0xff]  ;;  %v76_v40 = vld [vmem:[#allocation6 + $0x88] sm:$0xff] }
  0x2d   :  { %1775 = vst [vmem:[#allocation12_spill] sm:$0xff] %v1449_v22  ;;  %1092 = vmatpush1.bf16.msra.mxu1 %v1449_v22  ;;  %1188 = vmatpush1.bf16.msra.mxu0 %v1449_v22  ;;  %v109_v32 = vand.u32 4294901760, %v67_v18  ;;  %v113_v33 = vand.u32 4294901760, %v69_v19  ;;  %v1462_v34 = vsub.f32 %v64_v8, %v99_v11  ;;  %v1465_v35 = vpack.c.bf16 %v105_v28, %v101_v27  ;;  %v78_v45 = vld [vmem:[#allocation6 + $0x98] sm:$0xff]  ;;  %v75_v46 = vld [vmem:[#allocation6 + $0x80] sm:$0xff]  ;;  %v77_v47 = vld [vmem:[#allocation6 + $0x90] sm:$0xff]  ;;  %p1370_p5 = por %p1369_p4, %p1368_p3 }
  0x2e   :  { %1776 = vst [vmem:[#allocation13_spill] sm:$0xff] %v1451_v23  ;;  %1094 = vmatprep.subr.bf16.mxu1 %v1451_v23  ;;  %1190 = vmatprep.subr.bf16.mxu0 %v1451_v23  ;;  %v115_v36 = vand.u32 4294901760, %v72_v24  ;;  %v119_v37 = vand.u32 4294901760, %v74_v25  ;;  %v1467_v41 = vsub.f32 %v66_v9, %v103_v12  ;;  %v1469_v42 = vsub.f32 %v63_v13, %v101_v27  ;;  %v80_v52 = vld [vmem:[#allocation6 + $0xa8] sm:$0xff]  ;;  %v82_v61 = vld [vmem:[#allocation6 + $0xb8] sm:$0xff]  ;;  %v79_v62 = vld [vmem:[#allocation6 + $0xa0] sm:$0xff] }
  0x2f   :  { %1777 = vst [vmem:[#allocation14_spill] sm:$0xff] %v1465_v35  ;;  %v1471_v43 = vsub.f32 %v65_v14, %v105_v28  ;;  %v1473_v44 = vpack.c.bf16 %v111_v31, %v107_v29  ;;  %v1475_v48 = vsub.f32 %v68_v15, %v107_v29  ;;  %v1477_v49 = vsub.f32 %v70_v17, %v111_v31  ;;  %v81_v4 = vld [vmem:[#allocation6 + $0xb0] sm:$0xff]  ;;  %v84_v5 = vld [vmem:[#allocation6 + $0xc8] sm:$0xff]  ;;  %v86_v6 = vld [vmem:[#allocation6 + $0xd8] sm:$0xff]  ;;  %p1371_p6 = pnand %p1370_p5, %p1364_p2 }
  0x30   :  { %1778 = vst [vmem:[#allocation15_spill] sm:$0xff] %v1469_v42  ;;  %v1479_v50 = vpack.c.bf16 %v113_v33, %v109_v32  ;;  %v1481_v51 = vsub.f32 %v67_v18, %v109_v32  ;;  %v1485_v53 = vsub.f32 %v69_v19, %v113_v33  ;;  %v117_v54 = vand.u32 4294901760, %v71_v38  ;;  %v83_v11 = vld [vmem:[#allocation6 + $0xc0] sm:$0xff]  ;;  %v85_v12 = vld [vmem:[#allocation6 + $0xd0] sm:$0xff]  ;;  %v88_v27 = vld [vmem:[#allocation6 + $0xe8] sm:$0xff] }
  0x31   :  { %1779 = vst [vmem:[#allocation16_spill] sm:$0xff] %v1471_v43  ;;  %1780 = vst [vmem:[#allocation17_spill] sm:$0xff] %v1473_v44  ;;  %1096 = vmatpush1.bf16.msra.mxu1 %v1465_v35  ;;  %1192 = vmatpush1.bf16.msra.mxu0 %v1465_v35  ;;  %v121_v55 = vand.u32 4294901760, %v73_v39  ;;  %v123_v56 = vand.u32 4294901760, %v76_v40  ;;  %v1489_v57 = vpack.c.bf16 %v119_v37, %v115_v36  ;;  %v127_v58 = vand.u32 4294901760, %v78_v45  ;;  %v90_v33 = vld [vmem:[#allocation6 + $0xf8] sm:$0xff] }
  0x32   :  { %1781 = vst [vmem:[#allocation18_spill] sm:$0xff] %v1475_v48  ;;  %1782 = vst [vmem:[#allocation19_spill] sm:$0xff] %v1477_v49  ;;  %1098 = vmatprep.subr.bf16.mxu1 %v1473_v44  ;;  %1194 = vmatprep.subr.bf16.mxu0 %v1473_v44  ;;  %v125_v59 = vand.u32 4294901760, %v75_v46  ;;  %v129_v60 = vand.u32 4294901760, %v77_v47  ;;  %v1491_v63 = vsub.f32 %v72_v24, %v115_v36  ;;  %v131_v3 = vand.u32 4294901760, %v80_v52  ;;  %v87_v36 = vld [vmem:[#allocation6 + $0xe0] sm:$0xff] }
  0x33   :  { %1783 = vst [vmem:[#allocation20_spill] sm:$0xff] %v1479_v50  ;;  %1784 = vst [vmem:[#allocation21_spill] sm:$0xff] %v1481_v51  ;;  %v1493_v1 = vsub.f32 %v74_v25, %v119_v37  ;;  %v1495_v2 = vpack.c.bf16 %v121_v55, %v117_v54  ;;  %v1497_v7 = vsub.f32 %v71_v38, %v117_v54  ;;  %v135_v15 = vand.u32 4294901760, %v82_v61  ;;  %v89_v37 = vld [vmem:[#allocation6 + $0xf0] sm:$0xff] }
  0x34   :  { %1785 = vst [vmem:[#allocation22_spill] sm:$0xff] %v1485_v53  ;;  %1786 = vst [vmem:[#allocation23_spill] sm:$0xff] %v1489_v57  ;;  %v1499_v8 = vsub.f32 %v73_v39, %v121_v55  ;;  %v1501_v9 = vpack.c.bf16 %v127_v58, %v123_v56  ;;  %v1503_v10 = vsub.f32 %v76_v40, %v123_v56  ;;  %v133_v17 = vand.u32 4294901760, %v79_v62 }
  0x35   :  { %1787 = vst [vmem:[#allocation24_spill] sm:$0xff] %v1495_v2  ;;  %1100 = vmatpush1.bf16.msra.mxu1 %v1479_v50  ;;  %1196 = vmatpush1.bf16.msra.mxu0 %v1479_v50  ;;  %v1507_v13 = vsub.f32 %v78_v45, %v127_v58  ;;  %v1509_v14 = vpack.c.bf16 %v129_v60, %v125_v59  ;;  %v137_v19 = vand.u32 4294901760, %v81_v4  ;;  %v139_v24 = vand.u32 4294901760, %v84_v5 }
  0x36   :  { %1788 = vst [vmem:[#allocation25_spill] sm:$0xff] %v1501_v9  ;;  %1102 = vmatprep.subr.bf16.mxu1 %v1489_v57  ;;  %1198 = vmatprep.subr.bf16.mxu0 %v1489_v57  ;;  %v1513_v18 = vsub.f32 %v75_v46, %v125_v59  ;;  %v143_v25 = vand.u32 4294901760, %v86_v6  ;;  %v1515_v28 = vsub.f32 %v77_v47, %v129_v60  ;;  %v141_v31 = vand.u32 4294901760, %v83_v11  ;;  %v56_v46 = vld [vmem:[#allocation3] sm:$0xff] }
  0x37   :  { %1789 = vst [vmem:[#allocation26_spill] sm:$0xff] %v1509_v14  ;;  %v1517_v29 = vsub.f32 %v80_v52, %v131_v3  ;;  %v145_v32 = vand.u32 4294901760, %v85_v12  ;;  %v1519_v38 = vpack.c.bf16 %v135_v15, %v131_v3  ;;  %v1521_v39 = vsub.f32 %v82_v61, %v135_v15 }
  0x38   :  { %v1523_v40 = vpack.c.bf16 %v137_v19, %v133_v17  ;;  %v1525_v45 = vsub.f32 %v79_v62, %v133_v17  ;;  %v1529_v47 = vsub.f32 %v81_v4, %v137_v19  ;;  %v1531_v52 = vpack.c.bf16 %v143_v25, %v139_v24 }
  0x39   :  { %1790 = vst [vmem:[#allocation27_spill] sm:$0xff] %v1519_v38  ;;  %1104 = vmatpush1.bf16.msra.mxu1 %v1495_v2  ;;  %1200 = vmatpush1.bf16.msra.mxu0 %v1495_v2  ;;  %v1533_v54 = vsub.f32 %v84_v5, %v139_v24  ;;  %v147_v55 = vand.u32 4294901760, %v88_v27  ;;  %v1537_v56 = vsub.f32 %v86_v6, %v143_v25  ;;  %v151_v58 = vand.u32 4294901760, %v90_v33 }
  0x3a   :  { %1791 = vst [vmem:[#allocation28_spill] sm:$0xff] %v1523_v40  ;;  %1792 = vst [vmem:[#allocation29_spill] sm:$0xff] %v1531_v52  ;;  %1106 = vmatprep.subr.bf16.mxu1 %v1501_v9  ;;  %1202 = vmatprep.subr.bf16.mxu0 %v1501_v9  ;;  %v149_v59 = vand.u32 4294901760, %v87_v36  ;;  %v153_v60 = vand.u32 4294901760, %v89_v37  ;;  %v1539_v61 = vpack.c.bf16 %v145_v32, %v141_v31  ;;  %v223_v62 = vand.u32 4294901760, %v1445_v20 }
  0x3b   :  { %v235_v3 = vand.u32 4294901760, %v1447_v21  ;;  %v1543_v4 = vand.u32 4294901760, %v56_v46  ;;  %v1545_v5 = vsub.f32 %v83_v11, %v141_v31  ;;  %v1547_v15 = vsub.f32 %v85_v12, %v145_v32 }
  0x3c   :  { %1793 = vst [vmem:[#allocation30_spill] sm:$0xff] %v1539_v61  ;;  %v1549_v17 = vpack.c.bf16 %v151_v58, %v147_v55  ;;  %v1551_v19 = vsub.f32 %v88_v27, %v147_v55  ;;  %v1555_v6 = vsub.f32 %v90_v33, %v151_v58  ;;  %v224_v24 = vsub.f32 %v1445_v20, %v223_v62 }
  0x3d   :  { %1794 = vst [vmem:[#allocation31_spill] sm:$0xff] %v1547_v15  ;;  %1108 = vmatpush1.bf16.msra.mxu1 %v1509_v14  ;;  %1204 = vmatpush1.bf16.msra.mxu0 %v1509_v14  ;;  %v236_v25 = vsub.f32 %v1447_v21, %v235_v3  ;;  %v229_v0 = vand.u32 4294901760, %v1455_v26  ;;  %v1562_v11 = vpack.c.bf16 %v153_v60, %v149_v59  ;;  %v241_v27 = vand.u32 4294901760, %v1458_v30 }
  0x3e   :  { %1795 = vst [vmem:[#allocation32_spill] sm:$0xff] %v1549_v17  ;;  %1110 = vmatprep.subr.bf16.mxu1 %v1519_v38  ;;  %1206 = vmatprep.subr.bf16.mxu0 %v1519_v38  ;;  %v1565_v12 = vsub.f32 %v56_v46, %v1543_v4  ;;  %v247_v31 = vand.u32 4294901760, %v1462_v34  ;;  %v1569_v32 = vsub.f32 %v87_v36, %v149_v59  ;;  %v259_v58 = vand.u32 4294901760, %v1467_v41 }
  0x3f   :  { %1796 = vst [vmem:[#allocation33_spill] sm:$0xff] %v1562_v11  ;;  %v1571_v33 = vsub.f32 %v89_v37, %v153_v60  ;;  %v230_v55 = vsub.f32 %v1455_v26, %v229_v0  ;;  %v225_v14 = vand.u32 4294901760, %v224_v24  ;;  %v237_v9 = vand.u32 4294901760, %v236_v25 }
  0x40   :  { %1797 = vst [vmem:[#allocation34_spill] sm:$0xff] %v1565_v12  ;;  %v190_v38 = vand.u32 4294901760, %v1565_v12  ;;  %v242_v2 = vsub.f32 %v1458_v30, %v241_v27  ;;  %v1217_v46 = vpack.c.bf16 %v235_v3, %v223_v62  ;;  %v248_v36 = vsub.f32 %v1462_v34, %v247_v31 }
  0x41   :  { %1112 = vmatpush1.bf16.msra.mxu1 %v1523_v40  ;;  %1208 = vmatpush1.bf16.msra.mxu0 %v1523_v40  ;;  %v260_v37 = vsub.f32 %v1467_v41, %v259_v58  ;;  %v231_v60 = vand.u32 4294901760, %v230_v55  ;;  %v253_v25 = vand.u32 4294901760, %v1469_v42  ;;  %v1219_v57 = vpack.c.bf16 %v241_v27, %v229_v0 }
  0x42   :  { %1114 = vmatprep.subr.bf16.mxu1 %v1531_v52  ;;  %1210 = vmatprep.subr.bf16.mxu0 %v1531_v52  ;;  %v191_v59 = vsub.f32 %v1565_v12, %v190_v38  ;;  %v243_v24 = vand.u32 4294901760, %v242_v2  ;;  %v265_v50 = vand.u32 4294901760, %v1471_v43  ;;  %v271_v40 = vand.u32 4294901760, %v1475_v48 }
  0x43   :  { %v283_v62 = vand.u32 4294901760, %v1477_v49  ;;  %v1121_v3 = vpack.c.bf16 %v237_v9, %v225_v14  ;;  %v1221_v44 = vpack.c.bf16 %v259_v58, %v247_v31  ;;  %v254_v35 = vsub.f32 %v1469_v42, %v253_v25 }
  0x44   :  { %v277_v23 = vand.u32 4294901760, %v1481_v51  ;;  %v249_v2 = vand.u32 4294901760, %v248_v36  ;;  %v261_v55 = vand.u32 4294901760, %v260_v37  ;;  %v266_v0 = vsub.f32 %v1471_v43, %v265_v50 }
  0x45   :  { %1116 = vmatpush1.bf16.msra.mxu1 %v1539_v61  ;;  %1212 = vmatpush1.bf16.msra.mxu0 %v1539_v61  ;;  %v289_v27 = vand.u32 4294901760, %v1485_v53  ;;  %v192_v9 = vand.u32 4294901760, %v191_v59  ;;  %v1123_v14 = vpack.c.bf16 %v243_v24, %v231_v60  ;;  %v272_v31 = vsub.f32 %v1475_v48, %v271_v40 }
  0x46   :  { %1118 = vmatprep.subr.bf16.mxu1 %v1549_v17  ;;  %1214 = vmatprep.subr.bf16.mxu0 %v1549_v17  ;;  %v284_v58 = vsub.f32 %v1477_v49, %v283_v62  ;;  %v255_v12 = vand.u32 4294901760, %v254_v35  ;;  %v267_v52 = vand.u32 4294901760, %v266_v0  ;;  %v278_v61 = vsub.f32 %v1481_v51, %v277_v23 }
  0x47   :  { %v290_v36 = vsub.f32 %v1485_v53, %v289_v27  ;;  %v273_v37 = vand.u32 4294901760, %v272_v31  ;;  %v295_v42 = vand.u32 4294901760, %v1491_v63  ;;  %v307_v22 = vand.u32 4294901760, %v1493_v1 }
  0x48   :  { %v285_v43 = vand.u32 4294901760, %v284_v58  ;;  %v1125_v59 = vpack.c.bf16 %v261_v55, %v249_v2  ;;  %v1223_v60 = vpack.c.bf16 %v265_v50, %v253_v25  ;;  %v279_v24 = vand.u32 4294901760, %v278_v61 }
  0x49   :  { %1120 = vmatpush1.bf16.msra.mxu1 %v1562_v11  ;;  %1216 = vmatpush1.bf16.msra.mxu0 %v1562_v11  ;;  %v301_v35 = vand.u32 4294901760, %v1497_v7  ;;  %v291_v0 = vand.u32 4294901760, %v290_v36  ;;  %v296_v17 = vsub.f32 %v1491_v63, %v295_v42  ;;  %v308_v31 = vsub.f32 %v1493_v1, %v307_v22 }
  0x4a   :  { %1122 = vmatprep.subr.bf16.mxu1 %v1121_v3  ;;  %1218 = vmatprep.subr.bf16.mxu0 %v1217_v46  ;;  %v313_v58 = vand.u32 4294901760, %v1499_v8  ;;  %v1127_v53 = vpack.c.bf16 %v267_v52, %v255_v12  ;;  %v1225_v51 = vpack.c.bf16 %v283_v62, %v271_v40  ;;  %v1227_v49 = vpack.c.bf16 %v289_v27, %v277_v23 }
  0x4b   :  { %v319_v48 = vand.u32 4294901760, %v1503_v10  ;;  %v1129_v50 = vpack.c.bf16 %v285_v43, %v273_v37  ;;  %v302_v61 = vsub.f32 %v1497_v7, %v301_v35  ;;  %v297_v46 = vand.u32 4294901760, %v296_v17 }
  0x4c   :  { %193 = vmatmul.mubr.f32.vlgmr.msra.gmra.mrb[0].mxu1 %v192_v9  ;;  %720 = vmatmul.mubr.f32.vlgmr.msra.gmra.mrb[0].mxu0 %v190_v38  ;;  %v314_v25 = vsub.f32 %v1499_v8, %v313_v58  ;;  %v309_v3 = vand.u32 4294901760, %v308_v31  ;;  %v331_v2 = vand.u32 4294901760, %v1507_v13  ;;  %v325_v55 = vand.u32 4294901760, %v1513_v18 }
  0x4d   :  { %1124 = vmatpush1.bf16.msra.mxu1 %v1123_v14  ;;  %1220 = vmatpush1.bf16.msra.mxu0 %v1219_v57  ;;  %v1131_v23 = vpack.c.bf16 %v291_v0, %v279_v24  ;;  %v320_v40 = vsub.f32 %v1503_v10, %v319_v48  ;;  %v337_v38 = vand.u32 4294901760, %v1515_v28  ;;  %v343_v43 = vand.u32 4294901760, %v1517_v29 }
  0x4e   :  { %1126 = vmatprep.subr.bf16.mxu1 %v1125_v59  ;;  %1222 = vmatprep.subr.bf16.mxu0 %v1221_v44  ;;  %v1229_v52 = vpack.c.bf16 %v307_v22, %v295_v42  ;;  %v332_v12 = vsub.f32 %v1507_v13, %v331_v2  ;;  %v326_v57 = vsub.f32 %v1513_v18, %v325_v55  ;;  %v1798_v17 = vmov 0.0  }
  0x4f   :  { %198 = vmatprep.mubr.f32.mxu1 %v1798_v17  ;;  %725 = vmatprep.mubr.f32.mxu0 %v1798_v17  ;;  %v303_v62 = vand.u32 4294901760, %v302_v61  ;;  %v315_v27 = vand.u32 4294901760, %v314_v25  ;;  %v1231_v9 = vpack.c.bf16 %v313_v58, %v301_v35  ;;  %v338_v44 = vsub.f32 %v1515_v28, %v337_v38  ;;  %v57_v35 = vld [vmem:[#allocation3 + $0x8] sm:$0xff] }
  0x50   :  { %v1133_v14 = vpack.c.bf16 %v309_v3, %v297_v46  ;;  %v344_v36 = vsub.f32 %v1517_v29, %v343_v43  ;;  %v355_v22 = vand.u32 4294901760, %v1521_v39  ;;  %v349_v42 = vand.u32 4294901760, %v1525_v45 }
  0x51   :  { %1128 = vmatpush1.bf16.msra.mxu1 %v1127_v53  ;;  %1224 = vmatpush1.bf16.msra.mxu0 %v1223_v60  ;;  %v321_v37 = vand.u32 4294901760, %v320_v40  ;;  %v333_v59 = vand.u32 4294901760, %v332_v12  ;;  %v361_v24 = vand.u32 4294901760, %v1529_v47  ;;  %v367_v0 = vand.u32 4294901760, %v1533_v54 }
  0x52   :  { %1130 = vmatprep.subr.bf16.mxu1 %v1129_v50  ;;  %1226 = vmatprep.subr.bf16.mxu0 %v1225_v51  ;;  %v1233_v31 = vpack.c.bf16 %v331_v2, %v319_v48  ;;  %v327_v58 = vand.u32 4294901760, %v326_v57  ;;  %v339_v53 = vand.u32 4294901760, %v338_v44  ;;  %v356_v60 = vsub.f32 %v1521_v39, %v355_v22 }
  0x53   :  { %v1135_v61 = vpack.c.bf16 %v315_v27, %v303_v62  ;;  %v350_v25 = vsub.f32 %v1525_v45, %v349_v42  ;;  %v362_v46 = vsub.f32 %v1529_v47, %v361_v24  ;;  %v368_v50 = vsub.f32 %v1533_v54, %v367_v0 }
  0x54   :  { %v1235_v51 = vpack.c.bf16 %v337_v38, %v325_v55  ;;  %v345_v3 = vand.u32 4294901760, %v344_v36  ;;  %v379_v40 = vand.u32 4294901760, %v1537_v56  ;;  %v1631_v12 = vand.u32 4294901760, %v57_v35  ;;  %v58_v55 = vld [vmem:[#allocation3 + $0x10] sm:$0xff] }
  0x55   :  { %1132 = vmatpush1.bf16.msra.mxu1 %v1131_v23  ;;  %1228 = vmatpush1.bf16.msra.mxu0 %v1227_v49  ;;  %v1137_v48 = vpack.c.bf16 %v333_v59, %v321_v37  ;;  %v357_v2 = vand.u32 4294901760, %v356_v60  ;;  %v373_v57 = vand.u32 4294901760, %v1545_v5  ;;  %v385_v62 = vand.u32 4294901760, %v1547_v15 }
  0x56   :  { %1134 = vmatprep.subr.bf16.mxu1 %v1133_v14  ;;  %1230 = vmatprep.subr.bf16.mxu0 %v1229_v52  ;;  %v1139_v27 = vpack.c.bf16 %v339_v53, %v327_v58  ;;  %v1237_v44 = vpack.c.bf16 %v355_v22, %v343_v43  ;;  %v380_v11 = vsub.f32 %v1537_v56, %v379_v40  ;;  %v351_v23 = vand.u32 4294901760, %v350_v25 }
  0x57   :  { %v1637_v49 = vsub.f32 %v57_v35, %v1631_v12  ;;  %v363_v38 = vand.u32 4294901760, %v362_v46  ;;  %v369_v36 = vand.u32 4294901760, %v368_v50  ;;  %v374_v14 = vsub.f32 %v1545_v5, %v373_v57 }
  0x58   :  { %v386_v37 = vsub.f32 %v1547_v15, %v385_v62  ;;  %v391_v59 = vand.u32 4294901760, %v1551_v19  ;;  %v403_v43 = vand.u32 4294901760, %v1555_v6  ;;  %v1141_v22 = vpack.c.bf16 %v357_v2, %v345_v3 }
  0x59   :  { %1136 = vmatpush1.bf16.msra.mxu1 %v1135_v61  ;;  %1232 = vmatpush1.bf16.msra.mxu0 %v1231_v9  ;;  %v201_v52 = vand.u32 4294901760, %v1637_v49  ;;  %v381_v35 = vand.u32 4294901760, %v380_v11  ;;  %v1644_v58 = vand.u32 4294901760, %v58_v55  ;;  %v397_v53 = vand.u32 4294901760, %v1569_v32 }
  0x5a   :  { %1138 = vmatprep.subr.bf16.mxu1 %v1137_v48  ;;  %1234 = vmatprep.subr.bf16.mxu0 %v1233_v31  ;;  %v1239_v60 = vpack.c.bf16 %v361_v24, %v349_v42  ;;  %v392_v9 = vsub.f32 %v1551_v19, %v391_v59  ;;  %v404_v25 = vsub.f32 %v1555_v6, %v403_v43  ;;  %v375_v15 = vand.u32 4294901760, %v374_v14 }
  0x5b   :  { %v202_v61 = vsub.f32 %v1637_v49, %v201_v52  ;;  %729 = vmatmul.mubr.f32.gmra.mrb[2].mxu0 %v201_v52  ;;  %v1143_v46 = vpack.c.bf16 %v363_v38, %v351_v23  ;;  %v1241_v50 = vpack.c.bf16 %v379_v40, %v367_v0  ;;  %v1652_v31 = vsub.f32 %v58_v55, %v1644_v58 }
  0x5c   :  { %734 = vmatprep.mubr.f32.mxu0 %v1798_v17  ;;  %v387_v3 = vand.u32 4294901760, %v386_v37  ;;  %v398_v42 = vsub.f32 %v1569_v32, %v397_v53  ;;  %v409_v24 = vand.u32 4294901760, %v1571_v33  ;;  %v1145_v48 = vpack.c.bf16 %v381_v35, %v369_v36  ;;  %v1802_v35 = vld [vmem:[#allocation13_spill] sm:$0xff] }
  0x5d   :  { %1140 = vmatpush1.bf16.msra.mxu1 %v1139_v27  ;;  %1236 = vmatpush1.bf16.msra.mxu0 %v1235_v51  ;;  %v203_v11 = vand.u32 4294901760, %v202_v61  ;;  %v393_v2 = vand.u32 4294901760, %v392_v9  ;;  %v405_v23 = vand.u32 4294901760, %v404_v25  ;;  %v212_v0 = vand.u32 4294901760, %v1652_v31  ;;  %v1808_v61 = vld [vmem:[#allocation17_spill] sm:$0xff]  ;;  %v1809_v25 = vld [vmem:[#allocation20_spill] sm:$0xff] }
  0x5e   :  { %1142 = vmatprep.subr.bf16.mxu1 %v1141_v22  ;;  %1238 = vmatprep.subr.bf16.mxu0 %v1237_v44  ;;  %v410_v40 = vsub.f32 %v1571_v33, %v409_v24  ;;  %v1147_v27 = vpack.c.bf16 %v387_v3, %v375_v15  ;;  %v1243_v55 = vpack.c.bf16 %v385_v62, %v373_v57  ;;  %v399_v38 = vand.u32 4294901760, %v398_v42  ;;  %v1812_v3 = vld [vmem:[#allocation25_spill] sm:$0xff] }
  0x5f   :  { %204 = vmatmul.mubr.f32.gmra.mrb[2].mxu1 %v203_v11  ;;  %v213_v51 = vsub.f32 %v1652_v31, %v212_v0  ;;  %738 = vmatmul.mubr.f32.gmra.mrb[4].mxu0 %v212_v0  ;;  %v1149_v44 = vpack.c.bf16 %v405_v23, %v393_v2  ;;  %v1245_v36 = vpack.c.bf16 %v403_v43, %v391_v59  ;;  %v1799_v59 = vld [vmem:[#allocation12_spill] sm:$0xff] }
  0x60   :  { %209 = vmatprep.mubr.f32.mxu1 %v1798_v17  ;;  %v411_v14 = vand.u32 4294901760, %v410_v40  ;;  %904 = vmatprep.mubr.f32.mxu0 %v1798_v17  ;;  %v1247_v22 = vpack.c.bf16 %v409_v24, %v397_v53  ;;  %v1153_v15 = vpack.c.bf16 %v1447_v21, %v1445_v20  ;;  %v1155_v57 = vpack.c.bf16 %v1458_v30, %v1455_v26  ;;  %v1800_v20 = vld [vmem:[#allocation15_spill] sm:$0xff]  ;;  %v1801_v21 = vld [vmem:[#allocation16_spill] sm:$0xff]  ;;  %v1803_v26 = vld [vmem:[#allocation18_spill] sm:$0xff] }
  0x61   :  { %1144 = vmatpush1.bf16.msra.mxu1 %v1143_v46  ;;  %1240 = vmatpush1.bf16.msra.mxu0 %v1239_v60  ;;  %v214_v52 = vand.u32 4294901760, %v213_v51  ;;  %v1157_v62 = vpack.c.bf16 %v1467_v41, %v1462_v34  ;;  %v1159_v43 = vpack.c.bf16 %v1801_v21, %v1800_v20  ;;  %v1804_v30 = vld [vmem:[#allocation19_spill] sm:$0xff]  ;;  %v1806_v34 = vld [vmem:[#allocation21_spill] sm:$0xff]  ;;  %v1807_v41 = vld [vmem:[#allocation22_spill] sm:$0xff]  ;;  %v1165_v9 = vpack.c.bf16 %v1493_v1, %v1491_v63 }
  0x62   :  { %1146 = vmatprep.subr.bf16.mxu1 %v1145_v48  ;;  %1242 = vmatprep.subr.bf16.mxu0 %v1241_v50  ;;  %v1151_v37 = vpack.c.bf16 %v411_v14, %v399_v38  ;;  %v1161_v53 = vpack.c.bf16 %v1804_v30, %v1803_v26  ;;  %v1163_v60 = vpack.c.bf16 %v1807_v41, %v1806_v34  ;;  %v1810_v50 = vld [vmem:[#allocation23_spill] sm:$0xff]  ;;  %v1811_v1 = vld [vmem:[#allocation24_spill] sm:$0xff]  ;;  %v1821_v48 = vld [vmem:[#allocation34_spill] sm:$0xff] }
  0x63   :  { %215 = vmatmul.mubr.f32.gmra.mrb[4].mxu1 %v214_v52  ;;  %v1167_v46 = vpack.c.bf16 %v1499_v8, %v1497_v7  ;;  %v1169_v63 = vpack.c.bf16 %v1507_v13, %v1503_v10  ;;  %v1171_v11 = vpack.c.bf16 %v1515_v28, %v1513_v18  ;;  %v1173_v7 = vpack.c.bf16 %v1521_v39, %v1517_v29  ;;  %v1813_v8 = vld [vmem:[#allocation26_spill] sm:$0xff]  ;;  %v1814_v13 = vld [vmem:[#allocation27_spill] sm:$0xff]  ;;  %v1815_v18 = vld [vmem:[#allocation28_spill] sm:$0xff] }
  0x64   :  { %445 = vmatprep.mubr.f32.mxu1 %v1798_v17  ;;  %v1175_v10 = vpack.c.bf16 %v1529_v47, %v1525_v45  ;;  %v1177_v42 = vpack.c.bf16 %v1537_v56, %v1533_v54  ;;  %v1816_v28 = vld [vmem:[#allocation31_spill] sm:$0xff]  ;;  %v1817_v29 = vld [vmem:[#allocation29_spill] sm:$0xff]  ;;  %v1181_v39 = vpack.c.bf16 %v1555_v6, %v1551_v19  ;;  %v1818_v45 = vld [vmem:[#allocation30_spill] sm:$0xff]  ;;  %v1183_v47 = vpack.c.bf16 %v1571_v33, %v1569_v32 }
  0x65   :  { %1148 = vmatpush1.bf16.msra.mxu1 %v1147_v27  ;;  %1244 = vmatpush1.bf16.msra.mxu0 %v1243_v55  ;;  %v1179_v24 = vpack.c.bf16 %v1816_v28, %v1545_v5  ;;  %v1819_v54 = vld [vmem:[#allocation32_spill] sm:$0xff]  ;;  %v1820_v56 = vld [vmem:[#allocation33_spill] sm:$0xff] }
  0x66   :  { %1150 = vmatprep.subr.bf16.mxu1 %v1149_v44  ;;  %1246 = vmatprep.subr.bf16.mxu0 %v1245_v36 }
  0x69   :  { %1152 = vmatpush1.bf16.msra.mxu1 %v1151_v37  ;;  %1248 = vmatpush1.bf16.msra.mxu0 %v1247_v22 }
  0x6a   :  { %1154 = vmatprep.subr.bf16.mxu1 %v1153_v15  ;;  %1250 = vmatprep.subr.bf16.mxu0 %v1443_v16  ;;  %v1805_v16 = vld [vmem:[#allocation14_spill] sm:$0xff] }
  0x6c   :  { %447 = vmatmul.mubr.f32.vlgmr.msra.gmra.mrb[0].mxu1 %v1543_v4  ;;  %906 = vmatmul.mubr.f32.vlgmr.msra.gmra.mrb[0].mxu0 %v1543_v4 }
  0x6d   :  { %1156 = vmatpush1.bf16.msra.mxu1 %v1155_v57  ;;  %1252 = vmatpush1.bf16.msra.mxu0 %v1799_v59 }
  0x6e   :  { %1158 = vmatprep.subr.bf16.mxu1 %v1157_v62  ;;  %1254 = vmatprep.subr.bf16.mxu0 %v1802_v35 }
  0x6f   :  { %452 = vmatprep.mubr.f32.mxu1 %v1798_v17  ;;  %911 = vmatprep.mubr.f32.mxu0 %v1798_v17 }
  0x70   :  { %454 = vmatmul.mubr.f32.gmra.mrb[2].mxu1 %v1631_v12  ;;  %913 = vmatmul.mubr.f32.gmra.mrb[2].mxu0 %v1631_v12 }
  0x71   :  { %1160 = vmatpush1.bf16.msra.mxu1 %v1159_v43  ;;  %1256 = vmatpush1.bf16.msra.mxu0 %v1805_v16 }
  0x72   :  { %1162 = vmatprep.subr.bf16.mxu1 %v1161_v53  ;;  %1258 = vmatprep.subr.bf16.mxu0 %v1808_v61 }
  0x73   :  { %459 = vmatprep.mubr.f32.mxu1 %v1798_v17  ;;  %918 = vmatprep.mubr.f32.mxu0 %v1798_v17 }
  0x74   :  { %461 = vmatmul.mubr.f32.gmra.mrb[4].mxu1 %v1644_v58  ;;  %920 = vmatmul.mubr.f32.gmra.mrb[4].mxu0 %v1644_v58 }
  0x75   :  { %1164 = vmatpush1.bf16.msra.mxu1 %v1163_v60  ;;  %1260 = vmatpush1.bf16.msra.mxu0 %v1809_v25 }
  0x76   :  { %1166 = vmatprep.subr.bf16.mxu1 %v1165_v9  ;;  %1262 = vmatprep.subr.bf16.mxu0 %v1810_v50 }
  0x77   :  { %595 = vmatprep.mubr.f32.mxu1 %v1798_v17  ;;  %1022 = vmatprep.mubr.f32.mxu0 %v1798_v17 }
  0x79   :  { %1168 = vmatpush1.bf16.msra.mxu1 %v1167_v46  ;;  %1264 = vmatpush1.bf16.msra.mxu0 %v1811_v1 }
  0x7a   :  { %1170 = vmatprep.subr.bf16.mxu1 %v1169_v63  ;;  %1266 = vmatprep.subr.bf16.mxu0 %v1812_v3 }
  0x7d   :  { %1172 = vmatpush1.bf16.msra.mxu1 %v1171_v11  ;;  %1268 = vmatpush1.bf16.msra.mxu0 %v1813_v8 }
  0x7e   :  { %1174 = vmatprep.subr.bf16.mxu1 %v1173_v7  ;;  %1270 = vmatprep.subr.bf16.mxu0 %v1814_v13 }
  0x81   :  { %1176 = vmatpush1.bf16.msra.mxu1 %v1175_v10  ;;  %1272 = vmatpush1.bf16.msra.mxu0 %v1815_v18 }
  0x82   :  { %1178 = vmatprep.subr.bf16.mxu1 %v1177_v42  ;;  %1274 = vmatprep.subr.bf16.mxu0 %v1817_v29 }
  0x85   :  { %1180 = vmatpush1.bf16.msra.mxu1 %v1179_v24  ;;  %1276 = vmatpush1.bf16.msra.mxu0 %v1818_v45 }
  0x86   :  { %1182 = vmatprep.subr.bf16.mxu1 %v1181_v39  ;;  %1278 = vmatprep.subr.bf16.mxu0 %v1819_v54 }
  0x89   :  { %1184 = vmatpush1.bf16.msra.mxu1 %v1183_v47  ;;  %1280 = vmatpush1.bf16.msra.mxu0 %v1820_v56 }
  0x8c   :  { %598 = vmatmul.mubr.f32.vlgmr.msra.gmra.mrb[0].mxu1 %v1821_v48  ;;  %1024 = vmatmul.mubr.f32.vlgmr.msra.gmra.mrb[0].mxu0 %v1543_v4 }
  0x8d   :  { %603 = vmatprep.mubr.f32.mxu1 %v1798_v17  ;;  %1029 = vmatprep.mubr.f32.mxu0 %v1798_v17 }
  0x90   :  { %606 = vmatmul.mubr.f32.gmra.mrb[2].mxu1 %v1637_v49  ;;  %1031 = vmatmul.mubr.f32.gmra.mrb[2].mxu0 %v1631_v12 }
  0x91   :  { %611 = vmatprep.mubr.f32.mxu1 %v1798_v17  ;;  %1036 = vmatprep.mubr.f32.mxu0 %v1798_v17 }
  0x94   :  { %614 = vmatmul.mubr.f32.gmra.mrb[4].mxu1 %v1652_v31  ;;  %1038 = vmatmul.mubr.f32.gmra.mrb[4].mxu0 %v1644_v58 }
 0x15f   :  { %v599_v5 = vpop.f32.mrb[0].mxu1  ;;  %v1025_v19 = vpop.f32.mrb[0].mxu0 }
 0x160   :  { %v1281_v6 = vadd.f32 %v1025_v19, %v599_v5  ;;  %v601_v4 = vpop.f32.mrb[1].mxu1  ;;  %v1027_v32 = vpop.f32.mrb[1].mxu0 }
 0x161   :  { %v1282_v33 = vadd.f32 %v1027_v32, %v601_v4 }
 0x162   :  { %1065 = vst [vmem:[#allocation8] sm:$0xff] %v1281_v6 }
 0x163   :  { %1066 = vst [vmem:[#allocation8 + $0x8] sm:$0xff] %v1282_v33  ;;  %v607_v2 = vpop.f32.mrb[2].mxu1  ;;  %v1032_v49 = vpop.f32.mrb[2].mxu0 }
 0x164   :  { %v1283_v23 = vadd.f32 %v1032_v49, %v607_v2  ;;  %v609_v12 = vpop.f32.mrb[3].mxu1  ;;  %v1034_v0 = vpop.f32.mrb[3].mxu0 }
 0x165   :  { %v1284_v40 = vadd.f32 %v1034_v0, %v609_v12 }
 0x166   :  { %1067 = vst [vmem:[#allocation8 + $0x10] sm:$0xff] %v1283_v23 }
 0x167   :  { %1068 = vst [vmem:[#allocation8 + $0x18] sm:$0xff] %v1284_v40  ;;  %v615_v17 = vpop.f32.mrb[4].mxu1  ;;  %v1039_v58 = vpop.f32.mrb[4].mxu0 }
 0x168   :  { %v1285_v31 = vadd.f32 %v1039_v58, %v615_v17  ;;  %v617_v51 = vpop.f32.mrb[5].mxu1  ;;  %v1041_v27 = vpop.f32.mrb[5].mxu0 }
 0x169   :  { %v1286_v55 = vadd.f32 %v1041_v27, %v617_v51 }
 0x16a   :  { %1069 = vst [vmem:[#allocation8 + $0x20] sm:$0xff] %v1285_v31 }
 0x16b   :  { %1070 = vst [vmem:[#allocation8 + $0x28] sm:$0xff] %v1286_v55 }
 0x16c   :  { %1374 = shalt.err (!%p1371_p6)
}
 0x16d   :  { %s1375_s12 = scalar_lea.hbm %s1749_s2, 768 }
 0x16e   :  { %p1376_p7 = scmp.ne.s32.totalorder %s1749_s2, %s1375_s12  ;;  %p1379_p8 = scmp.lt.u32.totalorder %s1375_s12, %s1749_s2 }
 0x170   :  { %p1381_p9 = pnand %p1379_p8, %p1376_p7 }
 0x172   :  { %1384 = shalt.err (!%p1381_p9)
}
 0x173   :  { %1082 = dma.vmem_to_hbm [thread:$0]  %s1077_s8, 768, %s1749_s2, [#allocation5], %s1395_s0, %s1395_s0, %s1396_s5  }
 0x174   :  { %1389 = dma.done.wait [#allocation5], 768  }
 0x175   :  { %1390 = vsyncadd [#allocation5], 4294966528 }
 0x176   :  { %1086 = vsyncpa [#allocation4], 1 }
 0x177   :  { %1087 = vsyncpa [#allocation7], 1 }
 0x178   :  { %1088 = vsyncpa [#allocation5], 1 }

// kernel: transformer_block.8
= control target key start
LH: loop header
LB: loop body
LE: loop exit
PB: predicated region body
PF: predicated region fallthrough
CT: control target
= control target key end

     0   :  { %s1651_s15 = smov 0   ;;  %s1695_s0 = inlined_call_operand.vmem [shape: f32[8,9,32], index: 0, kind: input, shape index: {}]   ;;  %s1696_s1 = inlined_call_operand.vmem [shape: f32[8,11,32], index: 1, kind: input, shape index: {}]   ;;  %s1697_s2 = inlined_call_operand.vmem [shape: f32[8,11,32], index: 2, kind: input, shape index: {}]   ;;  %s1698_s3 = inlined_call_operand.vmem [shape: f32[9,11], index: 3, kind: input, shape index: {}]   ;;  %s1699_s4 = inlined_call_operand.vmem [shape: f32[8,9,32], index: 4, kind: output, shape index: {}]  }
   0x1 LB: > { %s1383_s16 = sadd.s32 4294967295, %s1624_s15   ;;  %p1387_p0 = scmp.ge.s32.totalorder %s1624_s15, 1  ;;  %s1624_s15 = sphi %s1651_s15, %s14_s15  }
   0x2   : > { %p182_p1 = scmp.lt.s32.totalorder %s1624_s15, 9 }
   0x4   : > { %p183_p2 = pnand %p1387_p0, %p182_p1 }
   0x5   : > { %p218_p3 = scmp.lt.s32.totalorder (!%p183_p2), %s1383_s16, 7  ;;  %vm244_vm0 = vcmask (!%p183_p2), 261120   ;;  %v761_v38 = vld [vmem:[%s1698_s3] sm:$0xff] (!%p183_p2)  ;;  %vm765_vm1 = vcmask (!%p183_p2), 89088   ;;  %v762_v41 = vld [vmem:[%s1698_s3 + $0x8] sm:$0x1] (!%p183_p2) }
   0x6   : > { %186 = sbr.rel (%p183_p2) target bundleno = 872 (0x368), region = 36  ;;  %vm769_vm2 = vcmask (!%p183_p2), 81920   ;;  %vm795_vm3 = vcmask (!%p183_p2), 1042432   ;;  %vm1302_vm4 = vcmask (!%p183_p2), 253952  }
   0xd   : > { %s1701_s16 = smov (!%p218_p3, %s1383_s16), 7 }
   0xe   : > { %s1659_s17 = sshll.u32 %s1701_s16, 4 }
   0xf   : > { %s227_s20 = scalar_lea.vmem %s1696_s1, %s1659_s17  ;;  %s222_s23 = scalar_lea.vmem %s1695_s0, %s1659_s17 }
  0x10   : > { %v240_v0 = vld [vmem:[%s227_s20] sm:$0xff]  ;;  %v241_v1 = vld [vmem:[%s227_s20 + $0x8] sm:$0x7]  ;;  %s232_s30 = scalar_lea.vmem %s1697_s2, %s1659_s17  ;;  %s237_s7 = scalar_lea.vmem %s1699_s4, %s1659_s17 }
  0x11   : > { %v252_v2 = vsel %vm244_vm0, %v240_v0, 0  ;;  %v255_v3 = vsel %vm244_vm0, %v241_v1, 0  ;;  %v238_v4 = vld [vmem:[%s222_s23] sm:$0xff]  ;;  %v239_v5 = vld [vmem:[%s222_s23 + $0x8] sm:$0x1] }
  0x12   : > { %v258_v6 = vand.u32 4294901760, %v252_v2  ;;  %v261_v7 = vand.u32 4294901760, %v255_v3  ;;  %v246_v8 = vsel %vm244_vm0, %v238_v4, 0  ;;  %v249_v9 = vsel %vm244_vm0, %v239_v5, 0  ;;  %v243_v56 = vld [vmem:[%s232_s30 + $0x8] sm:$0x7] }
  0x13   : > { %v324_v10 = vand.u32 4294901760, %v246_v8  ;;  %v334_v11 = vand.u32 4294901760, %v249_v9  ;;  %v242_v57 = vld [vmem:[%s232_s30] sm:$0xff]  ;;  %v797_v58 = vsel %vm795_vm3, %v243_v56, 0 }
  0x14   : > { %v1534_v12 = vpack.c.bf16 %v261_v7, %v258_v6  ;;  %v346_v13 = vsub.f32 %v252_v2, %v258_v6  ;;  %v353_v14 = vsub.f32 %v255_v3, %v261_v7  ;;  %v800_v59 = vand.u32 4294901760, %v242_v57 }
  0x15   : > { %1461 = vmatprep.mubr.f32.mxu0 %v324_v10  ;;  %v325_v15 = vsub.f32 %v246_v8, %v324_v10  ;;  %v335_v16 = vsub.f32 %v249_v9, %v334_v11  ;;  %v803_v60 = vand.u32 4294901760, %v797_v58 }
  0x16   : > { %v347_v17 = vand.u32 4294901760, %v346_v13  ;;  %v354_v18 = vand.u32 4294901760, %v353_v14  ;;  %1535 = vmatprep.subr.bf16.mxu1 %v1534_v12  ;;  %v1542_v30 = vpack.c.bf16 %v353_v14, %v346_v13  ;;  %v888_v62 = vsub.f32 %v242_v57, %v800_v59 }
  0x17   : > { %v326_v19 = vand.u32 4294901760, %v325_v15  ;;  %v336_v20 = vand.u32 4294901760, %v335_v16  ;;  %1537 = vmatpush3.bf16.xpose.msra.mxu1 %v1534_v12  ;;  %v1558_v61 = vpack.c.bf16 %v803_v60, %v800_v59  ;;  %v895_v63 = vsub.f32 %v797_v58, %v803_v60 }
  0x18   : > { %v348_v21 = vsub.f32 %v346_v13, %v347_v17  ;;  %v355_v22 = vsub.f32 %v353_v14, %v354_v18  ;;  %v1550_v31 = vpack.c.bf16 %v354_v18, %v347_v17  ;;  %v889_v0 = vand.u32 4294901760, %v888_v62 }
  0x19   : > { %v327_v23 = vsub.f32 %v325_v15, %v326_v19  ;;  %v337_v24 = vsub.f32 %v335_v16, %v336_v20  ;;  %1559 = vmatprep.subr.bf16.mxu1 %v1558_v61  ;;  %v896_v1 = vand.u32 4294901760, %v895_v63  ;;  %v1566_v7 = vpack.c.bf16 %v895_v63, %v888_v62 }
  0x1a   : > { %v349_v25 = vand.u32 4294901760, %v348_v21  ;;  %v356_v26 = vand.u32 4294901760, %v355_v22  ;;  %v890_v2 = vsub.f32 %v888_v62, %v889_v0 }
  0x1b   : > { %v328_v27 = vand.u32 4294901760, %v327_v23  ;;  %v338_v28 = vand.u32 4294901760, %v337_v24  ;;  %v897_v3 = vsub.f32 %v895_v63, %v896_v1  ;;  %v1574_v8 = vpack.c.bf16 %v896_v1, %v889_v0 }
  0x1c   : > { %v1538_v29 = vpack.c.bf16 %v356_v26, %v349_v25  ;;  %v891_v4 = vand.u32 4294901760, %v890_v2 }
  0x1d   : > { %1454 = vmatprep.mubr.f32.mxu1 %v328_v27  ;;  %v898_v5 = vand.u32 4294901760, %v897_v3 }
  0x1e   : > { %1539 = vmatprep.subr.bf16.mxu0 %v1538_v29  ;;  %1455 = vmatmul.mubr.f32.vlgmr.msra.gmra.mrb[0].mxu1 %v338_v28 }
  0x1f   : > { %1541 = vmatpush3.bf16.xpose.msra.mxu0 %v1538_v29  ;;  %1561 = vmatpush3.bf16.msra.mxu1 %v1558_v61  ;;  %v1562_v6 = vpack.c.bf16 %v898_v5, %v891_v4 }
  0x20   : > { %1543 = vmatprep.subr.bf16.mxu0 %v1542_v30 }
  0x21   : > { %1563 = vmatprep.subr.bf16.mxu1 %v1562_v6 }
  0x26   : > { %1462 = vmatmul.mubr.f32.vlgmr.msra.gmra.mrb[0].mxu0 %v334_v11 }
  0x27   : > { %1545 = vmatpush3.bf16.xpose.msra.mxu0 %v1542_v30  ;;  %1468 = vmatprep.mubr.f32.mxu0 %v325_v15 }
  0x28   : > { %1547 = vmatprep.subr.bf16.mxu0 %v1534_v12 }
  0x2e   : > { %1469 = vmatmul.mubr.f32.vlgmr.msra.gmra.mrb[0].mxu0 %v335_v16 }
  0x2f   : > { %1549 = vmatpush3.bf16.xpose.msra.mxu0 %v1534_v12  ;;  %1475 = vmatprep.mubr.f32.mxu0 %v326_v19 }
  0x30   : > { %1551 = vmatprep.subr.bf16.mxu0 %v1550_v31 }
  0x36   : > { %1476 = vmatmul.mubr.f32.vlgmr.msra.gmra.mrb[0].mxu0 %v336_v20 }
  0x37   : > { %1553 = vmatpush3.bf16.xpose.msra.mxu0 %v1550_v31  ;;  %1482 = vmatprep.mubr.f32.mxu0 %v324_v10 }
  0x38   : > { %1555 = vmatprep.subr.bf16.mxu0 %v1534_v12 }
  0x3e   : > { %1483 = vmatmul.mubr.f32.vlgmr.msra.gmra.mrb[0].mxu0 %v334_v11 }
  0x3f   : > { %1557 = vmatpush3.bf16.xpose.msra.mxu0 %v1534_v12  ;;  %1489 = vmatprep.mubr.f32.mxu0 %v324_v10 }
  0x46   : > { %1490 = vmatmul.mubr.f32.vlgmr.msra.gmra.mrb[0].mxu0 %v334_v11 }
  0xf1   : > { %v1456_v32 = vpop.f32.mrb[0].mxu1 }
  0xf2   : > { %v330_v33 = vpop.f32.mrb[1].mxu1 }
 0x119   : > { %v1491_v34 = vpop.f32.mrb[0].mxu0 }
 0x11a   : > { %v1582_v35 = vadd.f32 %v1491_v34, %v1456_v32  ;;  %v749_v36 = vpop.f32.mrb[1].mxu0 }
 0x11b   : > { %v1583_v37 = vadd.f32 %v749_v36, %v330_v33 }
 0x11c   : > { %v760_v39 = vmul.f32 0.17677669, %v1582_v35 }
 0x11d   : > { %v759_v40 = vmul.f32 0.17677669, %v1583_v37 }
 0x11e   : > { %v764_v44 = vadd.f32 %v762_v41, %v760_v39 }
 0x11f   : > { %v763_v42 = vadd.f32 %v761_v38, %v759_v40 }
 0x120   : > { %v770_v45 = vsel %vm769_vm2, %v764_v44, -inf }
 0x121   : > { %v766_v43 = vsel %vm765_vm1, %v763_v42, -inf }
 0x122   : > { %767 = vmax.xlane.f32.xlu0 %v766_v43 }
 0x126   : > { %771 = vmax.xlane.f32.xlu0 %v770_v45 }
 0x1af   : > { %v768_v46 = vpop.xlane.xlu0 %767 }
 0x1b0   : > { %v773_v47 = vsub.f32 %v763_v42, %v768_v46 }
 0x1b2   : > { %v775_v48 = vmul.f32 1.442695, %v773_v47 }
 0x1b3   : > { %v772_v49 = vpop.xlane.xlu0 %771 }
 0x1b4   : > { %1610 = vpow2.f32 %v775_v48  ;;  %v774_v50 = vsub.f32 %v764_v44, %v772_v49 }
 0x1b6   : > { %v777_v51 = vmul.f32 1.442695, %v774_v50 }
 0x1b8   : > { %1612 = vpow2.f32 %v777_v51 }
 0x1be   : > { %v1611_v52 = vpop.eup %1610 }
 0x1bf   : > { %v779_v53 = vsel %vm765_vm1, %v1611_v52, 0.0 }
 0x1c0   : > { %780 = vadd.xlane.f32.xlu1 %v779_v53 }
 0x1c2   : > { %v1613_v54 = vpop.eup %1612 }
 0x1c3   : > { %v782_v55 = vsel %vm769_vm2, %v1613_v54, 0.0 }
 0x1c4   : > { %783 = vadd.xlane.f32.xlu1 %v782_v55 }
 0x24d   : > { %v781_v9 = vpop.xlane.xlu1 %780 }
 0x24e   : > { %1614 = vrcp.f32 %v781_v9 }
 0x251   : > { %v784_v10 = vpop.xlane.xlu1 %783 }
 0x252   : > { %1616 = vrcp.f32 %v784_v10 }
 0x258   : > { %v1615_v11 = vpop.eup %1614 }
 0x259   : > { %v786_v12 = vmul.f32 %v1615_v11, %v1611_v52 }
 0x25b   : > { %v790_v13 = vsel %vm765_vm1, %v786_v12, 0 }
 0x25c   : > { %v1617_v14 = vpop.eup %1616  ;;  %v866_v15 = vand.u32 4294901760, %v790_v13 }
 0x25d   : > { %v788_v16 = vmul.f32 %v1617_v14, %v1613_v54 }
 0x25e   : > { %v867_v17 = vsub.f32 %v790_v13, %v866_v15 }
 0x25f   : > { %v793_v18 = vsel %vm765_vm1, %v788_v16, 0 }
 0x260   : > { %v876_v19 = vand.u32 4294901760, %v793_v18  ;;  %v868_v20 = vand.u32 4294901760, %v867_v17 }
 0x262   : > { %v869_v21 = vsub.f32 %v867_v17, %v868_v20  ;;  %v877_v22 = vsub.f32 %v793_v18, %v876_v19 }
 0x264   : > { %v870_v23 = vand.u32 4294901760, %v869_v21  ;;  %v878_v24 = vand.u32 4294901760, %v877_v22 }
 0x266   : > { %1496 = vmatprep.mubr.f32.mxu1 %v870_v23  ;;  %v879_v25 = vsub.f32 %v877_v22, %v878_v24 }
 0x268   : > { %v880_v26 = vand.u32 4294901760, %v879_v25 }
 0x26a   : > { %1497 = vmatmul.mubr.f32.vlgmr.msra.gmra.mrb[2].mxu1 %v880_v26 }
 0x26b   : > { %1565 = vmatpush3.bf16.msra.mxu1 %v1562_v6  ;;  %1503 = vmatprep.mubr.f32.mxu1 %v866_v15 }
 0x26c   : > { %1567 = vmatprep.subr.bf16.mxu1 %v1566_v7 }
 0x272   : > { %1504 = vmatmul.mubr.f32.vlgmr.msra.gmra.mrb[2].mxu1 %v876_v19 }
 0x273   : > { %1569 = vmatpush3.bf16.msra.mxu1 %v1566_v7  ;;  %1510 = vmatprep.mubr.f32.mxu1 %v867_v17 }
 0x274   : > { %1571 = vmatprep.subr.bf16.mxu1 %v1558_v61 }
 0x27a   : > { %1511 = vmatmul.mubr.f32.vlgmr.msra.gmra.mrb[2].mxu1 %v877_v22 }
 0x27b   : > { %1573 = vmatpush3.bf16.msra.mxu1 %v1558_v61  ;;  %1517 = vmatprep.mubr.f32.mxu1 %v868_v20 }
 0x27c   : > { %1575 = vmatprep.subr.bf16.mxu1 %v1574_v8 }
 0x282   : > { %1518 = vmatmul.mubr.f32.vlgmr.msra.gmra.mrb[2].mxu1 %v878_v24 }
 0x283   : > { %1577 = vmatpush3.bf16.msra.mxu1 %v1574_v8  ;;  %1524 = vmatprep.mubr.f32.mxu1 %v866_v15 }
 0x284   : > { %1579 = vmatprep.subr.bf16.mxu1 %v1558_v61 }
 0x28a   : > { %1525 = vmatmul.mubr.f32.vlgmr.msra.gmra.mrb[2].mxu1 %v876_v19 }
 0x28b   : > { %1581 = vmatpush3.bf16.msra.mxu1 %v1558_v61  ;;  %1531 = vmatprep.mubr.f32.mxu1 %v866_v15 }
 0x292   : > { %1532 = vmatmul.mubr.f32.vlgmr.msra.gmra.mrb[2].mxu1 %v876_v19 }
 0x365   : > { %v1533_v27 = vpop.f32.mrb[2].mxu1 }
 0x366   : > { %1303 = vst.msk [vmem:[%s237_s7 + $0x8] sm:$0x1] %vm1302_vm4, %v1533_v27  ;;  %v1291_v28 = vpop.f32.mrb[3].mxu1 }
 0x367   : > { %1301 = vst.msk [vmem:[%s237_s7] sm:$0xff] %vm244_vm0, %v1291_v28 }
 0x368 PF: > { %s14_s15 = sadd.s32 1, %s1624_s15  }
 0x369   : > { %p11_p4 = scmp.ge.s32.totalorder %s14_s15, 10  }
 0x36b   :  { %13 = sbr.rel (!%p11_p4) target bundleno = 1 (0x1), region = 72 }

// kernel: transformer_block.9
= control target key start
LH: loop header
LB: loop body
LE: loop exit
PB: predicated region body
PF: predicated region fallthrough
CT: control target
= control target key end

     0   :  { %7 = vsyncpa [#allocation4], 0  ;;  %s1817_s0 = inlined_call_operand.hbm [shape: f32[24,128], index: 0, kind: input, shape index: {}]   ;;  %s1818_s1 = inlined_call_operand.hbm [shape: f32[128,128], index: 1, kind: input, shape index: {}]   ;;  %s1819_s2 = inlined_call_operand.hbm [shape: f32[24,128], index: 2, kind: output, shape index: {}]  }
   0x1   :  { %8 = vsyncpa [#allocation7], 0 }
   0x2   :  { %9 = vsyncpa [#allocation5], 0  ;;  %s1440_s9 = smov [#allocation3]   ;;  %s1368_s13 = scalar_lea.hbm %s1817_s0, 384 }
   0x3   :  { %s15_s10 = sshll.u32 %s1440_s9, 4  ;;  %p1369_p0 = scmp.ne.s32.totalorder %s1817_s0, %s1368_s13  ;;  %s16_s10 = int_to_ptr.vmem [resolvable:$true] %s15_s10 }
   0x4   :  { %p1372_p1 = scmp.lt.u32.totalorder %s1368_s13, %s1817_s0 }
   0x6   :  { %p1374_p2 = pnand %p1372_p1, %p1369_p0 }
   0x8   :  { %1377 = shalt.err (!%p1374_p2)
}
   0x9   :  { %s1378_s18 = scalar_lea.vmem %s16_s10, 384  ;;  %p1383_p4 = scmp.lt.s32.totalorder %s16_s10, %s16_s10 }
   0xa   :  { %p1379_p3 = scmp.ne.s32.totalorder %s16_s10, %s1378_s18  ;;  %p1384_p5 = scmp.lt.s32.totalorder %s1378_s18, %s1378_s18 }
   0xc   :  { %p1385_p6 = por %p1384_p5, %p1383_p4 }
   0xe   :  { %p1386_p7 = pnand %p1385_p6, %p1379_p3 }
  0x10   :  { %1389 = shalt.err (!%p1386_p7)
}
  0x11   :  { %s1441_s19 = smov 128   ;;  %s1442_s20 = smov 8  }
  0x12   :  { %21 = dma.hbm_to_vmem [thread:$0]  %s1817_s0, 384, %s16_s10, [#allocation4], %s1441_s19, %s1441_s19, %s1442_s20  }
  0x13   :  { %s1443_s23 = smov [#allocation6]   ;;  %s1390_s27 = scalar_lea.hbm %s1818_s1, 2048 }
  0x14   :  { %s27_s24 = sshll.u32 %s1443_s23, 4  ;;  %p1391_p8 = scmp.ne.s32.totalorder %s1818_s1, %s1390_s27  ;;  %s28_s24 = int_to_ptr.vmem [resolvable:$true] %s27_s24 }
  0x15   :  { %p1394_p9 = scmp.lt.u32.totalorder %s1390_s27, %s1818_s1 }
  0x17   :  { %p1396_p10 = pnand %p1394_p9, %p1391_p8 }
  0x19   :  { %1399 = shalt.err (!%p1396_p10)
}
  0x1a   :  { %s1400_s4 = scalar_lea.vmem %s28_s24, 2048  ;;  %p1405_p12 = scmp.lt.s32.totalorder %s28_s24, %s28_s24 }
  0x1b   :  { %p1401_p11 = scmp.ne.s32.totalorder %s28_s24, %s1400_s4  ;;  %p1406_p13 = scmp.lt.s32.totalorder %s1400_s4, %s1400_s4 }
  0x1d   :  { %p1407_p0 = por %p1406_p13, %p1405_p12 }
  0x1f   :  { %p1408_p1 = pnand %p1407_p0, %p1401_p11 }
  0x21   :  { %1411 = shalt.err (!%p1408_p1)
}
  0x22   :  { %33 = dma.hbm_to_vmem [thread:$0]  %s1818_s1, 2048, %s28_s24, [#allocation7], %s1441_s19, %s1441_s19, %s1442_s20  }
  0x23   :  { %1434 = dma.done.wait [#allocation4], 384  }
  0x24   :  { %1435 = vsyncadd [#allocation4], 4294966912 }
  0x25   :  { %1436 = dma.done.wait [#allocation7], 2048  }
  0x26   :  { %1437 = vsyncadd [#allocation7], 4294965248  ;;  %v1444_v0 = vmov 0.0|0.0   ;;  %vm1445_vm0 = vmmov 0   ;;  %v1446_v1 = vmov 0.0   ;;  %v53_v2 = vld [vmem:[#allocation6] sm:$0xff] }
  0x27   :  { %1189 = vmatprep.subr.bf16.mxu1 %v1444_v0  ;;  %1261 = vmatprep.subr.bf16.mxu0 %v1444_v0  ;;  %v54_v3 = vld [vmem:[#allocation6 + $0x8] sm:$0xff]  ;;  %v55_v4 = vld [vmem:[#allocation6 + $0x10] sm:$0xff]  ;;  %v70_v5 = vand.u32 4294901760, %v53_v2  ;;  %v56_v7 = vld [vmem:[#allocation6 + $0x18] sm:$0xff]  ;;  %s1447_s1 = smov [#allocation8]  }
  0x28   :  { %975 = vmatprep.mubr.msk.f32.mxu1 %vm1445_vm0, %v1446_v1  ;;  %1098 = vmatprep.mubr.msk.f32.mxu0 %vm1445_vm0, %v1446_v1  ;;  %v73_v6 = vand.u32 4294901760, %v54_v3  ;;  %v76_v8 = vand.u32 4294901760, %v55_v4  ;;  %v79_v9 = vand.u32 4294901760, %v56_v7  ;;  %v57_v10 = vld [vmem:[#allocation6 + $0x20] sm:$0xff]  ;;  %v58_v11 = vld [vmem:[#allocation6 + $0x28] sm:$0xff]  ;;  %v1507_v16 = vld [vmem:[#allocation6 + $0x30] sm:$0xff] }
  0x29   :  { %v82_v14 = vand.u32 4294901760, %v57_v10  ;;  %v85_v15 = vand.u32 4294901760, %v58_v11  ;;  %v1509_v17 = vld [vmem:[#allocation6 + $0x38] sm:$0xff]  ;;  %v88_v19 = vand.u32 4294901760, %v1507_v16  ;;  %v1519_v21 = vld [vmem:[#allocation6 + $0x40] sm:$0xff]  ;;  %v1521_v22 = vld [vmem:[#allocation6 + $0x48] sm:$0xff]  ;;  %v1535_v29 = vsub.f32 %v53_v2, %v70_v5 }
  0x2a   :  { %v1499_v12 = vpack.c.bf16 %v73_v6, %v70_v5  ;;  %v1503_v13 = vpack.c.bf16 %v79_v9, %v76_v8  ;;  %v91_v20 = vand.u32 4294901760, %v1509_v17  ;;  %v94_v24 = vand.u32 4294901760, %v1519_v21  ;;  %v50_v26 = vld [vmem:[#allocation3] sm:$0xff]  ;;  %v1531_v27 = vld [vmem:[#allocation6 + $0x50] sm:$0xff]  ;;  %v1533_v28 = vld [vmem:[#allocation6 + $0x58] sm:$0xff]  ;;  %s816_s6 = sshll.u32 %s1447_s1, 4  ;;  %s817_s6 = int_to_ptr.vmem [resolvable:$true] %s816_s6 }
  0x2b   :  { %v1513_v18 = vpack.c.bf16 %v85_v15, %v82_v14  ;;  %v97_v25 = vand.u32 4294901760, %v1521_v22  ;;  %v1537_v30 = vand.u32 4294901760, %v50_v26  ;;  %v1539_v31 = vsub.f32 %v54_v3, %v73_v6  ;;  %v1551_v35 = vld [vmem:[#allocation6 + $0x60] sm:$0xff]  ;;  %v1553_v36 = vld [vmem:[#allocation6 + $0x68] sm:$0xff]  ;;  %v51_v37 = vld [vmem:[#allocation3 + $0x8] sm:$0xff]  ;;  %s1412_s7 = scalar_lea.vmem %s817_s6, 384  ;;  %p1417_p3 = scmp.lt.s32.totalorder %s817_s6, %s817_s6 }
  0x2c   :  { %1191 = vmatpush3.bf16.msra.mxu1 %v1499_v12  ;;  %1263 = vmatpush3.bf16.msra.mxu0 %v1499_v12  ;;  %v1525_v23 = vpack.c.bf16 %v91_v20, %v88_v19  ;;  %v100_v33 = vand.u32 4294901760, %v1531_v27  ;;  %v103_v34 = vand.u32 4294901760, %v1533_v28  ;;  %v1557_v38 = vsub.f32 %v55_v4, %v76_v8  ;;  %v1563_v42 = vld [vmem:[#allocation6 + $0x70] sm:$0xff]  ;;  %v1576_v45 = vld [vmem:[#allocation6 + $0x78] sm:$0xff]  ;;  %p1413_p2 = scmp.ne.s32.totalorder %s817_s6, %s1412_s7  ;;  %p1418_p4 = scmp.lt.s32.totalorder %s1412_s7, %s1412_s7 }
  0x2d   :  { %1192 = vmatprep.subr.bf16.mxu1 %v1444_v0  ;;  %1264 = vmatprep.subr.bf16.mxu0 %v1444_v0  ;;  %v1547_v32 = vpack.c.bf16 %v97_v25, %v94_v24  ;;  %v1559_v39 = vsub.f32 %v56_v7, %v79_v9  ;;  %v106_v40 = vand.u32 4294901760, %v1551_v35  ;;  %v109_v41 = vand.u32 4294901760, %v1553_v36  ;;  %v52_v49 = vld [vmem:[#allocation3 + $0x10] sm:$0xff] }
  0x2e   :  { %v1566_v43 = vsub.f32 %v50_v26, %v1537_v30  ;;  %v1574_v44 = vpack.c.bf16 %v103_v34, %v100_v33  ;;  %v183_v46 = vand.u32 4294901760, %v1535_v29  ;;  %v190_v47 = vand.u32 4294901760, %v1539_v31  ;;  %p1419_p5 = por %p1418_p4, %p1417_p3 }
  0x2f   :  { %v1580_v48 = vand.u32 4294901760, %v51_v37  ;;  %v1584_v50 = vsub.f32 %v57_v10, %v82_v14  ;;  %v1586_v51 = vsub.f32 %v58_v11, %v85_v15  ;;  %v112_v52 = vand.u32 4294901760, %v1563_v42 }
  0x30   :  { %1194 = vmatpush3.bf16.msra.mxu1 %v1503_v13  ;;  %1266 = vmatpush3.bf16.msra.mxu0 %v1503_v13  ;;  %v197_v53 = vand.u32 4294901760, %v1557_v38  ;;  %v1594_v54 = vpack.c.bf16 %v109_v41, %v106_v40  ;;  %v115_v55 = vand.u32 4294901760, %v1576_v45  ;;  %v152_v56 = vand.u32 4294901760, %v1566_v43  ;;  %p1420_p6 = pnand %p1419_p5, %p1413_p2 }
  0x31   :  { %1195 = vmatprep.subr.bf16.mxu1 %v1444_v0  ;;  %1267 = vmatprep.subr.bf16.mxu0 %v1444_v0  ;;  %v1599_v57 = vsub.f32 %v51_v37, %v1580_v48  ;;  %v184_v58 = vsub.f32 %v1535_v29, %v183_v46  ;;  %v191_v59 = vsub.f32 %v1539_v31, %v190_v47  ;;  %v204_v60 = vand.u32 4294901760, %v1559_v39 }
  0x32   :  { %v1606_v61 = vand.u32 4294901760, %v52_v49  ;;  %v1611_v62 = vsub.f32 %v1507_v16, %v88_v19  ;;  %v1614_v63 = vsub.f32 %v1509_v17, %v91_v20  ;;  %v198_v2 = vsub.f32 %v1557_v38, %v197_v53 }
  0x33   :  { %v211_v3 = vand.u32 4294901760, %v1584_v50  ;;  %v153_v4 = vsub.f32 %v1566_v43, %v152_v56  ;;  %v218_v5 = vand.u32 4294901760, %v1586_v51  ;;  %v162_v6 = vand.u32 4294901760, %v1599_v57 }
  0x34   :  { %1197 = vmatpush3.bf16.msra.mxu1 %v1513_v18  ;;  %1269 = vmatpush3.bf16.msra.mxu0 %v1513_v18  ;;  %v1622_v7 = vsub.f32 %v52_v49, %v1606_v61  ;;  %v1630_v8 = vpack.c.bf16 %v115_v55, %v112_v52  ;;  %v185_v9 = vand.u32 4294901760, %v184_v58  ;;  %v192_v10 = vand.u32 4294901760, %v191_v59 }
  0x35   :  { %1198 = vmatprep.subr.bf16.mxu1 %v1444_v0  ;;  %1270 = vmatprep.subr.bf16.mxu0 %v1444_v0  ;;  %v205_v11 = vsub.f32 %v1559_v39, %v204_v60  ;;  %v1636_v14 = vsub.f32 %v1519_v21, %v94_v24  ;;  %v1643_v15 = vsub.f32 %v1521_v22, %v97_v25  ;;  %v199_v17 = vand.u32 4294901760, %v198_v2 }
  0x36   :  { %v1286_v16 = vpack.c.bf16 %v190_v47, %v183_v46  ;;  %v212_v19 = vsub.f32 %v1584_v50, %v211_v3  ;;  %v154_v20 = vand.u32 4294901760, %v153_v4  ;;  %v219_v26 = vsub.f32 %v1586_v51, %v218_v5 }
  0x37   :  { %v163_v37 = vsub.f32 %v1599_v57, %v162_v6  ;;  %v172_v21 = vand.u32 4294901760, %v1622_v7  ;;  %v1214_v24 = vpack.c.bf16 %v192_v10, %v185_v9  ;;  %v206_v49 = vand.u32 4294901760, %v205_v11 }
  0x38   :  { %1200 = vmatpush3.bf16.msra.mxu1 %v1525_v23  ;;  %1272 = vmatpush3.bf16.msra.mxu0 %v1525_v23  ;;  %v225_v22 = vand.u32 4294901760, %v1611_v62  ;;  %v232_v25 = vand.u32 4294901760, %v1614_v63  ;;  %v1658_v46 = vsub.f32 %v1531_v27, %v100_v33  ;;  %v1663_v47 = vsub.f32 %v1533_v28, %v103_v34 }
  0x39   :  { %1201 = vmatprep.subr.bf16.mxu1 %v1444_v0  ;;  %1273 = vmatprep.subr.bf16.mxu0 %v1444_v0  ;;  %v1289_v58 = vpack.c.bf16 %v204_v60, %v197_v53  ;;  %v213_v59 = vand.u32 4294901760, %v212_v19  ;;  %v220_v2 = vand.u32 4294901760, %v219_v26  ;;  %v239_v4 = vand.u32 4294901760, %v1636_v14 }
  0x3a   :  { %v164_v9 = vand.u32 4294901760, %v163_v37  ;;  %v173_v10 = vsub.f32 %v1622_v7, %v172_v21  ;;  %v1217_v11 = vpack.c.bf16 %v206_v49, %v199_v17  ;;  %v226_v27 = vsub.f32 %v1611_v62, %v225_v22 }
  0x3b   :  { %v233_v33 = vsub.f32 %v1614_v63, %v232_v25  ;;  %v246_v28 = vand.u32 4294901760, %v1643_v15  ;;  %v1675_v34 = vsub.f32 %v1551_v35, %v106_v40  ;;  %v1680_v53 = vsub.f32 %v1553_v36, %v109_v41 }
  0x3c   :  { %1203 = vmatpush3.bf16.msra.mxu1 %v1547_v32  ;;  %1275 = vmatpush3.bf16.msra.mxu0 %v1547_v32  ;;  %v240_v60 = vsub.f32 %v1636_v14, %v239_v4  ;;  %v260_v17 = vand.u32 4294901760, %v1663_v47  ;;  %v174_v35 = vand.u32 4294901760, %v173_v10  ;;  %v1220_v36 = vpack.c.bf16 %v220_v2, %v213_v59 }
  0x3d   :  { %1204 = vmatprep.subr.bf16.mxu1 %v1444_v0  ;;  %1276 = vmatprep.subr.bf16.mxu0 %v1444_v0  ;;  %v227_v40 = vand.u32 4294901760, %v226_v27  ;;  %v234_v41 = vand.u32 4294901760, %v233_v33  ;;  %v1295_v19 = vpack.c.bf16 %v232_v25, %v225_v22 }
  0x3e   :  { %v261_v37 = vsub.f32 %v1663_v47, %v260_v17 }
  0x40   :  { %1206 = vmatpush3.bf16.msra.mxu1 %v1574_v44  ;;  %1278 = vmatpush3.bf16.msra.mxu0 %v1574_v44  ;;  %v262_v49 = vand.u32 4294901760, %v261_v37 }
  0x41   :  { %1207 = vmatprep.subr.bf16.mxu1 %v1444_v0  ;;  %1279 = vmatprep.subr.bf16.mxu0 %v1444_v0 }
  0x44   :  { %1209 = vmatpush3.bf16.msra.mxu1 %v1594_v54  ;;  %1281 = vmatpush3.bf16.msra.mxu0 %v1594_v54 }
  0x45   :  { %1210 = vmatprep.subr.bf16.mxu1 %v1444_v0  ;;  %1282 = vmatprep.subr.bf16.mxu0 %v1444_v0 }
  0x48   :  { %1212 = vmatpush3.bf16.msra.mxu1 %v1630_v8  ;;  %1284 = vmatpush3.bf16.msra.mxu0 %v1630_v8 }
  0x49   :  { %1213 = vmatprep.subr.bf16.mxu1 %v1444_v0  ;;  %1285 = vmatprep.subr.bf16.mxu0 %v1444_v0 }
  0x4b   :  { %976 = vmatmul.mubr.f32.vlgmr.msra.gmra.mrb[0].mxu1 %v154_v20  ;;  %1099 = vmatmul.mubr.f32.vlgmr.msra.gmra.mrb[0].mxu0 %v152_v56  ;;  %v1292_v56 = vpack.c.bf16 %v218_v5, %v211_v3  ;;  %v247_v3 = vsub.f32 %v1643_v15, %v246_v28  ;;  %v1695_v5 = vsub.f32 %v1563_v42, %v112_v52  ;;  %v241_v20 = vand.u32 4294901760, %v240_v60 }
  0x4c   :  { %1215 = vmatpush3.bf16.msra.mxu1 %v1214_v24  ;;  %1287 = vmatpush3.bf16.msra.mxu0 %v1286_v16  ;;  %v253_v16 = vand.u32 4294901760, %v1658_v46  ;;  %v1223_v42 = vpack.c.bf16 %v234_v41, %v227_v40  ;;  %v1298_v24 = vpack.c.bf16 %v246_v28, %v239_v4  ;;  %v1241_v40 = vpack.c.bf16 %v1559_v39, %v1557_v38 }
  0x4d   :  { %1216 = vmatprep.subr.bf16.mxu1 %v1444_v0  ;;  %1288 = vmatprep.subr.bf16.mxu0 %v1444_v0  ;;  %v248_v52 = vand.u32 4294901760, %v247_v3  ;;  %v281_v22 = vand.u32 4294901760, %v1695_v5 }
  0x4e   :  { %978 = vmatprep.mubr.msk.f32.mxu1 %vm1445_vm0, %v1446_v1  ;;  %1101 = vmatprep.mubr.msk.f32.mxu0 %vm1445_vm0, %v1446_v1  ;;  %v254_v26 = vsub.f32 %v1658_v46, %v253_v16  ;;  %v1301_v10 = vpack.c.bf16 %v260_v17, %v253_v16 }
  0x4f   :  { %979 = vmatmul.mubr.f32.gmra.mrb[2].mxu1 %v164_v9  ;;  %1102 = vmatmul.mubr.f32.gmra.mrb[2].mxu0 %v162_v6  ;;  %v1700_v6 = vsub.f32 %v1576_v45, %v115_v55  ;;  %v267_v45 = vand.u32 4294901760, %v1675_v34  ;;  %v274_v55 = vand.u32 4294901760, %v1680_v53  ;;  %v1226_v25 = vpack.c.bf16 %v248_v52, %v241_v20 }
  0x50   :  { %1218 = vmatpush3.bf16.msra.mxu1 %v1217_v11  ;;  %1290 = vmatpush3.bf16.msra.mxu0 %v1289_v58  ;;  %v282_v27 = vsub.f32 %v1695_v5, %v281_v22 }
  0x51   :  { %1219 = vmatprep.subr.bf16.mxu1 %v1444_v0  ;;  %1291 = vmatprep.subr.bf16.mxu0 %v1444_v0  ;;  %v268_v58 = vsub.f32 %v1675_v34, %v267_v45  ;;  %v275_v59 = vsub.f32 %v1680_v53, %v274_v55  ;;  %v288_v2 = vand.u32 4294901760, %v1700_v6 }
  0x52   :  { %981 = vmatprep.mubr.msk.f32.mxu1 %vm1445_vm0, %v1446_v1  ;;  %1104 = vmatprep.mubr.msk.f32.mxu0 %vm1445_vm0, %v1446_v1  ;;  %v283_v60 = vand.u32 4294901760, %v282_v27 }
  0x53   :  { %982 = vmatmul.mubr.f32.gmra.mrb[4].mxu1 %v174_v35  ;;  %1105 = vmatmul.mubr.f32.gmra.mrb[4].mxu0 %v172_v21  ;;  %v255_v21 = vand.u32 4294901760, %v254_v26  ;;  %v269_v4 = vand.u32 4294901760, %v268_v58  ;;  %v276_v11 = vand.u32 4294901760, %v275_v59  ;;  %v289_v33 = vsub.f32 %v1700_v6, %v288_v2 }
  0x54   :  { %1221 = vmatpush3.bf16.msra.mxu1 %v1220_v36  ;;  %1293 = vmatpush3.bf16.msra.mxu0 %v1292_v56  ;;  %v1304_v56 = vpack.c.bf16 %v274_v55, %v267_v45  ;;  %v1307_v17 = vpack.c.bf16 %v288_v2, %v281_v22  ;;  %v1238_v36 = vpack.c.bf16 %v1539_v31, %v1535_v29 }
  0x55   :  { %1222 = vmatprep.subr.bf16.mxu1 %v1444_v0  ;;  %1294 = vmatprep.subr.bf16.mxu0 %v1444_v0  ;;  %v1229_v9 = vpack.c.bf16 %v262_v49, %v255_v21  ;;  %v1232_v28 = vpack.c.bf16 %v276_v11, %v269_v4  ;;  %v290_v35 = vand.u32 4294901760, %v289_v33  ;;  %v1250_v29 = vpack.c.bf16 %v1643_v15, %v1636_v14 }
  0x56   :  { %1016 = vmatprep.mubr.msk.f32.mxu1 %vm1445_vm0, %v1446_v1  ;;  %1139 = vmatprep.mubr.msk.f32.mxu0 %vm1445_vm0, %v1446_v1  ;;  %v1259_v31 = vpack.c.bf16 %v1700_v6, %v1695_v5 }
  0x57   :  { %v1235_v16 = vpack.c.bf16 %v290_v35, %v283_v60 }
  0x58   :  { %1224 = vmatpush3.bf16.msra.mxu1 %v1223_v42  ;;  %1296 = vmatpush3.bf16.msra.mxu0 %v1295_v19 }
  0x59   :  { %1225 = vmatprep.subr.bf16.mxu1 %v1444_v0  ;;  %1297 = vmatprep.subr.bf16.mxu0 %v1444_v0 }
  0x5c   :  { %1227 = vmatpush3.bf16.msra.mxu1 %v1226_v25  ;;  %1299 = vmatpush3.bf16.msra.mxu0 %v1298_v24 }
  0x5d   :  { %1228 = vmatprep.subr.bf16.mxu1 %v1444_v0  ;;  %1300 = vmatprep.subr.bf16.mxu0 %v1444_v0 }
  0x60   :  { %1230 = vmatpush3.bf16.msra.mxu1 %v1229_v9  ;;  %1302 = vmatpush3.bf16.msra.mxu0 %v1301_v10 }
  0x61   :  { %1231 = vmatprep.subr.bf16.mxu1 %v1444_v0  ;;  %1303 = vmatprep.subr.bf16.mxu0 %v1444_v0 }
  0x64   :  { %1233 = vmatpush3.bf16.msra.mxu1 %v1232_v28  ;;  %1305 = vmatpush3.bf16.msra.mxu0 %v1304_v56 }
  0x65   :  { %1234 = vmatprep.subr.bf16.mxu1 %v1444_v0  ;;  %1306 = vmatprep.subr.bf16.mxu0 %v1444_v0 }
  0x68   :  { %1236 = vmatpush3.bf16.msra.mxu1 %v1235_v16  ;;  %1308 = vmatpush3.bf16.msra.mxu0 %v1307_v17 }
  0x69   :  { %1237 = vmatprep.subr.bf16.mxu1 %v1444_v0  ;;  %1309 = vmatprep.subr.bf16.mxu0 %v1444_v0 }
  0x6b   :  { %1017 = vmatmul.mubr.f32.vlgmr.msra.gmra.mrb[0].mxu1 %v1537_v30  ;;  %1140 = vmatmul.mubr.f32.vlgmr.msra.gmra.mrb[0].mxu0 %v1537_v30 }
  0x6c   :  { %1239 = vmatpush3.bf16.msra.mxu1 %v1238_v36  ;;  %1311 = vmatpush3.bf16.msra.mxu0 %v1499_v12  ;;  %v1244_v12 = vpack.c.bf16 %v1586_v51, %v1584_v50 }
  0x6d   :  { %1240 = vmatprep.subr.bf16.mxu1 %v1444_v0  ;;  %1312 = vmatprep.subr.bf16.mxu0 %v1444_v0 }
  0x6e   :  { %1019 = vmatprep.mubr.msk.f32.mxu1 %vm1445_vm0, %v1446_v1  ;;  %1142 = vmatprep.mubr.msk.f32.mxu0 %vm1445_vm0, %v1446_v1 }
  0x6f   :  { %1020 = vmatmul.mubr.f32.gmra.mrb[2].mxu1 %v1580_v48  ;;  %1143 = vmatmul.mubr.f32.gmra.mrb[2].mxu0 %v1580_v48 }
  0x70   :  { %1242 = vmatpush3.bf16.msra.mxu1 %v1241_v40  ;;  %1314 = vmatpush3.bf16.msra.mxu0 %v1503_v13  ;;  %v1247_v13 = vpack.c.bf16 %v1614_v63, %v1611_v62 }
  0x71   :  { %1243 = vmatprep.subr.bf16.mxu1 %v1444_v0  ;;  %1315 = vmatprep.subr.bf16.mxu0 %v1444_v0 }
  0x72   :  { %1022 = vmatprep.mubr.msk.f32.mxu1 %vm1445_vm0, %v1446_v1  ;;  %1145 = vmatprep.mubr.msk.f32.mxu0 %vm1445_vm0, %v1446_v1 }
  0x73   :  { %1023 = vmatmul.mubr.f32.gmra.mrb[4].mxu1 %v1606_v61  ;;  %1146 = vmatmul.mubr.f32.gmra.mrb[4].mxu0 %v1606_v61 }
  0x74   :  { %1245 = vmatpush3.bf16.msra.mxu1 %v1244_v12  ;;  %1317 = vmatpush3.bf16.msra.mxu0 %v1513_v18  ;;  %v1253_v18 = vpack.c.bf16 %v1663_v47, %v1658_v46 }
  0x75   :  { %1246 = vmatprep.subr.bf16.mxu1 %v1444_v0  ;;  %1318 = vmatprep.subr.bf16.mxu0 %v1444_v0 }
  0x76   :  { %1057 = vmatprep.mubr.msk.f32.mxu1 %vm1445_vm0, %v1446_v1  ;;  %1180 = vmatprep.mubr.msk.f32.mxu0 %vm1445_vm0, %v1446_v1 }
  0x78   :  { %1248 = vmatpush3.bf16.msra.mxu1 %v1247_v13  ;;  %1320 = vmatpush3.bf16.msra.mxu0 %v1525_v23  ;;  %v1256_v23 = vpack.c.bf16 %v1680_v53, %v1675_v34 }
  0x79   :  { %1249 = vmatprep.subr.bf16.mxu1 %v1444_v0  ;;  %1321 = vmatprep.subr.bf16.mxu0 %v1444_v0 }
  0x7c   :  { %1251 = vmatpush3.bf16.msra.mxu1 %v1250_v29  ;;  %1323 = vmatpush3.bf16.msra.mxu0 %v1547_v32 }
  0x7d   :  { %1252 = vmatprep.subr.bf16.mxu1 %v1444_v0  ;;  %1324 = vmatprep.subr.bf16.mxu0 %v1444_v0 }
  0x80   :  { %1254 = vmatpush3.bf16.msra.mxu1 %v1253_v18  ;;  %1326 = vmatpush3.bf16.msra.mxu0 %v1574_v44 }
  0x81   :  { %1255 = vmatprep.subr.bf16.mxu1 %v1444_v0  ;;  %1327 = vmatprep.subr.bf16.mxu0 %v1444_v0 }
  0x84   :  { %1257 = vmatpush3.bf16.msra.mxu1 %v1256_v23  ;;  %1329 = vmatpush3.bf16.msra.mxu0 %v1594_v54 }
  0x85   :  { %1258 = vmatprep.subr.bf16.mxu1 %v1444_v0  ;;  %1330 = vmatprep.subr.bf16.mxu0 %v1444_v0 }
  0x88   :  { %1260 = vmatpush3.bf16.msra.mxu1 %v1259_v31  ;;  %1332 = vmatpush3.bf16.msra.mxu0 %v1630_v8 }
  0x8b   :  { %1058 = vmatmul.mubr.f32.vlgmr.msra.gmra.mrb[0].mxu1 %v1566_v43  ;;  %1181 = vmatmul.mubr.f32.vlgmr.msra.gmra.mrb[0].mxu0 %v1537_v30 }
  0x8c   :  { %1060 = vmatprep.mubr.msk.f32.mxu1 %vm1445_vm0, %v1446_v1  ;;  %1183 = vmatprep.mubr.msk.f32.mxu0 %vm1445_vm0, %v1446_v1 }
  0x8f   :  { %1061 = vmatmul.mubr.f32.gmra.mrb[2].mxu1 %v1599_v57  ;;  %1184 = vmatmul.mubr.f32.gmra.mrb[2].mxu0 %v1580_v48 }
  0x90   :  { %1063 = vmatprep.mubr.msk.f32.mxu1 %vm1445_vm0, %v1446_v1  ;;  %1186 = vmatprep.mubr.msk.f32.mxu0 %vm1445_vm0, %v1446_v1 }
  0x93   :  { %1064 = vmatmul.mubr.f32.gmra.mrb[4].mxu1 %v1622_v7  ;;  %1187 = vmatmul.mubr.f32.gmra.mrb[4].mxu0 %v1606_v61 }
 0x15e   :  { %v443_v0 = vpop.f32.mrb[0].mxu1  ;;  %v780_v30 = vpop.f32.mrb[0].mxu0 }
 0x15f   :  { %v1333_v32 = vadd.f32 %v780_v30, %v443_v0  ;;  %v1059_v38 = vpop.f32.mrb[1].mxu1  ;;  %v1182_v39 = vpop.f32.mrb[1].mxu0 }
 0x161   :  { %808 = vst [vmem:[#allocation8] sm:$0xff] %v1333_v32 }
 0x162   :  { %v450_v43 = vpop.f32.mrb[2].mxu1  ;;  %v786_v44 = vpop.f32.mrb[2].mxu0 }
 0x163   :  { %v1334_v50 = vadd.f32 %v786_v44, %v450_v43  ;;  %v1062_v48 = vpop.f32.mrb[3].mxu1  ;;  %v1185_v51 = vpop.f32.mrb[3].mxu0 }
 0x165   :  { %809 = vst [vmem:[#allocation8 + $0x8] sm:$0xff] %v1334_v50 }
 0x166   :  { %v457_v54 = vpop.f32.mrb[4].mxu1  ;;  %v792_v1 = vpop.f32.mrb[4].mxu0 }
 0x167   :  { %v1335_v57 = vadd.f32 %v792_v1, %v457_v54  ;;  %v1065_v62 = vpop.f32.mrb[5].mxu1  ;;  %v1188_v63 = vpop.f32.mrb[5].mxu0 }
 0x169   :  { %810 = vst [vmem:[#allocation8 + $0x10] sm:$0xff] %v1335_v57 }
 0x16a   :  { %1423 = shalt.err (!%p1420_p6)
}
 0x16b   :  { %s1424_s10 = scalar_lea.hbm %s1819_s2, 384 }
 0x16c   :  { %p1425_p7 = scmp.ne.s32.totalorder %s1819_s2, %s1424_s10  ;;  %p1428_p8 = scmp.lt.u32.totalorder %s1424_s10, %s1819_s2 }
 0x16e   :  { %p1430_p9 = pnand %p1428_p8, %p1425_p7 }
 0x170   :  { %1433 = shalt.err (!%p1430_p9)
}
 0x171   :  { %822 = dma.vmem_to_hbm [thread:$0]  %s817_s6, 384, %s1819_s2, [#allocation5], %s1441_s19, %s1441_s19, %s1442_s20  }
 0x172   :  { %1438 = dma.done.wait [#allocation5], 384  }
 0x173   :  { %1439 = vsyncadd [#allocation5], 4294966912 }
 0x174   :  { %826 = vsyncpa [#allocation4], 1 }
 0x175   :  { %827 = vsyncpa [#allocation7], 1 }
 0x176   :  { %828 = vsyncpa [#allocation5], 1 }

// kernel: transformer_block.11
= control target key start
LH: loop header
LB: loop body
LE: loop exit
PB: predicated region body
PF: predicated region fallthrough
CT: control target
= control target key end

     0   :  { %8 = vsyncpa [#allocation4], 0  ;;  %s9411_s0 = inlined_call_operand.hbm [shape: f32[24,128], index: 0, kind: input, shape index: {}]   ;;  %s9412_s1 = inlined_call_operand.hbm [shape: f32[128,768], index: 1, kind: input, shape index: {}]   ;;  %s9413_s2 = inlined_call_operand.hbm [shape: f32[384,128], index: 2, kind: input, shape index: {}]   ;;  %s9414_s3 = inlined_call_operand.hbm [shape: f32[24,128], index: 3, kind: output, shape index: {}]  }
   0x1   :  { %9 = vsyncpa [#allocation7], 0 }
   0x2   :  { %10 = vsyncpa [#allocation5], 0  ;;  %s6669_s12 = smov [#allocation6]   ;;  %s6575_s16 = scalar_lea.hbm %s9412_s1, 12288 }
   0x3   :  { %s28_s13 = sshll.u32 %s6669_s12, 4  ;;  %p6576_p0 = scmp.ne.s32.totalorder %s9412_s1, %s6575_s16  ;;  %s29_s13 = int_to_ptr.vmem [resolvable:$true] %s28_s13 }
   0x4   :  { %p6579_p1 = scmp.lt.u32.totalorder %s6575_s16, %s9412_s1 }
   0x6   :  { %p6581_p2 = pnand %p6579_p1, %p6576_p0 }
   0x8   :  { %6584 = shalt.err (!%p6581_p2)
}
   0x9   :  { %s6585_s21 = scalar_lea.vmem %s29_s13, 12288  ;;  %p6590_p4 = scmp.lt.s32.totalorder %s29_s13, %s29_s13 }
   0xa   :  { %p6586_p3 = scmp.ne.s32.totalorder %s29_s13, %s6585_s21  ;;  %p6591_p5 = scmp.lt.s32.totalorder %s6585_s21, %s6585_s21 }
   0xc   :  { %p6592_p6 = por %p6591_p5, %p6590_p4 }
   0xe   :  { %p6593_p7 = pnand %p6592_p6, %p6586_p3 }
  0x10   :  { %6596 = shalt.err (!%p6593_p7)
}
  0x11   :  { %s6670_s22 = smov 768   ;;  %s6671_s23 = smov 48  }
  0x12   :  { %34 = dma.hbm_to_vmem [thread:$0]  %s9412_s1, 12288, %s29_s13, [#allocation7], %s6670_s22, %s6670_s22, %s6671_s23  }
  0x13   :  { %s6672_s26 = smov [#allocation3]   ;;  %s6597_s30 = scalar_lea.hbm %s9411_s0, 384 }
  0x14   :  { %s16_s27 = sshll.u32 %s6672_s26, 4  ;;  %p6598_p8 = scmp.ne.s32.totalorder %s9411_s0, %s6597_s30  ;;  %s17_s27 = int_to_ptr.vmem [resolvable:$true] %s16_s27 }
  0x15   :  { %p6601_p9 = scmp.lt.u32.totalorder %s6597_s30, %s9411_s0 }
  0x17   :  { %p6603_p10 = pnand %p6601_p9, %p6598_p8 }
  0x19   :  { %6606 = shalt.err (!%p6603_p10)
}
  0x1a   :  { %s6607_s8 = scalar_lea.vmem %s17_s27, 384  ;;  %p6612_p12 = scmp.lt.s32.totalorder %s17_s27, %s17_s27 }
  0x1b   :  { %p6608_p11 = scmp.ne.s32.totalorder %s17_s27, %s6607_s8  ;;  %p6613_p13 = scmp.lt.s32.totalorder %s6607_s8, %s6607_s8 }
  0x1d   :  { %p6614_p0 = por %p6613_p13, %p6612_p12 }
  0x1f   :  { %p6615_p1 = pnand %p6614_p0, %p6608_p11 }
  0x21   :  { %6618 = shalt.err (!%p6615_p1)
}
  0x22   :  { %s6673_s1 = smov 128   ;;  %s6674_s9 = smov 8  }
  0x23   :  { %22 = dma.hbm_to_vmem [thread:$0]  %s9411_s0, 384, %s17_s27, [#allocation4], %s6673_s1, %s6673_s1, %s6674_s9  }
  0x24   :  { %s6675_s12 = smov [#allocation8]   ;;  %s6619_s16 = scalar_lea.hbm %s9413_s2, 6144 }
  0x25   :  { %s40_s13 = sshll.u32 %s6675_s12, 4  ;;  %p6620_p2 = scmp.ne.s32.totalorder %s9413_s2, %s6619_s16  ;;  %s41_s13 = int_to_ptr.vmem [resolvable:$true] %s40_s13 }
  0x26   :  { %p6623_p3 = scmp.lt.u32.totalorder %s6619_s16, %s9413_s2 }
  0x28   :  { %p6625_p4 = pnand %p6623_p3, %p6620_p2 }
  0x2a   :  { %6628 = shalt.err (!%p6625_p4)
}
  0x2b   :  { %s6629_s21 = scalar_lea.vmem %s41_s13, 6144  ;;  %p6634_p6 = scmp.lt.s32.totalorder %s41_s13, %s41_s13 }
  0x2c   :  { %p6630_p5 = scmp.ne.s32.totalorder %s41_s13, %s6629_s21  ;;  %p6635_p7 = scmp.lt.s32.totalorder %s6629_s21, %s6629_s21 }
  0x2e   :  { %p6636_p8 = por %p6635_p7, %p6634_p6 }
  0x30   :  { %p6637_p9 = pnand %p6636_p8, %p6630_p5 }
  0x32   :  { %6640 = shalt.err (!%p6637_p9)
}
  0x33   :  { %46 = dma.hbm_to_vmem [thread:$0]  %s9413_s2, 6144, %s41_s13, [#allocation7], %s6673_s1, %s6673_s1, %s6674_s9  }
  0x34   :  { %6663 = dma.done.wait [#allocation4], 384  }
  0x35   :  { %6664 = vsyncadd [#allocation4], 4294966912 }
  0x36   :  { %6665 = dma.done.wait [#allocation7], 18432  }
  0x37   :  { %6666 = vsyncadd [#allocation7], 4294948864  ;;  %v9415_v0 = vmov 0.0   ;;  %v67_v1 = vld [vmem:[#allocation6 + $0x8] sm:$0xff]  ;;  %v73_v2 = vld [vmem:[#allocation6 + $0x38] sm:$0xff]  ;;  %vm6678_vm0 = vmmov 0  }
  0x38   :  { %258 = vmatprep.mubr.f32.mxu1 %v9415_v0  ;;  %787 = vmatprep.mubr.f32.mxu0 %v9415_v0  ;;  %v66_v3 = vld [vmem:[#allocation6] sm:$0xff]  ;;  %v162_v4 = vand.u32 4294901760, %v67_v1  ;;  %v166_v5 = vand.u32 4294901760, %v73_v2  ;;  %v72_v6 = vld [vmem:[#allocation6 + $0x30] sm:$0xff]  ;;  %v79_v8 = vld [vmem:[#allocation6 + $0x68] sm:$0xff]  ;;  %s6679_s2 = smov [#allocation9]  }
  0x39   :  { %v164_v7 = vand.u32 4294901760, %v66_v3  ;;  %v85_v9 = vld [vmem:[#allocation6 + $0x98] sm:$0xff]  ;;  %v168_v10 = vand.u32 4294901760, %v72_v6  ;;  %v170_v11 = vand.u32 4294901760, %v79_v8  ;;  %v78_v13 = vld [vmem:[#allocation6 + $0x60] sm:$0xff]  ;;  %v84_v14 = vld [vmem:[#allocation6 + $0x90] sm:$0xff] }
  0x3a   :  { %v174_v12 = vand.u32 4294901760, %v85_v9  ;;  %v91_v15 = vld [vmem:[#allocation6 + $0xc8] sm:$0xff]  ;;  %v6744_v16 = vpack.c.bf16 %v166_v5, %v162_v4  ;;  %v6746_v17 = vsub.f32 %v67_v1, %v162_v4  ;;  %v6748_v18 = vsub.f32 %v73_v2, %v166_v5  ;;  %v97_v20 = vld [vmem:[#allocation6 + $0xf8] sm:$0xff]  ;;  %v90_v21 = vld [vmem:[#allocation6 + $0xc0] sm:$0xff]  ;;  %s4865_s23 = sshll.u32 %s6679_s2, 4  ;;  %s4866_s23 = int_to_ptr.vmem [resolvable:$true] %s4865_s23 }
  0x3b   :  { %v6750_v19 = vsub.f32 %v66_v3, %v164_v7  ;;  %v96_v22 = vld [vmem:[#allocation6 + $0xf0] sm:$0xff]  ;;  %v6752_v23 = vpack.c.bf16 %v168_v10, %v164_v7  ;;  %v6754_v24 = vsub.f32 %v72_v6, %v168_v10  ;;  %v6758_v26 = vsub.f32 %v79_v8, %v170_v11  ;;  %v103_v27 = vld [vmem:[#allocation6 + $0x128] sm:$0xff]  ;;  %v109_v28 = vld [vmem:[#allocation6 + $0x158] sm:$0xff]  ;;  %s6641_s24 = scalar_lea.vmem %s4866_s23, 384  ;;  %p6646_p11 = scmp.lt.s32.totalorder %s4866_s23, %s4866_s23 }
  0x3c   :  { %v6756_v25 = vpack.c.bf16 %v174_v12, %v170_v11  ;;  %5494 = vmatprep.subr.bf16.mxu1 %v6744_v16  ;;  %5590 = vmatprep.subr.bf16.mxu0 %v6744_v16  ;;  %v6762_v29 = vsub.f32 %v85_v9, %v174_v12  ;;  %v172_v30 = vand.u32 4294901760, %v78_v13  ;;  %v176_v31 = vand.u32 4294901760, %v84_v14  ;;  %v102_v37 = vld [vmem:[#allocation6 + $0x120] sm:$0xff]  ;;  %v108_v42 = vld [vmem:[#allocation6 + $0x150] sm:$0xff]  ;;  %v115_v43 = vld [vmem:[#allocation6 + $0x188] sm:$0xff]  ;;  %p6642_p10 = scmp.ne.s32.totalorder %s4866_s23, %s6641_s24  ;;  %p6647_p12 = scmp.lt.s32.totalorder %s6641_s24, %s6641_s24 }
  0x3d   :  { %9915 = vst [vmem:[#allocation13_spill] sm:$0xff] %v6752_v23  ;;  %v178_v32 = vand.u32 4294901760, %v91_v15  ;;  %5496 = vmatpush1.bf16.msra.mxu1 %v6752_v23  ;;  %5592 = vmatpush1.bf16.msra.mxu0 %v6752_v23  ;;  %v182_v33 = vand.u32 4294901760, %v97_v20  ;;  %v180_v34 = vand.u32 4294901760, %v90_v21  ;;  %v184_v35 = vand.u32 4294901760, %v96_v22  ;;  %v121_v44 = vld [vmem:[#allocation6 + $0x1b8] sm:$0xff] }
  0x3e   :  { %9916 = vst [vmem:[#allocation14_spill] sm:$0xff] %v6756_v25  ;;  %v186_v36 = vand.u32 4294901760, %v103_v27  ;;  %5498 = vmatprep.subr.bf16.mxu1 %v6756_v25  ;;  %5594 = vmatprep.subr.bf16.mxu0 %v6756_v25  ;;  %v6768_v38 = vpack.c.bf16 %v176_v31, %v172_v30  ;;  %v6770_v39 = vsub.f32 %v78_v13, %v172_v30  ;;  %v190_v41 = vand.u32 4294901760, %v109_v28  ;;  %v114_v49 = vld [vmem:[#allocation6 + $0x180] sm:$0xff]  ;;  %v120_v50 = vld [vmem:[#allocation6 + $0x1b0] sm:$0xff]  ;;  %v127_v51 = vld [vmem:[#allocation6 + $0x1e8] sm:$0xff]  ;;  %p6648_p13 = por %p6647_p12, %p6646_p11 }
  0x3f   :  { %v6772_v40 = vsub.f32 %v84_v14, %v176_v31  ;;  %v6774_v45 = vpack.c.bf16 %v182_v33, %v178_v32  ;;  %v6776_v46 = vsub.f32 %v91_v15, %v178_v32  ;;  %v6778_v47 = vsub.f32 %v97_v20, %v182_v33  ;;  %v133_v60 = vld [vmem:[#allocation6 + $0x218] sm:$0xff]  ;;  %v126_v2 = vld [vmem:[#allocation6 + $0x1e0] sm:$0xff]  ;;  %v132_v3 = vld [vmem:[#allocation6 + $0x210] sm:$0xff] }
  0x40   :  { %9917 = vst [vmem:[#allocation15_spill] sm:$0xff] %v6768_v38  ;;  %v6780_v48 = vpack.c.bf16 %v184_v35, %v180_v34  ;;  %v6782_v52 = vsub.f32 %v90_v21, %v180_v34  ;;  %v6784_v53 = vsub.f32 %v96_v22, %v184_v35  ;;  %v6786_v54 = vpack.c.bf16 %v190_v41, %v186_v36  ;;  %v139_v8 = vld [vmem:[#allocation6 + $0x248] sm:$0xff]  ;;  %v145_v9 = vld [vmem:[#allocation6 + $0x278] sm:$0xff]  ;;  %v138_v10 = vld [vmem:[#allocation6 + $0x240] sm:$0xff]  ;;  %p6649_p0 = pnand %p6648_p13, %p6642_p10 }
  0x41   :  { %9918 = vst [vmem:[#allocation16_spill] sm:$0xff] %v6774_v45  ;;  %v6788_v55 = vsub.f32 %v103_v27, %v186_v36  ;;  %5500 = vmatpush1.bf16.msra.mxu1 %v6768_v38  ;;  %5596 = vmatpush1.bf16.msra.mxu0 %v6768_v38  ;;  %v6792_v56 = vsub.f32 %v109_v28, %v190_v41  ;;  %v188_v57 = vand.u32 4294901760, %v102_v37  ;;  %v192_v58 = vand.u32 4294901760, %v108_v42  ;;  %v144_v15 = vld [vmem:[#allocation6 + $0x270] sm:$0xff]  ;;  %v151_v33 = vld [vmem:[#allocation6 + $0x2a8] sm:$0xff]  ;;  %v157_v41 = vld [vmem:[#allocation6 + $0x2d8] sm:$0xff] }
  0x42   :  { %9919 = vst [vmem:[#allocation17_spill] sm:$0xff] %v6780_v48  ;;  %9920 = vst [vmem:[#allocation18_spill] sm:$0xff] %v6786_v54  ;;  %v194_v59 = vand.u32 4294901760, %v115_v43  ;;  %5502 = vmatprep.subr.bf16.mxu1 %v6774_v45  ;;  %5598 = vmatprep.subr.bf16.mxu0 %v6774_v45  ;;  %v198_v61 = vand.u32 4294901760, %v121_v44  ;;  %v196_v62 = vand.u32 4294901760, %v114_v49  ;;  %v200_v63 = vand.u32 4294901760, %v120_v50 }
  0x43   :  { %v202_v1 = vand.u32 4294901760, %v127_v51  ;;  %v6796_v4 = vpack.c.bf16 %v192_v58, %v188_v57  ;;  %v6798_v5 = vsub.f32 %v102_v37, %v188_v57  ;;  %v6800_v6 = vsub.f32 %v108_v42, %v192_v58  ;;  %v150_v42 = vld [vmem:[#allocation6 + $0x2a0] sm:$0xff]  ;;  %v63_v57 = vld [vmem:[#allocation3] sm:$0xff] }
  0x44   :  { %v6802_v7 = vsub.f32 %v115_v43, %v194_v59  ;;  %v6804_v11 = vpack.c.bf16 %v198_v61, %v194_v59  ;;  %v6806_v12 = vsub.f32 %v121_v44, %v198_v61  ;;  %v6808_v13 = vpack.c.bf16 %v200_v63, %v196_v62  ;;  %v156_v43 = vld [vmem:[#allocation6 + $0x2d0] sm:$0xff] }
  0x45   :  { %9921 = vst [vmem:[#allocation19_spill] sm:$0xff] %v6796_v4  ;;  %v6810_v14 = vsub.f32 %v114_v49, %v196_v62  ;;  %5504 = vmatpush1.bf16.msra.mxu1 %v6780_v48  ;;  %5600 = vmatpush1.bf16.msra.mxu0 %v6780_v48  ;;  %v6814_v20 = vsub.f32 %v120_v50, %v200_v63  ;;  %v206_v21 = vand.u32 4294901760, %v133_v60  ;;  %v204_v27 = vand.u32 4294901760, %v126_v2 }
  0x46   :  { %9922 = vst [vmem:[#allocation20_spill] sm:$0xff] %v6804_v11  ;;  %9923 = vst [vmem:[#allocation21_spill] sm:$0xff] %v6808_v13  ;;  %v6816_v22 = vsub.f32 %v127_v51, %v202_v1  ;;  %5506 = vmatprep.subr.bf16.mxu1 %v6786_v54  ;;  %5602 = vmatprep.subr.bf16.mxu0 %v6786_v54  ;;  %v208_v28 = vand.u32 4294901760, %v132_v3  ;;  %v210_v30 = vand.u32 4294901760, %v139_v8  ;;  %v214_v31 = vand.u32 4294901760, %v145_v9 }
  0x47   :  { %v212_v32 = vand.u32 4294901760, %v138_v10  ;;  %v6820_v34 = vpack.c.bf16 %v206_v21, %v202_v1  ;;  %v6822_v35 = vsub.f32 %v133_v60, %v206_v21  ;;  %v6824_v36 = vsub.f32 %v126_v2, %v204_v27 }
  0x48   :  { %v216_v37 = vand.u32 4294901760, %v144_v15  ;;  %v6826_v44 = vpack.c.bf16 %v208_v28, %v204_v27  ;;  %v6828_v49 = vsub.f32 %v132_v3, %v208_v28  ;;  %v6830_v50 = vpack.c.bf16 %v214_v31, %v210_v30 }
  0x49   :  { %9924 = vst [vmem:[#allocation22_spill] sm:$0xff] %v6820_v34  ;;  %v6832_v51 = vsub.f32 %v139_v8, %v210_v30  ;;  %5508 = vmatpush1.bf16.msra.mxu1 %v6796_v4  ;;  %5604 = vmatpush1.bf16.msra.mxu0 %v6796_v4  ;;  %v6836_v58 = vsub.f32 %v145_v9, %v214_v31  ;;  %v218_v61 = vand.u32 4294901760, %v151_v33  ;;  %v222_v63 = vand.u32 4294901760, %v157_v41 }
  0x4a   :  { %9925 = vst [vmem:[#allocation23_spill] sm:$0xff] %v6826_v44  ;;  %9926 = vst [vmem:[#allocation24_spill] sm:$0xff] %v6830_v50  ;;  %v6838_v59 = vpack.c.bf16 %v216_v37, %v212_v32  ;;  %v6840_v60 = vsub.f32 %v138_v10, %v212_v32  ;;  %5510 = vmatprep.subr.bf16.mxu1 %v6804_v11  ;;  %5606 = vmatprep.subr.bf16.mxu0 %v6804_v11  ;;  %v220_v1 = vand.u32 4294901760, %v150_v42 }
  0x4b   :  { %v6844_v62 = vsub.f32 %v144_v15, %v216_v37  ;;  %v224_v2 = vand.u32 4294901760, %v156_v43  ;;  %v6846_v3 = vsub.f32 %v151_v33, %v218_v61  ;;  %v294_v8 = vand.u32 4294901760, %v6746_v17 }
  0x4c   :  { %9927 = vst [vmem:[#allocation25_spill] sm:$0xff] %v6838_v59  ;;  %v306_v9 = vand.u32 4294901760, %v6748_v18  ;;  %v6850_v21 = vand.u32 4294901760, %v63_v57  ;;  %v6852_v10 = vpack.c.bf16 %v222_v63, %v218_v61  ;;  %v6854_v27 = vsub.f32 %v157_v41, %v222_v63 }
  0x4d   :  { %9928 = vst [vmem:[#allocation26_spill] sm:$0xff] %v6846_v3  ;;  %v6856_v28 = vpack.c.bf16 %v224_v2, %v220_v1  ;;  %v6858_v30 = vsub.f32 %v150_v42, %v220_v1  ;;  %5512 = vmatpush1.bf16.msra.mxu1 %v6808_v13  ;;  %5608 = vmatpush1.bf16.msra.mxu0 %v6808_v13  ;;  %v300_v33 = vand.u32 4294901760, %v6750_v19  ;;  %v312_v42 = vand.u32 4294901760, %v6754_v24 }
  0x4e   :  { %9929 = vst [vmem:[#allocation27_spill] sm:$0xff] %v6850_v21  ;;  %9930 = vst [vmem:[#allocation28_spill] sm:$0xff] %v6852_v10  ;;  %v6862_v15 = vsub.f32 %v156_v43, %v224_v2  ;;  %v295_v31 = vsub.f32 %v6746_v17, %v294_v8  ;;  %v307_v32 = vsub.f32 %v6748_v18, %v306_v9  ;;  %5514 = vmatprep.subr.bf16.mxu1 %v6820_v34 }
  0x4f   :  { %9931 = vst [vmem:[#allocation29_spill] sm:$0xff] %v6856_v28  ;;  %9932 = vst [vmem:[#allocation30_spill] sm:$0xff] %v6858_v30  ;;  %5610 = vmatprep.subr.bf16.mxu0 %v6820_v34  ;;  %v5621_v37 = vpack.c.bf16 %v306_v9, %v294_v8  ;;  %v6870_v41 = vsub.f32 %v63_v57, %v6850_v21  ;;  %v318_v61 = vand.u32 4294901760, %v6758_v26  ;;  %v330_v2 = vand.u32 4294901760, %v6762_v29 }
  0x50   :  { %9933 = vst [vmem:[#allocation31_spill] sm:$0xff] %v6862_v15  ;;  %v296_v43 = vand.u32 4294901760, %v295_v31  ;;  %v308_v63 = vand.u32 4294901760, %v307_v32  ;;  %v301_v1 = vsub.f32 %v6750_v19, %v300_v33  ;;  %v313_v13 = vsub.f32 %v6754_v24, %v312_v42 }
  0x51   :  { %9934 = vst [vmem:[#allocation32_spill] sm:$0xff] %v6870_v41  ;;  %v6877_v0 = vand.u32 4294901760, %v6870_v41  ;;  %v6880_v34 = vpack.c.bf16 %v312_v42, %v300_v33  ;;  %v319_v57 = vsub.f32 %v6758_v26, %v318_v61  ;;  %5516 = vmatpush1.bf16.msra.mxu1 %v6826_v44  ;;  %5612 = vmatpush1.bf16.msra.mxu0 %v6826_v44  ;;  %v324_v4 = vand.u32 4294901760, %v6770_v39 }
  0x52   :  { %v5525_v8 = vpack.c.bf16 %v308_v63, %v296_v43  ;;  %v302_v9 = vand.u32 4294901760, %v301_v1  ;;  %v331_v31 = vsub.f32 %v6762_v29, %v330_v2  ;;  %v6886_v32 = vpack.c.bf16 %v330_v2, %v318_v61  ;;  %5518 = vmatprep.subr.bf16.mxu1 %v6830_v50  ;;  %5614 = vmatprep.subr.bf16.mxu0 %v6830_v50 }
  0x53   :  { %9935 = vst [vmem:[#allocation33_spill] sm:$0xff] %v6877_v0  ;;  %v262_v33 = vsub.f32 %v6870_v41, %v6877_v0  ;;  %v314_v42 = vand.u32 4294901760, %v313_v13  ;;  %v320_v11 = vand.u32 4294901760, %v319_v57  ;;  %v336_v44 = vand.u32 4294901760, %v6772_v40 }
  0x54   :  { %v332_v54 = vand.u32 4294901760, %v331_v31  ;;  %v342_v43 = vand.u32 4294901760, %v6776_v46  ;;  %v354_v63 = vand.u32 4294901760, %v6778_v47  ;;  %v325_v2 = vsub.f32 %v6770_v39, %v324_v4 }
  0x55   :  { %v6896_v61 = vand.u32 4294901760, %v262_v33  ;;  %v5527_v1 = vpack.c.bf16 %v314_v42, %v302_v9  ;;  %v348_v50 = vand.u32 4294901760, %v6782_v52  ;;  %5520 = vmatpush1.bf16.msra.mxu1 %v6838_v59  ;;  %5616 = vmatpush1.bf16.msra.mxu0 %v6838_v59  ;;  %v337_v57 = vsub.f32 %v6772_v40, %v336_v44 }
  0x56   :  { %v5529_v13 = vpack.c.bf16 %v332_v54, %v320_v11  ;;  %v5627_v31 = vpack.c.bf16 %v336_v44, %v324_v4  ;;  %v360_v41 = vand.u32 4294901760, %v6784_v53  ;;  %5522 = vmatprep.subr.bf16.mxu1 %v6852_v10  ;;  %5618 = vmatprep.subr.bf16.mxu0 %v6852_v10  ;;  %v326_v33 = vand.u32 4294901760, %v325_v2 }
  0x57   :  { %9936 = vst [vmem:[#allocation34_spill] sm:$0xff] %v6896_v61  ;;  %v343_v9 = vsub.f32 %v6776_v46, %v342_v43  ;;  %v355_v42 = vsub.f32 %v6778_v47, %v354_v63  ;;  %v5629_v48 = vpack.c.bf16 %v354_v63, %v342_v43  ;;  %v338_v45 = vand.u32 4294901760, %v337_v57 }
  0x58   :  { %v349_v38 = vsub.f32 %v6782_v52, %v348_v50  ;;  %v361_v54 = vsub.f32 %v6784_v53, %v360_v41  ;;  %v6910_v11 = vpack.c.bf16 %v360_v41, %v348_v50  ;;  %v366_v59 = vand.u32 4294901760, %v6788_v55 }
  0x59   :  { %v344_v4 = vand.u32 4294901760, %v343_v9  ;;  %v356_v44 = vand.u32 4294901760, %v355_v42  ;;  %v378_v25 = vand.u32 4294901760, %v6792_v56  ;;  %5524 = vmatpush1.bf16.msra.mxu1 %v6856_v28  ;;  %5620 = vmatpush1.bf16.msra.mxu0 %v6856_v28  ;;  %v5531_v2 = vpack.c.bf16 %v338_v45, %v326_v33 }
  0x5a   :  { %v350_v10 = vand.u32 4294901760, %v349_v38  ;;  %v362_v43 = vand.u32 4294901760, %v361_v54  ;;  %v372_v63 = vand.u32 4294901760, %v6798_v5  ;;  %5526 = vmatprep.subr.bf16.mxu1 %v5525_v8  ;;  %5622 = vmatprep.subr.bf16.mxu0 %v5621_v37  ;;  %v367_v50 = vsub.f32 %v6788_v55, %v366_v59 }
  0x5b   :  { %v5533_v57 = vpack.c.bf16 %v356_v44, %v344_v4  ;;  %v379_v41 = vsub.f32 %v6792_v56, %v378_v25  ;;  %v384_v9 = vand.u32 4294901760, %v6800_v6  ;;  %v5633_v23 = vpack.c.bf16 %v378_v25, %v366_v59 }
  0x5c   :  { %v5535_v42 = vpack.c.bf16 %v362_v43, %v350_v10  ;;  %v373_v21 = vsub.f32 %v6798_v5, %v372_v63  ;;  %v390_v28 = vand.u32 4294901760, %v6802_v7  ;;  %264 = vmatmul.mubr.f32.vlgmr.msra.gmra.mrb[0].mxu1 %v6896_v61  ;;  %791 = vmatmul.mubr.f32.vlgmr.msra.gmra.mrb[0].mxu0 %v6877_v0  ;;  %v368_v38 = vand.u32 4294901760, %v367_v50 }
  0x5d   :  { %v380_v45 = vand.u32 4294901760, %v379_v41  ;;  %v385_v37 = vsub.f32 %v6800_v6, %v384_v9  ;;  %v6925_v8 = vpack.c.bf16 %v384_v9, %v372_v63  ;;  %5528 = vmatpush1.bf16.msra.mxu1 %v5527_v1  ;;  %5624 = vmatpush1.bf16.msra.mxu0 %v6880_v34  ;;  %v402_v59 = vand.u32 4294901760, %v6806_v12 }
  0x5e   :  { %v374_v33 = vand.u32 4294901760, %v373_v21  ;;  %v391_v25 = vsub.f32 %v6802_v7, %v390_v28  ;;  %v396_v10 = vand.u32 4294901760, %v6810_v14  ;;  %5530 = vmatprep.subr.bf16.mxu1 %v5529_v13  ;;  %5626 = vmatprep.subr.bf16.mxu0 %v6886_v32  ;;  %v408_v44 = vand.u32 4294901760, %v6814_v20 }
  0x5f   :  { %v5537_v54 = vpack.c.bf16 %v380_v45, %v368_v38  ;;  %v386_v4 = vand.u32 4294901760, %v385_v37  ;;  %v414_v43 = vand.u32 4294901760, %v6816_v22  ;;  %v403_v1 = vsub.f32 %v6806_v12, %v402_v59 }
  0x60   :  { %v392_v63 = vand.u32 4294901760, %v391_v25  ;;  %v5637_v34 = vpack.c.bf16 %v402_v59, %v390_v28  ;;  %v397_v21 = vsub.f32 %v6810_v14, %v396_v10  ;;  %v9937_v50 = vmov 0.0  }
  0x61   :  { %269 = vmatprep.mubr.f32.mxu1 %v9937_v50  ;;  %796 = vmatprep.mubr.f32.mxu0 %v9937_v50  ;;  %v5539_v41 = vpack.c.bf16 %v386_v4, %v374_v33  ;;  %v409_v13 = vsub.f32 %v6814_v20, %v408_v44  ;;  %v6939_v32 = vpack.c.bf16 %v408_v44, %v396_v10  ;;  %v404_v38 = vand.u32 4294901760, %v403_v1  ;;  %v64_v10 = vld [vmem:[#allocation3 + $0x8] sm:$0xff] }
  0x62   :  { %v415_v9 = vsub.f32 %v6816_v22, %v414_v43  ;;  %5532 = vmatpush1.bf16.msra.mxu1 %v5531_v2  ;;  %5628 = vmatpush1.bf16.msra.mxu0 %v5627_v31  ;;  %v398_v45 = vand.u32 4294901760, %v397_v21  ;;  %v426_v37 = vand.u32 4294901760, %v6822_v35  ;;  %v420_v28 = vand.u32 4294901760, %v6824_v36 }
  0x63   :  { %5534 = vmatprep.subr.bf16.mxu1 %v5533_v57  ;;  %5630 = vmatprep.subr.bf16.mxu0 %v5629_v48  ;;  %v410_v25 = vand.u32 4294901760, %v409_v13  ;;  %v432_v33 = vand.u32 4294901760, %v6828_v49  ;;  %v438_v4 = vand.u32 4294901760, %v6832_v51  ;;  %v5541_v44 = vpack.c.bf16 %v404_v38, %v392_v63 }
  0x64   :  { %v416_v59 = vand.u32 4294901760, %v415_v9  ;;  %v427_v0 = vsub.f32 %v6822_v35, %v426_v37  ;;  %v5641_v2 = vpack.c.bf16 %v426_v37, %v414_v43  ;;  %v421_v31 = vsub.f32 %v6824_v36, %v420_v28 }
  0x65   :  { %v5543_v1 = vpack.c.bf16 %v410_v25, %v398_v45  ;;  %v433_v21 = vsub.f32 %v6828_v49, %v432_v33  ;;  %v6949_v61 = vpack.c.bf16 %v432_v33, %v420_v28  ;;  %v439_v48 = vsub.f32 %v6832_v51, %v438_v4 }
  0x66   :  { %5536 = vmatpush1.bf16.msra.mxu1 %v5535_v42  ;;  %5632 = vmatpush1.bf16.msra.mxu0 %v6910_v11  ;;  %v428_v57 = vand.u32 4294901760, %v427_v0  ;;  %v422_v13 = vand.u32 4294901760, %v421_v31  ;;  %v450_v9 = vand.u32 4294901760, %v6836_v58  ;;  %v6954_v63 = vand.u32 4294901760, %v64_v10  ;;  %v65_v0 = vld [vmem:[#allocation3 + $0x10] sm:$0xff] }
  0x67   :  { %5538 = vmatprep.subr.bf16.mxu1 %v5537_v54  ;;  %5634 = vmatprep.subr.bf16.mxu0 %v5633_v23  ;;  %v434_v43 = vand.u32 4294901760, %v433_v21  ;;  %v440_v38 = vand.u32 4294901760, %v439_v48  ;;  %v444_v45 = vand.u32 4294901760, %v6840_v60  ;;  %v456_v37 = vand.u32 4294901760, %v6844_v62 }
  0x68   :  { %9938 = vst [vmem:[#allocation35_spill] sm:$0xff] %v6954_v63  ;;  %v5545_v28 = vpack.c.bf16 %v428_v57, %v416_v59  ;;  %v451_v25 = vsub.f32 %v6836_v58, %v450_v9  ;;  %v5645_v42 = vpack.c.bf16 %v450_v9, %v438_v4  ;;  %v6960_v11 = vsub.f32 %v64_v10, %v6954_v63 }
  0x69   :  { %v5547_v33 = vpack.c.bf16 %v434_v43, %v422_v13  ;;  %v445_v31 = vsub.f32 %v6840_v60, %v444_v45  ;;  %v457_v54 = vsub.f32 %v6844_v62, %v456_v37  ;;  %v6964_v23 = vpack.c.bf16 %v456_v37, %v444_v45 }
  0x6a   :  { %9939 = vst [vmem:[#allocation36_spill] sm:$0xff] %v6960_v11  ;;  %5540 = vmatpush1.bf16.msra.mxu1 %v5539_v41  ;;  %5636 = vmatpush1.bf16.msra.mxu0 %v6925_v8  ;;  %v452_v21 = vand.u32 4294901760, %v451_v25  ;;  %v6968_v59 = vand.u32 4294901760, %v6960_v11  ;;  %v462_v4 = vand.u32 4294901760, %v6846_v3  ;;  %v474_v10 = vand.u32 4294901760, %v6854_v27 }
  0x6b   :  { %5542 = vmatprep.subr.bf16.mxu1 %v5541_v44  ;;  %5638 = vmatprep.subr.bf16.mxu0 %v5637_v34  ;;  %v446_v48 = vand.u32 4294901760, %v445_v31  ;;  %v458_v57 = vand.u32 4294901760, %v457_v54  ;;  %v6972_v13 = vand.u32 4294901760, %v65_v0  ;;  %v468_v9 = vand.u32 4294901760, %v6858_v30 }
  0x6c   :  { %9940 = vst [vmem:[#allocation37_spill] sm:$0xff] %v6968_v59  ;;  %v5549_v43 = vpack.c.bf16 %v452_v21, %v440_v38  ;;  %v273_v8 = vsub.f32 %v6960_v11, %v6968_v59  ;;  %800 = vmatmul.mubr.f32.gmra.mrb[2].mxu0 %v6968_v59  ;;  %v463_v41 = vsub.f32 %v6846_v3, %v462_v4  ;;  %v480_v21 = vand.u32 4294901760, %v6862_v15  ;;  %v81_v59 = vld [vmem:[#allocation6 + $0x78] sm:$0xff]  ;;  %v83_v11 = vld [vmem:[#allocation6 + $0x88] sm:$0xff] }
  0x6d   :  { %9941 = vst [vmem:[#allocation38_spill] sm:$0xff] %v6972_v13  ;;  %v475_v45 = vsub.f32 %v6854_v27, %v474_v10  ;;  %v5551_v37 = vpack.c.bf16 %v458_v57, %v446_v48  ;;  %805 = vmatprep.mubr.f32.mxu0 %v9937_v50  ;;  %v5649_v34 = vpack.c.bf16 %v474_v10, %v462_v4  ;;  %v69_v10 = vld [vmem:[#allocation6 + $0x18] sm:$0xff] }
  0x6e   :  { %v6982_v44 = vsub.f32 %v65_v0, %v6972_v13  ;;  %v469_v25 = vsub.f32 %v6858_v30, %v468_v9  ;;  %5544 = vmatpush1.bf16.msra.mxu1 %v5543_v1  ;;  %5640 = vmatpush1.bf16.msra.mxu0 %v6939_v32  ;;  %v6986_v38 = vand.u32 4294901760, %v273_v8  ;;  %v464_v31 = vand.u32 4294901760, %v463_v41  ;;  %v74_v41 = vld [vmem:[#allocation6 + $0x40] sm:$0xff] }
  0x6f   :  { %v476_v54 = vand.u32 4294901760, %v475_v45  ;;  %5546 = vmatprep.subr.bf16.mxu1 %v5545_v28  ;;  %5642 = vmatprep.subr.bf16.mxu0 %v5641_v2  ;;  %v481_v57 = vsub.f32 %v6862_v15, %v480_v21  ;;  %v6998_v8 = vpack.c.bf16 %v480_v21, %v468_v9  ;;  %v1115_v21 = vand.u32 4294901760, %v69_v10  ;;  %v71_v2 = vld [vmem:[#allocation6 + $0x28] sm:$0xff]  ;;  %v70_v45 = vld [vmem:[#allocation6 + $0x20] sm:$0xff] }
  0x70   :  { %9942 = vst [vmem:[#allocation39_spill] sm:$0xff] %v6982_v44  ;;  %9943 = vst [vmem:[#allocation40_spill] sm:$0xff] %v6986_v38  ;;  %v6990_v48 = vand.u32 4294901760, %v6982_v44  ;;  %v470_v4 = vand.u32 4294901760, %v469_v25  ;;  %275 = vmatmul.mubr.f32.gmra.mrb[2].mxu1 %v6986_v38  ;;  %v68_v25 = vld [vmem:[#allocation6 + $0x10] sm:$0xff]  ;;  %v2070_v38 = vand.u32 4294901760, %v70_v45 }
  0x71   :  { %v5553_v32 = vpack.c.bf16 %v476_v54, %v464_v31  ;;  %280 = vmatprep.mubr.f32.mxu1 %v9937_v50  ;;  %v482_v9 = vand.u32 4294901760, %v481_v57  ;;  %v75_v54 = vld [vmem:[#allocation6 + $0x48] sm:$0xff]  ;;  %v77_v57 = vld [vmem:[#allocation6 + $0x58] sm:$0xff] }
  0x72   :  { %9944 = vst [vmem:[#allocation41_spill] sm:$0xff] %v6990_v48  ;;  %v284_v28 = vsub.f32 %v6982_v44, %v6990_v48  ;;  %809 = vmatmul.mubr.f32.gmra.mrb[4].mxu0 %v6990_v48  ;;  %5548 = vmatpush1.bf16.msra.mxu1 %v5547_v33  ;;  %v2072_v0 = vand.u32 4294901760, %v77_v57  ;;  %v1121_v48 = vand.u32 4294901760, %v74_v41  ;;  %v7040_v33 = vsub.f32 %v69_v10, %v1115_v21  ;;  %v87_v44 = vld [vmem:[#allocation6 + $0xa8] sm:$0xff] }
  0x73   :  { %5644 = vmatpush1.bf16.msra.mxu0 %v6949_v61  ;;  %5550 = vmatprep.subr.bf16.mxu1 %v5549_v43  ;;  %v5555_v31 = vpack.c.bf16 %v482_v9, %v470_v4  ;;  %v76_v61 = vld [vmem:[#allocation6 + $0x50] sm:$0xff]  ;;  %v2068_v43 = vand.u32 4294901760, %v71_v2  ;;  %v89_v9 = vld [vmem:[#allocation6 + $0xb8] sm:$0xff] }
  0x74   :  { %5646 = vmatprep.subr.bf16.mxu0 %v5645_v42  ;;  %v7015_v1 = vand.u32 4294901760, %v284_v28  ;;  %975 = vmatprep.mubr.f32.mxu0 %v9937_v50  ;;  %v1119_v42 = vand.u32 4294901760, %v75_v54  ;;  %v1117_v28 = vand.u32 4294901760, %v68_v25  ;;  %9947 = vst [vmem:[#allocation44_spill] sm:$0xff] %v7040_v33  ;;  %v2074_v4 = vand.u32 4294901760, %v76_v61 }
  0x75   :  { %v7047_v30 = vsub.f32 %v71_v2, %v2068_v43  ;;  %v7049_v15 = vsub.f32 %v77_v57, %v2072_v0  ;;  %v7055_v33 = vsub.f32 %v74_v41, %v1121_v48  ;;  %v1123_v2 = vand.u32 4294901760, %v81_v59  ;;  %v88_v57 = vld [vmem:[#allocation6 + $0xb0] sm:$0xff] }
  0x76   :  { %9945 = vst [vmem:[#allocation42_spill] sm:$0xff] %v7015_v1  ;;  %286 = vmatmul.mubr.f32.gmra.mrb[4].mxu1 %v7015_v1  ;;  %v7038_v1 = vpack.c.bf16 %v1119_v42, %v1115_v21  ;;  %v7051_v10 = vpack.c.bf16 %v1121_v48, %v1117_v28  ;;  %v7053_v21 = vsub.f32 %v68_v25, %v1117_v28  ;;  %v2080_v25 = vand.u32 4294901760, %v89_v9 }
  0x77   :  { %5552 = vmatpush1.bf16.msra.mxu1 %v5551_v37  ;;  %5648 = vmatpush1.bf16.msra.mxu0 %v6964_v23  ;;  %v7043_v37 = vsub.f32 %v75_v54, %v1119_v42  ;;  %v7045_v23 = vpack.c.bf16 %v2072_v0, %v2068_v43  ;;  %9949 = vst [vmem:[#allocation46_spill] sm:$0xff] %v7047_v30  ;;  %9950 = vst [vmem:[#allocation47_spill] sm:$0xff] %v7049_v15  ;;  %v1127_v42 = vand.u32 4294901760, %v87_v44  ;;  %v9960_v15 = vld [vmem:[#allocation27_spill] sm:$0xff] }
  0x78   :  { %5554 = vmatprep.subr.bf16.mxu1 %v5553_v32  ;;  %5650 = vmatprep.subr.bf16.mxu0 %v5649_v34  ;;  %9946 = vst [vmem:[#allocation43_spill] sm:$0xff] %v7038_v1  ;;  %v80_v34 = vld [vmem:[#allocation6 + $0x70] sm:$0xff]  ;;  %v86_v32 = vld [vmem:[#allocation6 + $0xa0] sm:$0xff]  ;;  %9951 = vst [vmem:[#allocation48_spill] sm:$0xff] %v7051_v10  ;;  %v7057_v3 = vpack.c.bf16 %v2074_v4, %v2070_v38  ;;  %v7060_v54 = vsub.f32 %v70_v45, %v2070_v38  ;;  %v2076_v0 = vand.u32 4294901760, %v83_v11 }
  0x79   :  { %516 = vmatprep.mubr.f32.mxu1 %v9937_v50  ;;  %9948 = vst [vmem:[#allocation45_spill] sm:$0xff] %v7045_v23  ;;  %v82_v1 = vld [vmem:[#allocation6 + $0x80] sm:$0xff]  ;;  %9952 = vst [vmem:[#allocation49_spill] sm:$0xff] %v7053_v21  ;;  %v9956_v43 = vpack.c.bf16 %v6748_v18, %v6746_v17  ;;  %v1125_v48 = vand.u32 4294901760, %v80_v34  ;;  %v1129_v41 = vand.u32 4294901760, %v86_v32  ;;  %v7070_v38 = vsub.f32 %v81_v59, %v1123_v2  ;;  %v95_v21 = vld [vmem:[#allocation6 + $0xe8] sm:$0xff] }
  0x7a   :  { %9953 = vst [vmem:[#allocation50_spill] sm:$0xff] %v7055_v33  ;;  %9954 = vst [vmem:[#allocation51_spill] sm:$0xff] %v7057_v3  ;;  %v2078_v28 = vand.u32 4294901760, %v82_v1  ;;  %v93_v33 = vld [vmem:[#allocation6 + $0xd8] sm:$0xff]  ;;  %v7072_v45 = vsub.f32 %v87_v44, %v1127_v42  ;;  %v7078_v17 = vsub.f32 %v83_v11, %v2076_v0  ;;  %v7080_v18 = vsub.f32 %v89_v9, %v2080_v25 }
  0x7b   :  { %5556 = vmatpush1.bf16.msra.mxu1 %v5555_v31  ;;  %5652 = vmatpush1.bf16.msra.mxu0 %v6998_v8  ;;  %9955 = vst [vmem:[#allocation52_spill] sm:$0xff] %v7060_v54  ;;  %v7066_v31 = vsub.f32 %v76_v61, %v2074_v4  ;;  %v7068_v8 = vpack.c.bf16 %v1127_v42, %v1123_v2  ;;  %v99_v54 = vld [vmem:[#allocation6 + $0x108] sm:$0xff]  ;;  %v2082_v61 = vand.u32 4294901760, %v88_v57  ;;  %v101_v4 = vld [vmem:[#allocation6 + $0x118] sm:$0xff]  ;;  %v1131_v11 = vand.u32 4294901760, %v93_v33 }
  0x7c   :  { %5558 = vmatprep.subr.bf16.mxu1 %v9956_v43  ;;  %5654 = vmatprep.subr.bf16.mxu0 %v6744_v16  ;;  %9959 = vst [vmem:[#allocation55_spill] sm:$0xff] %v7072_v45  ;;  %v7076_v16 = vpack.c.bf16 %v2080_v25, %v2076_v0  ;;  %9962 = vst [vmem:[#allocation57_spill] sm:$0xff] %v7078_v17  ;;  %v92_v43 = vld [vmem:[#allocation6 + $0xd0] sm:$0xff]  ;;  %v9964_v59 = vpack.c.bf16 %v6754_v24, %v6750_v19  ;;  %v9965_v44 = vld [vmem:[#allocation13_spill] sm:$0xff]  ;;  %v1135_v24 = vand.u32 4294901760, %v99_v54 }
  0x7d   :  { %9957 = vst [vmem:[#allocation53_spill] sm:$0xff] %v7066_v31  ;;  %9958 = vst [vmem:[#allocation54_spill] sm:$0xff] %v7068_v8  ;;  %v98_v8 = vld [vmem:[#allocation6 + $0x100] sm:$0xff]  ;;  %v7086_v2 = vpack.c.bf16 %v1129_v41, %v1125_v48  ;;  %v7088_v42 = vsub.f32 %v80_v34, %v1125_v48  ;;  %v7090_v45 = vsub.f32 %v86_v32, %v1129_v41  ;;  %v2088_v32 = vand.u32 4294901760, %v101_v4 }
  0x7e   :  { %518 = vmatmul.mubr.f32.vlgmr.msra.gmra.mrb[0].mxu1 %v9960_v15  ;;  %977 = vmatmul.mubr.f32.vlgmr.msra.gmra.mrb[0].mxu0 %v9960_v15  ;;  %9961 = vst [vmem:[#allocation56_spill] sm:$0xff] %v7076_v16  ;;  %9963 = vst [vmem:[#allocation58_spill] sm:$0xff] %v7080_v18  ;;  %v94_v0 = vld [vmem:[#allocation6 + $0xe0] sm:$0xff]  ;;  %v9969_v9 = vpack.c.bf16 %v6762_v29, %v6758_v26  ;;  %v7096_v18 = vpack.c.bf16 %v2082_v61, %v2078_v28  ;;  %v1133_v48 = vand.u32 4294901760, %v92_v43  ;;  %v105_v26 = vld [vmem:[#allocation6 + $0x138] sm:$0xff] }
  0x7f   :  { %5560 = vmatpush1.bf16.msra.mxu1 %v9964_v59  ;;  %5656 = vmatpush1.bf16.msra.mxu0 %v9965_v44  ;;  %9966 = vst [vmem:[#allocation13_spill] sm:$0xff] %v7086_v2  ;;  %9967 = vst [vmem:[#allocation59_spill] sm:$0xff] %v7088_v42  ;;  %v9970_v25 = vld [vmem:[#allocation14_spill] sm:$0xff]  ;;  %v7098_v19 = vsub.f32 %v82_v1, %v2078_v28  ;;  %v2084_v59 = vand.u32 4294901760, %v95_v21  ;;  %v100_v44 = vld [vmem:[#allocation6 + $0x110] sm:$0xff]  ;;  %v7102_v34 = vsub.f32 %v88_v57, %v2082_v61 }
  0x80   :  { %9968 = vst [vmem:[#allocation60_spill] sm:$0xff] %v7090_v45  ;;  %5562 = vmatprep.subr.bf16.mxu1 %v9969_v9  ;;  %5658 = vmatprep.subr.bf16.mxu0 %v9970_v25  ;;  %9971 = vst [vmem:[#allocation14_spill] sm:$0xff] %v7096_v18  ;;  %v1137_v41 = vand.u32 4294901760, %v98_v8  ;;  %v7106_v29 = vpack.c.bf16 %v1135_v24, %v1131_v11  ;;  %v7108_v1 = vsub.f32 %v93_v33, %v1131_v11  ;;  %v111_v25 = vld [vmem:[#allocation6 + $0x168] sm:$0xff]  ;;  %v113_v33 = vld [vmem:[#allocation6 + $0x178] sm:$0xff] }
  0x81   :  { %9972 = vst [vmem:[#allocation61_spill] sm:$0xff] %v7098_v19  ;;  %523 = vmatprep.mubr.f32.mxu1 %v9937_v50  ;;  %982 = vmatprep.mubr.f32.mxu0 %v9937_v50  ;;  %9973 = vst [vmem:[#allocation62_spill] sm:$0xff] %v7102_v34  ;;  %v7110_v28 = vsub.f32 %v99_v54, %v1135_v24  ;;  %v2086_v9 = vand.u32 4294901760, %v94_v0  ;;  %v107_v19 = vld [vmem:[#allocation6 + $0x148] sm:$0xff]  ;;  %v9977_v57 = vpack.c.bf16 %v6772_v40, %v6770_v39  ;;  %v104_v11 = vld [vmem:[#allocation6 + $0x130] sm:$0xff] }
  0x82   :  { %525 = vmatmul.mubr.f32.gmra.mrb[2].mxu1 %v6954_v63  ;;  %984 = vmatmul.mubr.f32.gmra.mrb[2].mxu0 %v6954_v63  ;;  %9974 = vst [vmem:[#allocation63_spill] sm:$0xff] %v7106_v29  ;;  %9975 = vst [vmem:[#allocation64_spill] sm:$0xff] %v7108_v1  ;;  %v9978_v61 = vld [vmem:[#allocation15_spill] sm:$0xff]  ;;  %v7116_v34 = vpack.c.bf16 %v2088_v32, %v2084_v59  ;;  %v7118_v45 = vsub.f32 %v95_v21, %v2084_v59  ;;  %v2090_v17 = vand.u32 4294901760, %v100_v44  ;;  %v110_v54 = vld [vmem:[#allocation6 + $0x160] sm:$0xff] }
  0x83   :  { %9976 = vst [vmem:[#allocation65_spill] sm:$0xff] %v7110_v28  ;;  %5564 = vmatpush1.bf16.msra.mxu1 %v9977_v57  ;;  %5660 = vmatpush1.bf16.msra.mxu0 %v9978_v61  ;;  %v7120_v42 = vsub.f32 %v101_v4, %v2088_v32  ;;  %v9982_v24 = vpack.c.bf16 %v6778_v47, %v6776_v46  ;;  %v9983_v28 = vld [vmem:[#allocation16_spill] sm:$0xff]  ;;  %v1139_v21 = vand.u32 4294901760, %v105_v26  ;;  %v106_v59 = vld [vmem:[#allocation6 + $0x140] sm:$0xff]  ;;  %v1143_v46 = vand.u32 4294901760, %v111_v25 }
  0x84   :  { %9979 = vst [vmem:[#allocation15_spill] sm:$0xff] %v7116_v34  ;;  %9980 = vst [vmem:[#allocation66_spill] sm:$0xff] %v7118_v45  ;;  %5662 = vmatprep.subr.bf16.mxu0 %v9983_v28  ;;  %v7126_v39 = vpack.c.bf16 %v1137_v41, %v1133_v48  ;;  %v7128_v40 = vsub.f32 %v92_v43, %v1133_v48  ;;  %v7130_v57 = vsub.f32 %v98_v8, %v1137_v41  ;;  %v112_v61 = vld [vmem:[#allocation6 + $0x170] sm:$0xff]  ;;  %v117_v28 = vld [vmem:[#allocation6 + $0x198] sm:$0xff] }
  0x85   :  { %9981 = vst [vmem:[#allocation67_spill] sm:$0xff] %v7120_v42  ;;  %5566 = vmatprep.subr.bf16.mxu1 %v9982_v24  ;;  %530 = vmatprep.mubr.f32.mxu1 %v9937_v50  ;;  %v7134_v4 = vpack.c.bf16 %v2090_v17, %v2086_v9  ;;  %v7136_v32 = vsub.f32 %v94_v0, %v2086_v9  ;;  %v2092_v47 = vand.u32 4294901760, %v107_v19  ;;  %v2096_v8 = vand.u32 4294901760, %v113_v33  ;;  %v123_v42 = vld [vmem:[#allocation6 + $0x1c8] sm:$0xff] }
  0x86   :  { %9984 = vst [vmem:[#allocation16_spill] sm:$0xff] %v7126_v39  ;;  %9985 = vst [vmem:[#allocation68_spill] sm:$0xff] %v7128_v40  ;;  %989 = vmatprep.mubr.f32.mxu0 %v9937_v50  ;;  %532 = vmatmul.mubr.f32.gmra.mrb[4].mxu1 %v6972_v13  ;;  %v7140_v43 = vsub.f32 %v100_v44, %v2090_v17  ;;  %v1141_v48 = vand.u32 4294901760, %v104_v11  ;;  %v1145_v41 = vand.u32 4294901760, %v110_v54  ;;  %v2094_v40 = vand.u32 4294901760, %v106_v59  ;;  %v119_v17 = vld [vmem:[#allocation6 + $0x1a8] sm:$0xff] }
  0x87   :  { %9986 = vst [vmem:[#allocation69_spill] sm:$0xff] %v7130_v57  ;;  %9987 = vst [vmem:[#allocation70_spill] sm:$0xff] %v7134_v4  ;;  %991 = vmatmul.mubr.f32.gmra.mrb[4].mxu0 %v6972_v13  ;;  %v9990_v24 = vpack.c.bf16 %v6784_v53, %v6782_v52  ;;  %v9991_v57 = vld [vmem:[#allocation17_spill] sm:$0xff]  ;;  %v7146_v0 = vpack.c.bf16 %v1143_v46, %v1139_v21  ;;  %v7148_v9 = vsub.f32 %v105_v26, %v1139_v21  ;;  %v116_v21 = vld [vmem:[#allocation6 + $0x190] sm:$0xff] }
  0x88   :  { %9988 = vst [vmem:[#allocation71_spill] sm:$0xff] %v7136_v32  ;;  %9989 = vst [vmem:[#allocation72_spill] sm:$0xff] %v7140_v43  ;;  %5664 = vmatpush1.bf16.msra.mxu0 %v9991_v57  ;;  %v7150_v32 = vsub.f32 %v111_v25, %v1143_v46  ;;  %v9995_v44 = vpack.c.bf16 %v6792_v56, %v6788_v55  ;;  %v9996_v43 = vld [vmem:[#allocation18_spill] sm:$0xff]  ;;  %v7156_v45 = vpack.c.bf16 %v2096_v8, %v2092_v47  ;;  %v125_v26 = vld [vmem:[#allocation6 + $0x1d8] sm:$0xff] }
  0x89   :  { %5568 = vmatpush1.bf16.msra.mxu1 %v9990_v24  ;;  %9992 = vst [vmem:[#allocation17_spill] sm:$0xff] %v7146_v0  ;;  %9993 = vst [vmem:[#allocation73_spill] sm:$0xff] %v7148_v9  ;;  %5666 = vmatprep.subr.bf16.mxu0 %v9996_v43  ;;  %v7158_v52 = vsub.f32 %v107_v19, %v2092_v47  ;;  %v7160_v53 = vsub.f32 %v113_v33, %v2096_v8  ;;  %v2098_v57 = vand.u32 4294901760, %v112_v61  ;;  %v122_v25 = vld [vmem:[#allocation6 + $0x1c0] sm:$0xff] }
  0x8a   :  { %9994 = vst [vmem:[#allocation74_spill] sm:$0xff] %v7150_v32  ;;  %5570 = vmatprep.subr.bf16.mxu1 %v9995_v44  ;;  %9997 = vst [vmem:[#allocation18_spill] sm:$0xff] %v7156_v45  ;;  %666 = vmatprep.mubr.f32.mxu1 %v9937_v50  ;;  %v7164_v46 = vpack.c.bf16 %v1145_v41, %v1141_v48  ;;  %v7166_v55 = vsub.f32 %v104_v11, %v1141_v48  ;;  %v1147_v43 = vand.u32 4294901760, %v117_v28  ;;  %v118_v24 = vld [vmem:[#allocation6 + $0x1a0] sm:$0xff] }
  0x8b   :  { %9998 = vst [vmem:[#allocation75_spill] sm:$0xff] %v7158_v52  ;;  %9999 = vst [vmem:[#allocation76_spill] sm:$0xff] %v7160_v53  ;;  %1093 = vmatprep.mubr.f32.mxu0 %v9937_v50  ;;  %v7168_v56 = vsub.f32 %v110_v54, %v1145_v41  ;;  %v7170_v19 = vpack.c.bf16 %v2098_v57, %v2094_v40  ;;  %v7172_v33 = vsub.f32 %v106_v59, %v2094_v40  ;;  %v10006_v53 = vld [vmem:[#allocation19_spill] sm:$0xff]  ;;  %v124_v41 = vld [vmem:[#allocation6 + $0x1d0] sm:$0xff] }
  0x8c   :  { %10000 = vst [vmem:[#allocation77_spill] sm:$0xff] %v7164_v46  ;;  %10001 = vst [vmem:[#allocation78_spill] sm:$0xff] %v7166_v55  ;;  %v1151_v47 = vand.u32 4294901760, %v123_v42  ;;  %v2100_v8 = vand.u32 4294901760, %v119_v17  ;;  %v10005_v44 = vpack.c.bf16 %v6800_v6, %v6798_v5  ;;  %5668 = vmatpush1.bf16.msra.mxu0 %v10006_v53  ;;  %v7178_v52 = vsub.f32 %v112_v61, %v2098_v57  ;;  %v135_v55 = vld [vmem:[#allocation6 + $0x228] sm:$0xff]  ;;  %v10009_v59 = vld [vmem:[#allocation20_spill] sm:$0xff] }
  0x8d   :  { %10002 = vst [vmem:[#allocation79_spill] sm:$0xff] %v7168_v56  ;;  %10003 = vst [vmem:[#allocation80_spill] sm:$0xff] %v7170_v19  ;;  %v2104_v11 = vand.u32 4294901760, %v125_v26  ;;  %v1149_v48 = vand.u32 4294901760, %v116_v21  ;;  %v1153_v54 = vand.u32 4294901760, %v122_v25  ;;  %v129_v56 = vld [vmem:[#allocation6 + $0x1f8] sm:$0xff]  ;;  %v10008_v40 = vpack.c.bf16 %v6806_v12, %v6802_v7  ;;  %5670 = vmatprep.subr.bf16.mxu0 %v10009_v59 }
  0x8e   :  { %10004 = vst [vmem:[#allocation81_spill] sm:$0xff] %v7172_v33  ;;  %5572 = vmatpush1.bf16.msra.mxu1 %v10005_v44  ;;  %10007 = vst [vmem:[#allocation19_spill] sm:$0xff] %v7178_v52  ;;  %v7184_v33 = vpack.c.bf16 %v1151_v47, %v1147_v43  ;;  %v7186_v5 = vsub.f32 %v117_v28, %v1147_v43  ;;  %v7188_v6 = vsub.f32 %v123_v42, %v1151_v47  ;;  %v131_v53 = vld [vmem:[#allocation6 + $0x208] sm:$0xff]  ;;  %v137_v57 = vld [vmem:[#allocation6 + $0x238] sm:$0xff] }
  0x8f   :  { %5574 = vmatprep.subr.bf16.mxu1 %v10008_v40  ;;  %v2102_v61 = vand.u32 4294901760, %v118_v24  ;;  %v128_v44 = vld [vmem:[#allocation6 + $0x1f0] sm:$0xff]  ;;  %v7190_v52 = vpack.c.bf16 %v2104_v11, %v2100_v8  ;;  %v7192_v32 = vsub.f32 %v119_v17, %v2100_v8  ;;  %v7194_v9 = vsub.f32 %v125_v26, %v2104_v11  ;;  %v134_v12 = vld [vmem:[#allocation6 + $0x220] sm:$0xff]  ;;  %v10020_v47 = vld [vmem:[#allocation21_spill] sm:$0xff] }
  0x90   :  { %10010 = vst [vmem:[#allocation20_spill] sm:$0xff] %v7184_v33  ;;  %10011 = vst [vmem:[#allocation82_spill] sm:$0xff] %v7186_v5  ;;  %v7196_v7 = vpack.c.bf16 %v1153_v54, %v1149_v48  ;;  %v7198_v40 = vsub.f32 %v116_v21, %v1149_v48  ;;  %v7200_v59 = vsub.f32 %v122_v25, %v1153_v54  ;;  %v2106_v28 = vand.u32 4294901760, %v124_v41  ;;  %v130_v11 = vld [vmem:[#allocation6 + $0x200] sm:$0xff] }
  0x91   :  { %10012 = vst [vmem:[#allocation83_spill] sm:$0xff] %v7188_v6  ;;  %10013 = vst [vmem:[#allocation84_spill] sm:$0xff] %v7190_v52  ;;  %v1155_v42 = vand.u32 4294901760, %v129_v56  ;;  %v10019_v43 = vpack.c.bf16 %v6814_v20, %v6810_v14  ;;  %5672 = vmatpush1.bf16.msra.mxu0 %v10020_v47  ;;  %v1159_v6 = vand.u32 4294901760, %v135_v55  ;;  %v2108_v17 = vand.u32 4294901760, %v131_v53  ;;  %v10022_v25 = vld [vmem:[#allocation22_spill] sm:$0xff] }
  0x92   :  { %10014 = vst [vmem:[#allocation85_spill] sm:$0xff] %v7192_v32  ;;  %10015 = vst [vmem:[#allocation86_spill] sm:$0xff] %v7194_v9  ;;  %v2112_v8 = vand.u32 4294901760, %v137_v57  ;;  %v1157_v26 = vand.u32 4294901760, %v128_v44  ;;  %v136_v9 = vld [vmem:[#allocation6 + $0x230] sm:$0xff]  ;;  %v10021_v21 = vpack.c.bf16 %v6822_v35, %v6816_v22  ;;  %5674 = vmatprep.subr.bf16.mxu0 %v10022_v25  ;;  %v7210_v48 = vpack.c.bf16 %v2106_v28, %v2102_v61  ;;  %v147_v47 = vld [vmem:[#allocation6 + $0x288] sm:$0xff] }
  0x93   :  { %10016 = vst [vmem:[#allocation87_spill] sm:$0xff] %v7196_v7  ;;  %10017 = vst [vmem:[#allocation88_spill] sm:$0xff] %v7198_v40  ;;  %5576 = vmatpush1.bf16.msra.mxu1 %v10019_v43  ;;  %v7212_v54 = vsub.f32 %v118_v24, %v2102_v61  ;;  %v7214_v14 = vsub.f32 %v124_v41, %v2106_v28  ;;  %v1161_v20 = vand.u32 4294901760, %v134_v12  ;;  %v141_v43 = vld [vmem:[#allocation6 + $0x258] sm:$0xff]  ;;  %v146_v25 = vld [vmem:[#allocation6 + $0x280] sm:$0xff] }
  0x94   :  { %10018 = vst [vmem:[#allocation89_spill] sm:$0xff] %v7200_v59  ;;  %5578 = vmatprep.subr.bf16.mxu1 %v10021_v21  ;;  %10023 = vst [vmem:[#allocation21_spill] sm:$0xff] %v7210_v48  ;;  %v143_v59 = vld [vmem:[#allocation6 + $0x268] sm:$0xff]  ;;  %v7216_v40 = vpack.c.bf16 %v1159_v6, %v1155_v42  ;;  %v7218_v32 = vsub.f32 %v129_v56, %v1155_v42  ;;  %v7220_v5 = vsub.f32 %v135_v55, %v1159_v6  ;;  %v149_v35 = vld [vmem:[#allocation6 + $0x298] sm:$0xff] }
  0x95   :  { %10024 = vst [vmem:[#allocation22_spill] sm:$0xff] %v7212_v54  ;;  %10025 = vst [vmem:[#allocation90_spill] sm:$0xff] %v7214_v14  ;;  %v7222_v22 = vpack.c.bf16 %v2112_v8, %v2108_v17  ;;  %v140_v21 = vld [vmem:[#allocation6 + $0x250] sm:$0xff]  ;;  %v7224_v48 = vsub.f32 %v131_v53, %v2108_v17  ;;  %v7226_v24 = vsub.f32 %v137_v57, %v2112_v8  ;;  %v10035_v56 = vld [vmem:[#allocation23_spill] sm:$0xff]  ;;  %v2110_v55 = vand.u32 4294901760, %v130_v11 }
  0x96   :  { %10026 = vst [vmem:[#allocation91_spill] sm:$0xff] %v7216_v40  ;;  %10027 = vst [vmem:[#allocation92_spill] sm:$0xff] %v7218_v32  ;;  %v7228_v41 = vpack.c.bf16 %v1161_v20, %v1157_v26  ;;  %v7230_v61 = vsub.f32 %v128_v44, %v1157_v26  ;;  %v10034_v28 = vpack.c.bf16 %v6828_v49, %v6824_v36  ;;  %5676 = vmatpush1.bf16.msra.mxu0 %v10035_v56  ;;  %v10037_v57 = vld [vmem:[#allocation24_spill] sm:$0xff]  ;;  %v159_v32 = vld [vmem:[#allocation6 + $0x2e8] sm:$0xff] }
  0x97   :  { %10028 = vst [vmem:[#allocation93_spill] sm:$0xff] %v7220_v5  ;;  %10029 = vst [vmem:[#allocation94_spill] sm:$0xff] %v7222_v22  ;;  %v2114_v6 = vand.u32 4294901760, %v136_v9  ;;  %v1163_v42 = vand.u32 4294901760, %v141_v43  ;;  %v1167_v5 = vand.u32 4294901760, %v147_v47  ;;  %v10036_v53 = vpack.c.bf16 %v6836_v58, %v6832_v51  ;;  %5678 = vmatprep.subr.bf16.mxu0 %v10037_v57  ;;  %v148_v56 = vld [vmem:[#allocation6 + $0x290] sm:$0xff] }
  0x98   :  { %10030 = vst [vmem:[#allocation95_spill] sm:$0xff] %v7224_v48  ;;  %10031 = vst [vmem:[#allocation96_spill] sm:$0xff] %v7226_v24  ;;  %5580 = vmatpush1.bf16.msra.mxu1 %v10034_v28  ;;  %v2116_v17 = vand.u32 4294901760, %v143_v59  ;;  %v2120_v8 = vand.u32 4294901760, %v149_v35  ;;  %v1165_v44 = vand.u32 4294901760, %v140_v21  ;;  %v1169_v26 = vand.u32 4294901760, %v146_v25 }
  0x99   :  { %10032 = vst [vmem:[#allocation97_spill] sm:$0xff] %v7228_v41  ;;  %10033 = vst [vmem:[#allocation98_spill] sm:$0xff] %v7230_v61  ;;  %5582 = vmatprep.subr.bf16.mxu1 %v10036_v53  ;;  %v142_v61 = vld [vmem:[#allocation6 + $0x260] sm:$0xff]  ;;  %v7240_v24 = vsub.f32 %v134_v12, %v1161_v20  ;;  %v7242_v36 = vpack.c.bf16 %v2114_v6, %v2110_v55  ;;  %v7244_v49 = vsub.f32 %v130_v11, %v2110_v55  ;;  %v153_v48 = vld [vmem:[#allocation6 + $0x2b8] sm:$0xff] }
  0x9a   :  { %v7246_v28 = vsub.f32 %v136_v9, %v2114_v6  ;;  %v7248_v51 = vpack.c.bf16 %v1167_v5, %v1163_v42  ;;  %v7250_v58 = vsub.f32 %v141_v43, %v1163_v42  ;;  %v7252_v53 = vsub.f32 %v147_v47, %v1167_v5  ;;  %v155_v14 = vld [vmem:[#allocation6 + $0x2c8] sm:$0xff]  ;;  %v161_v12 = vld [vmem:[#allocation6 + $0x2f8] sm:$0xff]  ;;  %v152_v20 = vld [vmem:[#allocation6 + $0x2b0] sm:$0xff] }
  0x9b   :  { %10038 = vst [vmem:[#allocation23_spill] sm:$0xff] %v7240_v24  ;;  %10039 = vst [vmem:[#allocation24_spill] sm:$0xff] %v7242_v36  ;;  %v7254_v57 = vpack.c.bf16 %v2120_v8, %v2116_v17  ;;  %v10046_v11 = vpack.c.bf16 %v6844_v62, %v6840_v60  ;;  %v10047_v9 = vld [vmem:[#allocation25_spill] sm:$0xff]  ;;  %v7260_v55 = vsub.f32 %v143_v59, %v2116_v17  ;;  %v2118_v43 = vand.u32 4294901760, %v142_v61  ;;  %v10051_v5 = vld [vmem:[#allocation26_spill] sm:$0xff] }
  0x9c   :  { %10040 = vst [vmem:[#allocation99_spill] sm:$0xff] %v7244_v49  ;;  %10041 = vst [vmem:[#allocation100_spill] sm:$0xff] %v7246_v28  ;;  %5680 = vmatpush1.bf16.msra.mxu0 %v10047_v9  ;;  %v7262_v6 = vsub.f32 %v149_v35, %v2120_v8  ;;  %v7264_v28 = vpack.c.bf16 %v1169_v26, %v1165_v44  ;;  %v10052_v47 = vpack.c.bf16 %v6854_v27, %v10051_v5  ;;  %v10053_v42 = vld [vmem:[#allocation28_spill] sm:$0xff]  ;;  %v154_v8 = vld [vmem:[#allocation6 + $0x2c0] sm:$0xff] }
  0x9d   :  { %10042 = vst [vmem:[#allocation101_spill] sm:$0xff] %v7248_v51  ;;  %10043 = vst [vmem:[#allocation102_spill] sm:$0xff] %v7250_v58  ;;  %5584 = vmatpush1.bf16.msra.mxu1 %v10046_v11  ;;  %5682 = vmatprep.subr.bf16.mxu0 %v10053_v42  ;;  %v2122_v58 = vand.u32 4294901760, %v148_v56  ;;  %v1171_v60 = vand.u32 4294901760, %v153_v48  ;;  %v1175_v62 = vand.u32 4294901760, %v159_v32  ;;  %v158_v11 = vld [vmem:[#allocation6 + $0x2e0] sm:$0xff]  ;;  %v7272_v9 = vsub.f32 %v146_v25, %v1169_v26 }
  0x9e   :  { %10044 = vst [vmem:[#allocation103_spill] sm:$0xff] %v7252_v53  ;;  %10045 = vst [vmem:[#allocation104_spill] sm:$0xff] %v7254_v57  ;;  %5586 = vmatprep.subr.bf16.mxu1 %v10052_v47  ;;  %v7270_v53 = vsub.f32 %v140_v21, %v1165_v44  ;;  %v2124_v59 = vand.u32 4294901760, %v155_v14  ;;  %v2128_v35 = vand.u32 4294901760, %v161_v12  ;;  %v1173_v17 = vand.u32 4294901760, %v152_v20  ;;  %v10060_v21 = vld [vmem:[#allocation31_spill] sm:$0xff] }
  0x9f   :  { %10048 = vst [vmem:[#allocation25_spill] sm:$0xff] %v7260_v55  ;;  %10049 = vst [vmem:[#allocation105_spill] sm:$0xff] %v7262_v6  ;;  %v160_v6 = vld [vmem:[#allocation6 + $0x2f0] sm:$0xff]  ;;  %v7274_v55 = vpack.c.bf16 %v2122_v58, %v2118_v43  ;;  %v7276_v49 = vsub.f32 %v142_v61, %v2118_v43  ;;  %v7278_v27 = vsub.f32 %v148_v56, %v2122_v58  ;;  %v10061_v44 = vld [vmem:[#allocation30_spill] sm:$0xff]  ;;  %v2126_v58 = vand.u32 4294901760, %v154_v8 }
  0xa0   :  { %10050 = vst [vmem:[#allocation106_spill] sm:$0xff] %v7264_v28  ;;  %10054 = vst [vmem:[#allocation26_spill] sm:$0xff] %v7270_v53  ;;  %v7280_v5 = vpack.c.bf16 %v1175_v62, %v1171_v60  ;;  %v10062_v47 = vpack.c.bf16 %v10060_v21, %v10061_v44  ;;  %v10063_v42 = vld [vmem:[#allocation29_spill] sm:$0xff]  ;;  %v7286_v25 = vsub.f32 %v153_v48, %v1171_v60  ;;  %v1177_v53 = vand.u32 4294901760, %v158_v11  ;;  %v10067_v24 = vld [vmem:[#allocation43_spill] sm:$0xff] }
  0xa1   :  { %10055 = vst [vmem:[#allocation28_spill] sm:$0xff] %v7272_v9  ;;  %10056 = vst [vmem:[#allocation107_spill] sm:$0xff] %v7274_v55  ;;  %5684 = vmatpush1.bf16.msra.mxu0 %v10063_v42  ;;  %v7288_v26 = vsub.f32 %v159_v32, %v1175_v62  ;;  %v7290_v9 = vpack.c.bf16 %v2128_v35, %v2124_v59  ;;  %v7294_v61 = vsub.f32 %v155_v14, %v2124_v59  ;;  %v10072_v48 = vld [vmem:[#allocation44_spill] sm:$0xff] }
  0xa2   :  { %10057 = vst [vmem:[#allocation108_spill] sm:$0xff] %v7276_v49  ;;  %10058 = vst [vmem:[#allocation109_spill] sm:$0xff] %v7278_v27  ;;  %5588 = vmatpush1.bf16.msra.mxu1 %v10062_v47  ;;  %5878 = vmatprep.subr.bf16.mxu0 %v7045_v23  ;;  %v7296_v56 = vsub.f32 %v161_v12, %v2128_v35  ;;  %v2130_v43 = vand.u32 4294901760, %v160_v6  ;;  %v7298_v21 = vpack.c.bf16 %v1177_v53, %v1173_v17  ;;  %v10073_v62 = vld [vmem:[#allocation32_spill] sm:$0xff]  ;;  %v10081_v23 = vld [vmem:[#allocation54_spill] sm:$0xff] }
  0xa3   :  { %10059 = vst [vmem:[#allocation110_spill] sm:$0xff] %v7280_v5  ;;  %10064 = vst [vmem:[#allocation31_spill] sm:$0xff] %v7286_v25  ;;  %5686 = vmatprep.subr.bf16.mxu1 %v10067_v24  ;;  %v7300_v44 = vsub.f32 %v152_v20, %v1173_v17  ;;  %v9510_v32 = vand.u32 4294901760, %v10072_v48  ;;  %v9513_v60 = vand.u32 4294901760, %v7043_v37  ;;  %v7306_v47 = vsub.f32 %v158_v11, %v1177_v53  ;;  %v10077_v53 = vld [vmem:[#allocation47_spill] sm:$0xff]  ;;  %v10078_v17 = vld [vmem:[#allocation49_spill] sm:$0xff] }
  0xa4   :  { %10065 = vst [vmem:[#allocation30_spill] sm:$0xff] %v7288_v26  ;;  %10066 = vst [vmem:[#allocation29_spill] sm:$0xff] %v7290_v9  ;;  %1095 = vmatmul.mubr.f32.vlgmr.msra.gmra.mrb[0].mxu0 %v9960_v15  ;;  %v7308_v14 = vpack.c.bf16 %v2130_v43, %v2126_v58  ;;  %v7310_v12 = vsub.f32 %v154_v8, %v2126_v58  ;;  %v9515_v59 = vand.u32 4294901760, %v7047_v30  ;;  %v9520_v11 = vand.u32 4294901760, %v10077_v53  ;;  %v10079_v58 = vld [vmem:[#allocation50_spill] sm:$0xff] }
  0xa5   :  { %10068 = vst [vmem:[#allocation111_spill] sm:$0xff] %v7294_v61  ;;  %10069 = vst [vmem:[#allocation112_spill] sm:$0xff] %v7296_v56  ;;  %669 = vmatmul.mubr.f32.vlgmr.msra.gmra.mrb[0].mxu1 %v10073_v62  ;;  %5880 = vmatpush1.bf16.msra.mxu0 %v7057_v3  ;;  %v1248_v20 = vsub.f32 %v10072_v48, %v9510_v32  ;;  %v1260_v35 = vsub.f32 %v7043_v37, %v9513_v60  ;;  %v9521_v3 = vand.u32 4294901760, %v10079_v58 }
  0xa6   :  { %10070 = vst [vmem:[#allocation113_spill] sm:$0xff] %v7298_v21  ;;  %10071 = vst [vmem:[#allocation114_spill] sm:$0xff] %v7300_v44  ;;  %5688 = vmatpush1.bf16.msra.mxu1 %v7051_v10  ;;  %674 = vmatprep.mubr.f32.mxu1 %v9937_v50  ;;  %v2201_v8 = vsub.f32 %v7047_v30, %v9515_v59  ;;  %v10080_v10 = vld [vmem:[#allocation52_spill] sm:$0xff]  ;;  %v2213_v24 = vsub.f32 %v10077_v53, %v9520_v11  ;;  %v10082_v15 = vand.u32 4294901760, %v10078_v17 }
  0xa7   :  { %10074 = vst [vmem:[#allocation44_spill] sm:$0xff] %v7306_v47  ;;  %10075 = vst [vmem:[#allocation115_spill] sm:$0xff] %v7308_v14  ;;  %1100 = vmatprep.mubr.f32.mxu0 %v9937_v50  ;;  %5690 = vmatprep.subr.bf16.mxu1 %v10081_v23  ;;  %v1249_v60 = vand.u32 4294901760, %v1248_v20  ;;  %v1261_v42 = vand.u32 4294901760, %v1260_v35  ;;  %v10083_v30 = vld [vmem:[#allocation36_spill] sm:$0xff]  ;;  %v1266_v62 = vsub.f32 %v10079_v58, %v9521_v3  ;;  %v10084_v20 = vand.u32 4294901760, %v10080_v10 }
  0xa8   :  { %10076 = vst [vmem:[#allocation116_spill] sm:$0xff] %v7310_v12  ;;  %5882 = vmatprep.subr.bf16.mxu0 %v7076_v16  ;;  %v1254_v59 = vsub.f32 %v10078_v17, %v10082_v15  ;;  %1102 = vmatmul.mubr.f32.gmra.mrb[2].mxu0 %v6954_v63  ;;  %v2202_v32 = vand.u32 4294901760, %v2201_v8  ;;  %v10085_v16 = vand.u32 4294901760, %v7066_v31  ;;  %v7352_v15 = vsub.f32 %v160_v6, %v2130_v43  ;;  %v10088_v43 = vld [vmem:[#allocation57_spill] sm:$0xff] }
  0xa9   :  { %677 = vmatmul.mubr.f32.gmra.mrb[2].mxu1 %v10083_v30  ;;  %v2207_v35 = vsub.f32 %v10080_v10, %v10084_v20  ;;  %5884 = vmatpush1.bf16.msra.mxu0 %v7096_v18  ;;  %v2214_v30 = vand.u32 4294901760, %v2213_v24  ;;  %v9531_v23 = vand.u32 4294901760, %v7070_v38  ;;  %v7357_v3 = vpack.c.bf16 %v1261_v42, %v1249_v60  ;;  %v10087_v10 = vld [vmem:[#allocation55_spill] sm:$0xff]  ;;  %v10089_v18 = vld [vmem:[#allocation58_spill] sm:$0xff] }
  0xaa   :  { %v2219_v11 = vsub.f32 %v7066_v31, %v10085_v16  ;;  %5692 = vmatpush1.bf16.msra.mxu1 %v7086_v2  ;;  %10086 = vst [vmem:[#allocation47_spill] sm:$0xff] %v7352_v15  ;;  %v1255_v8 = vand.u32 4294901760, %v1254_v59  ;;  %682 = vmatprep.mubr.f32.mxu1 %v9937_v50  ;;  %v1267_v20 = vand.u32 4294901760, %v1266_v62  ;;  %v9532_v16 = vand.u32 4294901760, %v10087_v10  ;;  %v10090_v31 = vld [vmem:[#allocation39_spill] sm:$0xff] }
  0xab   :  { %1107 = vmatprep.mubr.f32.mxu0 %v9937_v50  ;;  %v2208_v63 = vand.u32 4294901760, %v2207_v35  ;;  %5694 = vmatprep.subr.bf16.mxu1 %v7106_v29  ;;  %v1272_v24 = vsub.f32 %v7070_v38, %v9531_v23  ;;  %v9539_v59 = vand.u32 4294901760, %v10088_v43  ;;  %v7369_v60 = vpack.c.bf16 %v2214_v30, %v2202_v32  ;;  %v10091_v42 = vld [vmem:[#allocation59_spill] sm:$0xff] }
  0xac   :  { %5886 = vmatprep.subr.bf16.mxu0 %v7116_v34  ;;  %v2220_v6 = vand.u32 4294901760, %v2219_v11  ;;  %1109 = vmatmul.mubr.f32.gmra.mrb[4].mxu0 %v6972_v13  ;;  %v7371_v62 = vpack.c.bf16 %v1267_v20, %v1255_v8  ;;  %v1284_v11 = vsub.f32 %v10087_v10, %v9532_v16  ;;  %v9546_v35 = vand.u32 4294901760, %v10091_v42  ;;  %v10093_v8 = vld [vmem:[#allocation60_spill] sm:$0xff] }
  0xad   :  { %685 = vmatmul.mubr.f32.gmra.mrb[4].mxu1 %v10090_v31  ;;  %5888 = vmatpush1.bf16.msra.mxu0 %v7134_v4  ;;  %v1273_v23 = vand.u32 4294901760, %v1272_v24  ;;  %v2225_v2 = vsub.f32 %v10088_v43, %v9539_v59  ;;  %v10092_v30 = vand.u32 4294901760, %v10089_v18  ;;  %v9551_v20 = vand.u32 4294901760, %v10093_v8  ;;  %v10094_v24 = vld [vmem:[#allocation61_spill] sm:$0xff]  ;;  %v10095_v31 = vld [vmem:[#allocation62_spill] sm:$0xff] }
  0xae   :  { %5696 = vmatpush1.bf16.msra.mxu1 %v7126_v39  ;;  %5890 = vmatprep.subr.bf16.mxu0 %v7156_v45  ;;  %v1285_v16 = vand.u32 4294901760, %v1284_v11  ;;  %v1278_v4 = vsub.f32 %v10091_v42, %v9546_v35  ;;  %v9549_v39 = vand.u32 4294901760, %v10094_v24  ;;  %v9550_v34 = vand.u32 4294901760, %v10095_v31 }
  0xaf   :  { %v2237_v32 = vsub.f32 %v10089_v18, %v10092_v30  ;;  %5698 = vmatprep.subr.bf16.mxu1 %v7146_v0  ;;  %1211 = vmatprep.mubr.f32.mxu1 %v9937_v50  ;;  %v2226_v30 = vand.u32 4294901760, %v2225_v2  ;;  %v1290_v0 = vsub.f32 %v10093_v8, %v9551_v20  ;;  %v9557_v11 = vand.u32 4294901760, %v7108_v1  ;;  %v10097_v20 = vld [vmem:[#allocation66_spill] sm:$0xff] }
  0xb0   :  { %2164 = vmatprep.mubr.f32.mxu0 %v9937_v50  ;;  %v7399_v45 = vpack.c.bf16 %v2220_v6, %v2208_v63  ;;  %v1279_v29 = vand.u32 4294901760, %v1278_v4  ;;  %v2231_v35 = vsub.f32 %v10094_v24, %v9549_v39  ;;  %v2243_v13 = vsub.f32 %v10095_v31, %v9550_v34  ;;  %v10096_v4 = vld [vmem:[#allocation65_spill] sm:$0xff]  ;;  %v10098_v31 = vld [vmem:[#allocation67_spill] sm:$0xff] }
  0xb1   :  { %v2238_v59 = vand.u32 4294901760, %v2237_v32  ;;  %5892 = vmatpush1.bf16.msra.mxu0 %v7170_v19  ;;  %v7409_v2 = vpack.c.bf16 %v1285_v16, %v1273_v23  ;;  %v1291_v32 = vand.u32 4294901760, %v1290_v0  ;;  %v1296_v63 = vsub.f32 %v7108_v1, %v9557_v11  ;;  %v10099_v11 = vld [vmem:[#allocation68_spill] sm:$0xff] }
  0xb2   :  { %5700 = vmatpush1.bf16.msra.mxu1 %v7164_v46  ;;  %v9563_v6 = vand.u32 4294901760, %v10096_v4  ;;  %5894 = vmatprep.subr.bf16.mxu0 %v7190_v52  ;;  %v2232_v34 = vand.u32 4294901760, %v2231_v35  ;;  %v9568_v46 = vand.u32 4294901760, %v10097_v20  ;;  %v9567_v19 = vand.u32 4294901760, %v10098_v31 }
  0xb3   :  { %5702 = vmatprep.subr.bf16.mxu1 %v7184_v33  ;;  %v7417_v39 = vpack.c.bf16 %v2238_v59, %v2226_v30  ;;  %v7421_v23 = vpack.c.bf16 %v1291_v32, %v1279_v29  ;;  %v2244_v0 = vand.u32 4294901760, %v2243_v13  ;;  %v9573_v1 = vand.u32 4294901760, %v10099_v11  ;;  %v10100_v30 = vld [vmem:[#allocation69_spill] sm:$0xff]  ;;  %v10103_v33 = vld [vmem:[#allocation72_spill] sm:$0xff] }
  0xb4   :  { %v1308_v16 = vsub.f32 %v10096_v4, %v9563_v6  ;;  %v1297_v24 = vand.u32 4294901760, %v1296_v63  ;;  %v2249_v59 = vsub.f32 %v10097_v20, %v9568_v46  ;;  %v2261_v35 = vsub.f32 %v10098_v31, %v9567_v19  ;;  %v10101_v13 = vld [vmem:[#allocation21_spill] sm:$0xff]  ;;  %v10102_v63 = vld [vmem:[#allocation71_spill] sm:$0xff] }
  0xb5   :  { %v9578_v52 = vand.u32 4294901760, %v10100_v30  ;;  %5896 = vmatpush1.bf16.msra.mxu0 %v10101_v13  ;;  %v1302_v32 = vsub.f32 %v10099_v11, %v9573_v1  ;;  %v9580_v6 = vand.u32 4294901760, %v10102_v63  ;;  %v9582_v4 = vand.u32 4294901760, %v10103_v33  ;;  %v10104_v13 = vld [vmem:[#allocation73_spill] sm:$0xff] }
  0xb6   :  { %5704 = vmatpush1.bf16.msra.mxu1 %v7196_v7  ;;  %v1309_v29 = vand.u32 4294901760, %v1308_v16  ;;  %5898 = vmatprep.subr.bf16.mxu0 %v7222_v22  ;;  %v2250_v19 = vand.u32 4294901760, %v2249_v59  ;;  %v2262_v46 = vand.u32 4294901760, %v2261_v35  ;;  %v9583_v16 = vand.u32 4294901760, %v10104_v13 }
  0xb7   :  { %5706 = vmatprep.subr.bf16.mxu1 %v7216_v40  ;;  %v1314_v7 = vsub.f32 %v10100_v30, %v9578_v52  ;;  %v7447_v31 = vpack.c.bf16 %v2244_v0, %v2232_v34  ;;  %v1303_v20 = vand.u32 4294901760, %v1302_v32  ;;  %v2255_v1 = vsub.f32 %v10102_v63, %v9580_v6  ;;  %v10105_v52 = vld [vmem:[#allocation74_spill] sm:$0xff]  ;;  %v10106_v32 = vld [vmem:[#allocation75_spill] sm:$0xff]  ;;  %v10107_v63 = vld [vmem:[#allocation76_spill] sm:$0xff] }
  0xb8   :  { %v2267_v40 = vsub.f32 %v10103_v33, %v9582_v4  ;;  %v7455_v22 = vpack.c.bf16 %v1309_v29, %v1297_v24  ;;  %v1320_v35 = vsub.f32 %v10104_v13, %v9583_v16  ;;  %v9590_v30 = vand.u32 4294901760, %v10105_v52  ;;  %v10108_v16 = vld [vmem:[#allocation78_spill] sm:$0xff] }
  0xb9   :  { %v1315_v59 = vand.u32 4294901760, %v1314_v7  ;;  %5900 = vmatpush1.bf16.msra.mxu0 %v7242_v36  ;;  %v7463_v34 = vpack.c.bf16 %v2262_v46, %v2250_v19  ;;  %v2256_v0 = vand.u32 4294901760, %v2255_v1  ;;  %v9594_v6 = vand.u32 4294901760, %v10106_v32 }
  0xba   :  { %5708 = vmatpush1.bf16.msra.mxu1 %v7228_v41  ;;  %v9595_v4 = vand.u32 4294901760, %v10107_v63  ;;  %5902 = vmatprep.subr.bf16.mxu0 %v7254_v57  ;;  %v2268_v24 = vand.u32 4294901760, %v2267_v40  ;;  %v1332_v29 = vsub.f32 %v10105_v52, %v9590_v30  ;;  %v9597_v36 = vand.u32 4294901760, %v10108_v16  ;;  %v10111_v41 = vld [vmem:[#allocation19_spill] sm:$0xff] }
  0xbb   :  { %5710 = vmatprep.subr.bf16.mxu1 %v7248_v51  ;;  %v7469_v7 = vpack.c.bf16 %v1315_v59, %v1303_v20  ;;  %v1321_v46 = vand.u32 4294901760, %v1320_v35  ;;  %v2273_v1 = vsub.f32 %v10106_v32, %v9594_v6  ;;  %v10109_v51 = vld [vmem:[#allocation79_spill] sm:$0xff]  ;;  %v10110_v59 = vld [vmem:[#allocation81_spill] sm:$0xff]  ;;  %v10117_v32 = vld [vmem:[#allocation86_spill] sm:$0xff] }
  0xbc   :  { %v2285_v19 = vsub.f32 %v10107_v63, %v9595_v4  ;;  %v9602_v57 = vand.u32 4294901760, %v10109_v51  ;;  %v1333_v20 = vand.u32 4294901760, %v1332_v29  ;;  %v1326_v40 = vsub.f32 %v10108_v16, %v9597_v36  ;;  %v10112_v63 = vld [vmem:[#allocation82_spill] sm:$0xff] }
  0xbd   :  { %5904 = vmatpush1.bf16.msra.mxu0 %v7274_v55  ;;  %v2274_v35 = vand.u32 4294901760, %v2273_v1  ;;  %v9610_v29 = vand.u32 4294901760, %v10112_v63  ;;  %v7495_v36 = vpack.c.bf16 %v2268_v24, %v2256_v0  ;;  %v10113_v52 = vand.u32 4294901760, %v10110_v59 }
  0xbe   :  { %5712 = vmatpush1.bf16.msra.mxu1 %v7264_v28  ;;  %v2286_v6 = vand.u32 4294901760, %v2285_v19  ;;  %v1338_v4 = vsub.f32 %v10109_v51, %v9602_v57  ;;  %5906 = vmatprep.subr.bf16.mxu0 %v7290_v9  ;;  %v1327_v30 = vand.u32 4294901760, %v1326_v40  ;;  %v10114_v1 = vand.u32 4294901760, %v10111_v41  ;;  %v10115_v51 = vld [vmem:[#allocation83_spill] sm:$0xff]  ;;  %v10116_v40 = vld [vmem:[#allocation85_spill] sm:$0xff] }
  0xbf   :  { %5714 = vmatprep.subr.bf16.mxu1 %v7280_v5  ;;  %v2279_v28 = vsub.f32 %v10110_v59, %v10113_v52  ;;  %v7503_v55 = vpack.c.bf16 %v1333_v20, %v1321_v46  ;;  %v1344_v5 = vsub.f32 %v10112_v63, %v9610_v29  ;;  %v9611_v9 = vand.u32 4294901760, %v10115_v51 }
  0xc0   :  { %v2291_v19 = vsub.f32 %v10111_v41, %v10114_v1  ;;  %v1339_v57 = vand.u32 4294901760, %v1338_v4  ;;  %v7509_v0 = vpack.c.bf16 %v2286_v6, %v2274_v35  ;;  %v9614_v16 = vand.u32 4294901760, %v10116_v40  ;;  %v10118_v1 = vld [vmem:[#allocation88_spill] sm:$0xff] }
  0xc1   :  { %v2280_v24 = vand.u32 4294901760, %v2279_v28  ;;  %v9617_v52 = vand.u32 4294901760, %v10117_v32  ;;  %5908 = vmatpush1.bf16.msra.mxu0 %v7308_v14  ;;  %v1356_v20 = vsub.f32 %v10115_v51, %v9611_v9  ;;  %v9619_v29 = vand.u32 4294901760, %v10118_v1  ;;  %v10120_v14 = vld [vmem:[#allocation90_spill] sm:$0xff] }
  0xc2   :  { %5716 = vmatpush1.bf16.msra.mxu1 %v7298_v21  ;;  %v7515_v46 = vpack.c.bf16 %v1339_v57, %v1327_v30  ;;  %v2292_v4 = vand.u32 4294901760, %v2291_v19  ;;  %5910 = vmatprep.subr.bf16.mxu0 %v7369_v60  ;;  %v1345_v28 = vand.u32 4294901760, %v1344_v5  ;;  %v2297_v6 = vsub.f32 %v10116_v40, %v9614_v16  ;;  %v10119_v30 = vld [vmem:[#allocation89_spill] sm:$0xff]  ;;  %v10121_v5 = vld [vmem:[#allocation34_spill] sm:$0xff] }
  0xc3   :  { %5718 = vmatprep.subr.bf16.mxu1 %v7357_v3  ;;  %v2309_v57 = vsub.f32 %v10117_v32, %v9617_v52  ;;  %v9621_v35 = vand.u32 4294901760, %v10119_v30  ;;  %v1357_v19 = vand.u32 4294901760, %v1356_v20  ;;  %v1350_v9 = vsub.f32 %v10118_v1, %v9619_v29  ;;  %v10122_v32 = vld [vmem:[#allocation92_spill] sm:$0xff] }
  0xc4   :  { %2170 = vmatmul.mubr.f32.vlgmr.msra.gmra.mrb[6].mxu0 %v10121_v5  ;;  %v2298_v16 = vand.u32 4294901760, %v2297_v6  ;;  %v9626_v20 = vand.u32 4294901760, %v10122_v32  ;;  %v7543_v29 = vpack.c.bf16 %v2292_v4, %v2280_v24  ;;  %v10123_v60 = vand.u32 4294901760, %v7212_v54 }
  0xc5   :  { %1217 = vmatmul.mubr.f32.vlgmr.msra.gmra.mrb[6].mxu1 %v10121_v5  ;;  %v2310_v21 = vand.u32 4294901760, %v2309_v57  ;;  %v1362_v52 = vsub.f32 %v10119_v30, %v9621_v35  ;;  %5912 = vmatpush1.bf16.msra.mxu0 %v7399_v45  ;;  %v1351_v3 = vand.u32 4294901760, %v1350_v9  ;;  %v10124_v6 = vand.u32 4294901760, %v10120_v14  ;;  %v10125_v9 = vld [vmem:[#allocation93_spill] sm:$0xff]  ;;  %v10126_v35 = vld [vmem:[#allocation95_spill] sm:$0xff]  ;;  %v10127_v30 = vld [vmem:[#allocation96_spill] sm:$0xff] }
  0xc6   :  { %5720 = vmatpush1.bf16.msra.mxu1 %v7371_v62  ;;  %v2303_v1 = vsub.f32 %v7212_v54, %v10123_v60  ;;  %5914 = vmatprep.subr.bf16.mxu0 %v7417_v39  ;;  %v7553_v5 = vpack.c.bf16 %v1357_v19, %v1345_v28  ;;  %v1368_v45 = vsub.f32 %v10122_v32, %v9626_v20  ;;  %v9625_v24 = vand.u32 4294901760, %v10125_v9  ;;  %v10128_v28 = vld [vmem:[#allocation98_spill] sm:$0xff] }
  0xc7   :  { %v2315_v57 = vsub.f32 %v10120_v14, %v10124_v6  ;;  %5722 = vmatprep.subr.bf16.mxu1 %v7409_v2  ;;  %v1363_v62 = vand.u32 4294901760, %v1362_v52  ;;  %v7559_v4 = vpack.c.bf16 %v2310_v21, %v2298_v16  ;;  %v9627_v54 = vand.u32 4294901760, %v10126_v35  ;;  %1222 = vmatprep.mubr.f32.mxu1 %v9937_v50  ;;  %v10129_v21 = vld [vmem:[#allocation40_spill] sm:$0xff] }
  0xc8   :  { %v2304_v60 = vand.u32 4294901760, %v2303_v1  ;;  %v9629_v6 = vand.u32 4294901760, %v10127_v30  ;;  %2175 = vmatprep.mubr.f32.mxu0 %v9937_v50  ;;  %v1380_v52 = vsub.f32 %v10125_v9, %v9625_v24  ;;  %v9633_v19 = vand.u32 4294901760, %v10128_v28  ;;  %v10132_v24 = vld [vmem:[#allocation100_spill] sm:$0xff] }
  0xc9   :  { %v7565_v39 = vpack.c.bf16 %v1363_v62, %v1351_v3  ;;  %v2316_v2 = vand.u32 4294901760, %v2315_v57  ;;  %1228 = vmatmul.mubr.f32.gmra.mrb[8].mxu1 %v10129_v21  ;;  %2181 = vmatmul.mubr.f32.gmra.mrb[8].mxu0 %v10129_v21  ;;  %v1369_v16 = vand.u32 4294901760, %v1368_v45  ;;  %v2321_v1 = vsub.f32 %v10126_v35, %v9627_v54  ;;  %v10130_v57 = vld [vmem:[#allocation23_spill] sm:$0xff] }
  0xca   :  { %5724 = vmatpush1.bf16.msra.mxu1 %v7421_v23  ;;  %5916 = vmatpush1.bf16.msra.mxu0 %v7447_v31  ;;  %v2333_v3 = vsub.f32 %v10127_v30, %v9629_v6  ;;  %v9632_v62 = vand.u32 4294901760, %v10130_v57  ;;  %v1381_v21 = vand.u32 4294901760, %v1380_v52  ;;  %v1374_v31 = vsub.f32 %v10128_v28, %v9633_v19  ;;  %v10131_v23 = vld [vmem:[#allocation99_spill] sm:$0xff]  ;;  %v10133_v30 = vld [vmem:[#allocation102_spill] sm:$0xff] }
  0xcb   :  { %5726 = vmatprep.subr.bf16.mxu1 %v7455_v22  ;;  %5918 = vmatprep.subr.bf16.mxu0 %v7463_v34  ;;  %v9635_v45 = vand.u32 4294901760, %v10131_v23  ;;  %v9634_v20 = vand.u32 4294901760, %v10132_v24  ;;  %v2322_v54 = vand.u32 4294901760, %v2321_v1  ;;  %v9643_v9 = vand.u32 4294901760, %v10133_v30 }
  0xcc   :  { %v2334_v35 = vand.u32 4294901760, %v2333_v3  ;;  %v1386_v6 = vsub.f32 %v10130_v57, %v9632_v62  ;;  %1233 = vmatprep.mubr.f32.mxu1 %v9937_v50  ;;  %2186 = vmatprep.mubr.f32.mxu0 %v9937_v50  ;;  %v5927_v22 = vpack.c.bf16 %v2316_v2, %v2304_v60  ;;  %v1375_v34 = vand.u32 4294901760, %v1374_v31  ;;  %v10134_v3 = vld [vmem:[#allocation42_spill] sm:$0xff]  ;;  %v10135_v2 = vld [vmem:[#allocation103_spill] sm:$0xff] }
  0xcd   :  { %v2327_v52 = vsub.f32 %v10131_v23, %v9635_v45  ;;  %v2339_v1 = vsub.f32 %v10132_v24, %v9634_v20  ;;  %1239 = vmatmul.mubr.f32.gmra.mrb[10].mxu1 %v10134_v3  ;;  %2192 = vmatmul.mubr.f32.gmra.mrb[10].mxu0 %v10134_v3  ;;  %v5737_v62 = vpack.c.bf16 %v1381_v21, %v1369_v16  ;;  %v9641_v31 = vand.u32 4294901760, %v10135_v2  ;;  %v10136_v24 = vld [vmem:[#allocation25_spill] sm:$0xff]  ;;  %v10138_v16 = vld [vmem:[#allocation26_spill] sm:$0xff] }
  0xce   :  { %5728 = vmatpush1.bf16.msra.mxu1 %v7469_v7  ;;  %5920 = vmatpush1.bf16.msra.mxu0 %v7495_v36  ;;  %v1387_v19 = vand.u32 4294901760, %v1386_v6  ;;  %v1392_v60 = vsub.f32 %v10133_v30, %v9643_v9  ;;  %v5929_v20 = vpack.c.bf16 %v2334_v35, %v2322_v54  ;;  %v9640_v3 = vand.u32 4294901760, %v10136_v24  ;;  %v10137_v23 = vld [vmem:[#allocation105_spill] sm:$0xff]  ;;  %v10139_v35 = vld [vmem:[#allocation28_spill] sm:$0xff] }
  0xcf   :  { %5730 = vmatprep.subr.bf16.mxu1 %v7503_v55  ;;  %5922 = vmatprep.subr.bf16.mxu0 %v7509_v0  ;;  %v2328_v45 = vand.u32 4294901760, %v2327_v52  ;;  %v9639_v7 = vand.u32 4294901760, %v10137_v23  ;;  %v2340_v36 = vand.u32 4294901760, %v2339_v1  ;;  %v1404_v6 = vsub.f32 %v10135_v2, %v9641_v31 }
  0xd0   :  { %v5739_v57 = vpack.c.bf16 %v1387_v19, %v1375_v34  ;;  %v9642_v21 = vand.u32 4294901760, %v10138_v16  ;;  %1469 = vmatprep.mubr.f32.mxu1 %v9937_v50  ;;  %2422 = vmatprep.mubr.f32.mxu0 %v9937_v50  ;;  %v1393_v55 = vand.u32 4294901760, %v1392_v60  ;;  %v2345_v54 = vsub.f32 %v10136_v24, %v9640_v3 }
  0xd1   :  { %v2357_v0 = vsub.f32 %v10137_v23, %v9639_v7  ;;  %v9654_v19 = vand.u32 4294901760, %v10139_v35  ;;  %v1405_v34 = vand.u32 4294901760, %v1404_v6  ;;  %v9644_v1 = vand.u32 4294901760, %v7276_v49 }
  0xd2   :  { %5732 = vmatpush1.bf16.msra.mxu1 %v7515_v46  ;;  %5924 = vmatpush1.bf16.msra.mxu0 %v7543_v29  ;;  %v1398_v52 = vsub.f32 %v10138_v16, %v9642_v21  ;;  %v9645_v60 = vand.u32 4294901760, %v7278_v27  ;;  %v2346_v7 = vand.u32 4294901760, %v2345_v54  ;;  %v9646_v29 = vand.u32 4294901760, %v7286_v25 }
  0xd3   :  { %5734 = vmatprep.subr.bf16.mxu1 %v7553_v5  ;;  %5926 = vmatprep.subr.bf16.mxu0 %v7559_v4  ;;  %v2358_v3 = vand.u32 4294901760, %v2357_v0  ;;  %v1410_v46 = vsub.f32 %v10139_v35, %v9654_v19  ;;  %v5931_v6 = vpack.c.bf16 %v2340_v36, %v2328_v45  ;;  %v2351_v21 = vsub.f32 %v7276_v49, %v9644_v1  ;;  %v10153_v19 = vld [vmem:[#allocation75_spill] sm:$0xff] }
  0xd4   :  { %v1399_v31 = vand.u32 4294901760, %v1398_v52  ;;  %v2363_v5 = vsub.f32 %v7278_v27, %v9645_v60  ;;  %v5741_v9 = vpack.c.bf16 %v1405_v34, %v1393_v55  ;;  %v1416_v54 = vsub.f32 %v7286_v25, %v9646_v29  ;;  %v10157_v25 = vld [vmem:[#allocation86_spill] sm:$0xff] }
  0xd5   :  { %v1411_v4 = vand.u32 4294901760, %v1410_v46  ;;  %v9653_v0 = vand.u32 4294901760, %v7288_v26  ;;  %v2352_v45 = vand.u32 4294901760, %v2351_v21  ;;  %v9652_v52 = vand.u32 4294901760, %v7294_v61 }
  0xd6   :  { %5736 = vmatpush1.bf16.msra.mxu1 %v7565_v39  ;;  %5928 = vmatpush1.bf16.msra.mxu0 %v5927_v22  ;;  %v2364_v36 = vand.u32 4294901760, %v2363_v5  ;;  %v9647_v1 = vand.u32 4294901760, %v7296_v56  ;;  %v5933_v60 = vpack.c.bf16 %v2358_v3, %v2346_v7  ;;  %v1417_v55 = vand.u32 4294901760, %v1416_v54 }
  0xd7   :  { %5738 = vmatprep.subr.bf16.mxu1 %v5737_v62  ;;  %5930 = vmatprep.subr.bf16.mxu0 %v5929_v20  ;;  %v1428_v34 = vsub.f32 %v7288_v26, %v9653_v0  ;;  %v9648_v46 = vand.u32 4294901760, %v7300_v44  ;;  %v5743_v29 = vpack.c.bf16 %v1411_v4, %v1399_v31  ;;  %v2369_v39 = vsub.f32 %v7294_v61, %v9652_v52  ;;  %v10152_v0 = vld [vmem:[#allocation27_spill] sm:$0xff] }
  0xd8   :  { %v2381_v22 = vsub.f32 %v7296_v56, %v9647_v1  ;;  %v9651_v62 = vand.u32 4294901760, %v7306_v47  ;;  %v9650_v7 = vand.u32 4294901760, %v7310_v12  ;;  %v9649_v21 = vand.u32 4294901760, %v7352_v15 }
  0xd9   :  { %v1429_v20 = vand.u32 4294901760, %v1428_v34  ;;  %v1422_v3 = vsub.f32 %v7300_v44, %v9648_v46  ;;  %v5935_v31 = vpack.c.bf16 %v2364_v36, %v2352_v45  ;;  %v2370_v5 = vand.u32 4294901760, %v2369_v39  ;;  %v10156_v44 = vld [vmem:[#allocation79_spill] sm:$0xff] }
  0xda   :  { %5740 = vmatpush1.bf16.msra.mxu1 %v5739_v57  ;;  %5932 = vmatpush1.bf16.msra.mxu0 %v5931_v6  ;;  %v2382_v4 = vand.u32 4294901760, %v2381_v22  ;;  %v1434_v54 = vsub.f32 %v7306_v47, %v9651_v62  ;;  %v2375_v46 = vsub.f32 %v7310_v12, %v9650_v7  ;;  %v2387_v57 = vsub.f32 %v7352_v15, %v9649_v21  ;;  %v10149_v21 = vld [vmem:[#allocation69_spill] sm:$0xff]  ;;  %v10150_v62 = vld [vmem:[#allocation71_spill] sm:$0xff]  ;;  %v10154_v15 = vld [vmem:[#allocation76_spill] sm:$0xff] }
  0xdb   :  { %5742 = vmatprep.subr.bf16.mxu1 %v5741_v9  ;;  %5934 = vmatprep.subr.bf16.mxu0 %v5933_v60  ;;  %v5745_v34 = vpack.c.bf16 %v1429_v20, %v1417_v55  ;;  %v1423_v1 = vand.u32 4294901760, %v1422_v3  ;;  %v5749_v60 = vpack.c.bf16 %v7043_v37, %v10072_v48  ;;  %v10140_v55 = vld [vmem:[#allocation46_spill] sm:$0xff]  ;;  %v5751_v3 = vpack.c.bf16 %v10079_v58, %v10078_v17 }
  0xdc   :  { %v5937_v6 = vpack.c.bf16 %v2382_v4, %v2370_v5  ;;  %v1435_v45 = vand.u32 4294901760, %v1434_v54  ;;  %v2376_v36 = vand.u32 4294901760, %v2375_v46  ;;  %v2388_v39 = vand.u32 4294901760, %v2387_v57  ;;  %v10141_v5 = vld [vmem:[#allocation52_spill] sm:$0xff]  ;;  %v10142_v46 = vld [vmem:[#allocation53_spill] sm:$0xff]  ;;  %v10155_v47 = vld [vmem:[#allocation78_spill] sm:$0xff] }
  0xdd   :  { %v5941_v20 = vpack.c.bf16 %v10077_v53, %v10140_v55  ;;  %v5943_v4 = vpack.c.bf16 %v10142_v46, %v10141_v5  ;;  %v10143_v54 = vld [vmem:[#allocation61_spill] sm:$0xff]  ;;  %v5759_v7 = vpack.c.bf16 %v10149_v21, %v10099_v11  ;;  %v5951_v52 = vpack.c.bf16 %v10103_v33, %v10150_v62 }
  0xde   :  { %5744 = vmatpush1.bf16.msra.mxu1 %v5743_v29  ;;  %5936 = vmatpush1.bf16.msra.mxu0 %v5935_v31  ;;  %v5747_v22 = vpack.c.bf16 %v1435_v45, %v1423_v1  ;;  %v5939_v9 = vpack.c.bf16 %v2388_v39, %v2376_v36  ;;  %v5753_v1 = vpack.c.bf16 %v10087_v10, %v7070_v38  ;;  %v10146_v45 = vld [vmem:[#allocation65_spill] sm:$0xff]  ;;  %v10147_v39 = vld [vmem:[#allocation66_spill] sm:$0xff]  ;;  %v10158_v49 = vand.u32 4294901760, %v10072_v48 }
  0xdf   :  { %5746 = vmatprep.subr.bf16.mxu1 %v5745_v34  ;;  %5938 = vmatprep.subr.bf16.mxu0 %v5937_v6  ;;  %v5945_v29 = vpack.c.bf16 %v10089_v18, %v10088_v43  ;;  %v5755_v31 = vpack.c.bf16 %v10093_v8, %v10091_v42  ;;  %v10144_v34 = vld [vmem:[#allocation62_spill] sm:$0xff]  ;;  %v10145_v6 = vld [vmem:[#allocation64_spill] sm:$0xff]  ;;  %v5953_v12 = vpack.c.bf16 %v10154_v15, %v10153_v19  ;;  %v10160_v16 = vand.u32 4294901760, %v10140_v55 }
  0xe0   :  { %v5947_v57 = vpack.c.bf16 %v10144_v34, %v10143_v54  ;;  %v5757_v36 = vpack.c.bf16 %v10146_v45, %v10145_v6  ;;  %v5763_v56 = vpack.c.bf16 %v10156_v44, %v10155_v47  ;;  %v5955_v61 = vpack.c.bf16 %v10111_v41, %v10110_v59 }
  0xe1   :  { %v5765_v26 = vpack.c.bf16 %v10115_v51, %v10112_v63  ;;  %v5957_v27 = vpack.c.bf16 %v10157_v25, %v10116_v40  ;;  %v10161_v23 = vand.u32 4294901760, %v10077_v53  ;;  %v10163_v24 = vand.u32 4294901760, %v10079_v58 }
  0xe2   :  { %5748 = vmatpush1.bf16.msra.mxu1 %v5747_v22  ;;  %5940 = vmatpush1.bf16.msra.mxu0 %v5939_v9  ;;  %v10148_v22 = vld [vmem:[#allocation67_spill] sm:$0xff]  ;;  %v10164_v48 = vand.u32 4294901760, %v10141_v5  ;;  %v10166_v53 = vand.u32 4294901760, %v7070_v38  ;;  %v10169_v58 = vand.u32 4294901760, %v10089_v18  ;;  %v10171_v55 = vand.u32 4294901760, %v10093_v8 }
  0xe3   :  { %5750 = vmatprep.subr.bf16.mxu1 %v5749_v60  ;;  %5942 = vmatprep.subr.bf16.mxu0 %v5941_v20  ;;  %v5949_v9 = vpack.c.bf16 %v10148_v22, %v10147_v39  ;;  %v10151_v60 = vld [vmem:[#allocation74_spill] sm:$0xff]  ;;  %v10174_v38 = vand.u32 4294901760, %v10144_v34  ;;  %v10175_v18 = vand.u32 4294901760, %v10145_v6  ;;  %v10178_v8 = vand.u32 4294901760, %v10148_v22 }
  0xe4   :  { %v5761_v20 = vpack.c.bf16 %v10151_v60, %v10104_v13  ;;  %v10180_v34 = vand.u32 4294901760, %v10149_v21  ;;  %v10181_v6 = vand.u32 4294901760, %v10150_v62  ;;  %v10184_v22 = vand.u32 4294901760, %v10151_v60 }
  0xe5   :  { %1471 = vmatmul.mubr.f32.vlgmr.msra.gmra.mrb[6].mxu1 %v10152_v0  ;;  %2424 = vmatmul.mubr.f32.vlgmr.msra.gmra.mrb[6].mxu0 %v10152_v0  ;;  %v10159_v0 = vand.u32 4294901760, %v7043_v37  ;;  %v10165_v37 = vand.u32 4294901760, %v10142_v46  ;;  %v10172_v46 = vld [vmem:[#allocation35_spill] sm:$0xff]  ;;  %v10186_v21 = vand.u32 4294901760, %v10154_v15  ;;  %v10187_v62 = vand.u32 4294901760, %v10155_v47 }
  0xe6   :  { %5752 = vmatpush1.bf16.msra.mxu1 %v5751_v3  ;;  %5944 = vmatpush1.bf16.msra.mxu0 %v5943_v4  ;;  %v7725_v3 = vpack.c.bf16 %v10161_v23, %v10160_v16  ;;  %v10162_v4 = vand.u32 4294901760, %v10078_v17  ;;  %v10167_v23 = vand.u32 4294901760, %v10087_v10  ;;  %v10168_v17 = vand.u32 4294901760, %v10088_v43 }
  0xe7   :  { %v7719_v35 = vpack.c.bf16 %v10159_v0, %v10158_v49  ;;  %5754 = vmatprep.subr.bf16.mxu1 %v5753_v1  ;;  %5946 = vmatprep.subr.bf16.mxu0 %v5945_v29  ;;  %v7737_v49 = vpack.c.bf16 %v10165_v37, %v10164_v48  ;;  %v10170_v0 = vand.u32 4294901760, %v10091_v42  ;;  %v10173_v10 = vand.u32 4294901760, %v10143_v54 }
  0xe8   :  { %v7731_v2 = vpack.c.bf16 %v10163_v24, %v10162_v4  ;;  %1476 = vmatprep.mubr.f32.mxu1 %v9937_v50  ;;  %2429 = vmatprep.mubr.f32.mxu0 %v9937_v50  ;;  %v7745_v16 = vpack.c.bf16 %v10167_v23, %v10166_v53  ;;  %v7751_v24 = vpack.c.bf16 %v10169_v58, %v10168_v17  ;;  %v10176_v43 = vand.u32 4294901760, %v10146_v45  ;;  %v10197_v17 = vld [vmem:[#allocation89_spill] sm:$0xff] }
  0xe9   :  { %v7757_v5 = vpack.c.bf16 %v10171_v55, %v10170_v0  ;;  %1478 = vmatmul.mubr.f32.gmra.mrb[8].mxu1 %v10172_v46  ;;  %2431 = vmatmul.mubr.f32.gmra.mrb[8].mxu0 %v10172_v46  ;;  %v7765_v1 = vpack.c.bf16 %v10174_v38, %v10173_v10  ;;  %v10177_v42 = vand.u32 4294901760, %v10147_v39  ;;  %v10179_v54 = vand.u32 4294901760, %v10099_v11  ;;  %v10199_v55 = vld [vmem:[#allocation38_spill] sm:$0xff] }
  0xea   :  { %v7771_v29 = vpack.c.bf16 %v10176_v43, %v10175_v18  ;;  %5756 = vmatpush1.bf16.msra.mxu1 %v5755_v31  ;;  %5948 = vmatpush1.bf16.msra.mxu0 %v5947_v57  ;;  %v10182_v45 = vand.u32 4294901760, %v10103_v33  ;;  %v10183_v39 = vand.u32 4294901760, %v10104_v13  ;;  %v10185_v11 = vand.u32 4294901760, %v10153_v19 }
  0xeb   :  { %v7777_v4 = vpack.c.bf16 %v10178_v8, %v10177_v42  ;;  %v7783_v48 = vpack.c.bf16 %v10180_v34, %v10179_v54  ;;  %5758 = vmatprep.subr.bf16.mxu1 %v5757_v36  ;;  %5950 = vmatprep.subr.bf16.mxu0 %v5949_v9  ;;  %v10188_v33 = vand.u32 4294901760, %v10156_v44  ;;  %v10189_v13 = vand.u32 4294901760, %v10110_v59  ;;  %v10195_v59 = vld [vmem:[#allocation88_spill] sm:$0xff]  ;;  %v10208_v42 = vld [vmem:[#allocation95_spill] sm:$0xff] }
  0xec   :  { %v7789_v37 = vpack.c.bf16 %v10182_v45, %v10181_v6  ;;  %v7795_v53 = vpack.c.bf16 %v10184_v22, %v10183_v39  ;;  %v7801_v31 = vpack.c.bf16 %v10186_v21, %v10185_v11  ;;  %v10190_v60 = vand.u32 4294901760, %v10111_v41  ;;  %1483 = vmatprep.mubr.f32.mxu1 %v9937_v50  ;;  %2436 = vmatprep.mubr.f32.mxu0 %v9937_v50  ;;  %v10210_v54 = vld [vmem:[#allocation96_spill] sm:$0xff]  ;;  %v10214_v39 = vld [vmem:[#allocation23_spill] sm:$0xff] }
  0xed   :  { %v7807_v57 = vpack.c.bf16 %v10188_v33, %v10187_v62  ;;  %v10191_v15 = vand.u32 4294901760, %v10112_v63  ;;  %v10192_v19 = vand.u32 4294901760, %v10115_v51  ;;  %v10193_v44 = vand.u32 4294901760, %v10116_v40  ;;  %1485 = vmatmul.mubr.f32.gmra.mrb[10].mxu1 %v10199_v55  ;;  %2438 = vmatmul.mubr.f32.gmra.mrb[10].mxu0 %v10199_v55  ;;  %v10200_v63 = vld [vmem:[#allocation22_spill] sm:$0xff]  ;;  %v10205_v40 = vld [vmem:[#allocation93_spill] sm:$0xff]  ;;  %v10217_v21 = vld [vmem:[#allocation99_spill] sm:$0xff] }
  0xee   :  { %v7813_v23 = vpack.c.bf16 %v10190_v60, %v10189_v13  ;;  %v10194_v47 = vand.u32 4294901760, %v10157_v25  ;;  %v10196_v41 = vand.u32 4294901760, %v10195_v59  ;;  %v10198_v58 = vand.u32 4294901760, %v10197_v17  ;;  %5760 = vmatpush1.bf16.msra.mxu1 %v5759_v7  ;;  %5952 = vmatpush1.bf16.msra.mxu0 %v5951_v52  ;;  %v10219_v33 = vld [vmem:[#allocation100_spill] sm:$0xff]  ;;  %v10226_v52 = vld [vmem:[#allocation25_spill] sm:$0xff]  ;;  %v10245_v55 = vld [vmem:[#allocation111_spill] sm:$0xff] }
  0xef   :  { %v7821_v36 = vpack.c.bf16 %v10192_v19, %v10191_v15  ;;  %v10201_v51 = vand.u32 4294901760, %v10200_v63  ;;  %v10202_v10 = vand.u32 4294901760, %v10120_v14  ;;  %v10204_v25 = vand.u32 4294901760, %v10122_v32  ;;  %v10223_v19 = vld [vmem:[#allocation103_spill] sm:$0xff]  ;;  %5762 = vmatprep.subr.bf16.mxu1 %v5761_v20  ;;  %5954 = vmatprep.subr.bf16.mxu0 %v5953_v12 }
  0xf0   :  { %v7827_v9 = vpack.c.bf16 %v10194_v47, %v10193_v44  ;;  %v7833_v0 = vpack.c.bf16 %v10198_v58, %v10196_v41  ;;  %v10206_v18 = vand.u32 4294901760, %v10205_v40  ;;  %v10209_v8 = vand.u32 4294901760, %v10208_v42  ;;  %v10228_v41 = vld [vmem:[#allocation105_spill] sm:$0xff]  ;;  %1619 = vmatprep.mubr.f32.mxu1 %v9937_v50  ;;  %2572 = vmatprep.mubr.f32.mxu0 %v9937_v50  ;;  %v10241_v12 = vld [vmem:[#allocation31_spill] sm:$0xff] }
  0xf1   :  { %v7841_v38 = vpack.c.bf16 %v10202_v10, %v10201_v51  ;;  %v10211_v34 = vand.u32 4294901760, %v10210_v54  ;;  %v10213_v45 = vand.u32 4294901760, %v10128_v28  ;;  %v10215_v22 = vand.u32 4294901760, %v10214_v39  ;;  %v10231_v10 = vld [vmem:[#allocation26_spill] sm:$0xff] }
  0xf2   :  { %v7847_v43 = vpack.c.bf16 %v10206_v18, %v10204_v25  ;;  %v10218_v62 = vand.u32 4294901760, %v10217_v21  ;;  %v10220_v13 = vand.u32 4294901760, %v10219_v33  ;;  %v10222_v15 = vand.u32 4294901760, %v10133_v30  ;;  %v10233_v18 = vld [vmem:[#allocation28_spill] sm:$0xff]  ;;  %5764 = vmatpush1.bf16.msra.mxu1 %v5763_v56  ;;  %5956 = vmatpush1.bf16.msra.mxu0 %v5955_v61 }
  0xf3   :  { %10203 = vst [vmem:[#allocation49_spill] sm:$0xff] %v7841_v38  ;;  %v7853_v6 = vpack.c.bf16 %v10211_v34, %v10209_v8  ;;  %v7859_v11 = vpack.c.bf16 %v10215_v22, %v10213_v45  ;;  %v10224_v44 = vand.u32 4294901760, %v10223_v19  ;;  %v10227_v7 = vand.u32 4294901760, %v10226_v52  ;;  %v10236_v45 = vld [vmem:[#allocation108_spill] sm:$0xff]  ;;  %5766 = vmatprep.subr.bf16.mxu1 %v5765_v26  ;;  %5958 = vmatprep.subr.bf16.mxu0 %v5957_v27 }
  0xf4   :  { %10207 = vst [vmem:[#allocation50_spill] sm:$0xff] %v7847_v43  ;;  %v7865_v60 = vpack.c.bf16 %v10220_v13, %v10218_v62  ;;  %v10229_v58 = vand.u32 4294901760, %v10228_v41  ;;  %v10232_v25 = vand.u32 4294901760, %v10231_v10  ;;  %v10234_v8 = vand.u32 4294901760, %v10233_v18  ;;  %v10238_v62 = vld [vmem:[#allocation109_spill] sm:$0xff] }
  0xf5   :  { %10212 = vst [vmem:[#allocation55_spill] sm:$0xff] %v7853_v6  ;;  %10216 = vst [vmem:[#allocation57_spill] sm:$0xff] %v7859_v11  ;;  %v7871_v47 = vpack.c.bf16 %v10224_v44, %v10222_v15  ;;  %v10237_v22 = vand.u32 4294901760, %v10236_v45  ;;  %v10239_v13 = vand.u32 4294901760, %v10238_v62  ;;  %v10242_v20 = vand.u32 4294901760, %v10241_v12  ;;  %v10243_v44 = vld [vmem:[#allocation30_spill] sm:$0xff] }
  0xf6   :  { %10221 = vst [vmem:[#allocation58_spill] sm:$0xff] %v7865_v60  ;;  %v7877_v51 = vpack.c.bf16 %v10229_v58, %v10227_v7  ;;  %v7883_v34 = vpack.c.bf16 %v10234_v8, %v10232_v25  ;;  %v10244_v7 = vand.u32 4294901760, %v10243_v44  ;;  %v10246_v46 = vand.u32 4294901760, %v10245_v55  ;;  %v10247_v25 = vld [vmem:[#allocation112_spill] sm:$0xff]  ;;  %v10255_v6 = vld [vmem:[#allocation47_spill] sm:$0xff] }
  0xf7   :  { %10225 = vst [vmem:[#allocation59_spill] sm:$0xff] %v7871_v47  ;;  %v7889_v15 = vpack.c.bf16 %v10239_v13, %v10237_v22  ;;  %v10248_v8 = vand.u32 4294901760, %v10247_v25  ;;  %v10251_v22 = vld [vmem:[#allocation44_spill] sm:$0xff]  ;;  %v10256_v43 = vand.u32 4294901760, %v10255_v6  ;;  %v5771_v56 = vpack.c.bf16 %v10214_v39, %v10128_v28 }
  0xf8   :  { %10230 = vst [vmem:[#allocation60_spill] sm:$0xff] %v7877_v51  ;;  %10235 = vst [vmem:[#allocation68_spill] sm:$0xff] %v7883_v34  ;;  %v7897_v58 = vpack.c.bf16 %v10244_v7, %v10242_v20  ;;  %v10249_v51 = vld [vmem:[#allocation114_spill] sm:$0xff]  ;;  %v10252_v13 = vand.u32 4294901760, %v10251_v22  ;;  %v10253_v60 = vld [vmem:[#allocation116_spill] sm:$0xff]  ;;  %v5767_v20 = vpack.c.bf16 %v10197_v17, %v10195_v59  ;;  %v5961_v7 = vpack.c.bf16 %v10210_v54, %v10208_v42 }
  0xf9   :  { %10240 = vst [vmem:[#allocation72_spill] sm:$0xff] %v7889_v15  ;;  %v7903_v34 = vpack.c.bf16 %v10248_v8, %v10246_v46  ;;  %v10250_v47 = vand.u32 4294901760, %v10249_v51  ;;  %v10254_v11 = vand.u32 4294901760, %v10253_v60  ;;  %v5959_v46 = vpack.c.bf16 %v10120_v14, %v10200_v63  ;;  %v10257_v63 = vld [vmem:[#allocation43_spill] sm:$0xff]  ;;  %v10262_v54 = vld [vmem:[#allocation54_spill] sm:$0xff]  ;;  %v10263_v39 = vld [vmem:[#allocation56_spill] sm:$0xff] }
  0xfa   :  { %5768 = vmatpush1.bf16.msra.mxu1 %v5767_v20  ;;  %v5963_v61 = vpack.c.bf16 %v10219_v33, %v10217_v21  ;;  %v5773_v26 = vpack.c.bf16 %v10223_v19, %v10133_v30  ;;  %v5965_v27 = vpack.c.bf16 %v10228_v41, %v10226_v52  ;;  %v5775_v14 = vpack.c.bf16 %v10233_v18, %v10231_v10  ;;  %v10261_v42 = vld [vmem:[#allocation51_spill] sm:$0xff]  ;;  %v10266_v21 = vld [vmem:[#allocation14_spill] sm:$0xff]  ;;  %v10270_v52 = vld [vmem:[#allocation16_spill] sm:$0xff] }
  0xfb   :  { %v7909_v15 = vpack.c.bf16 %v10252_v13, %v10250_v47  ;;  %v7915_v38 = vpack.c.bf16 %v10256_v43, %v10254_v11  ;;  %v5769_v47 = vpack.c.bf16 %v10205_v40, %v10122_v32  ;;  %5960 = vmatpush1.bf16.msra.mxu0 %v5959_v46  ;;  %v5967_v32 = vpack.c.bf16 %v10238_v62, %v10236_v45  ;;  %v10258_v40 = vld [vmem:[#allocation45_spill] sm:$0xff]  ;;  %v10259_v43 = vld [vmem:[#allocation32_spill] sm:$0xff]  ;;  %v10267_v33 = vld [vmem:[#allocation63_spill] sm:$0xff] }
  0xfc   :  { %5962 = vmatprep.subr.bf16.mxu0 %v5961_v7  ;;  %v5777_v28 = vpack.c.bf16 %v10243_v44, %v10241_v12  ;;  %v5969_v59 = vpack.c.bf16 %v10247_v25, %v10245_v55  ;;  %v5779_v30 = vpack.c.bf16 %v10251_v22, %v10249_v51  ;;  %v5971_v17 = vpack.c.bf16 %v10255_v6, %v10253_v60  ;;  %v10260_v55 = vld [vmem:[#allocation48_spill] sm:$0xff]  ;;  %v10265_v11 = vld [vmem:[#allocation13_spill] sm:$0xff]  ;;  %v10268_v60 = vld [vmem:[#allocation15_spill] sm:$0xff] }
  0xfd   :  { %5770 = vmatprep.subr.bf16.mxu1 %v5769_v47  ;;  %v10264_v6 = vld [vmem:[#allocation36_spill] sm:$0xff]  ;;  %v10269_v19 = vld [vmem:[#allocation39_spill] sm:$0xff]  ;;  %v10271_v41 = vld [vmem:[#allocation70_spill] sm:$0xff] }
  0xfe   :  { %5772 = vmatpush1.bf16.msra.mxu1 %v5771_v56  ;;  %v10272_v51 = vld [vmem:[#allocation17_spill] sm:$0xff]  ;;  %v10273_v10 = vld [vmem:[#allocation18_spill] sm:$0xff]  ;;  %v10275_v45 = vld [vmem:[#allocation80_spill] sm:$0xff] }
  0xff   :  { %5964 = vmatpush1.bf16.msra.mxu0 %v5963_v61  ;;  %5774 = vmatprep.subr.bf16.mxu1 %v5773_v26  ;;  %v10274_v18 = vld [vmem:[#allocation77_spill] sm:$0xff]  ;;  %v10276_v62 = vld [vmem:[#allocation20_spill] sm:$0xff]  ;;  %v7975_v44 = vld [vmem:[#allocation8 + $0x80] sm:$0xff] }
 0x100   :  { %5966 = vmatprep.subr.bf16.mxu0 %v5965_v27  ;;  %v10277_v12 = vld [vmem:[#allocation84_spill] sm:$0xff]  ;;  %10278 = vst [vmem:[#allocation73_spill] sm:$0xff] %v7975_v44  ;;  %v7977_v25 = vld [vmem:[#allocation8 + $0x88] sm:$0xff]  ;;  %v7979_v8 = vld [vmem:[#allocation8] sm:$0xff]  ;;  %v9683_v22 = vand.u32 4294901760, %v7975_v44 }
 0x101   :  { %10279 = vst [vmem:[#allocation81_spill] sm:$0xff] %v7977_v25  ;;  %10280 = vst [vmem:[#allocation19_spill] sm:$0xff] %v7979_v8  ;;  %v9684_v13 = vand.u32 4294901760, %v7977_v25  ;;  %v7983_v20 = vld [vmem:[#allocation8 + $0x8] sm:$0xff]  ;;  %v7985_v46 = vld [vmem:[#allocation8 + $0x90] sm:$0xff]  ;;  %v9689_v7 = vand.u32 4294901760, %v7979_v8 }
 0x102   :  { %5776 = vmatpush1.bf16.msra.mxu1 %v5775_v14  ;;  %10281 = vst [vmem:[#allocation82_spill] sm:$0xff] %v7983_v20  ;;  %10282 = vst [vmem:[#allocation83_spill] sm:$0xff] %v7985_v46  ;;  %v7987_v47 = vld [vmem:[#allocation8 + $0x98] sm:$0xff]  ;;  %v9691_v56 = vand.u32 4294901760, %v7983_v20  ;;  %v7992_v26 = vld [vmem:[#allocation8 + $0x10] sm:$0xff] }
 0x103   :  { %5968 = vmatpush1.bf16.msra.mxu0 %v5967_v32  ;;  %5778 = vmatprep.subr.bf16.mxu1 %v5777_v28  ;;  %10283 = vst [vmem:[#allocation85_spill] sm:$0xff] %v7987_v47  ;;  %10284 = vst [vmem:[#allocation90_spill] sm:$0xff] %v7992_v26  ;;  %v7994_v27 = vld [vmem:[#allocation8 + $0x18] sm:$0xff]  ;;  %v10286_v14 = vld [vmem:[#allocation87_spill] sm:$0xff]  ;;  %v8001_v28 = vsub.f32 %v7975_v44, %v9683_v22  ;;  %v8019_v22 = vsub.f32 %v7979_v8, %v9689_v7  ;;  %v10301_v7 = vand.u32 4294901760, %v7987_v47 }
 0x104   :  { %5970 = vmatprep.subr.bf16.mxu0 %v5969_v59  ;;  %10285 = vst [vmem:[#allocation34_spill] sm:$0xff] %v7994_v27  ;;  %v10287_v32 = vld [vmem:[#allocation21_spill] sm:$0xff]  ;;  %v8006_v59 = vsub.f32 %v7977_v25, %v9684_v13  ;;  %v10293_v61 = vld [vmem:[#allocation94_spill] sm:$0xff]  ;;  %v8024_v13 = vsub.f32 %v7983_v20, %v9691_v56  ;;  %v10299_v25 = vand.u32 4294901760, %v7985_v46  ;;  %v10303_v56 = vand.u32 4294901760, %v7992_v26  ;;  %v8050_v20 = vld [vmem:[#allocation8 + $0x30] sm:$0xff] }
 0x105   :  { %10288 = vst [vmem:[#allocation92_spill] sm:$0xff] %v8001_v28  ;;  %10294 = vst [vmem:[#allocation42_spill] sm:$0xff] %v8019_v22  ;;  %v8031_v28 = vld [vmem:[#allocation8 + $0xb0] sm:$0xff]  ;;  %v8041_v22 = vsub.f32 %v7987_v47, %v10301_v7  ;;  %v10307_v8 = vand.u32 4294901760, %v7994_v27  ;;  %v10309_v7 = vld [vmem:[#allocation97_spill] sm:$0xff] }
 0x106   :  { %5780 = vmatpush1.bf16.msra.mxu1 %v5779_v30  ;;  %10289 = vst [vmem:[#allocation98_spill] sm:$0xff] %v8006_v59  ;;  %10295 = vst [vmem:[#allocation46_spill] sm:$0xff] %v8024_v13  ;;  %v8027_v30 = vld [vmem:[#allocation8 + $0x20] sm:$0xff]  ;;  %v8029_v59 = vld [vmem:[#allocation8 + $0x28] sm:$0xff]  ;;  %v8036_v44 = vsub.f32 %v7985_v46, %v10299_v25 }
 0x107   :  { %5972 = vmatpush1.bf16.msra.mxu0 %v5971_v17  ;;  %5782 = vmatprep.subr.bf16.mxu1 %v10257_v63  ;;  %10296 = vst [vmem:[#allocation52_spill] sm:$0xff] %v8027_v30  ;;  %10297 = vst [vmem:[#allocation53_spill] sm:$0xff] %v8029_v59  ;;  %v8046_v17 = vsub.f32 %v7992_v26, %v10303_v56  ;;  %v8048_v13 = vld [vmem:[#allocation8 + $0xb8] sm:$0xff]  ;;  %v8080_v56 = vld [vmem:[#allocation8 + $0xc0] sm:$0xff]  ;;  %v10321_v26 = vand.u32 4294901760, %v8031_v28 }
 0x108   :  { %5974 = vmatprep.subr.bf16.mxu0 %v10258_v40  ;;  %10298 = vst [vmem:[#allocation61_spill] sm:$0xff] %v8031_v28  ;;  %10300 = vst [vmem:[#allocation62_spill] sm:$0xff] %v8036_v44  ;;  %v8064_v47 = vld [vmem:[#allocation8 + $0x38] sm:$0xff] }
 0x109   :  { %1622 = vmatmul.mubr.f32.vlgmr.msra.gmra.mrb[6].mxu1 %v10259_v43  ;;  %10302 = vst [vmem:[#allocation64_spill] sm:$0xff] %v8041_v22  ;;  %10304 = vst [vmem:[#allocation65_spill] sm:$0xff] %v8046_v17  ;;  %v10310_v22 = vld [vmem:[#allocation24_spill] sm:$0xff]  ;;  %v10312_v46 = vld [vmem:[#allocation101_spill] sm:$0xff]  ;;  %v8101_v17 = vsub.f32 %v8031_v28, %v10321_v26 }
 0x10a   :  { %2575 = vmatmul.mubr.f32.vlgmr.msra.gmra.mrb[6].mxu0 %v10259_v43  ;;  %5784 = vmatpush1.bf16.msra.mxu1 %v10260_v55  ;;  %v8010_v43 = vld [vmem:[#allocation8 + $0xa0] sm:$0xff]  ;;  %10305 = vst [vmem:[#allocation66_spill] sm:$0xff] %v8048_v13  ;;  %10306 = vst [vmem:[#allocation67_spill] sm:$0xff] %v8050_v20  ;;  %v10330_v28 = vld [vmem:[#allocation29_spill] sm:$0xff] }
 0x10b   :  { %5976 = vmatpush1.bf16.msra.mxu0 %v10261_v42  ;;  %5786 = vmatprep.subr.bf16.mxu1 %v10262_v54  ;;  %10290 = vst [vmem:[#allocation40_spill] sm:$0xff] %v8010_v43  ;;  %v9703_v25 = vand.u32 4294901760, %v8010_v43  ;;  %10311 = vst [vmem:[#allocation71_spill] sm:$0xff] %v8064_v47 }
 0x10c   :  { %5978 = vmatprep.subr.bf16.mxu0 %v10263_v39  ;;  %1627 = vmatprep.mubr.f32.mxu1 %v9937_v50  ;;  %10322 = vst [vmem:[#allocation79_spill] sm:$0xff] %v8101_v17  ;;  %v10329_v17 = vld [vmem:[#allocation110_spill] sm:$0xff] }
 0x10d   :  { %2580 = vmatprep.mubr.f32.mxu0 %v9937_v50  ;;  %1630 = vmatmul.mubr.f32.gmra.mrb[8].mxu1 %v10264_v6  ;;  %v8071_v44 = vsub.f32 %v8010_v43, %v9703_v25  ;;  %v10319_v25 = vand.u32 4294901760, %v8029_v59 }
 0x10e   :  { %2583 = vmatmul.mubr.f32.gmra.mrb[8].mxu0 %v10264_v6  ;;  %5788 = vmatpush1.bf16.msra.mxu1 %v10265_v11  ;;  %v8012_v6 = vld [vmem:[#allocation8 + $0xa8] sm:$0xff] }
 0x10f   :  { %5980 = vmatpush1.bf16.msra.mxu0 %v10266_v21  ;;  %5790 = vmatprep.subr.bf16.mxu1 %v10267_v33  ;;  %10291 = vst [vmem:[#allocation102_spill] sm:$0xff] %v8012_v6  ;;  %10314 = vst [vmem:[#allocation74_spill] sm:$0xff] %v8071_v44  ;;  %v8092_v44 = vsub.f32 %v8029_v59, %v10319_v25  ;;  %v10328_v59 = vld [vmem:[#allocation107_spill] sm:$0xff] }
 0x110   :  { %5982 = vmatprep.subr.bf16.mxu0 %v10268_v60  ;;  %1635 = vmatprep.mubr.f32.mxu1 %v9937_v50 }
 0x111   :  { %2588 = vmatprep.mubr.f32.mxu0 %v9937_v50  ;;  %1638 = vmatmul.mubr.f32.gmra.mrb[10].mxu1 %v10269_v19  ;;  %10320 = vst [vmem:[#allocation78_spill] sm:$0xff] %v8092_v44  ;;  %v10327_v44 = vld [vmem:[#allocation106_spill] sm:$0xff] }
 0x112   :  { %2591 = vmatmul.mubr.f32.gmra.mrb[10].mxu0 %v10269_v19  ;;  %5792 = vmatpush1.bf16.msra.mxu1 %v10270_v52  ;;  %v10292_v19 = vld [vmem:[#allocation91_spill] sm:$0xff] }
 0x113   :  { %5984 = vmatpush1.bf16.msra.mxu0 %v10271_v41  ;;  %5794 = vmatprep.subr.bf16.mxu1 %v10272_v51 }
 0x114   :  { %5986 = vmatprep.subr.bf16.mxu0 %v10273_v10  ;;  %1740 = vmatprep.mubr.f32.mxu1 %v9937_v50 }
 0x115   :  { %2693 = vmatprep.mubr.f32.mxu0 %v9937_v50 }
 0x116   :  { %5796 = vmatpush1.bf16.msra.mxu1 %v10274_v18 }
 0x117   :  { %5988 = vmatpush1.bf16.msra.mxu0 %v10275_v45  ;;  %5798 = vmatprep.subr.bf16.mxu1 %v10276_v62 }
 0x118   :  { %5990 = vmatprep.subr.bf16.mxu0 %v10277_v12 }
 0x11a   :  { %5800 = vmatpush1.bf16.msra.mxu1 %v10286_v14 }
 0x11b   :  { %5992 = vmatpush1.bf16.msra.mxu0 %v10287_v32  ;;  %5802 = vmatprep.subr.bf16.mxu1 %v10292_v19 }
 0x11c   :  { %5994 = vmatprep.subr.bf16.mxu0 %v10293_v61  ;;  %v8055_v61 = vsub.f32 %v7994_v27, %v10307_v8  ;;  %v10313_v8 = vld [vmem:[#allocation104_spill] sm:$0xff] }
 0x11e   :  { %10308 = vst [vmem:[#allocation69_spill] sm:$0xff] %v8055_v61  ;;  %5804 = vmatpush1.bf16.msra.mxu1 %v10309_v7  ;;  %v10315_v61 = vand.u32 4294901760, %v8012_v6 }
 0x11f   :  { %5996 = vmatpush1.bf16.msra.mxu0 %v10310_v22  ;;  %5806 = vmatprep.subr.bf16.mxu1 %v10312_v46  ;;  %v8082_v22 = vld [vmem:[#allocation8 + $0xc8] sm:$0xff] }
 0x120   :  { %5998 = vmatprep.subr.bf16.mxu0 %v10313_v8  ;;  %v8076_v27 = vsub.f32 %v8012_v6, %v10315_v61  ;;  %v10317_v8 = vand.u32 4294901760, %v8027_v30  ;;  %v8094_v61 = vld [vmem:[#allocation8 + $0x40] sm:$0xff]  ;;  %v10323_v6 = vand.u32 4294901760, %v8048_v13  ;;  %v9721_v26 = vand.u32 4294901760, %v8082_v22 }
 0x122   :  { %10316 = vst [vmem:[#allocation75_spill] sm:$0xff] %v8076_v27  ;;  %v8087_v46 = vsub.f32 %v8027_v30, %v10317_v8  ;;  %v8096_v27 = vld [vmem:[#allocation8 + $0x48] sm:$0xff]  ;;  %v8106_v43 = vsub.f32 %v8048_v13, %v10323_v6  ;;  %v9718_v8 = vand.u32 4294901760, %v8064_v47  ;;  %5808 = vmatpush1.bf16.msra.mxu1 %v10327_v44  ;;  %v3217_v30 = vand.u32 4294901760, %v8080_v56 }
 0x123   :  { %6000 = vmatpush1.bf16.msra.mxu0 %v10328_v59  ;;  %5810 = vmatprep.subr.bf16.mxu1 %v10329_v17 }
 0x124   :  { %10318 = vst [vmem:[#allocation76_spill] sm:$0xff] %v8087_v46  ;;  %10324 = vst [vmem:[#allocation86_spill] sm:$0xff] %v8106_v43  ;;  %v10325_v46 = vand.u32 4294901760, %v8050_v20  ;;  %6002 = vmatprep.subr.bf16.mxu0 %v10330_v28  ;;  %v8123_v6 = vsub.f32 %v8064_v47, %v9718_v8  ;;  %v8130_v43 = vsub.f32 %v8080_v56, %v3217_v30  ;;  %v10337_v47 = vld [vmem:[#allocation115_spill] sm:$0xff] }
 0x126   :  { %v8112_v25 = vsub.f32 %v8050_v20, %v10325_v46  ;;  %10331 = vst [vmem:[#allocation89_spill] sm:$0xff] %v8123_v6  ;;  %v3169_v46 = vand.u32 4294901760, %v8094_v61  ;;  %10332 = vst [vmem:[#allocation22_spill] sm:$0xff] %v8130_v43  ;;  %v8135_v20 = vsub.f32 %v8082_v22, %v9721_v26  ;;  %v10336_v6 = vld [vmem:[#allocation113_spill] sm:$0xff] }
 0x127   :  { %5812 = vmatpush1.bf16.msra.mxu1 %v10336_v6  ;;  %6004 = vmatpush1.bf16.msra.mxu0 %v10337_v47  ;;  %v10338_v26 = vld [vmem:[#allocation33_spill] sm:$0xff] }
 0x128   :  { %10326 = vst [vmem:[#allocation88_spill] sm:$0xff] %v8112_v25  ;;  %v9722_v25 = vand.u32 4294901760, %v8096_v27  ;;  %10333 = vst [vmem:[#allocation93_spill] sm:$0xff] %v8135_v20  ;;  %v8140_v13 = vsub.f32 %v8094_v61, %v3169_v46  ;;  %5814 = vmatprep.subr.bf16.mxu1 %v7719_v35  ;;  %6006 = vmatprep.subr.bf16.mxu0 %v7725_v3  ;;  %v10341_v35 = vld [vmem:[#allocation49_spill] sm:$0xff]  ;;  %v10342_v3 = vld [vmem:[#allocation50_spill] sm:$0xff] }
 0x12a   :  { %10334 = vst [vmem:[#allocation95_spill] sm:$0xff] %v8140_v13  ;;  %v8145_v8 = vsub.f32 %v8096_v27, %v9722_v25  ;;  %1744 = vmatmul.mubr.f32.vlgmr.msra.gmra.mrb[6].mxu1 %v10338_v26  ;;  %2697 = vmatmul.mubr.f32.vlgmr.msra.gmra.mrb[6].mxu0 %v10338_v26  ;;  %v10339_v25 = vld [vmem:[#allocation37_spill] sm:$0xff] }
 0x12b   :  { %5816 = vmatpush1.bf16.msra.mxu1 %v7731_v2  ;;  %6008 = vmatpush1.bf16.msra.mxu0 %v7737_v49  ;;  %v10340_v2 = vld [vmem:[#allocation41_spill] sm:$0xff]  ;;  %v10343_v49 = vld [vmem:[#allocation55_spill] sm:$0xff] }
 0x12c   :  { %10335 = vst [vmem:[#allocation96_spill] sm:$0xff] %v8145_v8  ;;  %5818 = vmatprep.subr.bf16.mxu1 %v7745_v16  ;;  %6010 = vmatprep.subr.bf16.mxu0 %v7751_v24  ;;  %v10344_v16 = vld [vmem:[#allocation57_spill] sm:$0xff]  ;;  %v10345_v24 = vld [vmem:[#allocation58_spill] sm:$0xff] }
 0x12d   :  { %1749 = vmatprep.mubr.f32.mxu1 %v9937_v50  ;;  %2702 = vmatprep.mubr.f32.mxu0 %v9937_v50 }
 0x12e   :  { %1753 = vmatmul.mubr.f32.gmra.mrb[8].mxu1 %v10339_v25  ;;  %2706 = vmatmul.mubr.f32.gmra.mrb[8].mxu0 %v10339_v25 }
 0x12f   :  { %5820 = vmatpush1.bf16.msra.mxu1 %v7757_v5  ;;  %6012 = vmatpush1.bf16.msra.mxu0 %v7765_v1  ;;  %v10346_v5 = vld [vmem:[#allocation59_spill] sm:$0xff]  ;;  %v10347_v1 = vld [vmem:[#allocation60_spill] sm:$0xff] }
 0x130   :  { %5822 = vmatprep.subr.bf16.mxu1 %v7771_v29  ;;  %6014 = vmatprep.subr.bf16.mxu0 %v7777_v4  ;;  %v10348_v29 = vld [vmem:[#allocation68_spill] sm:$0xff] }
 0x131   :  { %1758 = vmatprep.mubr.f32.mxu1 %v9937_v50  ;;  %2711 = vmatprep.mubr.f32.mxu0 %v9937_v50  ;;  %v10349_v4 = vld [vmem:[#allocation72_spill] sm:$0xff] }
 0x132   :  { %1762 = vmatmul.mubr.f32.gmra.mrb[10].mxu1 %v10340_v2  ;;  %2715 = vmatmul.mubr.f32.gmra.mrb[10].mxu0 %v10340_v2 }
 0x133   :  { %5824 = vmatpush1.bf16.msra.mxu1 %v7783_v48  ;;  %6016 = vmatpush1.bf16.msra.mxu0 %v7789_v37  ;;  %v10350_v48 = vld [vmem:[#allocation27_spill] sm:$0xff] }
 0x134   :  { %5826 = vmatprep.subr.bf16.mxu1 %v7795_v53  ;;  %6018 = vmatprep.subr.bf16.mxu0 %v7801_v31  ;;  %v10351_v37 = vld [vmem:[#allocation35_spill] sm:$0xff]  ;;  %v10352_v53 = vld [vmem:[#allocation38_spill] sm:$0xff] }
 0x135   :  { %1928 = vmatprep.mubr.f32.mxu1 %v9937_v50  ;;  %2881 = vmatprep.mubr.f32.mxu0 %v9937_v50  ;;  %v10353_v31 = vld [vmem:[#allocation94_spill] sm:$0xff] }
 0x137   :  { %5828 = vmatpush1.bf16.msra.mxu1 %v7807_v57  ;;  %6020 = vmatpush1.bf16.msra.mxu0 %v7813_v23  ;;  %v10354_v57 = vld [vmem:[#allocation24_spill] sm:$0xff]  ;;  %v10355_v23 = vld [vmem:[#allocation101_spill] sm:$0xff] }
 0x138   :  { %5830 = vmatprep.subr.bf16.mxu1 %v7821_v36  ;;  %6022 = vmatprep.subr.bf16.mxu0 %v7827_v9  ;;  %v10356_v36 = vld [vmem:[#allocation104_spill] sm:$0xff]  ;;  %v10357_v9 = vld [vmem:[#allocation73_spill] sm:$0xff] }
 0x13b   :  { %5832 = vmatpush1.bf16.msra.mxu1 %v7833_v0  ;;  %6024 = vmatpush1.bf16.msra.mxu0 %v10341_v35  ;;  %v10358_v0 = vand.u32 4294901760, %v10357_v9  ;;  %v10394_v35 = vld [vmem:[#allocation71_spill] sm:$0xff] }
 0x13c   :  { %5834 = vmatprep.subr.bf16.mxu1 %v10342_v3  ;;  %6026 = vmatprep.subr.bf16.mxu0 %v10343_v49  ;;  %v10395_v3 = vand.u32 4294901760, %v10394_v35  ;;  %v8391_v35 = vld [vmem:[#allocation8 + $0x70] sm:$0xff] }
 0x13f   :  { %5836 = vmatpush1.bf16.msra.mxu1 %v10344_v16  ;;  %6028 = vmatpush1.bf16.msra.mxu0 %v10345_v24  ;;  %v10397_v16 = vand.u32 4294901760, %v8082_v22 }
 0x140   :  { %5838 = vmatprep.subr.bf16.mxu1 %v10346_v5  ;;  %6030 = vmatprep.subr.bf16.mxu0 %v10347_v1  ;;  %v10399_v5 = vand.u32 4294901760, %v8096_v27 }
 0x141   :  { %v8306_v24 = vpack.c.bf16 %v10397_v16, %v3217_v30 }
 0x142   :  { %v8313_v1 = vpack.c.bf16 %v10399_v5, %v3169_v46  ;;  %v9731_v5 = vand.u32 4294901760, %v8391_v35 }
 0x143   :  { %5840 = vmatpush1.bf16.msra.mxu1 %v10348_v29  ;;  %6032 = vmatpush1.bf16.msra.mxu0 %v10349_v4  ;;  %10398 = vst [vmem:[#allocation108_spill] sm:$0xff] %v8306_v24 }
 0x144   :  { %5842 = vmatprep.subr.bf16.mxu1 %v7897_v58  ;;  %6034 = vmatprep.subr.bf16.mxu0 %v7903_v34  ;;  %v10362_v58 = vld [vmem:[#allocation19_spill] sm:$0xff]  ;;  %10400 = vst [vmem:[#allocation109_spill] sm:$0xff] %v8313_v1 }
 0x147   :  { %5844 = vmatpush1.bf16.msra.mxu1 %v7909_v15  ;;  %6036 = vmatpush1.bf16.msra.mxu0 %v7915_v38  ;;  %v10359_v38 = vld [vmem:[#allocation81_spill] sm:$0xff] }
 0x148   :  { %5846 = vmatprep.subr.bf16.mxu1 %v10257_v63  ;;  %6038 = vmatprep.subr.bf16.mxu0 %v10258_v40  ;;  %v10360_v34 = vand.u32 4294901760, %v10359_v38  ;;  %v10363_v63 = vand.u32 4294901760, %v10362_v58  ;;  %v10364_v40 = vld [vmem:[#allocation82_spill] sm:$0xff]  ;;  %v8331_v58 = vld [vmem:[#allocation8 + $0xd8] sm:$0xff] }
 0x14a   :  { %1930 = vmatmul.mubr.f32.vlgmr.msra.gmra.mrb[6].mxu1 %v10350_v48  ;;  %2883 = vmatmul.mubr.f32.vlgmr.msra.gmra.mrb[6].mxu0 %v10350_v48  ;;  %v8239_v15 = vpack.c.bf16 %v10360_v34, %v10358_v0  ;;  %v8329_v34 = vld [vmem:[#allocation8 + $0xd0] sm:$0xff] }
 0x14b   :  { %5848 = vmatpush1.bf16.msra.mxu1 %v10260_v55  ;;  %6040 = vmatpush1.bf16.msra.mxu0 %v10261_v42  ;;  %v10365_v55 = vand.u32 4294901760, %v10364_v40  ;;  %v9737_v40 = vand.u32 4294901760, %v8331_v58 }
 0x14c   :  { %5850 = vmatprep.subr.bf16.mxu1 %v10262_v54  ;;  %6042 = vmatprep.subr.bf16.mxu0 %v10263_v39  ;;  %10361 = vst [vmem:[#allocation23_spill] sm:$0xff] %v8239_v15  ;;  %v10367_v54 = vld [vmem:[#allocation83_spill] sm:$0xff] }
 0x14d   :  { %1935 = vmatprep.mubr.f32.mxu1 %v9937_v50  ;;  %2888 = vmatprep.mubr.f32.mxu0 %v9937_v50  ;;  %v8248_v42 = vpack.c.bf16 %v10365_v55, %v10363_v63  ;;  %v10368_v39 = vand.u32 4294901760, %v10367_v54  ;;  %v9739_v63 = vand.u32 4294901760, %v8329_v34  ;;  %v8335_v55 = vld [vmem:[#allocation8 + $0x50] sm:$0xff]  ;;  %v8337_v54 = vld [vmem:[#allocation8 + $0x58] sm:$0xff] }
 0x14e   :  { %1937 = vmatmul.mubr.f32.gmra.mrb[8].mxu1 %v10351_v37  ;;  %2890 = vmatmul.mubr.f32.gmra.mrb[8].mxu0 %v10351_v37 }
 0x14f   :  { %5852 = vmatpush1.bf16.msra.mxu1 %v10265_v11  ;;  %6044 = vmatpush1.bf16.msra.mxu0 %v10266_v21  ;;  %10366 = vst [vmem:[#allocation99_spill] sm:$0xff] %v8248_v42  ;;  %v10369_v11 = vld [vmem:[#allocation85_spill] sm:$0xff] }
 0x150   :  { %5854 = vmatprep.subr.bf16.mxu1 %v10267_v33  ;;  %6046 = vmatprep.subr.bf16.mxu0 %v10268_v60  ;;  %v10370_v21 = vand.u32 4294901760, %v10369_v11  ;;  %v10372_v60 = vld [vmem:[#allocation90_spill] sm:$0xff]  ;;  %v9734_v11 = vand.u32 4294901760, %v8337_v54 }
 0x151   :  { %1942 = vmatprep.mubr.f32.mxu1 %v9937_v50  ;;  %2895 = vmatprep.mubr.f32.mxu0 %v9937_v50 }
 0x152   :  { %1944 = vmatmul.mubr.f32.gmra.mrb[10].mxu1 %v10352_v53  ;;  %2897 = vmatmul.mubr.f32.gmra.mrb[10].mxu0 %v10352_v53  ;;  %v8254_v33 = vpack.c.bf16 %v10370_v21, %v10368_v39  ;;  %v9736_v39 = vand.u32 4294901760, %v8335_v55  ;;  %v8345_v21 = vpack.c.bf16 %v9737_v40, %v9739_v63 }
 0x153   :  { %5856 = vmatpush1.bf16.msra.mxu1 %v10270_v52  ;;  %6048 = vmatpush1.bf16.msra.mxu0 %v10271_v41  ;;  %v10373_v52 = vand.u32 4294901760, %v10372_v60  ;;  %v10374_v41 = vld [vmem:[#allocation34_spill] sm:$0xff] }
 0x154   :  { %5858 = vmatprep.subr.bf16.mxu1 %v10272_v51  ;;  %6050 = vmatprep.subr.bf16.mxu0 %v10273_v10  ;;  %10371 = vst [vmem:[#allocation100_spill] sm:$0xff] %v8254_v33  ;;  %v10375_v51 = vand.u32 4294901760, %v10374_v41  ;;  %10407 = vst [vmem:[#allocation116_spill] sm:$0xff] %v8345_v21  ;;  %v8351_v60 = vpack.c.bf16 %v9734_v11, %v9736_v39  ;;  %v8355_v41 = vld [vmem:[#allocation8 + $0xe8] sm:$0xff] }
 0x155   :  { %2046 = vmatprep.mubr.f32.mxu1 %v9937_v50  ;;  %2999 = vmatprep.mubr.f32.mxu0 %v9937_v50 }
 0x156   :  { %v8265_v10 = vpack.c.bf16 %v10375_v51, %v10373_v52  ;;  %10408 = vst [vmem:[#allocation47_spill] sm:$0xff] %v8351_v60  ;;  %v8353_v52 = vld [vmem:[#allocation8 + $0xe0] sm:$0xff] }
 0x157   :  { %5860 = vmatpush1.bf16.msra.mxu1 %v10274_v18  ;;  %6052 = vmatpush1.bf16.msra.mxu0 %v10275_v45  ;;  %v10377_v18 = vld [vmem:[#allocation40_spill] sm:$0xff]  ;;  %v9733_v51 = vand.u32 4294901760, %v8353_v52 }
 0x158   :  { %5862 = vmatprep.subr.bf16.mxu1 %v10276_v62  ;;  %6054 = vmatprep.subr.bf16.mxu0 %v10277_v12  ;;  %10376 = vst [vmem:[#allocation103_spill] sm:$0xff] %v8265_v10  ;;  %v10378_v45 = vand.u32 4294901760, %v10377_v18  ;;  %v10379_v62 = vld [vmem:[#allocation102_spill] sm:$0xff]  ;;  %v9732_v18 = vand.u32 4294901760, %v8355_v41 }
 0x159   :  { %v10380_v12 = vand.u32 4294901760, %v10379_v62  ;;  %v8362_v62 = vld [vmem:[#allocation8 + $0x68] sm:$0xff] }
 0x15b   :  { %5864 = vmatpush1.bf16.msra.mxu1 %v10286_v14  ;;  %6056 = vmatpush1.bf16.msra.mxu0 %v10287_v32  ;;  %v10384_v32 = vld [vmem:[#allocation53_spill] sm:$0xff] }
 0x15c   :  { %5866 = vmatprep.subr.bf16.mxu1 %v10292_v19  ;;  %6058 = vmatprep.subr.bf16.mxu0 %v10353_v31 }
 0x15f   :  { %5868 = vmatpush1.bf16.msra.mxu1 %v10309_v7  ;;  %6060 = vmatpush1.bf16.msra.mxu0 %v10354_v57  ;;  %v10389_v7 = vld [vmem:[#allocation66_spill] sm:$0xff] }
 0x160   :  { %5870 = vmatprep.subr.bf16.mxu1 %v10355_v23  ;;  %6062 = vmatprep.subr.bf16.mxu0 %v10356_v36  ;;  %v10390_v25 = vand.u32 4294901760, %v10389_v7 }
 0x163   :  { %5872 = vmatpush1.bf16.msra.mxu1 %v10327_v44  ;;  %6064 = vmatpush1.bf16.msra.mxu0 %v10328_v59  ;;  %v8272_v44 = vpack.c.bf16 %v10380_v12, %v10378_v45  ;;  %v8360_v45 = vld [vmem:[#allocation8 + $0x60] sm:$0xff] }
 0x164   :  { %5874 = vmatprep.subr.bf16.mxu1 %v10329_v17  ;;  %6066 = vmatprep.subr.bf16.mxu0 %v10330_v28  ;;  %v10385_v28 = vand.u32 4294901760, %v10384_v32  ;;  %v10387_v17 = vld [vmem:[#allocation61_spill] sm:$0xff]  ;;  %v9726_v12 = vand.u32 4294901760, %v8360_v45 }
 0x165   :  { %10381 = vst [vmem:[#allocation25_spill] sm:$0xff] %v8272_v44  ;;  %v10388_v19 = vand.u32 4294901760, %v10387_v17  ;;  %v8381_v17 = vld [vmem:[#allocation8 + $0xf8] sm:$0xff] }
 0x167   :  { %5876 = vmatpush1.bf16.msra.mxu1 %v10336_v6  ;;  %6068 = vmatpush1.bf16.msra.mxu0 %v10337_v47  ;;  %v10382_v47 = vld [vmem:[#allocation52_spill] sm:$0xff]  ;;  %v8290_v26 = vpack.c.bf16 %v10390_v25, %v10388_v19  ;;  %v10392_v6 = vld [vmem:[#allocation67_spill] sm:$0xff]  ;;  %v8383_v19 = vld [vmem:[#allocation8 + $0x100] sm:$0xff]  ;;  %v9723_v25 = vand.u32 4294901760, %v8381_v17 }
 0x168   :  { %6070 = vmatprep.subr.bf16.mxu1 %v8239_v15  ;;  %v10383_v14 = vand.u32 4294901760, %v10382_v47  ;;  %v10393_v2 = vand.u32 4294901760, %v10392_v6  ;;  %v9725_v47 = vand.u32 4294901760, %v8362_v62  ;;  %v8388_v6 = vld [vmem:[#allocation8 + $0x108] sm:$0xff] }
 0x169   :  { %10391 = vst [vmem:[#allocation26_spill] sm:$0xff] %v8290_v26  ;;  %v9727_v16 = vand.u32 4294901760, %v8388_v6  ;;  %v8523_v15 = vld [vmem:[#allocation8 + $0x148] sm:$0xff] }
 0x16a   :  { %2048 = vmatmul.mubr.f32.vlgmr.msra.gmra.mrb[6].mxu1 %v10350_v48  ;;  %3001 = vmatmul.mubr.f32.vlgmr.msra.gmra.mrb[6].mxu0 %v10350_v48  ;;  %v8283_v59 = vpack.c.bf16 %v10385_v28, %v10383_v14  ;;  %v8299_v49 = vpack.c.bf16 %v10395_v3, %v10393_v2  ;;  %v8371_v14 = vpack.c.bf16 %v9732_v18, %v9733_v51  ;;  %v8379_v28 = vld [vmem:[#allocation8 + $0xf0] sm:$0xff]  ;;  %v9728_v2 = vand.u32 4294901760, %v8383_v19  ;;  %v8393_v3 = vld [vmem:[#allocation8 + $0x78] sm:$0xff]  ;;  %v10418_v51 = vld [vmem:[#allocation62_spill] sm:$0xff] }
 0x16b   :  { %2053 = vmatprep.mubr.f32.mxu1 %v9937_v50  ;;  %3006 = vmatprep.mubr.f32.mxu0 %v9937_v50  ;;  %v8377_v32 = vpack.c.bf16 %v9725_v47, %v9726_v12  ;;  %v9724_v7 = vand.u32 4294901760, %v8379_v28  ;;  %v10417_v47 = vld [vmem:[#allocation46_spill] sm:$0xff]  ;;  %v9755_v11 = vand.u32 4294901760, %v10418_v51 }
 0x16c   :  { %6072 = vmatpush3.bf16.msra.mxu1 %v8248_v42  ;;  %10386 = vst [vmem:[#allocation105_spill] sm:$0xff] %v8283_v59  ;;  %10396 = vst [vmem:[#allocation28_spill] sm:$0xff] %v8299_v49  ;;  %v9744_v12 = vand.u32 4294901760, %v10417_v47 }
 0x16d   :  { %6074 = vmatprep.subr.bf16.mxu1 %v8254_v33  ;;  %10409 = vst [vmem:[#allocation43_spill] sm:$0xff] %v8371_v14  ;;  %10410 = vst [vmem:[#allocation45_spill] sm:$0xff] %v8377_v32 }
 0x16e   :  { %2055 = vmatmul.mubr.f32.gmra.mrb[8].mxu1 %v10351_v37  ;;  %3008 = vmatmul.mubr.f32.gmra.mrb[8].mxu0 %v10351_v37  ;;  %v3297_v18 = vsub.f32 %v10417_v47, %v9744_v12  ;;  %v3416_v12 = vsub.f32 %v10418_v51, %v9755_v11 }
 0x16f   :  { %2060 = vmatprep.mubr.f32.mxu1 %v9937_v50  ;;  %3013 = vmatprep.mubr.f32.mxu0 %v9937_v50 }
 0x170   :  { %6076 = vmatpush3.bf16.msra.mxu1 %v8265_v10  ;;  %v3417_v11 = vand.u32 4294901760, %v3416_v12  ;;  %v10428_v12 = vld [vmem:[#allocation76_spill] sm:$0xff]  ;;  %v10435_v10 = vld [vmem:[#allocation79_spill] sm:$0xff] }
 0x171   :  { %6078 = vmatprep.subr.bf16.mxu1 %v8272_v44  ;;  %v9792_v33 = vand.u32 4294901760, %v10435_v10 }
 0x172   :  { %2062 = vmatmul.mubr.f32.gmra.mrb[10].mxu1 %v10352_v53  ;;  %3015 = vmatmul.mubr.f32.gmra.mrb[10].mxu0 %v10352_v53 }
 0x173   :  { %5279 = vmatprep.mubr.msk.f32.mxu0 %vm6678_vm0, %v9937_v50 }
 0x174   :  { %6080 = vmatpush3.bf16.msra.mxu1 %v8283_v59 }
 0x175   :  { %6082 = vmatprep.subr.bf16.mxu1 %v8290_v26  ;;  %v8491_v26 = vld [vmem:[#allocation8 + $0x130] sm:$0xff] }
 0x177   :  { %v1096_v4 = vpop.f32.mrb[0].mxu0 }
 0x178   :  { %6084 = vmatpush3.bf16.msra.mxu1 %v8299_v49  ;;  %v670_v29 = vpop.f32.mrb[0].mxu1  ;;  %v1098_v22 = vpop.f32.mrb[1].mxu0 }
 0x179   :  { %6086 = vmatprep.subr.bf16.mxu1 %v8306_v24  ;;  %v8317_v48 = vadd.f32 %v1096_v4, %v670_v29  ;;  %v672_v56 = vpop.f32.mrb[1].mxu1  ;;  %v9729_v29 = vand.u32 4294901760, %v8393_v3  ;;  %v10411_v4 = vld [vmem:[#allocation92_spill] sm:$0xff] }
 0x17a   :  { %v8319_v30 = vadd.f32 %v1098_v22, %v672_v56  ;;  %v9730_v56 = vand.u32 4294901760, %v10411_v4  ;;  %v8404_v22 = vpack.c.bf16 %v9723_v25, %v9724_v7  ;;  %v8424_v25 = vld [vmem:[#allocation8 + $0x110] sm:$0xff]  ;;  %v8426_v7 = vld [vmem:[#allocation8 + $0x118] sm:$0xff] }
 0x17b   :  { %10401 = vst [vmem:[#allocation31_spill] sm:$0xff] %v8317_v48  ;;  %v1103_v53 = vpop.f32.mrb[2].mxu0 }
 0x17c   :  { %6088 = vmatpush3.bf16.msra.mxu1 %v8313_v1  ;;  %10402 = vst [vmem:[#allocation30_spill] sm:$0xff] %v8319_v30  ;;  %v678_v37 = vpop.f32.mrb[2].mxu1  ;;  %v1105_v27 = vpop.f32.mrb[3].mxu0  ;;  %10412 = vst [vmem:[#allocation32_spill] sm:$0xff] %v8404_v22  ;;  %v10425_v1 = vld [vmem:[#allocation74_spill] sm:$0xff] }
 0x17d   :  { %v8321_v31 = vadd.f32 %v1103_v53, %v678_v37  ;;  %v680_v61 = vpop.f32.mrb[3].mxu1  ;;  %6090 = vmatprep.subr.bf16.mxu1 %v8345_v21  ;;  %v10413_v37 = vld [vmem:[#allocation98_spill] sm:$0xff] }
 0x17e   :  { %v8323_v46 = vadd.f32 %v1105_v27, %v680_v61  ;;  %v9735_v53 = vand.u32 4294901760, %v10413_v37  ;;  %v10414_v61 = vld [vmem:[#allocation42_spill] sm:$0xff] }
 0x17f   :  { %10403 = vst [vmem:[#allocation111_spill] sm:$0xff] %v8321_v31  ;;  %v1110_v23 = vpop.f32.mrb[4].mxu0  ;;  %v9738_v27 = vand.u32 4294901760, %v10414_v61  ;;  %v3141_v31 = vld [vmem:[#allocation8 + $0x168] sm:$0xff] }
 0x180   :  { %10404 = vst [vmem:[#allocation112_spill] sm:$0xff] %v8323_v46  ;;  %v686_v57 = vpop.f32.mrb[4].mxu1  ;;  %v1112_v0 = vpop.f32.mrb[5].mxu0  ;;  %6092 = vmatpush3.bf16.msra.mxu1 %v8351_v60  ;;  %v8462_v60 = vld [vmem:[#allocation8 + $0x128] sm:$0xff] }
 0x181   :  { %v8325_v36 = vadd.f32 %v1110_v23, %v686_v57  ;;  %v688_v9 = vpop.f32.mrb[5].mxu1  ;;  %6094 = vmatprep.subr.bf16.mxu1 %v8371_v14  ;;  %v9747_v57 = vmov 0.0|0.0   ;;  %v8413_v23 = vpack.c.bf16 %v9727_v16, %v9728_v2  ;;  %v3409_v16 = vsub.f32 %v10413_v37, %v9735_v53  ;;  %v10419_v53 = vld [vmem:[#allocation64_spill] sm:$0xff]  ;;  %v8460_v14 = vld [vmem:[#allocation8 + $0x120] sm:$0xff] }
 0x182   :  { %v8327_v38 = vadd.f32 %v1112_v0, %v688_v9  ;;  %6261 = vmatprep.subr.bf16.mxu0 %v9747_v57  ;;  %v8419_v9 = vpack.c.bf16 %v9729_v29, %v9731_v5  ;;  %v3402_v0 = vsub.f32 %v10411_v4, %v9730_v56  ;;  %v9757_v2 = vand.u32 4294901760, %v8424_v25 }
 0x183   :  { %10405 = vst [vmem:[#allocation114_spill] sm:$0xff] %v8325_v36  ;;  %10415 = vst [vmem:[#allocation48_spill] sm:$0xff] %v8413_v23  ;;  %v9756_v29 = vand.u32 4294901760, %v8426_v7  ;;  %v3290_v56 = vsub.f32 %v10414_v61, %v9738_v27  ;;  %6263 = vmatpush3.bf16.msra.mxu0 %v8413_v23  ;;  %v9758_v39 = vand.u32 4294901760, %v10419_v53  ;;  %v3410_v40 = vand.u32 4294901760, %v3409_v16 }
 0x184   :  { %10406 = vst [vmem:[#allocation44_spill] sm:$0xff] %v8327_v38  ;;  %6096 = vmatpush3.bf16.msra.mxu1 %v8377_v32  ;;  %10416 = vst [vmem:[#allocation51_spill] sm:$0xff] %v8419_v9  ;;  %v3403_v5 = vand.u32 4294901760, %v3402_v0  ;;  %6264 = vmatprep.subr.bf16.mxu0 %v9747_v57  ;;  %v3298_v23 = vand.u32 4294901760, %v3297_v18  ;;  %v10422_v57 = vld [vmem:[#allocation69_spill] sm:$0xff]  ;;  %v10443_v38 = vand.u32 4294901760, %v8331_v58 }
 0x185   :  { %6098 = vmatprep.subr.bf16.mxu1 %v8404_v22  ;;  %v8450_v27 = vpack.c.bf16 %v9756_v29, %v9757_v2  ;;  %v3291_v63 = vand.u32 4294901760, %v3290_v56  ;;  %v3423_v22 = vsub.f32 %v10419_v53, %v9758_v39  ;;  %v9770_v16 = vand.u32 4294901760, %v10422_v57 }
 0x186   :  { %v6101_v32 = vpack.c.bf16 %v3410_v40, %v3403_v5  ;;  %v10424_v39 = vmov 0.0|0.0   ;;  %v9773_v40 = vand.u32 4294901760, %v8462_v60  ;;  %v9793_v2 = vand.u32 4294901760, %v8491_v26 }
 0x187   :  { %10420 = vst [vmem:[#allocation54_spill] sm:$0xff] %v8450_v27  ;;  %6266 = vmatpush3.bf16.msra.mxu0 %v8450_v27  ;;  %v8468_v18 = vpack.c.bf16 %v3298_v23, %v3291_v63  ;;  %v3424_v29 = vand.u32 4294901760, %v3423_v22  ;;  %v3311_v21 = vsub.f32 %v10422_v57, %v9770_v16  ;;  %v10427_v63 = vld [vmem:[#allocation75_spill] sm:$0xff]  ;;  %v10429_v27 = vld [vmem:[#allocation78_spill] sm:$0xff] }
 0x188   :  { %6100 = vmatpush3.bf16.msra.mxu1 %v8419_v9  ;;  %v10421_v9 = vld [vmem:[#allocation65_spill] sm:$0xff]  ;;  %6267 = vmatprep.subr.bf16.mxu0 %v10424_v39  ;;  %v9783_v23 = vand.u32 4294901760, %v10427_v63  ;;  %v10434_v59 = vand.u32 4294901760, %v10429_v27 }
 0x189   :  { %v9763_v0 = vand.u32 4294901760, %v10421_v9  ;;  %10423 = vst [vmem:[#allocation56_spill] sm:$0xff] %v8468_v18  ;;  %6102 = vmatprep.subr.bf16.mxu1 %v6101_v32  ;;  %v8477_v24 = vpack.c.bf16 %v3424_v29, %v3417_v11  ;;  %v10430_v32 = vand.u32 4294901760, %v8460_v14  ;;  %v8493_v11 = vld [vmem:[#allocation8 + $0x138] sm:$0xff] }
 0x18a   :  { %v3437_v29 = vsub.f32 %v10427_v63, %v9783_v23  ;;  %v9791_v22 = vand.u32 4294901760, %v8493_v11  ;;  %v3325_v44 = vsub.f32 %v10429_v27, %v10434_v59  ;;  %v8521_v59 = vld [vmem:[#allocation8 + $0x140] sm:$0xff] }
 0x18b   :  { %v3304_v56 = vsub.f32 %v10421_v9, %v9763_v0  ;;  %v9774_v0 = vand.u32 4294901760, %v10425_v1  ;;  %10426 = vst [vmem:[#allocation36_spill] sm:$0xff] %v8477_v24  ;;  %v8486_v49 = vpack.c.bf16 %v9773_v40, %v10430_v32  ;;  %v10432_v32 = vand.u32 4294901760, %v10428_v12  ;;  %v10439_v24 = vld [vmem:[#allocation89_spill] sm:$0xff] }
 0x18c   :  { %v3438_v23 = vand.u32 4294901760, %v3437_v29  ;;  %v8515_v42 = vpack.c.bf16 %v9791_v22, %v9793_v2  ;;  %v8542_v29 = vsub.f32 %v8331_v58, %v10443_v38  ;;  %v10448_v22 = vand.u32 4294901760, %v8337_v54 }
 0x18d   :  { %v3305_v5 = vand.u32 4294901760, %v3304_v56  ;;  %10431 = vst [vmem:[#allocation13_spill] sm:$0xff] %v8486_v49  ;;  %v3312_v56 = vand.u32 4294901760, %v3311_v21  ;;  %v3430_v16 = vsub.f32 %v10425_v1, %v9774_v0  ;;  %v3318_v21 = vsub.f32 %v10428_v12, %v10432_v32  ;;  %6269 = vmatpush3.bf16.msra.mxu0 %v8486_v49  ;;  %v10437_v49 = vld [vmem:[#allocation86_spill] sm:$0xff] }
 0x18e   :  { %6270 = vmatprep.subr.bf16.mxu0 %v10424_v39  ;;  %10436 = vst [vmem:[#allocation63_spill] sm:$0xff] %v8515_v42  ;;  %10444 = vst [vmem:[#allocation16_spill] sm:$0xff] %v8542_v29  ;;  %v10449_v38 = vand.u32 4294901760, %v8523_v15 }
 0x18f   :  { %v8504_v40 = vpack.c.bf16 %v3312_v56, %v3305_v5  ;;  %v3431_v0 = vand.u32 4294901760, %v3430_v16  ;;  %v3319_v32 = vand.u32 4294901760, %v3318_v21  ;;  %v9795_v5 = vand.u32 4294901760, %v10437_v49 }
 0x190   :  { %v3326_v56 = vand.u32 4294901760, %v3325_v44  ;;  %v3444_v16 = vsub.f32 %v10435_v10, %v9792_v33  ;;  %v9798_v44 = vand.u32 4294901760, %v8521_v59  ;;  %v10441_v33 = vand.u32 4294901760, %v8329_v34  ;;  %v10514_v10 = vld [vmem:[#allocation96_spill] sm:$0xff] }
 0x191   :  { %10433 = vst [vmem:[#allocation14_spill] sm:$0xff] %v8504_v40  ;;  %v10438_v40 = vld [vmem:[#allocation88_spill] sm:$0xff]  ;;  %v8527_v36 = vpack.c.bf16 %v3438_v23, %v3431_v0  ;;  %v3451_v21 = vsub.f32 %v10437_v49, %v9795_v5  ;;  %6272 = vmatpush3.bf16.msra.mxu0 %v8515_v42  ;;  %v10446_v5 = vand.u32 4294901760, %v8335_v55 }
 0x192   :  { %v8537_v2 = vsub.f32 %v8329_v34, %v10441_v33  ;;  %v8545_v0 = vpack.c.bf16 %v3326_v56, %v3319_v32  ;;  %v3445_v23 = vand.u32 4294901760, %v3444_v16  ;;  %v8555_v33 = vsub.f32 %v8337_v54, %v10448_v22  ;;  %6273 = vmatprep.subr.bf16.mxu0 %v10424_v39  ;;  %v8572_v16 = vld [vmem:[#allocation8 + $0x150] sm:$0xff] }
 0x193   :  { %10440 = vst [vmem:[#allocation15_spill] sm:$0xff] %v8527_v36  ;;  %v8550_v18 = vsub.f32 %v8335_v55, %v10446_v5  ;;  %v3452_v34 = vand.u32 4294901760, %v3451_v21  ;;  %v8562_v58 = vpack.c.bf16 %v10449_v38, %v9798_v44  ;;  %v10451_v32 = vand.u32 4294901760, %v10438_v40  ;;  %v8574_v21 = vld [vmem:[#allocation8 + $0x158] sm:$0xff] }
 0x194   :  { %10442 = vst [vmem:[#allocation39_spill] sm:$0xff] %v8537_v2  ;;  %10445 = vst [vmem:[#allocation70_spill] sm:$0xff] %v8545_v0  ;;  %v10452_v55 = vand.u32 4294901760, %v10439_v24  ;;  %v10454_v0 = vand.u32 4294901760, %v8353_v52  ;;  %v10455_v54 = vand.u32 4294901760, %v8355_v41  ;;  %v10456_v38 = vand.u32 4294901760, %v8360_v45 }
 0x195   :  { %10447 = vst [vmem:[#allocation17_spill] sm:$0xff] %v8550_v18  ;;  %10450 = vst [vmem:[#allocation18_spill] sm:$0xff] %v8562_v58  ;;  %v3332_v56 = vsub.f32 %v10438_v40, %v10451_v32  ;;  %v8576_v42 = vpack.c.bf16 %v3452_v34, %v3445_v23  ;;  %6275 = vmatpush3.bf16.msra.mxu0 %v8562_v58  ;;  %v10457_v32 = vand.u32 4294901760, %v8362_v62  ;;  %v9805_v58 = vand.u32 4294901760, %v8145_v8  ;;  %v10516_v1 = vld [vmem:[#allocation16_spill] sm:$0xff] }
 0x196   :  { %v3339_v5 = vsub.f32 %v10439_v24, %v10452_v55  ;;  %v8584_v55 = vsub.f32 %v8353_v52, %v10454_v0  ;;  %v8589_v22 = vsub.f32 %v8355_v41, %v10455_v54  ;;  %v8595_v44 = vsub.f32 %v8360_v45, %v10456_v38  ;;  %6276 = vmatprep.subr.bf16.mxu0 %v10424_v39 }
 0x197   :  { %10453 = vst [vmem:[#allocation77_spill] sm:$0xff] %v8576_v42  ;;  %v3333_v23 = vand.u32 4294901760, %v3332_v56  ;;  %v8600_v42 = vsub.f32 %v8362_v62, %v10457_v32  ;;  %v10458_v52 = vand.u32 4294901760, %v8130_v43  ;;  %v10459_v0 = vand.u32 4294901760, %v8135_v20 }
 0x198   :  { %v3340_v34 = vand.u32 4294901760, %v3339_v5  ;;  %v10461_v45 = vand.u32 4294901760, %v8572_v16  ;;  %v10462_v54 = vand.u32 4294901760, %v8574_v21  ;;  %v10464_v62 = vand.u32 4294901760, %v8140_v13 }
 0x199   :  { %v3458_v41 = vsub.f32 %v8130_v43, %v10458_v52  ;;  %v3465_v56 = vsub.f32 %v8135_v20, %v10459_v0 }
 0x19a   :  { %v8609_v5 = vpack.c.bf16 %v3340_v34, %v3333_v23  ;;  %v8615_v38 = vpack.c.bf16 %v10462_v54, %v10461_v45  ;;  %v3346_v32 = vsub.f32 %v8140_v13, %v10464_v62  ;;  %v3140_v23 = vld [vmem:[#allocation8 + $0x160] sm:$0xff]  ;;  %v10465_v34 = vand.u32 4294901760, %v8379_v28 }
 0x19b   :  { %v3459_v36 = vand.u32 4294901760, %v3458_v41  ;;  %v3466_v52 = vand.u32 4294901760, %v3465_v56  ;;  %v10467_v45 = vand.u32 4294901760, %v8381_v17  ;;  %v10468_v62 = vand.u32 4294901760, %v8383_v19 }
 0x19c   :  { %10460 = vst [vmem:[#allocation80_spill] sm:$0xff] %v8609_v5  ;;  %10463 = vst [vmem:[#allocation20_spill] sm:$0xff] %v8615_v38  ;;  %v8626_v5 = vsub.f32 %v8379_v28, %v10465_v34  ;;  %v10470_v56 = vand.u32 4294901760, %v8388_v6  ;;  %6278 = vmatpush3.bf16.msra.mxu0 %v8615_v38  ;;  %v10472_v28 = vand.u32 4294901760, %v8391_v35  ;;  %v4155_v46 = vand.u32 4294901760, %v3140_v23 }
 0x19d   :  { %v8631_v54 = vsub.f32 %v8381_v17, %v10467_v45  ;;  %v8636_v41 = vsub.f32 %v8383_v19, %v10468_v62  ;;  %v10474_v17 = vand.u32 4294901760, %v8393_v3  ;;  %v8654_v19 = vpack.c.bf16 %v3466_v52, %v3459_v36  ;;  %6279 = vmatprep.subr.bf16.mxu0 %v10424_v39 }
 0x19e   :  { %10466 = vst [vmem:[#allocation84_spill] sm:$0xff] %v8626_v5  ;;  %v8641_v0 = vsub.f32 %v8388_v6, %v10470_v56  ;;  %v8647_v34 = vsub.f32 %v8391_v35, %v10472_v28  ;;  %v3347_v62 = vand.u32 4294901760, %v3346_v32  ;;  %v3353_v6 = vsub.f32 %v8145_v8, %v9805_v58 }
 0x19f   :  { %10469 = vst [vmem:[#allocation87_spill] sm:$0xff] %v8636_v41  ;;  %v8652_v45 = vsub.f32 %v8393_v3, %v10474_v17  ;;  %10476 = vst [vmem:[#allocation106_spill] sm:$0xff] %v8654_v19  ;;  %v10477_v56 = vand.u32 4294901760, %v8537_v2  ;;  %v10478_v35 = vand.u32 4294901760, %v8542_v29  ;;  %v4158_v3 = vand.u32 4294901760, %v3141_v31  ;;  %v3142_v17 = vld [vmem:[#allocation8 + $0x170] sm:$0xff] }
 0x1a0   :  { %10471 = vst [vmem:[#allocation21_spill] sm:$0xff] %v8641_v0  ;;  %10473 = vst [vmem:[#allocation91_spill] sm:$0xff] %v8647_v34  ;;  %v10479_v19 = vand.u32 4294901760, %v8424_v25  ;;  %v10484_v32 = vand.u32 4294901760, %v8550_v18  ;;  %v10485_v8 = vand.u32 4294901760, %v8555_v33  ;;  %v10486_v13 = vand.u32 4294901760, %v8584_v55 }
 0x1a1   :  { %10475 = vst [vmem:[#allocation97_spill] sm:$0xff] %v8652_v45  ;;  %v3472_v38 = vsub.f32 %v8537_v2, %v10477_v56  ;;  %v3479_v28 = vsub.f32 %v8542_v29, %v10478_v35  ;;  %v10481_v56 = vand.u32 4294901760, %v8426_v7  ;;  %v3354_v35 = vand.u32 4294901760, %v3353_v6  ;;  %v3143_v29 = vld [vmem:[#allocation8 + $0x178] sm:$0xff] }
 0x1a2   :  { %v8672_v58 = vsub.f32 %v8424_v25, %v10479_v19  ;;  %v8679_v36 = vpack.c.bf16 %v4158_v3, %v4155_v46  ;;  %v3360_v52 = vsub.f32 %v8550_v18, %v10484_v32  ;;  %v3367_v25 = vsub.f32 %v8555_v33, %v10485_v8 }
 0x1a3   :  { %v8677_v48 = vsub.f32 %v8426_v7, %v10481_v56  ;;  %v3473_v30 = vand.u32 4294901760, %v3472_v38  ;;  %v3480_v2 = vand.u32 4294901760, %v3479_v28  ;;  %v8687_v19 = vpack.c.bf16 %v3354_v35, %v3347_v62 }
 0x1a4   :  { %10480 = vst [vmem:[#allocation107_spill] sm:$0xff] %v8672_v58  ;;  %10483 = vst [vmem:[#allocation29_spill] sm:$0xff] %v8679_v36  ;;  %v3486_v7 = vsub.f32 %v8584_v55, %v10486_v13  ;;  %v9820_v38 = vand.u32 4294901760, %v8589_v22  ;;  %v4161_v6 = vand.u32 4294901760, %v3142_v17  ;;  %6281 = vmatpush3.bf16.msra.mxu0 %v8679_v36  ;;  %v3361_v56 = vand.u32 4294901760, %v3360_v52 }
 0x1a5   :  { %10482 = vst [vmem:[#allocation110_spill] sm:$0xff] %v8677_v48  ;;  %v8693_v28 = vpack.c.bf16 %v3480_v2, %v3473_v30  ;;  %v3368_v20 = vand.u32 4294901760, %v3367_v25  ;;  %v4164_v32 = vand.u32 4294901760, %v3143_v29  ;;  %6282 = vmatprep.subr.bf16.mxu0 %v10424_v39  ;;  %v10487_v35 = vand.u32 4294901760, %v8460_v14 }
 0x1a6   :  { %v3487_v18 = vand.u32 4294901760, %v3486_v7  ;;  %v3493_v8 = vsub.f32 %v8589_v22, %v9820_v38  ;;  %v10489_v2 = vand.u32 4294901760, %v8462_v60  ;;  %v10492_v38 = vand.u32 4294901760, %v8491_v26 }
 0x1a7   :  { %v8705_v30 = vsub.f32 %v8460_v14, %v10487_v35  ;;  %v8712_v25 = vpack.c.bf16 %v3368_v20, %v3361_v56  ;;  %v8714_v7 = vpack.c.bf16 %v4164_v32, %v4161_v6  ;;  %v10494_v13 = vand.u32 4294901760, %v8493_v11 }
 0x1a8   :  { %v8710_v52 = vsub.f32 %v8462_v60, %v10489_v2  ;;  %v8719_v62 = vsub.f32 %v8491_v26, %v10492_v38  ;;  %v10496_v14 = vand.u32 4294901760, %v8521_v59  ;;  %v10498_v20 = vand.u32 4294901760, %v8523_v15 }
 0x1a9   :  { %10488 = vst [vmem:[#allocation113_spill] sm:$0xff] %v8705_v30  ;;  %10491 = vst [vmem:[#allocation33_spill] sm:$0xff] %v8714_v7  ;;  %v8724_v36 = vsub.f32 %v8493_v11, %v10494_v13  ;;  %v10500_v56 = vand.u32 4294901760, %v8572_v16  ;;  %v10502_v38 = vand.u32 4294901760, %v8574_v21  ;;  %v8746_v13 = vsub.f32 %v3140_v23, %v4155_v46  ;;  %6284 = vmatpush3.bf16.msra.mxu0 %v8714_v7 }
 0x1aa   :  { %10490 = vst [vmem:[#allocation115_spill] sm:$0xff] %v8710_v52  ;;  %10493 = vst [vmem:[#allocation37_spill] sm:$0xff] %v8719_v62  ;;  %v8729_v35 = vsub.f32 %v8521_v59, %v10496_v14  ;;  %v8734_v60 = vsub.f32 %v8523_v15, %v10498_v20  ;;  %v8748_v2 = vsub.f32 %v3141_v31, %v4158_v3  ;;  %v3494_v59 = vand.u32 4294901760, %v3493_v8 }
 0x1ab   :  { %10495 = vst [vmem:[#allocation41_spill] sm:$0xff] %v8724_v36  ;;  %v8739_v26 = vsub.f32 %v8572_v16, %v10500_v56  ;;  %v8744_v11 = vsub.f32 %v8574_v21, %v10502_v38  ;;  %10504 = vst [vmem:[#allocation58_spill] sm:$0xff] %v8746_v13  ;;  %v8751_v14 = vsub.f32 %v3142_v17, %v4161_v6  ;;  %v10508_v20 = vand.u32 4294901760, %v8595_v44 }
 0x1ac   :  { %10497 = vst [vmem:[#allocation49_spill] sm:$0xff] %v8729_v35  ;;  %10499 = vst [vmem:[#allocation50_spill] sm:$0xff] %v8734_v60  ;;  %v8753_v15 = vsub.f32 %v3143_v29, %v4164_v32  ;;  %6285 = vmatprep.subr.bf16.mxu0 %v10424_v39  ;;  %v10509_v21 = vand.u32 4294901760, %v8600_v42  ;;  %v9823_v31 = vand.u32 4294901760, %v8626_v5  ;;  %v9824_v23 = vand.u32 4294901760, %v8631_v54 }
 0x1ad   :  { %10501 = vst [vmem:[#allocation55_spill] sm:$0xff] %v8739_v26  ;;  %10503 = vst [vmem:[#allocation57_spill] sm:$0xff] %v8744_v11  ;;  %v3374_v16 = vsub.f32 %v8595_v44, %v10508_v20  ;;  %v8764_v3 = vpack.c.bf16 %v3494_v59, %v3487_v18  ;;  %v9828_v29 = vand.u32 4294901760, %v8636_v41  ;;  %v9829_v6 = vand.u32 4294901760, %v8641_v0 }
 0x1ae   :  { %10505 = vst [vmem:[#allocation59_spill] sm:$0xff] %v8748_v2  ;;  %10506 = vst [vmem:[#allocation60_spill] sm:$0xff] %v8751_v14  ;;  %v3381_v46 = vsub.f32 %v8600_v42, %v10509_v21  ;;  %v3500_v8 = vsub.f32 %v8626_v5, %v9823_v31  ;;  %v3507_v56 = vsub.f32 %v8631_v54, %v9824_v23  ;;  %v9833_v18 = vand.u32 4294901760, %v8647_v34 }
 0x1af   :  { %10507 = vst [vmem:[#allocation68_spill] sm:$0xff] %v8753_v15  ;;  %10510 = vst [vmem:[#allocation72_spill] sm:$0xff] %v8764_v3  ;;  %v3375_v17 = vand.u32 4294901760, %v3374_v16  ;;  %v4233_v38 = vsub.f32 %v8636_v41, %v9828_v29  ;;  %v4240_v59 = vsub.f32 %v8641_v0, %v9829_v6  ;;  %v9832_v20 = vand.u32 4294901760, %v8652_v45 }
 0x1b0   :  { %v3382_v32 = vand.u32 4294901760, %v3381_v46  ;;  %v3501_v46 = vand.u32 4294901760, %v3500_v8  ;;  %v3508_v31 = vand.u32 4294901760, %v3507_v56  ;;  %v3388_v23 = vsub.f32 %v8647_v34, %v9833_v18 }
 0x1b1   :  { %v4234_v7 = vand.u32 4294901760, %v4233_v38  ;;  %v4241_v39 = vand.u32 4294901760, %v4240_v59  ;;  %v3395_v29 = vsub.f32 %v8652_v45, %v9832_v20  ;;  %v9831_v6 = vand.u32 4294901760, %v8672_v58 }
 0x1b2   :  { %v8786_v21 = vpack.c.bf16 %v3382_v32, %v3375_v17  ;;  %v8795_v50 = vpack.c.bf16 %v3508_v31, %v3501_v46  ;;  %v3389_v3 = vand.u32 4294901760, %v3388_v23  ;;  %v9834_v17 = vand.u32 4294901760, %v8677_v48 }
 0x1b3   :  { %v8800_v8 = vpack.c.bf16 %v4241_v39, %v4234_v7  ;;  %v3396_v56 = vand.u32 4294901760, %v3395_v29  ;;  %v4247_v38 = vsub.f32 %v8672_v58, %v9831_v6  ;;  %v9835_v23 = vand.u32 4294901760, %v8705_v30 }
 0x1b4   :  { %v4254_v31 = vsub.f32 %v8677_v48, %v9834_v17  ;;  %v9836_v46 = vand.u32 4294901760, %v8710_v52  ;;  %v9838_v20 = vand.u32 4294901760, %v8719_v62  ;;  %v9839_v32 = vand.u32 4294901760, %v8724_v36 }
 0x1b5   :  { %v8814_v7 = vpack.c.bf16 %v3396_v56, %v3389_v3  ;;  %v4248_v29 = vand.u32 4294901760, %v4247_v38  ;;  %v4261_v17 = vsub.f32 %v8705_v30, %v9835_v23  ;;  %v9842_v38 = vand.u32 4294901760, %v8729_v35 }
 0x1b6   :  { %v4255_v18 = vand.u32 4294901760, %v4254_v31  ;;  %v4268_v59 = vsub.f32 %v8710_v52, %v9836_v46  ;;  %v4275_v3 = vsub.f32 %v8719_v62, %v9838_v20  ;;  %v9843_v31 = vand.u32 4294901760, %v8734_v60 }
 0x1b7   :  { %v4262_v23 = vand.u32 4294901760, %v4261_v17  ;;  %v4282_v46 = vsub.f32 %v8724_v36, %v9839_v32  ;;  %v4289_v20 = vsub.f32 %v8729_v35, %v9842_v38  ;;  %v9848_v49 = vand.u32 4294901760, %v8744_v11 }
 0x1b8   :  { %v8833_v6 = vpack.c.bf16 %v4255_v18, %v4248_v29  ;;  %v4269_v39 = vand.u32 4294901760, %v4268_v59  ;;  %v4276_v16 = vand.u32 4294901760, %v4275_v3  ;;  %v4296_v56 = vsub.f32 %v8734_v60, %v9843_v31 }
 0x1b9   :  { %v4283_v17 = vand.u32 4294901760, %v4282_v46  ;;  %v9846_v29 = vand.u32 4294901760, %v8739_v26  ;;  %v4290_v3 = vand.u32 4294901760, %v4289_v20  ;;  %v9850_v46 = vand.u32 4294901760, %v8746_v13 }
 0x1ba   :  { %v8846_v18 = vpack.c.bf16 %v4269_v39, %v4262_v23  ;;  %v4297_v32 = vand.u32 4294901760, %v4296_v56  ;;  %v9851_v39 = vand.u32 4294901760, %v8748_v2  ;;  %v4310_v20 = vsub.f32 %v8744_v11, %v9848_v49 }
 0x1bb   :  { %v8854_v38 = vpack.c.bf16 %v4283_v17, %v4276_v16  ;;  %v4303_v23 = vsub.f32 %v8739_v26, %v9846_v29  ;;  %v4317_v16 = vsub.f32 %v8746_v13, %v9850_v46  ;;  %v9852_v29 = vand.u32 4294901760, %v8751_v14  ;;  %v10517_v46 = vld [vmem:[#allocation17_spill] sm:$0xff] }
 0x1bc   :  { %v8861_v31 = vpack.c.bf16 %v4297_v32, %v4290_v3  ;;  %v4324_v17 = vsub.f32 %v8748_v2, %v9851_v39  ;;  %v4311_v32 = vand.u32 4294901760, %v4310_v20  ;;  %v9853_v49 = vand.u32 4294901760, %v8753_v15 }
 0x1bd   :  { %v4304_v43 = vand.u32 4294901760, %v4303_v23  ;;  %v4318_v24 = vand.u32 4294901760, %v4317_v16  ;;  %v4331_v23 = vsub.f32 %v8751_v14, %v9852_v29 }
 0x1be   :  { %10512 = vst [vmem:[#allocation27_spill] sm:$0xff] %v8861_v31  ;;  %v4325_v31 = vand.u32 4294901760, %v4324_v17  ;;  %v4338_v20 = vsub.f32 %v8753_v15, %v9853_v49  ;;  %v10518_v49 = vld [vmem:[#allocation30_spill] sm:$0xff] }
 0x1bf   :  { %v8881_v59 = vpack.c.bf16 %v4311_v32, %v4304_v43  ;;  %v4332_v40 = vand.u32 4294901760, %v4331_v23  ;;  %v4879_v29 = vmul.f32 -1.442695, %v10518_v49  ;;  %v10519_v32 = vld [vmem:[#allocation31_spill] sm:$0xff] }
 0x1c0   :  { %v8888_v39 = vpack.c.bf16 %v4325_v31, %v4318_v24  ;;  %v4339_v17 = vand.u32 4294901760, %v4338_v20  ;;  %v4878_v43 = vmul.f32 -1.442695, %v10519_v32  ;;  %v10520_v31 = vld [vmem:[#allocation112_spill] sm:$0xff]  ;;  %v10521_v23 = vld [vmem:[#allocation111_spill] sm:$0xff] }
 0x1c1   :  { %6539 = vpow2.f32 %v4879_v29  ;;  %v4882_v16 = vmul.f32 -1.442695, %v10520_v31  ;;  %v4881_v56 = vmul.f32 -1.442695, %v10521_v23  ;;  %v10522_v20 = vld [vmem:[#allocation44_spill] sm:$0xff] }
 0x1c2   :  { %v8892_v3 = vpack.c.bf16 %v4339_v17, %v4332_v40  ;;  %6541 = vpow2.f32 %v4878_v43  ;;  %v4885_v35 = vmul.f32 -1.442695, %v10522_v20  ;;  %v10523_v17 = vld [vmem:[#allocation114_spill] sm:$0xff] }
 0x1c3   :  { %6543 = vpow2.f32 %v4882_v16  ;;  %v4884_v26 = vmul.f32 -1.442695, %v10523_v17 }
 0x1c4   :  { %6545 = vpow2.f32 %v4881_v56 }
 0x1c5   :  { %6547 = vpow2.f32 %v4885_v35 }
 0x1c6   :  { %6549 = vpow2.f32 %v4884_v26 }
 0x1cb   :  { %v6540_v11 = vpop.eup %6539 }
 0x1cc   :  { %v6542_v60 = vpop.eup %6541  ;;  %v3049_v24 = vadd.f32 1.0, %v6540_v11 }
 0x1cd   :  { %v6544_v29 = vpop.eup %6543  ;;  %v3048_v13 = vadd.f32 1.0, %v6542_v60 }
 0x1ce   :  { %v6546_v2 = vpop.eup %6545  ;;  %6551 = vrcp.f32 %v3049_v24  ;;  %v3052_v43 = vadd.f32 1.0, %v6544_v29 }
 0x1cf   :  { %v6548_v62 = vpop.eup %6547  ;;  %6553 = vrcp.f32 %v3048_v13  ;;  %v3051_v36 = vadd.f32 1.0, %v6546_v2 }
 0x1d0   :  { %v6550_v40 = vpop.eup %6549  ;;  %6555 = vrcp.f32 %v3052_v43  ;;  %v3055_v16 = vadd.f32 1.0, %v6548_v62 }
 0x1d1   :  { %6557 = vrcp.f32 %v3051_v36  ;;  %v3054_v56 = vadd.f32 1.0, %v6550_v40 }
 0x1d2   :  { %6559 = vrcp.f32 %v3055_v16 }
 0x1d3   :  { %6561 = vrcp.f32 %v3054_v56 }
 0x1d8   :  { %v6552_v35 = vpop.eup %6551 }
 0x1d9   :  { %v6554_v26 = vpop.eup %6553  ;;  %v3076_v14 = vmul.f32 %v6552_v35, %v10518_v49 }
 0x1da   :  { %v6556_v11 = vpop.eup %6555  ;;  %v3075_v24 = vmul.f32 %v6554_v26, %v10519_v32 }
 0x1db   :  { %v6558_v29 = vpop.eup %6557  ;;  %v3079_v16 = vmul.f32 %v6556_v11, %v10520_v31 }
 0x1dc   :  { %v6560_v49 = vpop.eup %6559  ;;  %v3078_v32 = vmul.f32 %v6558_v29, %v10521_v23 }
 0x1dd   :  { %v6562_v26 = vpop.eup %6561  ;;  %v3082_v58 = vmul.f32 %v6560_v49, %v10522_v20 }
 0x23d   :  { %v8923_v15 = vpop.f32.mrb[6].mxu1  ;;  %v3002_v60 = vpop.f32.mrb[6].mxu0 }
 0x23e   :  { %v4880_v13 = vmul.f32 -1.442695, %v8923_v15  ;;  %v3085_v2 = vmul.f32 %v3076_v14, %v3002_v60  ;;  %v2051_v43 = vpop.f32.mrb[7].mxu1  ;;  %v8927_v62 = vpop.f32.mrb[7].mxu0 }
 0x23f   :  { %v3084_v36 = vmul.f32 %v3075_v24, %v2051_v43 }
 0x240   :  { %6563 = vpow2.f32 %v4880_v13  ;;  %v8929_v40 = vand.u32 4294901760, %v3085_v2 }
 0x241   :  { %v8932_v56 = vand.u32 4294901760, %v3084_v36  ;;  %v8934_v35 = vpop.f32.mrb[8].mxu1  ;;  %v3009_v30 = vpop.f32.mrb[8].mxu0 }
 0x242   :  { %v8938_v14 = vsub.f32 %v3085_v2, %v8929_v40  ;;  %v4883_v60 = vmul.f32 -1.442695, %v8934_v35  ;;  %v3088_v24 = vmul.f32 %v3079_v16, %v3009_v30  ;;  %v2058_v13 = vpop.f32.mrb[9].mxu1  ;;  %v8941_v43 = vpop.f32.mrb[9].mxu0  ;;  %v3081_v16 = vmul.f32 %v6562_v26, %v10523_v17 }
 0x243   :  { %v8944_v31 = vsub.f32 %v3084_v36, %v8932_v56  ;;  %v3087_v11 = vmul.f32 %v3078_v32, %v2058_v13 }
 0x244   :  { %6565 = vpow2.f32 %v4883_v60  ;;  %v8946_v52 = vand.u32 4294901760, %v3088_v24  ;;  %v9890_v23 = vand.u32 4294901760, %v8938_v14 }
 0x245   :  { %v9893_v29 = vand.u32 4294901760, %v8944_v31  ;;  %v8951_v2 = vand.u32 4294901760, %v3087_v11  ;;  %v8953_v48 = vpop.f32.mrb[10].mxu1  ;;  %v3016_v30 = vpop.f32.mrb[10].mxu0 }
 0x246   :  { %v8957_v36 = vsub.f32 %v3088_v24, %v8946_v52  ;;  %v4886_v32 = vmul.f32 -1.442695, %v8953_v48  ;;  %v3091_v60 = vmul.f32 %v3082_v58, %v3016_v30  ;;  %v2065_v13 = vpop.f32.mrb[11].mxu1  ;;  %v8960_v34 = vpop.f32.mrb[11].mxu0  ;;  %v3243_v20 = vsub.f32 %v8938_v14, %v9890_v23 }
 0x247   :  { %10524 = vst [vmem:[#allocation35_spill] sm:$0xff] %v8951_v2  ;;  %v3249_v49 = vsub.f32 %v8944_v31, %v9893_v29  ;;  %v8969_v45 = vsub.f32 %v3087_v11, %v8951_v2  ;;  %v3090_v17 = vmul.f32 %v3081_v16, %v2065_v13 }
 0x248   :  { %6567 = vpow2.f32 %v4886_v32  ;;  %v8971_v26 = vand.u32 4294901760, %v3091_v60  ;;  %v3244_v24 = vand.u32 4294901760, %v3243_v20  ;;  %v9894_v58 = vand.u32 4294901760, %v8957_v36  ;;  %v10528_v20 = vld [vmem:[#allocation56_spill] sm:$0xff] }
 0x249   :  { %10525 = vst [vmem:[#allocation38_spill] sm:$0xff] %v8969_v45  ;;  %v3250_v30 = vand.u32 4294901760, %v3249_v49  ;;  %v8974_v41 = vand.u32 4294901760, %v3090_v17  ;;  %v9895_v0 = vand.u32 4294901760, %v8969_v45 }
 0x24a   :  { %10526 = vst [vmem:[#allocation94_spill] sm:$0xff] %v8971_v26  ;;  %v6564_v23 = vpop.eup %6563  ;;  %v8978_v5 = vsub.f32 %v3091_v60, %v8971_v26  ;;  %3245 = vmatprep.mubr.f32.mxu1 %v3244_v24  ;;  %v3258_v11 = vsub.f32 %v8957_v36, %v9894_v58  ;;  %v10529_v24 = vld [vmem:[#allocation36_spill] sm:$0xff] }
 0x24b   :  { %10527 = vst [vmem:[#allocation24_spill] sm:$0xff] %v8974_v41  ;;  %v3050_v16 = vadd.f32 1.0, %v6564_v23  ;;  %v8984_v32 = vsub.f32 %v3090_v17, %v8974_v41  ;;  %3251 = vmatmul.mubr.f32.vlgmr.msra.gmra.mrb[12].mxu1 %v3250_v30  ;;  %v3264_v13 = vsub.f32 %v8969_v45, %v9895_v0  ;;  %v10532_v45 = vld [vmem:[#allocation70_spill] sm:$0xff] }
 0x24c   :  { %6104 = vmatpush3.bf16.msra.mxu1 %v10528_v20  ;;  %v3259_v49 = vand.u32 4294901760, %v3258_v11  ;;  %v9902_v60 = vand.u32 4294901760, %v8978_v5  ;;  %v10530_v20 = vld [vmem:[#allocation14_spill] sm:$0xff] }
 0x24d   :  { %6569 = vrcp.f32 %v3050_v16  ;;  %6106 = vmatprep.subr.bf16.mxu1 %v10529_v24  ;;  %v3265_v29 = vand.u32 4294901760, %v3264_v13  ;;  %v9898_v58 = vand.u32 4294901760, %v8984_v32  ;;  %v10531_v24 = vld [vmem:[#allocation15_spill] sm:$0xff] }
 0x24e   :  { %v6566_v23 = vpop.eup %6565  ;;  %3260 = vmatprep.mubr.f32.mxu1 %v3259_v49  ;;  %v3273_v17 = vsub.f32 %v8978_v5, %v9902_v60  ;;  %v10585_v60 = vld [vmem:[#allocation25_spill] sm:$0xff] }
 0x24f   :  { %v3053_v30 = vadd.f32 1.0, %v6566_v23  ;;  %3266 = vmatmul.mubr.f32.gmra.mrb[14].mxu1 %v3265_v29  ;;  %v3279_v11 = vsub.f32 %v8984_v32, %v9898_v58  ;;  %v10533_v29 = vld [vmem:[#allocation77_spill] sm:$0xff] }
 0x250   :  { %6108 = vmatpush3.bf16.msra.mxu1 %v10530_v20  ;;  %v3274_v16 = vand.u32 4294901760, %v3273_v17  ;;  %v10534_v20 = vld [vmem:[#allocation80_spill] sm:$0xff]  ;;  %v10535_v17 = vld [vmem:[#allocation106_spill] sm:$0xff] }
 0x251   :  { %6571 = vrcp.f32 %v3053_v30  ;;  %6110 = vmatprep.subr.bf16.mxu1 %v10531_v24  ;;  %v3280_v13 = vand.u32 4294901760, %v3279_v11 }
 0x252   :  { %v6568_v0 = vpop.eup %6567  ;;  %3275 = vmatprep.mubr.f32.mxu1 %v3274_v16 }
 0x253   :  { %v3056_v49 = vadd.f32 1.0, %v6568_v0  ;;  %3281 = vmatmul.mubr.f32.gmra.mrb[16].mxu1 %v3280_v13 }
 0x254   :  { %6112 = vmatpush3.bf16.msra.mxu1 %v10532_v45  ;;  %3511 = vmatprep.mubr.f32.mxu1 %v8929_v40 }
 0x255   :  { %6573 = vrcp.f32 %v3056_v49  ;;  %6114 = vmatprep.subr.bf16.mxu1 %v10533_v29 }
 0x257   :  { %v6570_v23 = vpop.eup %6569 }
 0x258   :  { %v3077_v58 = vmul.f32 %v6570_v23, %v8923_v15  ;;  %6116 = vmatpush3.bf16.msra.mxu1 %v10534_v20 }
 0x259   :  { %6118 = vmatprep.subr.bf16.mxu1 %v10535_v17  ;;  %v10542_v17 = vpack.c.bf16 %v10413_v37, %v10411_v4 }
 0x25a   :  { %v3086_v30 = vmul.f32 %v3077_v58, %v8927_v62  ;;  %v10538_v58 = vld [vmem:[#allocation72_spill] sm:$0xff] }
 0x25b   :  { %v6572_v11 = vpop.eup %6571 }
 0x25c   :  { %v9008_v16 = vand.u32 4294901760, %v3086_v30  ;;  %v3080_v0 = vmul.f32 %v6572_v11, %v8934_v35  ;;  %6120 = vmatpush3.bf16.msra.mxu1 %v8687_v19  ;;  %v10544_v11 = vpack.c.bf16 %v10419_v53, %v10418_v51 }
 0x25d   :  { %6122 = vmatprep.subr.bf16.mxu1 %v8693_v28 }
 0x25e   :  { %10536 = vst [vmem:[#allocation101_spill] sm:$0xff] %v9008_v16  ;;  %v9014_v45 = vsub.f32 %v3086_v30, %v9008_v16  ;;  %v3089_v15 = vmul.f32 %v3080_v0, %v8941_v43  ;;  %v10546_v0 = vld [vmem:[#allocation74_spill] sm:$0xff] }
 0x25f   :  { %v6574_v24 = vpop.eup %6573 }
 0x260   :  { %v9901_v13 = vand.u32 4294901760, %v9014_v45  ;;  %v9018_v49 = vand.u32 4294901760, %v3089_v15  ;;  %v3083_v62 = vmul.f32 %v6574_v24, %v8953_v48  ;;  %6124 = vmatpush3.bf16.msra.mxu1 %v8712_v25  ;;  %v10549_v24 = vld [vmem:[#allocation86_spill] sm:$0xff] }
 0x261   :  { %6126 = vmatprep.subr.bf16.mxu1 %v10538_v58 }
 0x262   :  { %10537 = vst [vmem:[#allocation104_spill] sm:$0xff] %v9018_v49  ;;  %v4202_v19 = vsub.f32 %v9014_v45, %v9901_v13  ;;  %v9027_v28 = vsub.f32 %v3089_v15, %v9018_v49  ;;  %v3092_v35 = vmul.f32 %v3083_v62, %v8960_v34  ;;  %v10540_v34 = vmov 0.0   ;;  %v10550_v62 = vld [vmem:[#allocation79_spill] sm:$0xff] }
 0x263   :  { %v10547_v15 = vpack.c.bf16 %v10427_v63, %v10546_v0  ;;  %v10551_v58 = vpack.c.bf16 %v10549_v24, %v10550_v62 }
 0x264   :  { %v4203_v43 = vand.u32 4294901760, %v4202_v19  ;;  %v9030_v29 = vand.u32 4294901760, %v3092_v35  ;;  %6128 = vmatpush3.bf16.msra.mxu1 %v8786_v21  ;;  %v9900_v48 = vand.u32 4294901760, %v9027_v28  ;;  %v10541_v21 = vmov 0.0|0.0   ;;  %v10552_v19 = vld [vmem:[#allocation27_spill] sm:$0xff] }
 0x265   :  { %6130 = vmatprep.subr.bf16.mxu1 %v8795_v50 }
 0x266   :  { %10539 = vst [vmem:[#allocation73_spill] sm:$0xff] %v9030_v29  ;;  %v9036_v25 = vsub.f32 %v3092_v35, %v9030_v29  ;;  %5280 = vmatmul.mubr.f32.vlgmr.msra.gmra.mrb[12].mxu0 %v4203_v43  ;;  %v4212_v23 = vsub.f32 %v9027_v28, %v9900_v48  ;;  %v10553_v35 = vld [vmem:[#allocation89_spill] sm:$0xff]  ;;  %v10554_v43 = vld [vmem:[#allocation88_spill] sm:$0xff] }
 0x267   :  { %6287 = vmatpush3.bf16.msra.mxu0 %v8800_v8  ;;  %5282 = vmatprep.mubr.msk.f32.mxu0 %vm6678_vm0, %v10540_v34  ;;  %v10543_v8 = vpack.c.bf16 %v10417_v47, %v10414_v61  ;;  %v10582_v48 = vld [vmem:[#allocation113_spill] sm:$0xff] }
 0x268   :  { %6132 = vmatpush3.bf16.msra.mxu1 %v8814_v7  ;;  %6288 = vmatprep.subr.bf16.mxu0 %v10541_v21  ;;  %v4213_v20 = vand.u32 4294901760, %v4212_v23  ;;  %v9899_v50 = vand.u32 4294901760, %v9036_v25  ;;  %v10555_v23 = vpack.c.bf16 %v10553_v35, %v10554_v43 }
 0x269   :  { %6134 = vmatprep.subr.bf16.mxu1 %v10542_v17 }
 0x26a   :  { %5283 = vmatmul.mubr.f32.gmra.mrb[14].mxu0 %v4213_v20  ;;  %v4222_v30 = vsub.f32 %v9036_v25, %v9899_v50  ;;  %v10557_v20 = vld [vmem:[#allocation22_spill] sm:$0xff]  ;;  %v10581_v50 = vld [vmem:[#allocation115_spill] sm:$0xff] }
 0x26b   :  { %3513 = vmatmul.mubr.f32.vlgmr.msra.gmra.mrb[18].mxu1 %v8932_v56  ;;  %6290 = vmatpush3.bf16.msra.mxu0 %v8833_v6  ;;  %v10545_v6 = vpack.c.bf16 %v10422_v57, %v10421_v9  ;;  %v10583_v13 = vpack.c.bf16 %v10581_v50, %v10582_v48 }
 0x26c   :  { %3518 = vmatprep.mubr.f32.mxu1 %v8946_v52  ;;  %6136 = vmatpush3.bf16.msra.mxu1 %v10543_v8  ;;  %v4223_v7 = vand.u32 4294901760, %v4222_v30  ;;  %v10559_v30 = vld [vmem:[#allocation95_spill] sm:$0xff] }
 0x26d   :  { %5285 = vmatprep.mubr.msk.f32.mxu0 %vm6678_vm0, %v10540_v34  ;;  %6291 = vmatprep.subr.bf16.mxu0 %v10541_v21  ;;  %v10560_v8 = vpack.c.bf16 %v10514_v10, %v10559_v30 }
 0x26e   :  { %6138 = vmatprep.subr.bf16.mxu1 %v10544_v11  ;;  %5286 = vmatmul.mubr.f32.gmra.mrb[16].mxu0 %v4223_v7  ;;  %v10561_v7 = vld [vmem:[#allocation39_spill] sm:$0xff] }
 0x26f   :  { %3520 = vmatmul.mubr.f32.gmra.mrb[20].mxu1 %v8951_v2  ;;  %6293 = vmatpush3.bf16.msra.mxu0 %v8846_v18  ;;  %v10548_v18 = vpack.c.bf16 %v10429_v27, %v10428_v12  ;;  %v10562_v11 = vpack.c.bf16 %v10516_v1, %v10561_v7 }
 0x270   :  { %3525 = vmatprep.mubr.f32.mxu1 %v8971_v26  ;;  %6140 = vmatpush3.bf16.msra.mxu1 %v10545_v6  ;;  %v10563_v6 = vpack.c.bf16 %v8555_v33, %v10517_v46  ;;  %v10592_v26 = vld [vmem:[#allocation50_spill] sm:$0xff] }
 0x271   :  { %6294 = vmatprep.subr.bf16.mxu0 %v10541_v21  ;;  %6142 = vmatprep.subr.bf16.mxu1 %v10547_v15  ;;  %v10565_v15 = vpack.c.bf16 %v8600_v42, %v8595_v44 }
 0x272   :  { %5320 = vmatprep.mubr.msk.f32.mxu0 %vm6678_vm0, %v10540_v34 }
 0x273   :  { %3527 = vmatmul.mubr.f32.gmra.mrb[22].mxu1 %v8974_v41  ;;  %6296 = vmatpush3.bf16.msra.mxu0 %v8854_v38  ;;  %v10556_v38 = vld [vmem:[#allocation93_spill] sm:$0xff] }
 0x274   :  { %6144 = vmatpush3.bf16.msra.mxu1 %v10548_v18  ;;  %3662 = vmatprep.mubr.f32.mxu1 %v8938_v14  ;;  %v10558_v17 = vpack.c.bf16 %v10556_v38, %v10557_v20  ;;  %v10589_v41 = vld [vmem:[#allocation105_spill] sm:$0xff] }
 0x275   :  { %6297 = vmatprep.subr.bf16.mxu0 %v10541_v21  ;;  %6146 = vmatprep.subr.bf16.mxu1 %v10551_v58  ;;  %v10568_v58 = vld [vmem:[#allocation21_spill] sm:$0xff] }
 0x277   :  { %6299 = vmatpush3.bf16.msra.mxu0 %v10552_v19  ;;  %v10569_v19 = vld [vmem:[#allocation87_spill] sm:$0xff] }
 0x278   :  { %6148 = vmatpush3.bf16.msra.mxu1 %v10555_v23  ;;  %6300 = vmatprep.subr.bf16.mxu0 %v10541_v21  ;;  %v10570_v23 = vpack.c.bf16 %v10568_v58, %v10569_v19 }
 0x279   :  { %6150 = vmatprep.subr.bf16.mxu1 %v10558_v17  ;;  %v10572_v17 = vld [vmem:[#allocation91_spill] sm:$0xff] }
 0x27b   :  { %6302 = vmatpush3.bf16.msra.mxu0 %v8881_v59  ;;  %v10564_v59 = vpack.c.bf16 %v8589_v22, %v8584_v55 }
 0x27c   :  { %6152 = vmatpush3.bf16.msra.mxu1 %v10560_v8  ;;  %6303 = vmatprep.subr.bf16.mxu0 %v10541_v21 }
 0x27d   :  { %6154 = vmatprep.subr.bf16.mxu1 %v10562_v11  ;;  %v10574_v11 = vld [vmem:[#allocation23_spill] sm:$0xff] }
 0x27f   :  { %6305 = vmatpush3.bf16.msra.mxu0 %v8888_v39  ;;  %v10566_v39 = vld [vmem:[#allocation84_spill] sm:$0xff] }
 0x280   :  { %6156 = vmatpush3.bf16.msra.mxu1 %v10563_v6  ;;  %6306 = vmatprep.subr.bf16.mxu0 %v10541_v21  ;;  %v10567_v18 = vpack.c.bf16 %v8631_v54, %v10566_v39  ;;  %v10575_v6 = vld [vmem:[#allocation110_spill] sm:$0xff] }
 0x281   :  { %6158 = vmatprep.subr.bf16.mxu1 %v10564_v59  ;;  %v10576_v59 = vld [vmem:[#allocation107_spill] sm:$0xff] }
 0x283   :  { %6308 = vmatpush3.bf16.msra.mxu0 %v8892_v3  ;;  %v10571_v3 = vld [vmem:[#allocation97_spill] sm:$0xff] }
 0x284   :  { %6160 = vmatpush3.bf16.msra.mxu1 %v10565_v15  ;;  %6309 = vmatprep.subr.bf16.mxu0 %v10541_v21  ;;  %v10573_v8 = vpack.c.bf16 %v10571_v3, %v10572_v17  ;;  %v10577_v15 = vpack.c.bf16 %v10575_v6, %v10576_v59 }
 0x285   :  { %6162 = vmatprep.subr.bf16.mxu1 %v10567_v18  ;;  %v10578_v18 = vld [vmem:[#allocation99_spill] sm:$0xff] }
 0x286   :  { %5321 = vmatmul.mubr.f32.vlgmr.msra.gmra.mrb[12].mxu0 %v9008_v16 }
 0x287   :  { %6311 = vmatpush3.bf16.msra.mxu0 %v10570_v23  ;;  %5323 = vmatprep.mubr.msk.f32.mxu0 %vm6678_vm0, %v10540_v34  ;;  %v10579_v23 = vld [vmem:[#allocation100_spill] sm:$0xff] }
 0x288   :  { %6164 = vmatpush3.bf16.msra.mxu1 %v10573_v8  ;;  %6312 = vmatprep.subr.bf16.mxu0 %v10541_v21  ;;  %v10580_v8 = vld [vmem:[#allocation38_spill] sm:$0xff] }
 0x289   :  { %6166 = vmatprep.subr.bf16.mxu1 %v10574_v11 }
 0x28a   :  { %5324 = vmatmul.mubr.f32.gmra.mrb[14].mxu0 %v9018_v49  ;;  %v10587_v49 = vld [vmem:[#allocation37_spill] sm:$0xff] }
 0x28b   :  { %3665 = vmatmul.mubr.f32.vlgmr.msra.gmra.mrb[24].mxu1 %v8944_v31  ;;  %6314 = vmatpush3.bf16.msra.mxu0 %v10577_v15  ;;  %v10584_v15 = vld [vmem:[#allocation103_spill] sm:$0xff] }
 0x28c   :  { %3671 = vmatprep.mubr.f32.mxu1 %v8957_v36  ;;  %6168 = vmatpush3.bf16.msra.mxu1 %v10578_v18  ;;  %v10596_v18 = vld [vmem:[#allocation108_spill] sm:$0xff] }
 0x28d   :  { %5326 = vmatprep.mubr.msk.f32.mxu0 %vm6678_vm0, %v10540_v34  ;;  %6315 = vmatprep.subr.bf16.mxu0 %v10541_v21 }
 0x28e   :  { %5327 = vmatmul.mubr.f32.gmra.mrb[16].mxu0 %v9030_v29  ;;  %6170 = vmatprep.subr.bf16.mxu1 %v10579_v23  ;;  %v10586_v29 = vld [vmem:[#allocation41_spill] sm:$0xff]  ;;  %v10595_v23 = vld [vmem:[#allocation28_spill] sm:$0xff] }
 0x28f   :  { %3674 = vmatmul.mubr.f32.gmra.mrb[26].mxu1 %v10580_v8  ;;  %6317 = vmatpush3.bf16.msra.mxu0 %v10583_v13  ;;  %v10588_v16 = vpack.c.bf16 %v10586_v29, %v10587_v49  ;;  %v10590_v13 = vand.u32 4294901760, %v8938_v14  ;;  %v10598_v29 = vld [vmem:[#allocation55_spill] sm:$0xff]  ;;  %v10600_v14 = vld [vmem:[#allocation109_spill] sm:$0xff]  ;;  %v10603_v49 = vld [vmem:[#allocation58_spill] sm:$0xff] }
 0x290   :  { %3680 = vmatprep.mubr.f32.mxu1 %v8978_v5  ;;  %6172 = vmatpush3.bf16.msra.mxu1 %v10584_v15  ;;  %v10591_v15 = vld [vmem:[#allocation26_spill] sm:$0xff] }
 0x291   :  { %6318 = vmatprep.subr.bf16.mxu0 %v10541_v21  ;;  %6174 = vmatprep.subr.bf16.mxu1 %v10585_v60  ;;  %v10593_v60 = vld [vmem:[#allocation49_spill] sm:$0xff] }
 0x292   :  { %5361 = vmatprep.mubr.msk.f32.mxu0 %vm6678_vm0, %v10540_v34  ;;  %v10594_v2 = vpack.c.bf16 %v10592_v26, %v10593_v60  ;;  %v10608_v60 = vld [vmem:[#allocation60_spill] sm:$0xff] }
 0x293   :  { %3683 = vmatmul.mubr.f32.gmra.mrb[28].mxu1 %v8984_v32  ;;  %6320 = vmatpush3.bf16.msra.mxu0 %v10588_v16  ;;  %v10597_v16 = vld [vmem:[#allocation57_spill] sm:$0xff] }
 0x294   :  { %6176 = vmatpush3.bf16.msra.mxu1 %v10589_v41  ;;  %3787 = vmatprep.mubr.f32.mxu1 %v10590_v13  ;;  %v10599_v41 = vpack.c.bf16 %v10597_v16, %v10598_v29  ;;  %v10601_v13 = vld [vmem:[#allocation116_spill] sm:$0xff] }
 0x295   :  { %6321 = vmatprep.subr.bf16.mxu0 %v10541_v21  ;;  %6178 = vmatprep.subr.bf16.mxu1 %v10591_v15  ;;  %v10602_v15 = vld [vmem:[#allocation59_spill] sm:$0xff] }
 0x296   :  { %v10604_v26 = vpack.c.bf16 %v10602_v15, %v10603_v49 }
 0x297   :  { %6323 = vmatpush3.bf16.msra.mxu0 %v10594_v2  ;;  %v10605_v2 = vld [vmem:[#allocation47_spill] sm:$0xff] }
 0x298   :  { %6180 = vmatpush3.bf16.msra.mxu1 %v10595_v23  ;;  %6324 = vmatprep.subr.bf16.mxu0 %v10541_v21  ;;  %v10606_v23 = vld [vmem:[#allocation43_spill] sm:$0xff] }
 0x299   :  { %6182 = vmatprep.subr.bf16.mxu1 %v10596_v18  ;;  %v10607_v18 = vld [vmem:[#allocation68_spill] sm:$0xff] }
 0x29a   :  { %v10609_v16 = vpack.c.bf16 %v10607_v18, %v10608_v60 }
 0x29b   :  { %6326 = vmatpush3.bf16.msra.mxu0 %v10599_v41  ;;  %v10610_v41 = vld [vmem:[#allocation45_spill] sm:$0xff] }
 0x29c   :  { %6184 = vmatpush3.bf16.msra.mxu1 %v10600_v14  ;;  %6327 = vmatprep.subr.bf16.mxu0 %v10541_v21  ;;  %v10611_v14 = vld [vmem:[#allocation32_spill] sm:$0xff] }
 0x29d   :  { %6186 = vmatprep.subr.bf16.mxu1 %v10601_v13  ;;  %v10612_v13 = vand.u32 4294901760, %v10411_v4  ;;  %v10618_v4 = vand.u32 4294901760, %v10418_v51  ;;  %v10625_v51 = vand.u32 4294901760, %v10546_v0 }
 0x29f   :  { %6329 = vmatpush3.bf16.msra.mxu0 %v10604_v26  ;;  %v10613_v26 = vand.u32 4294901760, %v10413_v37  ;;  %v10619_v37 = vand.u32 4294901760, %v10419_v53  ;;  %v10626_v53 = vand.u32 4294901760, %v10427_v63  ;;  %v10632_v63 = vand.u32 4294901760, %v10550_v62 }
 0x2a0   :  { %6188 = vmatpush3.bf16.msra.mxu1 %v10605_v2  ;;  %6330 = vmatprep.subr.bf16.mxu0 %v10541_v21  ;;  %v10614_v2 = vld [vmem:[#allocation48_spill] sm:$0xff]  ;;  %v10639_v62 = vand.u32 4294901760, %v10556_v38  ;;  %v10646_v38 = vand.u32 4294901760, %v10517_v46  ;;  %v10654_v46 = vand.u32 4294901760, %v8631_v54  ;;  %v10661_v54 = vand.u32 4294901760, %v10576_v59  ;;  %v10669_v59 = vld [vmem:[#allocation35_spill] sm:$0xff] }
 0x2a1   :  { %6190 = vmatprep.subr.bf16.mxu1 %v10606_v23  ;;  %v6197_v15 = vpack.c.bf16 %v10613_v26, %v10612_v13  ;;  %v10615_v23 = vld [vmem:[#allocation51_spill] sm:$0xff]  ;;  %v6201_v13 = vpack.c.bf16 %v10619_v37, %v10618_v4  ;;  %v10620_v26 = vand.u32 4294901760, %v8944_v31  ;;  %v6205_v31 = vpack.c.bf16 %v10626_v53, %v10625_v51 }
 0x2a3   :  { %6332 = vmatpush3.bf16.msra.mxu0 %v10609_v16  ;;  %v10616_v16 = vand.u32 4294901760, %v10414_v61  ;;  %v10624_v61 = vand.u32 4294901760, %v10422_v57  ;;  %v10629_v57 = vand.u32 4294901760, %v8978_v5  ;;  %v10634_v5 = vand.u32 4294901760, %v8984_v32  ;;  %v10640_v32 = vld [vmem:[#allocation18_spill] sm:$0xff] }
 0x2a4   :  { %6192 = vmatpush3.bf16.msra.mxu1 %v10610_v41  ;;  %6333 = vmatprep.subr.bf16.mxu0 %v10541_v21 }
 0x2a5   :  { %6194 = vmatprep.subr.bf16.mxu1 %v10611_v14  ;;  %v10617_v14 = vand.u32 4294901760, %v10417_v47  ;;  %v10623_v47 = vand.u32 4294901760, %v10421_v9  ;;  %v10628_v9 = vld [vmem:[#allocation13_spill] sm:$0xff] }
 0x2a6   :  { %5362 = vmatmul.mubr.f32.vlgmr.msra.gmra.mrb[12].mxu0 %v9014_v45 }
 0x2a7   :  { %6335 = vmatpush3.bf16.msra.mxu0 %v10614_v2  ;;  %5364 = vmatprep.mubr.msk.f32.mxu0 %vm6678_vm0, %v10540_v34  ;;  %v6199_v41 = vpack.c.bf16 %v10617_v14, %v10616_v16  ;;  %v10621_v2 = vld [vmem:[#allocation54_spill] sm:$0xff]  ;;  %v10631_v14 = vand.u32 4294901760, %v10429_v27  ;;  %v10635_v16 = vld [vmem:[#allocation63_spill] sm:$0xff]  ;;  %v10636_v27 = vand.u32 4294901760, %v10554_v43  ;;  %v10642_v43 = vand.u32 4294901760, %v10514_v10 }
 0x2a8   :  { %6196 = vmatpush3.bf16.msra.mxu1 %v10615_v23  ;;  %6336 = vmatprep.subr.bf16.mxu0 %v10541_v21  ;;  %v10622_v23 = vand.u32 4294901760, %v8957_v36  ;;  %v10627_v36 = vand.u32 4294901760, %v10580_v8  ;;  %v10648_v10 = vand.u32 4294901760, %v8584_v55  ;;  %v10655_v55 = vld [vmem:[#allocation33_spill] sm:$0xff] }
 0x2a9   :  { %6198 = vmatprep.subr.bf16.mxu1 %v6197_v15  ;;  %v6203_v15 = vpack.c.bf16 %v10624_v61, %v10623_v47  ;;  %v10644_v47 = vand.u32 4294901760, %v10516_v1  ;;  %v10651_v1 = vand.u32 4294901760, %v8595_v44  ;;  %v10658_v44 = vand.u32 4294901760, %v10572_v17 }
 0x2aa   :  { %5365 = vmatmul.mubr.f32.gmra.mrb[14].mxu0 %v9027_v28  ;;  %v10665_v17 = vand.u32 4294901760, %v10581_v50 }
 0x2ab   :  { %3791 = vmatmul.mubr.f32.vlgmr.msra.gmra.mrb[30].mxu1 %v10620_v26  ;;  %6338 = vmatpush3.bf16.msra.mxu0 %v10621_v2 }
 0x2ac   :  { %3798 = vmatprep.mubr.f32.mxu1 %v10622_v23  ;;  %6200 = vmatpush3.bf16.msra.mxu1 %v6199_v41  ;;  %v10630_v23 = vand.u32 4294901760, %v10428_v12  ;;  %v10633_v41 = vand.u32 4294901760, %v10549_v24  ;;  %v10637_v12 = vand.u32 4294901760, %v10553_v35  ;;  %v10638_v24 = vand.u32 4294901760, %v10557_v20  ;;  %v10645_v20 = vld [vmem:[#allocation20_spill] sm:$0xff] }
 0x2ad   :  { %5367 = vmatprep.mubr.msk.f32.mxu0 %vm6678_vm0, %v10540_v34  ;;  %6339 = vmatprep.subr.bf16.mxu0 %v10541_v21  ;;  %v10643_v35 = vand.u32 4294901760, %v10561_v7  ;;  %v10650_v7 = vld [vmem:[#allocation29_spill] sm:$0xff] }
 0x2ae   :  { %5368 = vmatmul.mubr.f32.gmra.mrb[16].mxu0 %v9036_v25  ;;  %6202 = vmatprep.subr.bf16.mxu1 %v6201_v13  ;;  %v6207_v0 = vpack.c.bf16 %v10631_v14, %v10630_v23  ;;  %v6209_v8 = vpack.c.bf16 %v10633_v41, %v10632_v63  ;;  %v6211_v4 = vpack.c.bf16 %v10637_v12, %v10636_v27  ;;  %v10641_v13 = vand.u32 4294901760, %v10559_v30  ;;  %v10672_v41 = vld [vmem:[#allocation41_spill] sm:$0xff]  ;;  %v10674_v27 = vld [vmem:[#allocation94_spill] sm:$0xff]  ;;  %v10675_v12 = vld [vmem:[#allocation103_spill] sm:$0xff] }
 0x2af   :  { %3802 = vmatmul.mubr.f32.gmra.mrb[32].mxu1 %v10627_v36  ;;  %6341 = vmatpush3.bf16.msra.mxu0 %v10628_v9  ;;  %v6213_v37 = vpack.c.bf16 %v10639_v62, %v10638_v24  ;;  %v6217_v61 = vpack.c.bf16 %v10644_v47, %v10643_v35  ;;  %v10649_v30 = vand.u32 4294901760, %v8589_v22  ;;  %v10656_v22 = vand.u32 4294901760, %v10569_v19  ;;  %v10678_v24 = vld [vmem:[#allocation49_spill] sm:$0xff]  ;;  %v10683_v35 = vld [vmem:[#allocation26_spill] sm:$0xff] }
 0x2b0   :  { %3809 = vmatprep.mubr.f32.mxu1 %v10629_v57  ;;  %6204 = vmatpush3.bf16.msra.mxu1 %v6203_v15  ;;  %v6215_v26 = vpack.c.bf16 %v10642_v43, %v10641_v13  ;;  %v10647_v15 = vand.u32 4294901760, %v8555_v33  ;;  %v10653_v33 = vand.u32 4294901760, %v10566_v39  ;;  %v10657_v23 = vand.u32 4294901760, %v10568_v58 }
 0x2b1   :  { %6342 = vmatprep.subr.bf16.mxu0 %v10541_v21  ;;  %6206 = vmatprep.subr.bf16.mxu1 %v6205_v31  ;;  %v6221_v53 = vpack.c.bf16 %v10649_v30, %v10648_v10  ;;  %v10652_v31 = vand.u32 4294901760, %v8600_v42  ;;  %v10659_v42 = vand.u32 4294901760, %v10571_v3  ;;  %v10660_v39 = vand.u32 4294901760, %v9014_v45  ;;  %v10688_v10 = vld [vmem:[#allocation108_spill] sm:$0xff] }
 0x2b2   :  { %5402 = vmatprep.mubr.msk.f32.mxu0 %vm6678_vm0, %v10540_v34  ;;  %v6219_v51 = vpack.c.bf16 %v10647_v15, %v10646_v38  ;;  %v6225_v57 = vpack.c.bf16 %v10654_v46, %v10653_v33  ;;  %v6358_v14 = vpack.c.bf16 %v10657_v23, %v10656_v22  ;;  %v10662_v58 = vand.u32 4294901760, %v10575_v6  ;;  %v10666_v6 = vld [vmem:[#allocation99_spill] sm:$0xff]  ;;  %v10698_v22 = vld [vmem:[#allocation45_spill] sm:$0xff]  ;;  %v10699_v23 = vld [vmem:[#allocation32_spill] sm:$0xff] }
 0x2b3   :  { %3813 = vmatmul.mubr.f32.gmra.mrb[34].mxu1 %v10634_v5  ;;  %6344 = vmatpush3.bf16.msra.mxu0 %v10635_v16  ;;  %v6223_v36 = vpack.c.bf16 %v10652_v31, %v10651_v1  ;;  %v10663_v3 = vand.u32 4294901760, %v9027_v28  ;;  %v10664_v45 = vand.u32 4294901760, %v10582_v48  ;;  %v10667_v28 = vand.u32 4294901760, %v9036_v25  ;;  %v10670_v48 = vld [vmem:[#allocation37_spill] sm:$0xff]  ;;  %v10677_v25 = vld [vmem:[#allocation24_spill] sm:$0xff] }
 0x2b4   :  { %6208 = vmatpush3.bf16.msra.mxu1 %v6207_v0  ;;  %3979 = vmatprep.mubr.f32.mxu1 %v8929_v40  ;;  %v6227_v0 = vpack.c.bf16 %v10659_v42, %v10658_v44  ;;  %v6361_v19 = vpack.c.bf16 %v10662_v58, %v10661_v54  ;;  %v10671_v50 = vand.u32 4294901760, %v10670_v48  ;;  %v10679_v62 = vand.u32 4294901760, %v10678_v24  ;;  %v10692_v31 = vld [vmem:[#allocation109_spill] sm:$0xff]  ;;  %v10701_v44 = vld [vmem:[#allocation48_spill] sm:$0xff] }
 0x2b5   :  { %6345 = vmatprep.subr.bf16.mxu0 %v10541_v21  ;;  %6210 = vmatprep.subr.bf16.mxu1 %v6209_v8  ;;  %v6364_v63 = vpack.c.bf16 %v10665_v17, %v10664_v45  ;;  %v10673_v8 = vand.u32 4294901760, %v10672_v41  ;;  %v10684_v47 = vand.u32 4294901760, %v10598_v29  ;;  %v10689_v30 = vand.u32 4294901760, %v10603_v49  ;;  %v10693_v29 = vld [vmem:[#allocation116_spill] sm:$0xff]  ;;  %v10697_v49 = vld [vmem:[#allocation43_spill] sm:$0xff]  ;;  %v10704_v42 = vld [vmem:[#allocation73_spill] sm:$0xff] }
 0x2b6   :  { %v10695_v33 = vand.u32 4294901760, %v10607_v18  ;;  %v10703_v18 = vld [vmem:[#allocation104_spill] sm:$0xff] }
 0x2b7   :  { %6347 = vmatpush3.bf16.msra.mxu0 %v10640_v32  ;;  %v6367_v5 = vpack.c.bf16 %v10673_v8, %v10671_v50 }
 0x2b8   :  { %6212 = vmatpush3.bf16.msra.mxu1 %v6211_v4  ;;  %6348 = vmatprep.subr.bf16.mxu0 %v10541_v21  ;;  %v10676_v4 = vld [vmem:[#allocation25_spill] sm:$0xff] }
 0x2b9   :  { %6214 = vmatprep.subr.bf16.mxu1 %v6213_v37  ;;  %v10680_v37 = vld [vmem:[#allocation50_spill] sm:$0xff] }
 0x2ba   :  { %v10681_v13 = vand.u32 4294901760, %v10680_v37 }
 0x2bb   :  { %6350 = vmatpush3.bf16.msra.mxu0 %v10645_v20 }
 0x2bc   :  { %6216 = vmatpush3.bf16.msra.mxu1 %v6215_v26  ;;  %6351 = vmatprep.subr.bf16.mxu0 %v10541_v21  ;;  %v6370_v43 = vpack.c.bf16 %v10681_v13, %v10679_v62  ;;  %v10682_v26 = vld [vmem:[#allocation105_spill] sm:$0xff] }
 0x2bd   :  { %6218 = vmatprep.subr.bf16.mxu1 %v6217_v61  ;;  %v10685_v61 = vld [vmem:[#allocation57_spill] sm:$0xff] }
 0x2be   :  { %v10686_v38 = vand.u32 4294901760, %v10685_v61 }
 0x2bf   :  { %6353 = vmatpush3.bf16.msra.mxu0 %v10650_v7 }
 0x2c0   :  { %6220 = vmatpush3.bf16.msra.mxu1 %v6219_v51  ;;  %6354 = vmatprep.subr.bf16.mxu0 %v10541_v21  ;;  %v6373_v15 = vpack.c.bf16 %v10686_v38, %v10684_v47  ;;  %v10687_v51 = vld [vmem:[#allocation28_spill] sm:$0xff] }
 0x2c1   :  { %6222 = vmatprep.subr.bf16.mxu1 %v6221_v53 }
 0x2c3   :  { %6356 = vmatpush3.bf16.msra.mxu0 %v10655_v55 }
 0x2c4   :  { %6224 = vmatpush3.bf16.msra.mxu1 %v6223_v36  ;;  %6357 = vmatprep.subr.bf16.mxu0 %v10541_v21  ;;  %v10694_v36 = vand.u32 4294901760, %v10608_v60  ;;  %v10702_v60 = vld [vmem:[#allocation51_spill] sm:$0xff] }
 0x2c5   :  { %6226 = vmatprep.subr.bf16.mxu1 %v6225_v57  ;;  %v10696_v57 = vld [vmem:[#allocation47_spill] sm:$0xff] }
 0x2c6   :  { %5403 = vmatmul.mubr.f32.vlgmr.msra.gmra.mrb[12].mxu0 %v10660_v39  ;;  %v6379_v46 = vpack.c.bf16 %v10695_v33, %v10694_v36 }
 0x2c7   :  { %6359 = vmatpush3.bf16.msra.mxu0 %v6358_v14  ;;  %5405 = vmatprep.mubr.msk.f32.mxu0 %vm6678_vm0, %v10540_v34  ;;  %v10700_v14 = vld [vmem:[#allocation101_spill] sm:$0xff] }
 0x2c8   :  { %6228 = vmatpush3.bf16.msra.mxu1 %v6227_v0  ;;  %6360 = vmatprep.subr.bf16.mxu0 %v10541_v21 }
 0x2c9   :  { %6230 = vmatprep.subr.bf16.mxu1 %v10574_v11  ;;  %v10668_v11 = vld [vmem:[#allocation100_spill] sm:$0xff] }
 0x2ca   :  { %5406 = vmatmul.mubr.f32.gmra.mrb[14].mxu0 %v10663_v3 }
 0x2cb   :  { %3981 = vmatmul.mubr.f32.vlgmr.msra.gmra.mrb[36].mxu1 %v8932_v56  ;;  %6362 = vmatpush3.bf16.msra.mxu0 %v6361_v19 }
 0x2cc   :  { %3986 = vmatprep.mubr.f32.mxu1 %v8946_v52  ;;  %6232 = vmatpush3.bf16.msra.mxu1 %v10666_v6 }
 0x2cd   :  { %5408 = vmatprep.mubr.msk.f32.mxu0 %vm6678_vm0, %v10540_v34  ;;  %6363 = vmatprep.subr.bf16.mxu0 %v10541_v21 }
 0x2ce   :  { %5409 = vmatmul.mubr.f32.gmra.mrb[16].mxu0 %v10667_v28  ;;  %6234 = vmatprep.subr.bf16.mxu1 %v10668_v11 }
 0x2cf   :  { %3988 = vmatmul.mubr.f32.gmra.mrb[38].mxu1 %v10669_v59  ;;  %6365 = vmatpush3.bf16.msra.mxu0 %v6364_v63 }
 0x2d0   :  { %3993 = vmatprep.mubr.f32.mxu1 %v10674_v27  ;;  %6236 = vmatpush3.bf16.msra.mxu1 %v10675_v12 }
 0x2d1   :  { %6366 = vmatprep.subr.bf16.mxu0 %v10541_v21  ;;  %6238 = vmatprep.subr.bf16.mxu1 %v10676_v4 }
 0x2d2   :  { %5443 = vmatprep.mubr.msk.f32.mxu0 %vm6678_vm0, %v10540_v34 }
 0x2d3   :  { %3995 = vmatmul.mubr.f32.gmra.mrb[40].mxu1 %v10677_v25  ;;  %6368 = vmatpush3.bf16.msra.mxu0 %v6367_v5 }
 0x2d4   :  { %6240 = vmatpush3.bf16.msra.mxu1 %v10682_v26  ;;  %4097 = vmatprep.mubr.f32.mxu1 %v8929_v40  ;;  %v10690_v40 = vld [vmem:[#allocation59_spill] sm:$0xff] }
 0x2d5   :  { %6369 = vmatprep.subr.bf16.mxu0 %v10541_v21  ;;  %6242 = vmatprep.subr.bf16.mxu1 %v10683_v35  ;;  %v10691_v53 = vand.u32 4294901760, %v10690_v40 }
 0x2d7   :  { %6371 = vmatpush3.bf16.msra.mxu0 %v6370_v43  ;;  %v6376_v1 = vpack.c.bf16 %v10691_v53, %v10689_v30 }
 0x2d8   :  { %6244 = vmatpush3.bf16.msra.mxu1 %v10687_v51  ;;  %6372 = vmatprep.subr.bf16.mxu0 %v10541_v21 }
 0x2d9   :  { %6246 = vmatprep.subr.bf16.mxu1 %v10688_v10 }
 0x2db   :  { %6374 = vmatpush3.bf16.msra.mxu0 %v6373_v15 }
 0x2dc   :  { %6248 = vmatpush3.bf16.msra.mxu1 %v10692_v31  ;;  %6375 = vmatprep.subr.bf16.mxu0 %v10541_v21 }
 0x2dd   :  { %6250 = vmatprep.subr.bf16.mxu1 %v10693_v29 }
 0x2df   :  { %6377 = vmatpush3.bf16.msra.mxu0 %v6376_v1 }
 0x2e0   :  { %6252 = vmatpush3.bf16.msra.mxu1 %v10696_v57  ;;  %6378 = vmatprep.subr.bf16.mxu0 %v10541_v21 }
 0x2e1   :  { %6254 = vmatprep.subr.bf16.mxu1 %v10697_v49 }
 0x2e3   :  { %6380 = vmatpush3.bf16.msra.mxu0 %v6379_v46 }
 0x2e4   :  { %6256 = vmatpush3.bf16.msra.mxu1 %v10698_v22  ;;  %6381 = vmatprep.subr.bf16.mxu0 %v10541_v21 }
 0x2e5   :  { %6258 = vmatprep.subr.bf16.mxu1 %v10699_v23 }
 0x2e6   :  { %5444 = vmatmul.mubr.f32.vlgmr.msra.gmra.mrb[12].mxu0 %v10700_v14 }
 0x2e7   :  { %6383 = vmatpush3.bf16.msra.mxu0 %v10701_v44  ;;  %5446 = vmatprep.mubr.msk.f32.mxu0 %vm6678_vm0, %v10540_v34 }
 0x2e8   :  { %6260 = vmatpush3.bf16.msra.mxu1 %v10702_v60  ;;  %6384 = vmatprep.subr.bf16.mxu0 %v10541_v21 }
 0x2ea   :  { %5447 = vmatmul.mubr.f32.gmra.mrb[14].mxu0 %v10703_v18 }
 0x2eb   :  { %4099 = vmatmul.mubr.f32.vlgmr.msra.gmra.mrb[42].mxu1 %v8932_v56  ;;  %6386 = vmatpush3.bf16.msra.mxu0 %v10621_v2 }
 0x2ec   :  { %4104 = vmatprep.mubr.f32.mxu1 %v8946_v52  ;;  %5449 = vmatprep.mubr.msk.f32.mxu0 %vm6678_vm0, %v10540_v34 }
 0x2ed   :  { %6387 = vmatprep.subr.bf16.mxu0 %v10541_v21 }
 0x2ee   :  { %5450 = vmatmul.mubr.f32.gmra.mrb[16].mxu0 %v10704_v42 }
 0x2ef   :  { %4106 = vmatmul.mubr.f32.gmra.mrb[44].mxu1 %v10669_v59  ;;  %6389 = vmatpush3.bf16.msra.mxu0 %v10628_v9 }
 0x2f0   :  { %4111 = vmatprep.mubr.f32.mxu1 %v10674_v27  ;;  %6390 = vmatprep.subr.bf16.mxu0 %v10541_v21 }
 0x2f1   :  { %5484 = vmatprep.mubr.msk.f32.mxu0 %vm6678_vm0, %v10540_v34 }
 0x2f3   :  { %4113 = vmatmul.mubr.f32.gmra.mrb[46].mxu1 %v10677_v25  ;;  %6392 = vmatpush3.bf16.msra.mxu0 %v10635_v16 }
 0x2f4   :  { %6393 = vmatprep.subr.bf16.mxu0 %v10541_v21 }
 0x2f7   :  { %6395 = vmatpush3.bf16.msra.mxu0 %v10640_v32 }
 0x2f8   :  { %6396 = vmatprep.subr.bf16.mxu0 %v10541_v21 }
 0x2fb   :  { %6398 = vmatpush3.bf16.msra.mxu0 %v10645_v20 }
 0x2fc   :  { %6399 = vmatprep.subr.bf16.mxu0 %v10541_v21 }
 0x2ff   :  { %6401 = vmatpush3.bf16.msra.mxu0 %v10650_v7 }
 0x300   :  { %6402 = vmatprep.subr.bf16.mxu0 %v10541_v21 }
 0x303   :  { %6404 = vmatpush3.bf16.msra.mxu0 %v10655_v55 }
 0x306   :  { %5485 = vmatmul.mubr.f32.vlgmr.msra.gmra.mrb[12].mxu0 %v10700_v14 }
 0x307   :  { %5487 = vmatprep.mubr.msk.f32.mxu0 %vm6678_vm0, %v10540_v34 }
 0x30a   :  { %5488 = vmatmul.mubr.f32.gmra.mrb[14].mxu0 %v10703_v18 }
 0x30b   :  { %5490 = vmatprep.mubr.msk.f32.mxu0 %vm6678_vm0, %v10540_v34 }
 0x30e   :  { %5491 = vmatmul.mubr.f32.gmra.mrb[16].mxu0 %v10704_v42 }
 0x31e   :  { %v4919_v52 = vpop.f32.mrb[12].mxu1 }
 0x31f   :  { %v4920_v56 = vpop.f32.mrb[13].mxu1 }
 0x320   :  { %v4921_v2 = vadd.f32 %v4920_v56, %v4919_v52 }
 0x322   :  { %v4922_v9 = vpop.f32.mrb[14].mxu1 }
 0x323   :  { %v4923_v16 = vpop.f32.mrb[15].mxu1 }
 0x324   :  { %v4924_v21 = vadd.f32 %v4923_v16, %v4922_v9 }
 0x326   :  { %v4925_v32 = vpop.f32.mrb[16].mxu1 }
 0x327   :  { %v4926_v20 = vpop.f32.mrb[17].mxu1 }
 0x328   :  { %v4927_v7 = vadd.f32 %v4926_v20, %v4925_v32 }
 0x33e   :  { %v4960_v55 = vpop.f32.mrb[18].mxu1 }
 0x33f   :  { %v4961_v0 = vpop.f32.mrb[19].mxu1 }
 0x340   :  { %v4962_v39 = vadd.f32 %v4961_v0, %v4960_v55 }
 0x342   :  { %v3515_v54 = vadd.f32 %v4962_v39, %v4921_v2  ;;  %v4963_v58 = vpop.f32.mrb[20].mxu1 }
 0x343   :  { %v4964_v19 = vpop.f32.mrb[21].mxu1 }
 0x344   :  { %v4965_v3 = vadd.f32 %v4964_v19, %v4963_v58 }
 0x346   :  { %v3522_v45 = vadd.f32 %v4965_v3, %v4924_v21  ;;  %v4966_v34 = vpop.f32.mrb[22].mxu1 }
 0x347   :  { %v4967_v17 = vpop.f32.mrb[23].mxu1 }
 0x348   :  { %v4968_v63 = vadd.f32 %v4967_v17, %v4966_v34 }
 0x34a   :  { %v3529_v6 = vadd.f32 %v4968_v63, %v4927_v7 }
 0x35e   :  { %v5001_v28 = vpop.f32.mrb[24].mxu1 }
 0x35f   :  { %v5002_v11 = vpop.f32.mrb[25].mxu1 }
 0x360   :  { %v5003_v59 = vadd.f32 %v5002_v11, %v5001_v28 }
 0x362   :  { %v3667_v48 = vadd.f32 %v5003_v59, %v3515_v54  ;;  %v5004_v50 = vpop.f32.mrb[26].mxu1 }
 0x363   :  { %v5005_v41 = vpop.f32.mrb[27].mxu1 }
 0x364   :  { %v5006_v8 = vadd.f32 %v5005_v41, %v5004_v50 }
 0x366   :  { %v3676_v5 = vadd.f32 %v5006_v8, %v3522_v45  ;;  %v5007_v27 = vpop.f32.mrb[28].mxu1 }
 0x367   :  { %v5008_v12 = vpop.f32.mrb[29].mxu1 }
 0x368   :  { %v5009_v4 = vadd.f32 %v5008_v12, %v5007_v27 }
 0x36a   :  { %v3685_v25 = vadd.f32 %v5009_v4, %v3529_v6 }
 0x37e   :  { %v5042_v24 = vpop.f32.mrb[30].mxu1 }
 0x37f   :  { %v5043_v62 = vpop.f32.mrb[31].mxu1 }
 0x380   :  { %v5044_v37 = vadd.f32 %v5043_v62, %v5042_v24 }
 0x382   :  { %v3793_v13 = vadd.f32 %v5044_v37, %v3667_v48  ;;  %v5045_v43 = vpop.f32.mrb[32].mxu1 }
 0x383   :  { %v5046_v26 = vpop.f32.mrb[33].mxu1 }
 0x384   :  { %v5047_v35 = vadd.f32 %v5046_v26, %v5045_v43 }
 0x386   :  { %v3804_v47 = vadd.f32 %v5047_v35, %v3676_v5  ;;  %v5048_v61 = vpop.f32.mrb[34].mxu1 }
 0x387   :  { %v5049_v38 = vpop.f32.mrb[35].mxu1 }
 0x388   :  { %v5050_v15 = vadd.f32 %v5049_v38, %v5048_v61 }
 0x38a   :  { %v3815_v51 = vadd.f32 %v5050_v15, %v3685_v25 }
 0x39e   :  { %v5083_v10 = vpop.f32.mrb[36].mxu1 }
 0x39f   :  { %v5084_v30 = vpop.f32.mrb[37].mxu1 }
 0x3a0   :  { %v5085_v40 = vadd.f32 %v5084_v30, %v5083_v10 }
 0x3a2   :  { %v3983_v53 = vadd.f32 %v5085_v40, %v3793_v13  ;;  %v5086_v1 = vpop.f32.mrb[38].mxu1 }
 0x3a3   :  { %v5087_v31 = vpop.f32.mrb[39].mxu1 }
 0x3a4   :  { %v5088_v29 = vadd.f32 %v5087_v31, %v5086_v1 }
 0x3a6   :  { %v3990_v36 = vadd.f32 %v5088_v29, %v3804_v47  ;;  %v5089_v33 = vpop.f32.mrb[40].mxu1 }
 0x3a7   :  { %v5090_v46 = vpop.f32.mrb[41].mxu1 }
 0x3a8   :  { %v5091_v57 = vadd.f32 %v5090_v46, %v5089_v33 }
 0x3aa   :  { %v3997_v49 = vadd.f32 %v5091_v57, %v3815_v51 }
 0x3be   :  { %v5124_v22 = vpop.f32.mrb[42].mxu1 }
 0x3bf   :  { %v5125_v23 = vpop.f32.mrb[43].mxu1 }
 0x3c0   :  { %v5126_v14 = vadd.f32 %v5125_v23, %v5124_v22 }
 0x3c2   :  { %v5127_v44 = vpop.f32.mrb[44].mxu1  ;;  %v4101_v60 = vadd.f32 %v5126_v14, %v3983_v53 }
 0x3c3   :  { %v5128_v18 = vpop.f32.mrb[45].mxu1 }
 0x3c4   :  { %v5129_v42 = vadd.f32 %v5128_v18, %v5127_v44 }
 0x3c6   :  { %v5130_v52 = vpop.f32.mrb[46].mxu1  ;;  %v4108_v56 = vadd.f32 %v5129_v42, %v3990_v36 }
 0x3c7   :  { %v5131_v2 = vpop.f32.mrb[47].mxu1 }
 0x3c8   :  { %v5132_v9 = vadd.f32 %v5131_v2, %v5130_v52 }
 0x3ca   :  { %v4115_v16 = vadd.f32 %v5132_v9, %v3997_v49 }
 0x3d9   :  { %v4829_v21 = vpop.f32.mrb[12].mxu0 }
 0x3da   :  { %v6411_v32 = vadd.f32 %v4829_v21, %v4101_v60  ;;  %v5486_v20 = vpop.f32.mrb[13].mxu0 }
 0x3dc   :  { %4857 = vst [vmem:[#allocation9] sm:$0xff] %v6411_v32 }
 0x3dd   :  { %v4835_v7 = vpop.f32.mrb[14].mxu0 }
 0x3de   :  { %v6412_v55 = vadd.f32 %v4835_v7, %v4108_v56  ;;  %v5489_v0 = vpop.f32.mrb[15].mxu0 }
 0x3e0   :  { %4858 = vst [vmem:[#allocation9 + $0x8] sm:$0xff] %v6412_v55 }
 0x3e1   :  { %v4841_v39 = vpop.f32.mrb[16].mxu0 }
 0x3e2   :  { %v6413_v54 = vadd.f32 %v4841_v39, %v4115_v16  ;;  %v5492_v58 = vpop.f32.mrb[17].mxu0 }
 0x3e4   :  { %4859 = vst [vmem:[#allocation9 + $0x10] sm:$0xff] %v6413_v54 }
 0x3e5   :  { %6652 = shalt.err (!%p6649_p0)
}
 0x3e6   :  { %s6653_s27 = scalar_lea.hbm %s9414_s3, 384 }
 0x3e7   :  { %p6654_p1 = scmp.ne.s32.totalorder %s9414_s3, %s6653_s27  ;;  %p6657_p2 = scmp.lt.u32.totalorder %s6653_s27, %s9414_s3 }
 0x3e9   :  { %p6659_p3 = pnand %p6657_p2, %p6654_p1 }
 0x3eb   :  { %6662 = shalt.err (!%p6659_p3)
}
 0x3ec   :  { %4871 = dma.vmem_to_hbm [thread:$0]  %s4866_s23, 384, %s9414_s3, [#allocation5], %s6673_s1, %s6673_s1, %s6674_s9  }
 0x3ed   :  { %6667 = dma.done.wait [#allocation5], 384  }
 0x3ee   :  { %6668 = vsyncadd [#allocation5], 4294966912 }
 0x3ef   :  { %4875 = vsyncpa [#allocation4], 1 }
 0x3f0   :  { %4876 = vsyncpa [#allocation7], 1 }
 0x3f1   :  { %4877 = vsyncpa [#allocation5], 1 }

</bundles_post_ra>
